<compile_context>
chip_gen: v6e
topology: v6e:2x2x1
jax: 0.10.0
libtpu: 0.0.40
codegen_flags: <defaults>
</compile_context>

<pallas_src>
import numpy as np
from functools import partial

import jax
import jax.numpy as jnp
from jax.experimental import pallas as pl
from jax.experimental.pallas import tpu as pltpu

HIDDEN = 128
NUM_CLASSES = 20
NUM_BBOXES = 2
IN_DIM = 576
OUT_DIM = 5 * NUM_BBOXES + NUM_CLASSES      # 30
OUT_PAD = 128                               # lane-dense padded conv5 output width
DROP_P = 0.3
NEG_SLOPE = 0.2
BN_EPS = 1e-5
HP = WP = 7                                 # activation map size (H', W')


# ----------------------------------------------------------------------------
# Fused prediction-network Pallas kernel
# ----------------------------------------------------------------------------
def _prednet_kernel(x_ref, w1_ref, b1_ref, w234_ref, bnp_ref, w5_ref, b5_ref,
                    drop_ref, tapm_ref, o_ref, *, m_valid, m_pad, tap_offsets):
    f32 = jnp.float32
    bf16 = jnp.bfloat16

    # ---- conv1 (1x1) + bias, inverted dropout (precomputed mask), LeakyReLU --
    y = jnp.dot(x_ref[...], w1_ref[...], preferred_element_type=f32) + b1_ref[...]
    y = y * drop_ref[...]
    y = jnp.where(y >= 0.0, y, NEG_SLOPE * y)

    # valid-row mask for BatchNorm statistics (padded rows excluded)
    row_ids = jax.lax.broadcasted_iota(jnp.int32, (m_pad, 1), 0)
    row_mask = (row_ids < m_valid).astype(f32)
    inv_m = np.float32(1.0 / m_valid)

    bnp = bnp_ref[...]          # (9,128): per-layer [bias, gamma, beta] rows
    tapm = tapm_ref[...]        # (m_pad, 9): 0/1 border/batch/pad validity per tap

    # ---- conv2/3/4: 3x3 conv as ONE K=1152 matmul per layer + LeakyReLU + BN --
    # Spatial shifts are sublane rolls (jnp.roll -> slice+concat, off the MXU;
    # works under interpret mode too, unlike pltpu.roll) with a per-tap mask so
    # circular wraps never leak across image borders / batch boundary / padding.
    for layer in range(3):
        pieces = []
        for t, d in enumerate(tap_offsets):
            shifted = y if d == 0 else jnp.roll(y, shift=-d, axis=0)
            pieces.append((shifted * tapm[:, t:t + 1]).astype(bf16))
        slab = jnp.concatenate(pieces, axis=1)                 # (m_pad, 9*HIDDEN)
        z = jnp.dot(slab, w234_ref[layer], preferred_element_type=f32)
        z = z + bnp[3 * layer + 0:3 * layer + 1, :]            # conv bias
        z = jnp.where(z >= 0.0, z, NEG_SLOPE * z)              # LeakyReLU(0.2)

        # train-mode BatchNorm (biased var) over the m_valid real rows, fused:
        # one masked pass for sum / sum-of-squares, gamma/beta folded in.
        zm = z * row_mask
        mean = jnp.sum(zm, axis=0, keepdims=True) * inv_m
        meansq = jnp.sum(zm * z, axis=0, keepdims=True) * inv_m
        var = jnp.maximum(meansq - mean * mean, 0.0)
        scale = bnp[3 * layer + 1:3 * layer + 2, :] * jax.lax.rsqrt(var + BN_EPS)
        shift = bnp[3 * layer + 2:3 * layer + 3, :] - mean * scale
        y = z * scale + shift

    # ---- conv5 (1x1) + bias, lane-dense padded output -------------------------
    o_ref[...] = jnp.dot(y.astype(bf16), w5_ref[...],
                         preferred_element_type=f32) + b5_ref[...]


def fused_prediction_net(x_pad, w1, b1, w234, bnp, w5p, b5p, dropmask, tapmask,
                         m_valid, m_pad, tap_offsets):
    kern = partial(_prednet_kernel, m_valid=m_valid, m_pad=m_pad,
                   tap_offsets=tap_offsets)
    args = (x_pad, w1, b1, w234, bnp, w5p, b5p, dropmask, tapmask)

    def whole(a):
        nd = a.ndim
        return pl.BlockSpec(a.shape, lambda i, nd=nd: (0,) * nd)

    # grid=(1,): single fused latency-bound step (everything fits in <2 MiB VMEM).
    # For large batches (M >= 2*128) add a parallel 128-row M axis instead and
    # handle cross-block BN stats with a shared scratch (v7x has 2 TCs).
    return pl.pallas_call(
        kern,
        out_shape=jax.ShapeDtypeStruct((m_pad, OUT_PAD), jnp.float32),
        grid=(1,),
        in_specs=[whole(a) for a in args],
        out_specs=pl.BlockSpec((m_pad, OUT_PAD), lambda i: (0, 0)),
        compiler_params=pltpu.CompilerParams(
            dimension_semantics=("arbitrary",),
            vmem_limit_bytes=8 * 1024 * 1024),
    )(*args)


# ----------------------------------------------------------------------------
# JAX glue reproducing the reference module semantics
# ----------------------------------------------------------------------------
def _build_tap_masks(B, H, W, m_pad):
    """mask[m, t] = 1 iff output row m has a valid neighbour for 3x3 tap t (pad=1)."""
    mask = np.zeros((m_pad, 9), dtype=np.float32)
    t = 0
    for kh in range(3):
        for kw in range(3):
            dh, dw = kh - 1, kw - 1
            for b in range(B):
                for h in range(H):
                    hh = h + dh
                    if hh < 0 or hh >= H:
                        continue
                    for w in range(W):
                        ww = w + dw
                        if ww < 0 or ww >= W:
                            continue
                        mask[b * H * W + h * W + w, t] = 1.0
            t += 1
    return mask


def init_params(key):
    def conv_init(k, cout, cin, ksz):
        fan_in = cin * ksz * ksz
        bound = 1.0 / np.sqrt(fan_in)
        k1, k2 = jax.random.split(k)
        w = jax.random.uniform(k1, (cout, cin, ksz, ksz), jnp.float32, -bound, bound)
        b = jax.random.uniform(k2, (cout,), jnp.float32, -bound, bound)
        return w, b

    keys = jax.random.split(key, 5)
    params = {"conv1": conv_init(keys[0], HIDDEN, IN_DIM, 1)}
    for i, kk in zip((2, 3, 4), keys[1:4]):
        params[f"conv{i}"] = conv_init(kk, HIDDEN, HIDDEN, 3)
        params[f"bn{i}"] = (jnp.ones((HIDDEN,), jnp.float32),
                            jnp.zeros((HIDDEN,), jnp.float32))
    params["conv5"] = conv_init(keys[4], OUT_DIM, HIDDEN, 1)
    return params


def prediction_network(features_nchw, params, drop_key):
    B, Cin, H, W = features_nchw.shape
    M = B * H * W
    M_PAD = max(128, ((M + 7) // 8) * 8)

    x = jnp.transpose(features_nchw, (0, 2, 3, 1)).reshape(M, Cin)
    x_pad = jnp.zeros((M_PAD, Cin), jnp.float32).at[:M].set(x).astype(jnp.bfloat16)

    w1, b1 = params["conv1"]                                   # (128,576,1,1), (128,)
    w1_mat = jnp.transpose(w1.reshape(HIDDEN, Cin)).astype(jnp.bfloat16)
    b1_row = b1.reshape(1, HIDDEN)

    w_layers, bnp_rows = [], []
    for i in (2, 3, 4):
        w, b = params[f"conv{i}"]                              # (128,128,3,3), (128,)
        g, beta = params[f"bn{i}"]
        taps = [jnp.transpose(w[:, :, kh, kw])                 # (Cin, Cout) per tap
                for kh in range(3) for kw in range(3)]
        w_layers.append(jnp.concatenate(taps, axis=0))         # (9*128, 128)
        bnp_rows += [b, g, beta]
    w234 = jnp.stack(w_layers, axis=0).astype(jnp.bfloat16)    # (3, 1152, 128)
    bnp = jnp.stack(bnp_rows, axis=0)                          # (9, 128)

    w5, b5 = params["conv5"]                                   # (30,128,1,1), (30,)
    w5_mat = jnp.transpose(w5.reshape(OUT_DIM, HIDDEN))        # (128,30)
    w5p = jnp.zeros((HIDDEN, OUT_PAD), jnp.float32).at[:, :OUT_DIM].set(w5_mat)
    w5p = w5p.astype(jnp.bfloat16)
    b5p = jnp.zeros((1, OUT_PAD), jnp.float32).at[0, :OUT_DIM].set(b5)

    tapmask = jnp.asarray(_build_tap_masks(B, H, W, M_PAD))    # (M_PAD, 9)
    tap_offsets = tuple((kh - 1) * W + (kw - 1)
                        for kh in range(3) for kw in range(3))

    # inverted-dropout keep mask (train mode), drawn outside the kernel
    keep = jax.random.bernoulli(drop_key, 1.0 - DROP_P, (M_PAD, HIDDEN))
    dropmask = keep.astype(jnp.float32) * np.float32(1.0 / (1.0 - DROP_P))

    out = fused_prediction_net(x_pad, w1_mat, b1_row, w234, bnp, w5p, b5p,
                               dropmask, tapmask, M, M_PAD, tap_offsets)
    out_nchw = out[:M, :OUT_DIM].reshape(B, H, W, OUT_DIM).transpose(0, 3, 1, 2)

    A, C = NUM_BBOXES, NUM_CLASSES
    bbox_idx = np.array([i for i in range(5 * A) if i % 5 != 4])
    bbox = out_nchw[:, bbox_idx].reshape(B, A, 4, H, W)
    sub = jnp.zeros_like(bbox).at[:, :, :2].add(0.5)
    bbox_xywh = jax.nn.sigmoid(bbox) - sub
    conf_idx = np.arange(4, 5 * A, 5)
    conf_scores = jax.nn.sigmoid(out_nchw[:, conf_idx])
    cls_scores = out_nchw[:, -C:]
    return bbox_xywh, conf_scores, cls_scores


def generate_grid(batch_size, w_amap=7, h_amap=7):
    w_range = jnp.arange(w_amap, dtype=jnp.float32) + 0.5
    h_range = jnp.arange(h_amap, dtype=jnp.float32) + 0.5
    wg = jnp.tile(w_range[None, :], (h_amap, 1))
    hg = jnp.tile(h_range[:, None], (1, w_amap))
    grid = jnp.stack([wg, hg], axis=-1)
    return jnp.tile(grid[None], (batch_size, 1, 1, 1))


def generate_proposal(grids, offsets):
    g = grids[:, None]                                   # (B,1,H,W,2)
    xcp = g[..., 0] + offsets[..., 0]
    ycp = g[..., 1] + offsets[..., 1]
    wp = offsets[..., 2] * 7 / 2
    hp = offsets[..., 3] * 7 / 2
    return jnp.stack([xcp - wp, ycp - hp, xcp + wp, ycp + hp], axis=4)


def iou_jax(proposals, gt_bboxes):
    B, A, H, W, _ = proposals.shape
    p = proposals.reshape(B, A * H * W, 1, 4)
    bb = gt_bboxes[:, None, :, :]
    inter_xtl = jnp.maximum(p[..., 0], bb[..., 0])
    inter_ytl = jnp.maximum(p[..., 1], bb[..., 1])
    inter_xbr = jnp.minimum(p[..., 2], bb[..., 2])
    inter_ybr = jnp.minimum(p[..., 3], bb[..., 3])
    inter = (jnp.maximum(0.0, inter_xbr - inter_xtl)
             * jnp.maximum(0.0, inter_ybr - inter_ytl))
    union = (jnp.abs((bb[..., 2] - bb[..., 0]) * (bb[..., 1] - bb[..., 3]))
             + jnp.abs((p[..., 2] - p[..., 0]) * (p[..., 1] - p[..., 3])) - inter)
    return inter / jnp.maximum(union, 1e-8)


@jax.jit
def single_stage_detector_forward(features, gt_bboxes, params, drop_key, neg_key):
    B, _, H, W = features.shape
    A, C = NUM_BBOXES, NUM_CLASSES
    N = gt_bboxes.shape[1]
    HWn = H * W
    AHW = A * HWn
    TA = B * AHW
    MAXP = TA * N                               # upper bound on #activated pairs

    grid = generate_grid(B, w_amap=W, h_amap=H)                     # (B,H,W,2)
    bbox_xywh, conf_scores, cls_scores = prediction_network(features, params, drop_key)
    bbox_p = jnp.transpose(bbox_xywh, (0, 1, 3, 4, 2))              # (B,A,H,W,4)
    proposals = generate_proposal(grid, bbox_p)                     # (B,A,H,W,4)
    iou_mat = iou_jax(proposals, gt_bboxes)                         # (B,AHW,N)

    # --- ReferenceOnActivatedBboxes: fixed-shape, fully on-device --------------
    max_iou_per_anc = iou_mat.max(axis=-1)                          # (B,AHW)
    bbox_mask = gt_bboxes[:, :, 0] != -1                            # (B,N)
    centers = (gt_bboxes[:, :, 2:4] - gt_bboxes[:, :, :2]) / 2.0 + gt_bboxes[:, :, :2]
    mah = jnp.abs(grid.reshape(B, HWn, 1, 2) - centers[:, None, :, :]).sum(-1)  # (B,HW,N)
    grid_mask = mah == mah.min(axis=1, keepdims=True)               # (B,HW,N)
    resh_iou = iou_mat.reshape(B, A, HWn, N)
    anc_mask = resh_iou == resh_iou.max(axis=1, keepdims=True)      # (B,A,HW,N)
    act = (grid_mask[:, None] & anc_mask).reshape(B, AHW, N) & bbox_mask[:, None, :]
    act_f = act.astype(jnp.float32)                                 # (B,AHW,N)
    m_pos = act_f.sum()
    m_pos_safe = jnp.maximum(m_pos, 1.0)

    # per-pair GT offsets (x, y, sqrt(w), sqrt(h))
    grid_anchor = jnp.tile(grid.reshape(B, 1, HWn, 2), (1, A, 1, 1)).reshape(B, AHW, 2)
    gt_center = (gt_bboxes[:, :, :2] + gt_bboxes[:, :, 2:4]) / 2.0            # (B,N,2)
    xy_off = gt_center[:, None, :, :] - grid_anchor[:, :, None, :]            # (B,AHW,N,2)
    wh_off = jnp.sqrt(jnp.maximum(gt_bboxes[:, :, 2:4] - gt_bboxes[:, :, :2], 0.0) / 7.0)
    wh_off = jnp.broadcast_to(wh_off[:, None], (B, AHW, N, 2))
    gt_off = jnp.concatenate([xy_off, wh_off], axis=-1)                       # (B,AHW,N,4)

    # predicted per-anchor quantities (flatten order: b, a, h, w)
    pred_off = bbox_p.at[..., 2:4].set(jnp.sqrt(bbox_p[..., 2:4])).reshape(B, AHW, 4)
    conf_anc = conf_scores.reshape(B, AHW)
    cls_anc = jnp.broadcast_to(jnp.transpose(cls_scores, (0, 2, 3, 1))[:, None],
                               (B, A, H, W, C)).reshape(B, AHW, C)

    # --- BboxRegression ---------------------------------------------------------
    reg_err = jnp.sum((pred_off[:, :, None, :] - gt_off) ** 2, axis=-1)       # (B,AHW,N)
    reg_loss = jnp.sum(act_f * reg_err) / m_pos_safe

    # --- ConfScoreRegression (positives target 1, M sampled negatives target 0) -
    conf_pos = jnp.sum(act_f * (conf_anc[:, :, None] - 1.0) ** 2)
    neg_f = (max_iou_per_anc < 0.3).reshape(-1).astype(jnp.float32)           # (TA,)
    num_neg = neg_f.sum()
    csum = jnp.cumsum(neg_f)                                                  # (TA,)
    u = jax.random.uniform(neg_key, (MAXP,))
    k = jnp.floor(u * num_neg)                                                # rank in [0,num_neg)
    neg_idx = jnp.searchsorted(csum, k + 0.5)                                 # gather, not one-hot matmul
    conf2 = conf_anc.reshape(-1) ** 2
    picked_vals = jnp.take(conf2, neg_idx, mode="clip")                       # (MAXP,)
    use = (jnp.arange(MAXP, dtype=jnp.float32) < m_pos).astype(jnp.float32)   # first M samples
    conf_neg = jnp.sum(picked_vals * use)
    conf_loss = (conf_pos + conf_neg) / (2.0 * m_pos_safe)

    # --- ObjectClassification (softmax CE, per-image normalized) ----------------
    lse = jax.nn.logsumexp(cls_anc, axis=-1)                                  # (B,AHW)
    gt_cls = gt_bboxes[:, :, 4].astype(jnp.int32)                             # (B,N)
    onehot = jax.nn.one_hot(gt_cls, C, dtype=jnp.float32)                     # (B,N,C)
    logit_at = jnp.einsum("bac,bnc->ban", cls_anc, onehot)                    # (B,AHW,N)
    ce = lse[:, :, None] - logit_at
    m_per_img = jnp.maximum(act_f.sum(axis=(1, 2)), 1.0)                      # (B,)
    cls_loss = jnp.mean(jnp.sum(act_f * ce, axis=(1, 2)) / m_per_img)

    return conf_loss + reg_loss + cls_loss


# ----------------------------------------------------------------------------
if __name__ == "__main__":
    key = jax.random.PRNGKey(0)
    k_feat, k_param, k_drop, k_neg = jax.random.split(key, 4)

    B = 2
    features = jax.random.normal(k_feat, (B, IN_DIM, HP, WP), jnp.float32)
    # GT boxes in 7x7 grid coordinates: (x_tl, y_tl, x_br, y_br, class), -1 = padding
    gt_bboxes = jnp.array(
        [[[0.8, 1.0, 3.3, 4.0, 3.0],
          [4.1, 4.5, 6.3, 6.8, 11.0],
          [-1., -1., -1., -1., -1.],
          [-1., -1., -1., -1., -1.]],
         [[2.2, 0.6, 5.4, 3.1, 7.0],
          [0.4, 4.2, 2.9, 6.6, 15.0],
          [5.0, 4.9, 6.5, 6.9, 1.0],
          [-1., -1., -1., -1., -1.]]], dtype=jnp.float32)

    params = init_params(k_param)

    total_loss = single_stage_detector_forward(features, gt_bboxes, params,
                                               k_drop, k_neg)
    total_loss = jax.block_until_ready(total_loss)
    assert np.isfinite(float(total_loss))
    print("KERNEL_OK")
</pallas_src>

<mosaic_0001>
module attributes {stable_mosaic.version = 11 : i64} {
  func.func @_prednet_kernel(%arg0: i32, %arg1: memref<128x576xbf16, #tpu.memory_space<vmem>>, %arg2: memref<576x128xbf16, #tpu.memory_space<vmem>>, %arg3: memref<1x128xf32, #tpu.memory_space<vmem>>, %arg4: memref<3x1152x128xbf16, #tpu.memory_space<vmem>>, %arg5: memref<9x128xf32, #tpu.memory_space<vmem>>, %arg6: memref<128x128xbf16, #tpu.memory_space<vmem>>, %arg7: memref<1x128xf32, #tpu.memory_space<vmem>>, %arg8: memref<128x128xf32, #tpu.memory_space<vmem>>, %arg9: memref<128x9xf32, #tpu.memory_space<vmem>>, %arg10: memref<128x128xf32, #tpu.memory_space<vmem>>) attributes {dimension_semantics = [#tpu.dimension_semantics<arbitrary>], iteration_bounds = array<i64: 1>, scalar_prefetch = 0 : i64, scratch_operands = 0 : i64, tpu.core_type = #tpu.core_type<tc>, window_params = [{pipeline_mode = #tpu.pipeline_mode<synchronous>, transform_indices = @transform_0, window_bounds = array<i64: 128, 576>}, {pipeline_mode = #tpu.pipeline_mode<synchronous>, transform_indices = @transform_1, window_bounds = array<i64: 576, 128>}, {pipeline_mode = #tpu.pipeline_mode<synchronous>, transform_indices = @transform_2, window_bounds = array<i64: 1, 128>}, {pipeline_mode = #tpu.pipeline_mode<synchronous>, transform_indices = @transform_3, window_bounds = array<i64: 3, 1152, 128>}, {pipeline_mode = #tpu.pipeline_mode<synchronous>, transform_indices = @transform_4, window_bounds = array<i64: 9, 128>}, {pipeline_mode = #tpu.pipeline_mode<synchronous>, transform_indices = @transform_5, window_bounds = array<i64: 128, 128>}, {pipeline_mode = #tpu.pipeline_mode<synchronous>, transform_indices = @transform_6, window_bounds = array<i64: 1, 128>}, {pipeline_mode = #tpu.pipeline_mode<synchronous>, transform_indices = @transform_7, window_bounds = array<i64: 128, 128>}, {pipeline_mode = #tpu.pipeline_mode<synchronous>, transform_indices = @transform_8, window_bounds = array<i64: 128, 9>}, {pipeline_mode = #tpu.pipeline_mode<synchronous>, transform_indices = @transform_9, window_bounds = array<i64: 128, 128>}]} {
    %c0 = arith.constant 0 : index
    %c0_0 = arith.constant 0 : index
    %0 = vector.load %arg1[%c0, %c0_0] : memref<128x576xbf16, #tpu.memory_space<vmem>>, vector<128x576xbf16>
    %c0_1 = arith.constant 0 : index
    %c0_2 = arith.constant 0 : index
    %1 = vector.load %arg2[%c0_1, %c0_2] : memref<576x128xbf16, #tpu.memory_space<vmem>>, vector<576x128xbf16>
    %cst = arith.constant dense<0.000000e+00> : vector<128x128xf32>
    %2 = tpu.matmul %0, %1, %cst {dimension_numbers = #tpu.dot_dimension_numbers<[1], [0], [0], [1], [0, 0, 1, 1], [], []>} : vector<128x576xbf16>, vector<576x128xbf16>, vector<128x128xf32> -> vector<128x128xf32>
    %c0_3 = arith.constant 0 : index
    %c0_4 = arith.constant 0 : index
    %3 = vector.load %arg3[%c0_3, %c0_4] : memref<1x128xf32, #tpu.memory_space<vmem>>, vector<1x128xf32>
    %4 = vector.broadcast %3 : vector<1x128xf32> to vector<128x128xf32>
    %5 = arith.addf %2, %4 : vector<128x128xf32>
    %c0_5 = arith.constant 0 : index
    %c0_6 = arith.constant 0 : index
    %6 = vector.load %arg8[%c0_5, %c0_6] : memref<128x128xf32, #tpu.memory_space<vmem>>, vector<128x128xf32>
    %7 = arith.mulf %5, %6 : vector<128x128xf32>
    %cst_7 = arith.constant 0.000000e+00 : f32
    %8 = vector.broadcast %cst_7 : f32 to vector<128x128xf32>
    %9 = arith.cmpf oge, %7, %8 : vector<128x128xf32>
    %cst_8 = arith.constant 2.000000e-01 : f32
    %10 = vector.broadcast %cst_8 : f32 to vector<128x128xf32>
    %11 = arith.mulf %10, %7 : vector<128x128xf32>
    %12 = arith.select %9, %7, %11 : vector<128x128xi1>, vector<128x128xf32>
    %13 = tpu.iota {dimensions = array<i32: 0>} : vector<128x1xi32>
    %c98_i32 = arith.constant 98 : i32
    %14 = vector.broadcast %c98_i32 : i32 to vector<128x1xi32>
    %15 = arith.cmpi slt, %13, %14 : vector<128x1xi32>
    %16 = arith.extui %15 : vector<128x1xi1> to vector<128x1xi32>
    %17 = arith.sitofp %16 : vector<128x1xi32> to vector<128x1xf32>
    %c0_9 = arith.constant 0 : index
    %c0_10 = arith.constant 0 : index
    %18 = vector.load %arg5[%c0_9, %c0_10] : memref<9x128xf32, #tpu.memory_space<vmem>>, vector<9x128xf32>
    %c0_11 = arith.constant 0 : index
    %c0_12 = arith.constant 0 : index
    %19 = vector.load %arg9[%c0_11, %c0_12] : memref<128x9xf32, #tpu.memory_space<vmem>>, vector<128x9xf32>
    %20 = vector.extract_strided_slice %12 {offsets = [120, 0], sizes = [8, 128], strides = [1, 1]} : vector<128x128xf32> to vector<8x128xf32>
    %21 = vector.extract_strided_slice %12 {offsets = [0, 0], sizes = [120, 128], strides = [1, 1]} : vector<128x128xf32> to vector<120x128xf32>
    %22 = tpu.concatenate %20, %21 in 0 : vector<8x128xf32>, vector<120x128xf32> -> vector<128x128xf32>
    %23 = vector.extract_strided_slice %19 {offsets = [0, 0], sizes = [128, 1], strides = [1, 1]} : vector<128x9xf32> to vector<128x1xf32>
    %24 = vector.broadcast %23 : vector<128x1xf32> to vector<128x128xf32>
    %25 = arith.mulf %22, %24 : vector<128x128xf32>
    %26 = arith.truncf %25 : vector<128x128xf32> to vector<128x128xbf16>
    %27 = vector.extract_strided_slice %12 {offsets = [121, 0], sizes = [7, 128], strides = [1, 1]} : vector<128x128xf32> to vector<7x128xf32>
    %28 = vector.extract_strided_slice %12 {offsets = [0, 0], sizes = [121, 128], strides = [1, 1]} : vector<128x128xf32> to vector<121x128xf32>
    %29 = tpu.concatenate %27, %28 in 0 : vector<7x128xf32>, vector<121x128xf32> -> vector<128x128xf32>
    %30 = vector.extract_strided_slice %19 {offsets = [0, 1], sizes = [128, 1], strides = [1, 1]} : vector<128x9xf32> to vector<128x1xf32>
    %31 = vector.broadcast %30 : vector<128x1xf32> to vector<128x128xf32>
    %32 = arith.mulf %29, %31 : vector<128x128xf32>
    %33 = arith.truncf %32 : vector<128x128xf32> to vector<128x128xbf16>
    %34 = vector.extract_strided_slice %12 {offsets = [122, 0], sizes = [6, 128], strides = [1, 1]} : vector<128x128xf32> to vector<6x128xf32>
    %35 = vector.extract_strided_slice %12 {offsets = [0, 0], sizes = [122, 128], strides = [1, 1]} : vector<128x128xf32> to vector<122x128xf32>
    %36 = tpu.concatenate %34, %35 in 0 : vector<6x128xf32>, vector<122x128xf32> -> vector<128x128xf32>
    %37 = vector.extract_strided_slice %19 {offsets = [0, 2], sizes = [128, 1], strides = [1, 1]} : vector<128x9xf32> to vector<128x1xf32>
    %38 = vector.broadcast %37 : vector<128x1xf32> to vector<128x128xf32>
    %39 = arith.mulf %36, %38 : vector<128x128xf32>
    %40 = arith.truncf %39 : vector<128x128xf32> to vector<128x128xbf16>
    %41 = vector.extract_strided_slice %12 {offsets = [127, 0], sizes = [1, 128], strides = [1, 1]} : vector<128x128xf32> to vector<1x128xf32>
    %42 = vector.extract_strided_slice %12 {offsets = [0, 0], sizes = [127, 128], strides = [1, 1]} : vector<128x128xf32> to vector<127x128xf32>
    %43 = tpu.concatenate %41, %42 in 0 : vector<1x128xf32>, vector<127x128xf32> -> vector<128x128xf32>
    %44 = vector.extract_strided_slice %19 {offsets = [0, 3], sizes = [128, 1], strides = [1, 1]} : vector<128x9xf32> to vector<128x1xf32>
    %45 = vector.broadcast %44 : vector<128x1xf32> to vector<128x128xf32>
    %46 = arith.mulf %43, %45 : vector<128x128xf32>
    %47 = arith.truncf %46 : vector<128x128xf32> to vector<128x128xbf16>
    %48 = vector.extract_strided_slice %19 {offsets = [0, 4], sizes = [128, 1], strides = [1, 1]} : vector<128x9xf32> to vector<128x1xf32>
    %49 = vector.broadcast %48 : vector<128x1xf32> to vector<128x128xf32>
    %50 = arith.mulf %12, %49 : vector<128x128xf32>
    %51 = arith.truncf %50 : vector<128x128xf32> to vector<128x128xbf16>
    %52 = vector.extract_strided_slice %12 {offsets = [1, 0], sizes = [127, 128], strides = [1, 1]} : vector<128x128xf32> to vector<127x128xf32>
    %53 = vector.extract_strided_slice %12 {offsets = [0, 0], sizes = [1, 128], strides = [1, 1]} : vector<128x128xf32> to vector<1x128xf32>
    %54 = tpu.concatenate %52, %53 in 0 : vector<127x128xf32>, vector<1x128xf32> -> vector<128x128xf32>
    %55 = vector.extract_strided_slice %19 {offsets = [0, 5], sizes = [128, 1], strides = [1, 1]} : vector<128x9xf32> to vector<128x1xf32>
    %56 = vector.broadcast %55 : vector<128x1xf32> to vector<128x128xf32>
    %57 = arith.mulf %54, %56 : vector<128x128xf32>
    %58 = arith.truncf %57 : vector<128x128xf32> to vector<128x128xbf16>
    %59 = vector.extract_strided_slice %12 {offsets = [6, 0], sizes = [122, 128], strides = [1, 1]} : vector<128x128xf32> to vector<122x128xf32>
    %60 = vector.extract_strided_slice %12 {offsets = [0, 0], sizes = [6, 128], strides = [1, 1]} : vector<128x128xf32> to vector<6x128xf32>
    %61 = tpu.concatenate %59, %60 in 0 : vector<122x128xf32>, vector<6x128xf32> -> vector<128x128xf32>
    %62 = vector.extract_strided_slice %19 {offsets = [0, 6], sizes = [128, 1], strides = [1, 1]} : vector<128x9xf32> to vector<128x1xf32>
    %63 = vector.broadcast %62 : vector<128x1xf32> to vector<128x128xf32>
    %64 = arith.mulf %61, %63 : vector<128x128xf32>
    %65 = arith.truncf %64 : vector<128x128xf32> to vector<128x128xbf16>
    %66 = vector.extract_strided_slice %12 {offsets = [7, 0], sizes = [121, 128], strides = [1, 1]} : vector<128x128xf32> to vector<121x128xf32>
    %67 = vector.extract_strided_slice %12 {offsets = [0, 0], sizes = [7, 128], strides = [1, 1]} : vector<128x128xf32> to vector<7x128xf32>
    %68 = tpu.concatenate %66, %67 in 0 : vector<121x128xf32>, vector<7x128xf32> -> vector<128x128xf32>
    %69 = vector.extract_strided_slice %19 {offsets = [0, 7], sizes = [128, 1], strides = [1, 1]} : vector<128x9xf32> to vector<128x1xf32>
    %70 = vector.broadcast %69 : vector<128x1xf32> to vector<128x128xf32>
    %71 = arith.mulf %68, %70 : vector<128x128xf32>
    %72 = arith.truncf %71 : vector<128x128xf32> to vector<128x128xbf16>
    %73 = vector.extract_strided_slice %12 {offsets = [8, 0], sizes = [120, 128], strides = [1, 1]} : vector<128x128xf32> to vector<120x128xf32>
    %74 = vector.extract_strided_slice %12 {offsets = [0, 0], sizes = [8, 128], strides = [1, 1]} : vector<128x128xf32> to vector<8x128xf32>
    %75 = tpu.concatenate %73, %74 in 0 : vector<120x128xf32>, vector<8x128xf32> -> vector<128x128xf32>
    %76 = vector.extract_strided_slice %19 {offsets = [0, 8], sizes = [128, 1], strides = [1, 1]} : vector<128x9xf32> to vector<128x1xf32>
    %77 = vector.broadcast %76 : vector<128x1xf32> to vector<128x128xf32>
    %78 = arith.mulf %75, %77 : vector<128x128xf32>
    %79 = arith.truncf %78 : vector<128x128xf32> to vector<128x128xbf16>
    %80 = tpu.concatenate %26, %33, %40, %47, %51, %58, %65, %72, %79 in 1 : vector<128x128xbf16>, vector<128x128xbf16>, vector<128x128xbf16>, vector<128x128xbf16>, vector<128x128xbf16>, vector<128x128xbf16>, vector<128x128xbf16>, vector<128x128xbf16>, vector<128x128xbf16> -> vector<128x1152xbf16>
    %c0_13 = arith.constant 0 : index
    %c0_14 = arith.constant 0 : index
    %c0_15 = arith.constant 0 : index
    %81 = vector.load %arg4[%c0_13, %c0_14, %c0_15] : memref<3x1152x128xbf16, #tpu.memory_space<vmem>>, vector<1x1152x128xbf16>
    %82 = vector.shape_cast %81 : vector<1x1152x128xbf16> to vector<1152x128xbf16>
    %cst_16 = arith.constant dense<0.000000e+00> : vector<128x128xf32>
    %83 = tpu.matmul %80, %82, %cst_16 {dimension_numbers = #tpu.dot_dimension_numbers<[1], [0], [0], [1], [0, 0, 1, 1], [], []>} : vector<128x1152xbf16>, vector<1152x128xbf16>, vector<128x128xf32> -> vector<128x128xf32>
    %84 = vector.extract_strided_slice %18 {offsets = [0, 0], sizes = [1, 128], strides = [1, 1]} : vector<9x128xf32> to vector<1x128xf32>
    %85 = vector.broadcast %84 : vector<1x128xf32> to vector<128x128xf32>
    %86 = arith.addf %83, %85 : vector<128x128xf32>
    %cst_17 = arith.constant 0.000000e+00 : f32
    %87 = vector.broadcast %cst_17 : f32 to vector<128x128xf32>
    %88 = arith.cmpf oge, %86, %87 : vector<128x128xf32>
    %cst_18 = arith.constant 2.000000e-01 : f32
    %89 = vector.broadcast %cst_18 : f32 to vector<128x128xf32>
    %90 = arith.mulf %89, %86 : vector<128x128xf32>
    %91 = arith.select %88, %86, %90 : vector<128x128xi1>, vector<128x128xf32>
    %92 = vector.broadcast %17 : vector<128x1xf32> to vector<128x128xf32>
    %93 = arith.mulf %91, %92 : vector<128x128xf32>
    %cst_19 = arith.constant dense<0.000000e+00> : vector<128xf32>
    %94 = vector.multi_reduction <add>, %93, %cst_19 [0] : vector<128x128xf32> to vector<128xf32>
    %95 = vector.shape_cast %94 : vector<128xf32> to vector<1x128xf32>
    %cst_20 = arith.constant 0.0102040814 : f32
    %96 = vector.broadcast %cst_20 : f32 to vector<1x128xf32>
    %97 = arith.mulf %95, %96 : vector<1x128xf32>
    %98 = arith.mulf %93, %91 : vector<128x128xf32>
    %cst_21 = arith.constant dense<0.000000e+00> : vector<128xf32>
    %99 = vector.multi_reduction <add>, %98, %cst_21 [0] : vector<128x128xf32> to vector<128xf32>
    %100 = vector.shape_cast %99 : vector<128xf32> to vector<1x128xf32>
    %cst_22 = arith.constant 0.0102040814 : f32
    %101 = vector.broadcast %cst_22 : f32 to vector<1x128xf32>
    %102 = arith.mulf %100, %101 : vector<1x128xf32>
    %103 = arith.mulf %97, %97 : vector<1x128xf32>
    %104 = arith.subf %102, %103 : vector<1x128xf32>
    %cst_23 = arith.constant 0.000000e+00 : f32
    %105 = vector.broadcast %cst_23 : f32 to vector<1x128xf32>
    %106 = arith.maximumf %104, %105 : vector<1x128xf32>
    %107 = vector.extract_strided_slice %18 {offsets = [1, 0], sizes = [1, 128], strides = [1, 1]} : vector<9x128xf32> to vector<1x128xf32>
    %cst_24 = arith.constant 9.99999974E-6 : f32
    %108 = vector.broadcast %cst_24 : f32 to vector<1x128xf32>
    %109 = arith.addf %106, %108 : vector<1x128xf32>
    %110 = math.rsqrt %109 : vector<1x128xf32>
    %111 = arith.mulf %107, %110 : vector<1x128xf32>
    %112 = vector.extract_strided_slice %18 {offsets = [2, 0], sizes = [1, 128], strides = [1, 1]} : vector<9x128xf32> to vector<1x128xf32>
    %113 = arith.mulf %97, %111 : vector<1x128xf32>
    %114 = arith.subf %112, %113 : vector<1x128xf32>
    %115 = vector.broadcast %111 : vector<1x128xf32> to vector<128x128xf32>
    %116 = arith.mulf %91, %115 : vector<128x128xf32>
    %117 = vector.broadcast %114 : vector<1x128xf32> to vector<128x128xf32>
    %118 = arith.addf %116, %117 : vector<128x128xf32>
    %119 = vector.extract_strided_slice %118 {offsets = [120, 0], sizes = [8, 128], strides = [1, 1]} : vector<128x128xf32> to vector<8x128xf32>
    %120 = vector.extract_strided_slice %118 {offsets = [0, 0], sizes = [120, 128], strides = [1, 1]} : vector<128x128xf32> to vector<120x128xf32>
    %121 = tpu.concatenate %119, %120 in 0 : vector<8x128xf32>, vector<120x128xf32> -> vector<128x128xf32>
    %122 = vector.extract_strided_slice %19 {offsets = [0, 0], sizes = [128, 1], strides = [1, 1]} : vector<128x9xf32> to vector<128x1xf32>
    %123 = vector.broadcast %122 : vector<128x1xf32> to vector<128x128xf32>
    %124 = arith.mulf %121, %123 : vector<128x128xf32>
    %125 = arith.truncf %124 : vector<128x128xf32> to vector<128x128xbf16>
    %126 = vector.extract_strided_slice %118 {offsets = [121, 0], sizes = [7, 128], strides = [1, 1]} : vector<128x128xf32> to vector<7x128xf32>
    %127 = vector.extract_strided_slice %118 {offsets = [0, 0], sizes = [121, 128], strides = [1, 1]} : vector<128x128xf32> to vector<121x128xf32>
    %128 = tpu.concatenate %126, %127 in 0 : vector<7x128xf32>, vector<121x128xf32> -> vector<128x128xf32>
    %129 = vector.extract_strided_slice %19 {offsets = [0, 1], sizes = [128, 1], strides = [1, 1]} : vector<128x9xf32> to vector<128x1xf32>
    %130 = vector.broadcast %129 : vector<128x1xf32> to vector<128x128xf32>
    %131 = arith.mulf %128, %130 : vector<128x128xf32>
    %132 = arith.truncf %131 : vector<128x128xf32> to vector<128x128xbf16>
    %133 = vector.extract_strided_slice %118 {offsets = [122, 0], sizes = [6, 128], strides = [1, 1]} : vector<128x128xf32> to vector<6x128xf32>
    %134 = vector.extract_strided_slice %118 {offsets = [0, 0], sizes = [122, 128], strides = [1, 1]} : vector<128x128xf32> to vector<122x128xf32>
    %135 = tpu.concatenate %133, %134 in 0 : vector<6x128xf32>, vector<122x128xf32> -> vector<128x128xf32>
    %136 = vector.extract_strided_slice %19 {offsets = [0, 2], sizes = [128, 1], strides = [1, 1]} : vector<128x9xf32> to vector<128x1xf32>
    %137 = vector.broadcast %136 : vector<128x1xf32> to vector<128x128xf32>
    %138 = arith.mulf %135, %137 : vector<128x128xf32>
    %139 = arith.truncf %138 : vector<128x128xf32> to vector<128x128xbf16>
    %140 = vector.extract_strided_slice %118 {offsets = [127, 0], sizes = [1, 128], strides = [1, 1]} : vector<128x128xf32> to vector<1x128xf32>
    %141 = vector.extract_strided_slice %118 {offsets = [0, 0], sizes = [127, 128], strides = [1, 1]} : vector<128x128xf32> to vector<127x128xf32>
    %142 = tpu.concatenate %140, %141 in 0 : vector<1x128xf32>, vector<127x128xf32> -> vector<128x128xf32>
    %143 = vector.extract_strided_slice %19 {offsets = [0, 3], sizes = [128, 1], strides = [1, 1]} : vector<128x9xf32> to vector<128x1xf32>
    %144 = vector.broadcast %143 : vector<128x1xf32> to vector<128x128xf32>
    %145 = arith.mulf %142, %144 : vector<128x128xf32>
    %146 = arith.truncf %145 : vector<128x128xf32> to vector<128x128xbf16>
    %147 = vector.extract_strided_slice %19 {offsets = [0, 4], sizes = [128, 1], strides = [1, 1]} : vector<128x9xf32> to vector<128x1xf32>
    %148 = vector.broadcast %147 : vector<128x1xf32> to vector<128x128xf32>
    %149 = arith.mulf %118, %148 : vector<128x128xf32>
    %150 = arith.truncf %149 : vector<128x128xf32> to vector<128x128xbf16>
    %151 = vector.extract_strided_slice %118 {offsets = [1, 0], sizes = [127, 128], strides = [1, 1]} : vector<128x128xf32> to vector<127x128xf32>
    %152 = vector.extract_strided_slice %118 {offsets = [0, 0], sizes = [1, 128], strides = [1, 1]} : vector<128x128xf32> to vector<1x128xf32>
    %153 = tpu.concatenate %151, %152 in 0 : vector<127x128xf32>, vector<1x128xf32> -> vector<128x128xf32>
    %154 = vector.extract_strided_slice %19 {offsets = [0, 5], sizes = [128, 1], strides = [1, 1]} : vector<128x9xf32> to vector<128x1xf32>
    %155 = vector.broadcast %154 : vector<128x1xf32> to vector<128x128xf32>
    %156 = arith.mulf %153, %155 : vector<128x128xf32>
    %157 = arith.truncf %156 : vector<128x128xf32> to vector<128x128xbf16>
    %158 = vector.extract_strided_slice %118 {offsets = [6, 0], sizes = [122, 128], strides = [1, 1]} : vector<128x128xf32> to vector<122x128xf32>
    %159 = vector.extract_strided_slice %118 {offsets = [0, 0], sizes = [6, 128], strides = [1, 1]} : vector<128x128xf32> to vector<6x128xf32>
    %160 = tpu.concatenate %158, %159 in 0 : vector<122x128xf32>, vector<6x128xf32> -> vector<128x128xf32>
    %161 = vector.extract_strided_slice %19 {offsets = [0, 6], sizes = [128, 1], strides = [1, 1]} : vector<128x9xf32> to vector<128x1xf32>
    %162 = vector.broadcast %161 : vector<128x1xf32> to vector<128x128xf32>
    %163 = arith.mulf %160, %162 : vector<128x128xf32>
    %164 = arith.truncf %163 : vector<128x128xf32> to vector<128x128xbf16>
    %165 = vector.extract_strided_slice %118 {offsets = [7, 0], sizes = [121, 128], strides = [1, 1]} : vector<128x128xf32> to vector<121x128xf32>
    %166 = vector.extract_strided_slice %118 {offsets = [0, 0], sizes = [7, 128], strides = [1, 1]} : vector<128x128xf32> to vector<7x128xf32>
    %167 = tpu.concatenate %165, %166 in 0 : vector<121x128xf32>, vector<7x128xf32> -> vector<128x128xf32>
    %168 = vector.extract_strided_slice %19 {offsets = [0, 7], sizes = [128, 1], strides = [1, 1]} : vector<128x9xf32> to vector<128x1xf32>
    %169 = vector.broadcast %168 : vector<128x1xf32> to vector<128x128xf32>
    %170 = arith.mulf %167, %169 : vector<128x128xf32>
    %171 = arith.truncf %170 : vector<128x128xf32> to vector<128x128xbf16>
    %172 = vector.extract_strided_slice %118 {offsets = [8, 0], sizes = [120, 128], strides = [1, 1]} : vector<128x128xf32> to vector<120x128xf32>
    %173 = vector.extract_strided_slice %118 {offsets = [0, 0], sizes = [8, 128], strides = [1, 1]} : vector<128x128xf32> to vector<8x128xf32>
    %174 = tpu.concatenate %172, %173 in 0 : vector<120x128xf32>, vector<8x128xf32> -> vector<128x128xf32>
    %175 = vector.extract_strided_slice %19 {offsets = [0, 8], sizes = [128, 1], strides = [1, 1]} : vector<128x9xf32> to vector<128x1xf32>
    %176 = vector.broadcast %175 : vector<128x1xf32> to vector<128x128xf32>
    %177 = arith.mulf %174, %176 : vector<128x128xf32>
    %178 = arith.truncf %177 : vector<128x128xf32> to vector<128x128xbf16>
    %179 = tpu.concatenate %125, %132, %139, %146, %150, %157, %164, %171, %178 in 1 : vector<128x128xbf16>, vector<128x128xbf16>, vector<128x128xbf16>, vector<128x128xbf16>, vector<128x128xbf16>, vector<128x128xbf16>, vector<128x128xbf16>, vector<128x128xbf16>, vector<128x128xbf16> -> vector<128x1152xbf16>
    %c1 = arith.constant 1 : index
    %c0_25 = arith.constant 0 : index
    %c0_26 = arith.constant 0 : index
    %180 = vector.load %arg4[%c1, %c0_25, %c0_26] : memref<3x1152x128xbf16, #tpu.memory_space<vmem>>, vector<1x1152x128xbf16>
    %181 = vector.shape_cast %180 : vector<1x1152x128xbf16> to vector<1152x128xbf16>
    %cst_27 = arith.constant dense<0.000000e+00> : vector<128x128xf32>
    %182 = tpu.matmul %179, %181, %cst_27 {dimension_numbers = #tpu.dot_dimension_numbers<[1], [0], [0], [1], [0, 0, 1, 1], [], []>} : vector<128x1152xbf16>, vector<1152x128xbf16>, vector<128x128xf32> -> vector<128x128xf32>
    %183 = vector.extract_strided_slice %18 {offsets = [3, 0], sizes = [1, 128], strides = [1, 1]} : vector<9x128xf32> to vector<1x128xf32>
    %184 = vector.broadcast %183 : vector<1x128xf32> to vector<128x128xf32>
    %185 = arith.addf %182, %184 : vector<128x128xf32>
    %cst_28 = arith.constant 0.000000e+00 : f32
    %186 = vector.broadcast %cst_28 : f32 to vector<128x128xf32>
    %187 = arith.cmpf oge, %185, %186 : vector<128x128xf32>
    %cst_29 = arith.constant 2.000000e-01 : f32
    %188 = vector.broadcast %cst_29 : f32 to vector<128x128xf32>
    %189 = arith.mulf %188, %185 : vector<128x128xf32>
    %190 = arith.select %187, %185, %189 : vector<128x128xi1>, vector<128x128xf32>
    %191 = vector.broadcast %17 : vector<128x1xf32> to vector<128x128xf32>
    %192 = arith.mulf %190, %191 : vector<128x128xf32>
    %cst_30 = arith.constant dense<0.000000e+00> : vector<128xf32>
    %193 = vector.multi_reduction <add>, %192, %cst_30 [0] : vector<128x128xf32> to vector<128xf32>
    %194 = vector.shape_cast %193 : vector<128xf32> to vector<1x128xf32>
    %cst_31 = arith.constant 0.0102040814 : f32
    %195 = vector.broadcast %cst_31 : f32 to vector<1x128xf32>
    %196 = arith.mulf %194, %195 : vector<1x128xf32>
    %197 = arith.mulf %192, %190 : vector<128x128xf32>
    %cst_32 = arith.constant dense<0.000000e+00> : vector<128xf32>
    %198 = vector.multi_reduction <add>, %197, %cst_32 [0] : vector<128x128xf32> to vector<128xf32>
    %199 = vector.shape_cast %198 : vector<128xf32> to vector<1x128xf32>
    %cst_33 = arith.constant 0.0102040814 : f32
    %200 = vector.broadcast %cst_33 : f32 to vector<1x128xf32>
    %201 = arith.mulf %199, %200 : vector<1x128xf32>
    %202 = arith.mulf %196, %196 : vector<1x128xf32>
    %203 = arith.subf %201, %202 : vector<1x128xf32>
    %cst_34 = arith.constant 0.000000e+00 : f32
    %204 = vector.broadcast %cst_34 : f32 to vector<1x128xf32>
    %205 = arith.maximumf %203, %204 : vector<1x128xf32>
    %206 = vector.extract_strided_slice %18 {offsets = [4, 0], sizes = [1, 128], strides = [1, 1]} : vector<9x128xf32> to vector<1x128xf32>
    %cst_35 = arith.constant 9.99999974E-6 : f32
    %207 = vector.broadcast %cst_35 : f32 to vector<1x128xf32>
    %208 = arith.addf %205, %207 : vector<1x128xf32>
    %209 = math.rsqrt %208 : vector<1x128xf32>
    %210 = arith.mulf %206, %209 : vector<1x128xf32>
    %211 = vector.extract_strided_slice %18 {offsets = [5, 0], sizes = [1, 128], strides = [1, 1]} : vector<9x128xf32> to vector<1x128xf32>
    %212 = arith.mulf %196, %210 : vector<1x128xf32>
    %213 = arith.subf %211, %212 : vector<1x128xf32>
    %214 = vector.broadcast %210 : vector<1x128xf32> to vector<128x128xf32>
    %215 = arith.mulf %190, %214 : vector<128x128xf32>
    %216 = vector.broadcast %213 : vector<1x128xf32> to vector<128x128xf32>
    %217 = arith.addf %215, %216 : vector<128x128xf32>
    %218 = vector.extract_strided_slice %217 {offsets = [120, 0], sizes = [8, 128], strides = [1, 1]} : vector<128x128xf32> to vector<8x128xf32>
    %219 = vector.extract_strided_slice %217 {offsets = [0, 0], sizes = [120, 128], strides = [1, 1]} : vector<128x128xf32> to vector<120x128xf32>
    %220 = tpu.concatenate %218, %219 in 0 : vector<8x128xf32>, vector<120x128xf32> -> vector<128x128xf32>
    %221 = vector.extract_strided_slice %19 {offsets = [0, 0], sizes = [128, 1], strides = [1, 1]} : vector<128x9xf32> to vector<128x1xf32>
    %222 = vector.broadcast %221 : vector<128x1xf32> to vector<128x128xf32>
    %223 = arith.mulf %220, %222 : vector<128x128xf32>
    %224 = arith.truncf %223 : vector<128x128xf32> to vector<128x128xbf16>
    %225 = vector.extract_strided_slice %217 {offsets = [121, 0], sizes = [7, 128], strides = [1, 1]} : vector<128x128xf32> to vector<7x128xf32>
    %226 = vector.extract_strided_slice %217 {offsets = [0, 0], sizes = [121, 128], strides = [1, 1]} : vector<128x128xf32> to vector<121x128xf32>
    %227 = tpu.concatenate %225, %226 in 0 : vector<7x128xf32>, vector<121x128xf32> -> vector<128x128xf32>
    %228 = vector.extract_strided_slice %19 {offsets = [0, 1], sizes = [128, 1], strides = [1, 1]} : vector<128x9xf32> to vector<128x1xf32>
    %229 = vector.broadcast %228 : vector<128x1xf32> to vector<128x128xf32>
    %230 = arith.mulf %227, %229 : vector<128x128xf32>
    %231 = arith.truncf %230 : vector<128x128xf32> to vector<128x128xbf16>
    %232 = vector.extract_strided_slice %217 {offsets = [122, 0], sizes = [6, 128], strides = [1, 1]} : vector<128x128xf32> to vector<6x128xf32>
    %233 = vector.extract_strided_slice %217 {offsets = [0, 0], sizes = [122, 128], strides = [1, 1]} : vector<128x128xf32> to vector<122x128xf32>
    %234 = tpu.concatenate %232, %233 in 0 : vector<6x128xf32>, vector<122x128xf32> -> vector<128x128xf32>
    %235 = vector.extract_strided_slice %19 {offsets = [0, 2], sizes = [128, 1], strides = [1, 1]} : vector<128x9xf32> to vector<128x1xf32>
    %236 = vector.broadcast %235 : vector<128x1xf32> to vector<128x128xf32>
    %237 = arith.mulf %234, %236 : vector<128x128xf32>
    %238 = arith.truncf %237 : vector<128x128xf32> to vector<128x128xbf16>
    %239 = vector.extract_strided_slice %217 {offsets = [127, 0], sizes = [1, 128], strides = [1, 1]} : vector<128x128xf32> to vector<1x128xf32>
    %240 = vector.extract_strided_slice %217 {offsets = [0, 0], sizes = [127, 128], strides = [1, 1]} : vector<128x128xf32> to vector<127x128xf32>
    %241 = tpu.concatenate %239, %240 in 0 : vector<1x128xf32>, vector<127x128xf32> -> vector<128x128xf32>
    %242 = vector.extract_strided_slice %19 {offsets = [0, 3], sizes = [128, 1], strides = [1, 1]} : vector<128x9xf32> to vector<128x1xf32>
    %243 = vector.broadcast %242 : vector<128x1xf32> to vector<128x128xf32>
    %244 = arith.mulf %241, %243 : vector<128x128xf32>
    %245 = arith.truncf %244 : vector<128x128xf32> to vector<128x128xbf16>
    %246 = vector.extract_strided_slice %19 {offsets = [0, 4], sizes = [128, 1], strides = [1, 1]} : vector<128x9xf32> to vector<128x1xf32>
    %247 = vector.broadcast %246 : vector<128x1xf32> to vector<128x128xf32>
    %248 = arith.mulf %217, %247 : vector<128x128xf32>
    %249 = arith.truncf %248 : vector<128x128xf32> to vector<128x128xbf16>
    %250 = vector.extract_strided_slice %217 {offsets = [1, 0], sizes = [127, 128], strides = [1, 1]} : vector<128x128xf32> to vector<127x128xf32>
    %251 = vector.extract_strided_slice %217 {offsets = [0, 0], sizes = [1, 128], strides = [1, 1]} : vector<128x128xf32> to vector<1x128xf32>
    %252 = tpu.concatenate %250, %251 in 0 : vector<127x128xf32>, vector<1x128xf32> -> vector<128x128xf32>
    %253 = vector.extract_strided_slice %19 {offsets = [0, 5], sizes = [128, 1], strides = [1, 1]} : vector<128x9xf32> to vector<128x1xf32>
    %254 = vector.broadcast %253 : vector<128x1xf32> to vector<128x128xf32>
    %255 = arith.mulf %252, %254 : vector<128x128xf32>
    %256 = arith.truncf %255 : vector<128x128xf32> to vector<128x128xbf16>
    %257 = vector.extract_strided_slice %217 {offsets = [6, 0], sizes = [122, 128], strides = [1, 1]} : vector<128x128xf32> to vector<122x128xf32>
    %258 = vector.extract_strided_slice %217 {offsets = [0, 0], sizes = [6, 128], strides = [1, 1]} : vector<128x128xf32> to vector<6x128xf32>
    %259 = tpu.concatenate %257, %258 in 0 : vector<122x128xf32>, vector<6x128xf32> -> vector<128x128xf32>
    %260 = vector.extract_strided_slice %19 {offsets = [0, 6], sizes = [128, 1], strides = [1, 1]} : vector<128x9xf32> to vector<128x1xf32>
    %261 = vector.broadcast %260 : vector<128x1xf32> to vector<128x128xf32>
    %262 = arith.mulf %259, %261 : vector<128x128xf32>
    %263 = arith.truncf %262 : vector<128x128xf32> to vector<128x128xbf16>
    %264 = vector.extract_strided_slice %217 {offsets = [7, 0], sizes = [121, 128], strides = [1, 1]} : vector<128x128xf32> to vector<121x128xf32>
    %265 = vector.extract_strided_slice %217 {offsets = [0, 0], sizes = [7, 128], strides = [1, 1]} : vector<128x128xf32> to vector<7x128xf32>
    %266 = tpu.concatenate %264, %265 in 0 : vector<121x128xf32>, vector<7x128xf32> -> vector<128x128xf32>
    %267 = vector.extract_strided_slice %19 {offsets = [0, 7], sizes = [128, 1], strides = [1, 1]} : vector<128x9xf32> to vector<128x1xf32>
    %268 = vector.broadcast %267 : vector<128x1xf32> to vector<128x128xf32>
    %269 = arith.mulf %266, %268 : vector<128x128xf32>
    %270 = arith.truncf %269 : vector<128x128xf32> to vector<128x128xbf16>
    %271 = vector.extract_strided_slice %217 {offsets = [8, 0], sizes = [120, 128], strides = [1, 1]} : vector<128x128xf32> to vector<120x128xf32>
    %272 = vector.extract_strided_slice %217 {offsets = [0, 0], sizes = [8, 128], strides = [1, 1]} : vector<128x128xf32> to vector<8x128xf32>
    %273 = tpu.concatenate %271, %272 in 0 : vector<120x128xf32>, vector<8x128xf32> -> vector<128x128xf32>
    %274 = vector.extract_strided_slice %19 {offsets = [0, 8], sizes = [128, 1], strides = [1, 1]} : vector<128x9xf32> to vector<128x1xf32>
    %275 = vector.broadcast %274 : vector<128x1xf32> to vector<128x128xf32>
    %276 = arith.mulf %273, %275 : vector<128x128xf32>
    %277 = arith.truncf %276 : vector<128x128xf32> to vector<128x128xbf16>
    %278 = tpu.concatenate %224, %231, %238, %245, %249, %256, %263, %270, %277 in 1 : vector<128x128xbf16>, vector<128x128xbf16>, vector<128x128xbf16>, vector<128x128xbf16>, vector<128x128xbf16>, vector<128x128xbf16>, vector<128x128xbf16>, vector<128x128xbf16>, vector<128x128xbf16> -> vector<128x1152xbf16>
    %c2 = arith.constant 2 : index
    %c0_36 = arith.constant 0 : index
    %c0_37 = arith.constant 0 : index
    %279 = vector.load %arg4[%c2, %c0_36, %c0_37] : memref<3x1152x128xbf16, #tpu.memory_space<vmem>>, vector<1x1152x128xbf16>
    %280 = vector.shape_cast %279 : vector<1x1152x128xbf16> to vector<1152x128xbf16>
    %cst_38 = arith.constant dense<0.000000e+00> : vector<128x128xf32>
    %281 = tpu.matmul %278, %280, %cst_38 {dimension_numbers = #tpu.dot_dimension_numbers<[1], [0], [0], [1], [0, 0, 1, 1], [], []>} : vector<128x1152xbf16>, vector<1152x128xbf16>, vector<128x128xf32> -> vector<128x128xf32>
    %282 = vector.extract_strided_slice %18 {offsets = [6, 0], sizes = [1, 128], strides = [1, 1]} : vector<9x128xf32> to vector<1x128xf32>
    %283 = vector.broadcast %282 : vector<1x128xf32> to vector<128x128xf32>
    %284 = arith.addf %281, %283 : vector<128x128xf32>
    %cst_39 = arith.constant 0.000000e+00 : f32
    %285 = vector.broadcast %cst_39 : f32 to vector<128x128xf32>
    %286 = arith.cmpf oge, %284, %285 : vector<128x128xf32>
    %cst_40 = arith.constant 2.000000e-01 : f32
    %287 = vector.broadcast %cst_40 : f32 to vector<128x128xf32>
    %288 = arith.mulf %287, %284 : vector<128x128xf32>
    %289 = arith.select %286, %284, %288 : vector<128x128xi1>, vector<128x128xf32>
    %290 = vector.broadcast %17 : vector<128x1xf32> to vector<128x128xf32>
    %291 = arith.mulf %289, %290 : vector<128x128xf32>
    %cst_41 = arith.constant dense<0.000000e+00> : vector<128xf32>
    %292 = vector.multi_reduction <add>, %291, %cst_41 [0] : vector<128x128xf32> to vector<128xf32>
    %293 = vector.shape_cast %292 : vector<128xf32> to vector<1x128xf32>
    %cst_42 = arith.constant 0.0102040814 : f32
    %294 = vector.broadcast %cst_42 : f32 to vector<1x128xf32>
    %295 = arith.mulf %293, %294 : vector<1x128xf32>
    %296 = arith.mulf %291, %289 : vector<128x128xf32>
    %cst_43 = arith.constant dense<0.000000e+00> : vector<128xf32>
    %297 = vector.multi_reduction <add>, %296, %cst_43 [0] : vector<128x128xf32> to vector<128xf32>
    %298 = vector.shape_cast %297 : vector<128xf32> to vector<1x128xf32>
    %cst_44 = arith.constant 0.0102040814 : f32
    %299 = vector.broadcast %cst_44 : f32 to vector<1x128xf32>
    %300 = arith.mulf %298, %299 : vector<1x128xf32>
    %301 = arith.mulf %295, %295 : vector<1x128xf32>
    %302 = arith.subf %300, %301 : vector<1x128xf32>
    %cst_45 = arith.constant 0.000000e+00 : f32
    %303 = vector.broadcast %cst_45 : f32 to vector<1x128xf32>
    %304 = arith.maximumf %302, %303 : vector<1x128xf32>
    %305 = vector.extract_strided_slice %18 {offsets = [7, 0], sizes = [1, 128], strides = [1, 1]} : vector<9x128xf32> to vector<1x128xf32>
    %cst_46 = arith.constant 9.99999974E-6 : f32
    %306 = vector.broadcast %cst_46 : f32 to vector<1x128xf32>
    %307 = arith.addf %304, %306 : vector<1x128xf32>
    %308 = math.rsqrt %307 : vector<1x128xf32>
    %309 = arith.mulf %305, %308 : vector<1x128xf32>
    %310 = vector.extract_strided_slice %18 {offsets = [8, 0], sizes = [1, 128], strides = [1, 1]} : vector<9x128xf32> to vector<1x128xf32>
    %311 = arith.mulf %295, %309 : vector<1x128xf32>
    %312 = arith.subf %310, %311 : vector<1x128xf32>
    %313 = vector.broadcast %309 : vector<1x128xf32> to vector<128x128xf32>
    %314 = arith.mulf %289, %313 : vector<128x128xf32>
    %315 = vector.broadcast %312 : vector<1x128xf32> to vector<128x128xf32>
    %316 = arith.addf %314, %315 : vector<128x128xf32>
    %317 = arith.truncf %316 : vector<128x128xf32> to vector<128x128xbf16>
    %c0_47 = arith.constant 0 : index
    %c0_48 = arith.constant 0 : index
    %318 = vector.load %arg6[%c0_47, %c0_48] : memref<128x128xbf16, #tpu.memory_space<vmem>>, vector<128x128xbf16>
    %cst_49 = arith.constant dense<0.000000e+00> : vector<128x128xf32>
    %319 = tpu.matmul %317, %318, %cst_49 {dimension_numbers = #tpu.dot_dimension_numbers<[1], [0], [0], [1], [0, 0, 1, 1], [], []>} : vector<128x128xbf16>, vector<128x128xbf16>, vector<128x128xf32> -> vector<128x128xf32>
    %c0_50 = arith.constant 0 : index
    %c0_51 = arith.constant 0 : index
    %320 = vector.load %arg7[%c0_50, %c0_51] : memref<1x128xf32, #tpu.memory_space<vmem>>, vector<1x128xf32>
    %321 = vector.broadcast %320 : vector<1x128xf32> to vector<128x128xf32>
    %322 = arith.addf %319, %321 : vector<128x128xf32>
    %c0_52 = arith.constant 0 : index
    %c0_53 = arith.constant 0 : index
    %323 = vector.load %arg10[%c0_52, %c0_53] : memref<128x128xf32, #tpu.memory_space<vmem>>, vector<128x128xf32>
    tpu.vector_store %arg10[%c0_52, %c0_53], %322 {strides = array<i32>} : memref<128x128xf32, #tpu.memory_space<vmem>>, vector<128x128xf32>,
    return
  }
  func.func @transform_0(%arg0: i32) -> (i32, i32) {
    %c0_i32 = arith.constant 0 : i32
    %c0_i32_0 = arith.constant 0 : i32
    %c0_i32_1 = arith.constant 0 : i32
    return %c0_i32, %c0_i32_0 : i32, i32
  }
  func.func @transform_1(%arg0: i32) -> (i32, i32) {
    %c0_i32 = arith.constant 0 : i32
    %c0_i32_0 = arith.constant 0 : i32
    %c0_i32_1 = arith.constant 0 : i32
    return %c0_i32, %c0_i32_0 : i32, i32
  }
  func.func @transform_2(%arg0: i32) -> (i32, i32) {
    %c0_i32 = arith.constant 0 : i32
    %c0_i32_0 = arith.constant 0 : i32
    %c0_i32_1 = arith.constant 0 : i32
    return %c0_i32, %c0_i32_0 : i32, i32
  }
  func.func @transform_3(%arg0: i32) -> (i32, i32, i32) {
    %c0_i32 = arith.constant 0 : i32
    %c0_i32_0 = arith.constant 0 : i32
    %c0_i32_1 = arith.constant 0 : i32
    %c0_i32_2 = arith.constant 0 : i32
    return %c0_i32, %c0_i32_0, %c0_i32_1 : i32, i32, i32
  }
  func.func @transform_4(%arg0: i32) -> (i32, i32) {
    %c0_i32 = arith.constant 0 : i32
    %c0_i32_0 = arith.constant 0 : i32
    %c0_i32_1 = arith.constant 0 : i32
    return %c0_i32, %c0_i32_0 : i32, i32
  }
  func.func @transform_5(%arg0: i32) -> (i32, i32) {
    %c0_i32 = arith.constant 0 : i32
    %c0_i32_0 = arith.constant 0 : i32
    %c0_i32_1 = arith.constant 0 : i32
    return %c0_i32, %c0_i32_0 : i32, i32
  }
  func.func @transform_6(%arg0: i32) -> (i32, i32) {
    %c0_i32 = arith.constant 0 : i32
    %c0_i32_0 = arith.constant 0 : i32
    %c0_i32_1 = arith.constant 0 : i32
    return %c0_i32, %c0_i32_0 : i32, i32
  }
  func.func @transform_7(%arg0: i32) -> (i32, i32) {
    %c0_i32 = arith.constant 0 : i32
    %c0_i32_0 = arith.constant 0 : i32
    %c0_i32_1 = arith.constant 0 : i32
    return %c0_i32, %c0_i32_0 : i32, i32
  }
  func.func @transform_8(%arg0: i32) -> (i32, i32) {
    %c0_i32 = arith.constant 0 : i32
    %c0_i32_0 = arith.constant 0 : i32
    %c0_i32_1 = arith.constant 0 : i32
    return %c0_i32, %c0_i32_0 : i32, i32
  }
  func.func @transform_9(%arg0: i32) -> (i32, i32) {
    %c0_i32 = arith.constant 0 : i32
    %c0_i32_0 = arith.constant 0 : i32
    %c0_i32_1 = arith.constant 0 : i32
    return %c0_i32, %c0_i32_0 : i32, i32
  }
}

</mosaic_0001>

<bundles_post_ra>
// kernel: sub.82
= control target key start
LH: loop header
LB: loop body
LE: loop exit
PB: predicated region body
PF: predicated region fallthrough
CT: control target
= control target key end

     0   :  { %vm6_vm0 = vcmask 1043458   ;;  %vm10_vm1 = vcmask 1045508   ;;  %vm14_vm2 = vcmask 1047558   ;;  %s21_s6 = smov 3  ;;  %s24_s7 = smov 12  ;;  %vm16_vm3 = vcmask 56320   ;;  %s651_s0 = inlined_call_operand.vmem [shape: f32[2,2,7,7,4], index: 0, kind: input, shape index: {}]   ;;  %s652_s1 = inlined_call_operand.vmem [shape: f32[2,98,4], index: 1, kind: output, shape index: {}]  }
   0x1   :  { %v346_v0 = vld [vmem:[%s651_s0 + $0xe] ss:$16 sm:%s21_s6]   ;;  %s29_s12 = smov 48  ;;  %s34_s13 = smov 192  ;;  %vm40_vm4 = vcmask 802520   ;;  %vm64_vm5 = vcmask 745120  }
   0x2   :  { %v347_v1 = vld [vmem:[%s651_s0 + $0xe] ss:$16 sm:%s24_s7]   ;;  %s69_s18 = smov 3  ;;  %s72_s21 = smov 12  ;;  %vm88_vm6 = vcmask 687720   ;;  %vm112_vm7 = vcmask 630320  }
   0x3   :  { %v27_v2 = vsel %vm6_vm0, %v347_v1, %v346_v0  ;;  %v348_v3 = vld [vmem:[%s651_s0 + $0xe] ss:$16 sm:%s29_s12]   ;;  %v354_v6 = vld [vmem:[%s651_s0 + $0xc] ss:$16 sm:%s69_s18]   ;;  %s77_s22 = smov 48  ;;  %s82_s27 = smov 192 }
   0x4   :  { %v349_v4 = vld [vmem:[%s651_s0 + $0xe] ss:$16 sm:%s34_s13]   ;;  %v32_v5 = vsel %vm10_vm1, %v348_v3, %v27_v2  ;;  %v355_v8 = vld [vmem:[%s651_s0 + $0xc] ss:$16 sm:%s72_s21]   ;;  %s412_s28 = smov 91   ;;  %s45_s2 = smov 3 }
   0x5   :  { %v37_v7 = vsel %vm14_vm2, %v349_v4, %v32_v5  ;;  %v356_v9 = vld [vmem:[%s651_s0 + $0xc] ss:$16 sm:%s77_s22]   ;;  %v75_v10 = vsel %vm6_vm0, %v355_v8, %v354_v6  ;;  %s48_s3 = smov 12  ;;  %v350_v13 = vld [vmem:[%s651_s0 + $0xd] ss:$16 sm:%s45_s2]   ;;  %s53_s8 = smov 48 }
   0x6   :  { %38 = vrot.lane.b32.xlu0 %v37_v7, %s412_s28  ;;  %v357_v11 = vld [vmem:[%s651_s0 + $0xc] ss:$16 sm:%s82_s27]   ;;  %v80_v12 = vsel %vm10_vm1, %v356_v9, %v75_v10  ;;  %s58_s9 = smov 192  ;;  %s93_s14 = smov 3  ;;  %vm136_vm8 = vcmask 572920   ;;  %vm160_vm9 = vcmask 515520  }
   0x7   :  { %v351_v14 = vld [vmem:[%s651_s0 + $0xd] ss:$16 sm:%s48_s3]   ;;  %v85_v15 = vsel %vm14_vm2, %v357_v11, %v80_v12  ;;  %s413_s15 = smov 77   ;;  %v358_v20 = vld [vmem:[%s651_s0 + $0xb] ss:$16 sm:%s93_s14]   ;;  %s96_s18 = smov 12 }
   0x8   :  { %v51_v16 = vsel %vm6_vm0, %v351_v14, %v350_v13  ;;  %v352_v17 = vld [vmem:[%s651_s0 + $0xd] ss:$16 sm:%s53_s8]   ;;  %86 = vrot.lane.b32.xlu1 %v85_v15, %s413_s15  ;;  %s101_s19 = smov 48  ;;  %s106_s24 = smov 192  ;;  %vm184_vm10 = vcmask 458120   ;;  %vm208_vm11 = vcmask 400720  }
   0x9   :  { %v353_v18 = vld [vmem:[%s651_s0 + $0xd] ss:$16 sm:%s58_s9]   ;;  %v56_v19 = vsel %vm10_vm1, %v352_v17, %v51_v16  ;;  %v359_v22 = vld [vmem:[%s651_s0 + $0xb] ss:$16 sm:%s96_s18]   ;;  %s414_s25 = smov 84   ;;  %s117_s28 = smov 3 }
   0xa   :  { %v61_v21 = vsel %vm14_vm2, %v353_v18, %v56_v19  ;;  %v360_v23 = vld [vmem:[%s651_s0 + $0xb] ss:$16 sm:%s101_s19]   ;;  %v99_v24 = vsel %vm6_vm0, %v359_v22, %v358_v20  ;;  %s120_s29 = smov 12  ;;  %v362_v27 = vld [vmem:[%s651_s0 + $0xa] ss:$16 sm:%s117_s28]   ;;  %s125_s5 = smov 48 }
   0xb   :  { %62 = vrot.lane.b32.xlu0 %v61_v21, %s414_s25  ;;  %v361_v25 = vld [vmem:[%s651_s0 + $0xb] ss:$16 sm:%s106_s24]   ;;  %v104_v26 = vsel %vm10_vm1, %v360_v23, %v99_v24  ;;  %s130_s6 = smov 192  ;;  %s141_s11 = smov 3  ;;  %vm232_vm12 = vcmask 343320   ;;  %vm256_vm13 = vcmask 285920  }
   0xc   :  { %v363_v28 = vld [vmem:[%s651_s0 + $0xa] ss:$16 sm:%s120_s29]   ;;  %v109_v29 = vsel %vm14_vm2, %v361_v25, %v104_v26  ;;  %s415_s12 = smov 70   ;;  %v366_v34 = vld [vmem:[%s651_s0 + $0x9] ss:$16 sm:%s141_s11]   ;;  %s144_s15 = smov 12 }
   0xd   :  { %v123_v30 = vsel %vm6_vm0, %v363_v28, %v362_v27  ;;  %v364_v31 = vld [vmem:[%s651_s0 + $0xa] ss:$16 sm:%s125_s5]   ;;  %110 = vrot.lane.b32.xlu1 %v109_v29, %s415_s12  ;;  %s149_s16 = smov 48  ;;  %s154_s21 = smov 192  ;;  %vm280_vm14 = vcmask 228520   ;;  %vm304_vm15 = vcmask 171120  }
   0xe   :  { %v365_v32 = vld [vmem:[%s651_s0 + $0xa] ss:$16 sm:%s130_s6]   ;;  %v128_v33 = vsel %vm10_vm1, %v364_v31, %v123_v30  ;;  %v367_v36 = vld [vmem:[%s651_s0 + $0x9] ss:$16 sm:%s144_s15]   ;;  %s416_s22 = smov 63   ;;  %s165_s25 = smov 3 }
   0xf   :  { %v133_v35 = vsel %vm14_vm2, %v365_v32, %v128_v33  ;;  %v368_v37 = vld [vmem:[%s651_s0 + $0x9] ss:$16 sm:%s149_s16]   ;;  %v147_v38 = vsel %vm6_vm0, %v367_v36, %v366_v34  ;;  %s168_s26 = smov 12  ;;  %v370_v41 = vld [vmem:[%s651_s0 + $0x8] ss:$16 sm:%s165_s25]   ;;  %s173_s2 = smov 48 }
  0x10   :  { %134 = vrot.lane.b32.xlu0 %v133_v35, %s416_s22  ;;  %v369_v39 = vld [vmem:[%s651_s0 + $0x9] ss:$16 sm:%s154_s21]   ;;  %v152_v40 = vsel %vm10_vm1, %v368_v37, %v147_v38  ;;  %s178_s3 = smov 192  ;;  %s189_s8 = smov 3 }
  0x11   :  { %v371_v42 = vld [vmem:[%s651_s0 + $0x8] ss:$16 sm:%s168_s26]   ;;  %v157_v43 = vsel %vm14_vm2, %v369_v39, %v152_v40  ;;  %s417_s9 = smov 56   ;;  %v374_v48 = vld [vmem:[%s651_s0 + $0x6] ss:$16 sm:%s189_s8]   ;;  %s192_s12 = smov 12 }
  0x12   :  { %v171_v44 = vsel %vm6_vm0, %v371_v42, %v370_v41  ;;  %v372_v45 = vld [vmem:[%s651_s0 + $0x8] ss:$16 sm:%s173_s2]   ;;  %158 = vrot.lane.b32.xlu1 %v157_v43, %s417_s9  ;;  %s197_s13 = smov 48  ;;  %s202_s18 = smov 192 }
  0x13   :  { %v373_v46 = vld [vmem:[%s651_s0 + $0x8] ss:$16 sm:%s178_s3]   ;;  %v176_v47 = vsel %vm10_vm1, %v372_v45, %v171_v44  ;;  %v375_v50 = vld [vmem:[%s651_s0 + $0x6] ss:$16 sm:%s192_s12]   ;;  %s418_s19 = smov 49   ;;  %s213_s22 = smov 3 }
  0x14   :  { %v181_v49 = vsel %vm14_vm2, %v373_v46, %v176_v47  ;;  %v376_v51 = vld [vmem:[%s651_s0 + $0x6] ss:$16 sm:%s197_s13]   ;;  %v195_v52 = vsel %vm6_vm0, %v375_v50, %v374_v48  ;;  %s216_s23 = smov 12  ;;  %v378_v55 = vld [vmem:[%s651_s0 + $0x5] ss:$16 sm:%s213_s22]   ;;  %s221_s28 = smov 48 }
  0x15   :  { %182 = vrot.lane.b32.xlu0 %v181_v49, %s418_s19  ;;  %v377_v53 = vld [vmem:[%s651_s0 + $0x6] ss:$16 sm:%s202_s18]   ;;  %v200_v54 = vsel %vm10_vm1, %v376_v51, %v195_v52  ;;  %s226_s29 = smov 192  ;;  %s237_s5 = smov 3 }
  0x16   :  { %v379_v56 = vld [vmem:[%s651_s0 + $0x5] ss:$16 sm:%s216_s23]   ;;  %v205_v57 = vsel %vm14_vm2, %v377_v53, %v200_v54  ;;  %s419_s6 = smov 42   ;;  %v382_v62 = vld [vmem:[%s651_s0 + $0x4] ss:$16 sm:%s237_s5]   ;;  %s240_s9 = smov 12 }
  0x17   :  { %v219_v58 = vsel %vm6_vm0, %v379_v56, %v378_v55  ;;  %v380_v59 = vld [vmem:[%s651_s0 + $0x5] ss:$16 sm:%s221_s28]   ;;  %206 = vrot.lane.b32.xlu1 %v205_v57, %s419_s6  ;;  %s245_s10 = smov 48  ;;  %s250_s15 = smov 192 }
  0x18   :  { %v381_v60 = vld [vmem:[%s651_s0 + $0x5] ss:$16 sm:%s226_s29]   ;;  %v224_v61 = vsel %vm10_vm1, %v380_v59, %v219_v58  ;;  %v383_v0 = vld [vmem:[%s651_s0 + $0x4] ss:$16 sm:%s240_s9]   ;;  %s420_s16 = smov 35   ;;  %s261_s19 = smov 3 }
  0x19   :  { %v229_v63 = vsel %vm14_vm2, %v381_v60, %v224_v61  ;;  %v384_v1 = vld [vmem:[%s651_s0 + $0x4] ss:$16 sm:%s245_s10]   ;;  %v243_v2 = vsel %vm6_vm0, %v383_v0, %v382_v62  ;;  %s264_s20 = smov 12  ;;  %v386_v5 = vld [vmem:[%s651_s0 + $0x3] ss:$16 sm:%s261_s19]   ;;  %s269_s25 = smov 48 }
  0x1a   :  { %230 = vrot.lane.b32.xlu0 %v229_v63, %s420_s16  ;;  %v385_v3 = vld [vmem:[%s651_s0 + $0x4] ss:$16 sm:%s250_s15]   ;;  %v248_v4 = vsel %vm10_vm1, %v384_v1, %v243_v2  ;;  %s274_s26 = smov 192  ;;  %s285_s2 = smov 3 }
  0x1b   :  { %v387_v6 = vld [vmem:[%s651_s0 + $0x3] ss:$16 sm:%s264_s20]   ;;  %v253_v7 = vsel %vm14_vm2, %v385_v3, %v248_v4  ;;  %s421_s3 = smov 28   ;;  %v390_v12 = vld [vmem:[%s651_s0 + $0x2] ss:$16 sm:%s285_s2]   ;;  %s288_s6 = smov 12 }
  0x1c   :  { %v267_v8 = vsel %vm6_vm0, %v387_v6, %v386_v5  ;;  %v388_v9 = vld [vmem:[%s651_s0 + $0x3] ss:$16 sm:%s269_s25]   ;;  %254 = vrot.lane.b32.xlu1 %v253_v7, %s421_s3  ;;  %s293_s7 = smov 48  ;;  %s298_s12 = smov 192 }
  0x1d   :  { %v389_v10 = vld [vmem:[%s651_s0 + $0x3] ss:$16 sm:%s274_s26]   ;;  %v272_v11 = vsel %vm10_vm1, %v388_v9, %v267_v8  ;;  %v391_v14 = vld [vmem:[%s651_s0 + $0x2] ss:$16 sm:%s288_s6]   ;;  %s422_s13 = smov 21   ;;  %s309_s16 = smov 3 }
  0x1e   :  { %v277_v13 = vsel %vm14_vm2, %v389_v10, %v272_v11  ;;  %v392_v15 = vld [vmem:[%s651_s0 + $0x2] ss:$16 sm:%s293_s7]   ;;  %v291_v16 = vsel %vm6_vm0, %v391_v14, %v390_v12  ;;  %s312_s17 = smov 12  ;;  %v394_v19 = vld [vmem:[%s651_s0 + $0x1] ss:$16 sm:%s309_s16]   ;;  %s317_s22 = smov 48 }
  0x1f   :  { %278 = vrot.lane.b32.xlu0 %v277_v13, %s422_s13  ;;  %v393_v17 = vld [vmem:[%s651_s0 + $0x2] ss:$16 sm:%s298_s12]   ;;  %v296_v18 = vsel %vm10_vm1, %v392_v15, %v291_v16  ;;  %s322_s23 = smov 192  ;;  %s8_s28 = smov 48 }
  0x20   :  { %v395_v20 = vld [vmem:[%s651_s0 + $0x1] ss:$16 sm:%s312_s17]   ;;  %v301_v21 = vsel %vm14_vm2, %v393_v17, %v296_v18  ;;  %s423_s29 = smov 14   ;;  %v9_v26 = vld [vmem:[%s651_s0] ss:$16 sm:%s8_s28]   ;;  %s12_s3 = smov 192 }
  0x21   :  { %v315_v22 = vsel %vm6_vm0, %v395_v20, %v394_v19  ;;  %v396_v23 = vld [vmem:[%s651_s0 + $0x1] ss:$16 sm:%s317_s22]   ;;  %302 = vrot.lane.b32.xlu1 %v301_v21, %s423_s29  ;;  %s2_s4 = smov 3  ;;  %s4_s9 = smov 12 }
  0x22   :  { %v397_v24 = vld [vmem:[%s651_s0 + $0x1] ss:$16 sm:%s322_s23]   ;;  %v320_v25 = vsel %vm10_vm1, %v396_v23, %v315_v22  ;;  %v13_v28 = vld [vmem:[%s651_s0] ss:$16 sm:%s12_s3]   ;;  %s424_s10 = smov 7  }
  0x23   :  { %v325_v27 = vsel %vm14_vm2, %v397_v24, %v320_v25  ;;  %v3_v29 = vld [vmem:[%s651_s0] ss:$16 sm:%s2_s4]  }
  0x24   :  { %326 = vrot.lane.b32.xlu0 %v325_v27, %s424_s10  ;;  %v5_v30 = vld [vmem:[%s651_s0] ss:$16 sm:%s4_s9]  }
  0x25   :  { %v7_v31 = vsel %vm6_vm0, %v5_v30, %v3_v29  ;;  %vm328_vm0 = vcmask 113720  }
  0x26   :  { %v11_v32 = vsel %vm10_vm1, %v9_v26, %v7_v31 }
  0x27   :  { %v15_v33 = vsel %vm14_vm2, %v13_v28, %v11_v32 }
  0x28   :  { %17 = vst.msk [vmem:[#allocation0] sm:$0xf] %vm16_vm3, %v15_v33   ;;  %19 = vst.msk [vmem:[#allocation0 + $0x4] sm:$0xf0] %vm16_vm3, %v15_v33  }
  0x78   :  { %v39_v34 = vpop.permute.xlu0 %38  }
  0x79   :  { %41 = vst.msk [vmem:[#allocation0] sm:$0xf] %vm40_vm4, %v39_v34   ;;  %43 = vst.msk [vmem:[#allocation0 + $0x4] sm:$0xf0] %vm40_vm4, %v39_v34  }
  0x7a   :  { %v87_v35 = vpop.permute.xlu1 %86  }
  0x7d   :  { %v63_v36 = vpop.permute.xlu0 %62  }
  0x7e   :  { %65 = vst.msk [vmem:[#allocation0] sm:$0xf] %vm64_vm5, %v63_v36   ;;  %67 = vst.msk [vmem:[#allocation0 + $0x4] sm:$0xf0] %vm64_vm5, %v63_v36  }
  0x7f   :  { %89 = vst.msk [vmem:[#allocation0] sm:$0xf] %vm88_vm6, %v87_v35   ;;  %91 = vst.msk [vmem:[#allocation0 + $0x4] sm:$0xf0] %vm88_vm6, %v87_v35   ;;  %v111_v37 = vpop.permute.xlu1 %110  }
  0x80   :  { %113 = vst.msk [vmem:[#allocation0] sm:$0xf] %vm112_vm7, %v111_v37   ;;  %115 = vst.msk [vmem:[#allocation0 + $0x4] sm:$0xf0] %vm112_vm7, %v111_v37  }
  0x82   :  { %v135_v38 = vpop.permute.xlu0 %134  }
  0x83   :  { %137 = vst.msk [vmem:[#allocation0] sm:$0xf] %vm136_vm8, %v135_v38   ;;  %139 = vst.msk [vmem:[#allocation0 + $0x4] sm:$0xf0] %vm136_vm8, %v135_v38  }
  0x84   :  { %v159_v39 = vpop.permute.xlu1 %158  }
  0x85   :  { %161 = vst.msk [vmem:[#allocation0] sm:$0xf] %vm160_vm9, %v159_v39   ;;  %163 = vst.msk [vmem:[#allocation0 + $0x4] sm:$0xf0] %vm160_vm9, %v159_v39  }
  0x87   :  { %v183_v40 = vpop.permute.xlu0 %182  }
  0x88   :  { %185 = vst.msk [vmem:[#allocation0] sm:$0xf] %vm184_vm10, %v183_v40   ;;  %187 = vst.msk [vmem:[#allocation0 + $0x4] sm:$0xf0] %vm184_vm10, %v183_v40  }
  0x89   :  { %v207_v41 = vpop.permute.xlu1 %206  }
  0x8a   :  { %209 = vst.msk [vmem:[#allocation0] sm:$0xf] %vm208_vm11, %v207_v41   ;;  %211 = vst.msk [vmem:[#allocation0 + $0x4] sm:$0xf0] %vm208_vm11, %v207_v41  }
  0x8c   :  { %v231_v42 = vpop.permute.xlu0 %230  }
  0x8d   :  { %233 = vst.msk [vmem:[#allocation0] sm:$0xf] %vm232_vm12, %v231_v42   ;;  %235 = vst.msk [vmem:[#allocation0 + $0x4] sm:$0xf0] %vm232_vm12, %v231_v42  }
  0x8e   :  { %v255_v43 = vpop.permute.xlu1 %254  }
  0x8f   :  { %257 = vst.msk [vmem:[#allocation0] sm:$0xf] %vm256_vm13, %v255_v43   ;;  %259 = vst.msk [vmem:[#allocation0 + $0x4] sm:$0xf0] %vm256_vm13, %v255_v43  }
  0x91   :  { %v279_v44 = vpop.permute.xlu0 %278  }
  0x92   :  { %281 = vst.msk [vmem:[#allocation0] sm:$0xf] %vm280_vm14, %v279_v44   ;;  %283 = vst.msk [vmem:[#allocation0 + $0x4] sm:$0xf0] %vm280_vm14, %v279_v44  }
  0x93   :  { %v303_v45 = vpop.permute.xlu1 %302  }
  0x94   :  { %305 = vst.msk [vmem:[#allocation0] sm:$0xf] %vm304_vm15, %v303_v45   ;;  %307 = vst.msk [vmem:[#allocation0 + $0x4] sm:$0xf0] %vm304_vm15, %v303_v45  }
  0x96   :  { %v327_v46 = vpop.permute.xlu0 %326  }
  0x97   :  { %329 = vst.msk [vmem:[#allocation0] sm:$0xf] %vm328_vm0, %v327_v46   ;;  %331 = vst.msk [vmem:[#allocation0 + $0x4] sm:$0xf0] %vm328_vm0, %v327_v46  }
  0x9e   :  { %v336_v47 = vld [vmem:[#allocation0] sm:$0xf]  ;;  %v341_v48 = vld [vmem:[#allocation0 + $0x8] sm:$0xf] }
  0x9f   :  { %339 = vst [vmem:[%s652_s1] sm:$0xf] %v336_v47  ;;  %398 = vst [vmem:[%s652_s1 + $0x4] sm:$0xf] %v341_v48 }

// kernel: custom-call
= control target key start
LH: loop header
LB: loop body
LE: loop exit
PB: predicated region body
PF: predicated region fallthrough
CT: control target
= control target key end

     0   :  { %s6_s0 = inlined_call_operand.vmem [shape: u32[784], index: 0, kind: output, shape index: {}]  }

// kernel: single_stage_detector_forward.1
= control target key start
LH: loop header
LB: loop body
LE: loop exit
PB: predicated region body
PF: predicated region fallthrough
CT: control target
= control target key end

     0   :  { %v9038_v0 = vmov 1   ;;  %v9039_v1 = vmov 0   ;;  %v9040_v54 = vmov 3   ;;  %vm576_vm0 = vcmask 523264   ;;  %s14361_s8 = inlined_call_operand.vmem [shape: f32[128,9], index: 8, kind: input, shape index: {}]   ;;  %s14362_s1 = inlined_call_operand.vmem [shape: bf16[576,128], index: 1, kind: input, shape index: {}]   ;;  %s14363_s0 = inlined_call_operand.vmem [shape: bf16[128,576], index: 0, kind: input, shape index: {}]   ;;  %s14364_s3 = inlined_call_operand.vmem [shape: bf16[3,1152,128], index: 3, kind: input, shape index: {}]   ;;  %s14365_s2 = inlined_call_operand.vmem [shape: f32[1,128], index: 2, kind: input, shape index: {}]   ;;  %s14366_s7 = inlined_call_operand.vmem [shape: f32[128,128], index: 7, kind: input, shape index: {}]   ;;  %s14367_s4 = inlined_call_operand.vmem [shape: f32[9,128], index: 4, kind: input, shape index: {}]   ;;  %s14368_s5 = inlined_call_operand.vmem [shape: bf16[128,128], index: 5, kind: input, shape index: {}]   ;;  %s14369_s6 = inlined_call_operand.vmem [shape: f32[1,128], index: 6, kind: input, shape index: {}]   ;;  %s14370_s9 = inlined_call_operand.vmem [shape: f32[128,128], index: 9, kind: output, shape index: {}]  }
   0x1   :  { %8602 = vset.pattern.permute.xlu0 %v9038_v0  ;;  %8603 = vset.pattern.permute.xlu1 %v9039_v1  ;;  %v9103_v2 = vld [vmem:[%s14361_s8] sm:$0xff]  ;;  %v8682_v3 = vld [vmem:[%s14362_s1 + $0x78] sm:$0xff]   ;;  %v9116_v5 = vld [vmem:[%s14361_s8 + $0x8] sm:$0xff]  ;;  %vm1177_vm4 = vcmask 1046528   ;;  %vm1453_vm9 = vcmask 1040384   ;;  %vm1315_vm11 = vcmask 1045504  }
   0x2   :  { %1057 = vperm.xlu1 %8603, %v9103_v2   ;;  %1226 = vperm.xlu0 %8602, %v9103_v2   ;;  %v8683_v4 = vld [vmem:[%s14362_s1 + $0x38] sm:$0xff]   ;;  %v8684_v6 = vld [vmem:[%s14362_s1 + $0x70] sm:$0xff]   ;;  %v8686_v9 = vld [vmem:[%s14362_s1 + $0x68] sm:$0xff]  }
   0x3   :  { %7452 = vmatprep.subr.bf16.mxu0 %v8682_v3  ;;  %v8685_v7 = vld [vmem:[%s14362_s1 + $0x30] sm:$0xff]   ;;  %v9137_v10 = vld [vmem:[%s14361_s8 + $0x18] sm:$0xff]  ;;  %v8687_v11 = vld [vmem:[%s14362_s1 + $0x28] sm:$0xff]  }
   0x4   :  { %7453 = vmatpush3.bf16.msra.mxu0 %v8683_v4  ;;  %v9129_v8 = vld [vmem:[%s14361_s8 + $0x10] sm:$0xff]  ;;  %v8688_v12 = vld [vmem:[%s14362_s1 + $0x60] sm:$0xff]   ;;  %v9151_v13 = vld [vmem:[%s14361_s8 + $0x28] sm:$0xff] }
   0x5   :  { %7454 = vmatprep.subr.bf16.mxu0 %v8684_v6  ;;  %v8689_v14 = vld [vmem:[%s14362_s1 + $0x20] sm:$0xff]   ;;  %v8690_v15 = vld [vmem:[%s14362_s1 + $0x58] sm:$0xff]   ;;  %v9164_v16 = vld [vmem:[%s14361_s8 + $0x30] sm:$0xff] }
   0x6   :  { %1062 = vperm.xlu1 %8603, %v9116_v5   ;;  %1230 = vperm.xlu0 %8602, %v9116_v5   ;;  %v9170_v17 = vld [vmem:[%s14361_s8 + $0x20] sm:$0xff]  ;;  %v8691_v18 = vld [vmem:[%s14362_s1 + $0x18] sm:$0xff]   ;;  %v9178_v19 = vld [vmem:[%s14361_s8 + $0x48] sm:$0xff] }
   0x7   :  { %v8692_v20 = vld [vmem:[%s14362_s1 + $0x50] sm:$0xff]   ;;  %v8696_v21 = vld [vmem:[%s14362_s1 + $0xf8] sm:$0xff]   ;;  %v9199_v24 = vld [vmem:[%s14361_s8 + $0x60] sm:$0xff] }
   0x8   :  { %7455 = vmatpush3.bf16.msra.mxu0 %v8685_v7  ;;  %v8697_v22 = vld [vmem:[%s14362_s1 + $0xb8] sm:$0xff]   ;;  %v8693_v23 = vld [vmem:[%s14362_s1 + $0x10] sm:$0xff]   ;;  %v8694_v25 = vld [vmem:[%s14362_s1 + $0x48] sm:$0xff]   ;;  %7516 = vmatprep.subr.bf16.mxu1 %v8696_v21 }
   0x9   :  { %7456 = vmatprep.subr.bf16.mxu0 %v8686_v9  ;;  %v8700_v26 = vld [vmem:[%s14362_s1 + $0xf0] sm:$0xff]   ;;  %v8695_v27 = vld [vmem:[%s14362_s1 + $0x8] sm:$0xff]   ;;  %7517 = vmatpush3.bf16.msra.mxu1 %v8697_v22  ;;  %v8703_v28 = vld [vmem:[%s14363_s0 + $0x4] ss:$20 sps:$4 sm:$0xff]   ;;  %v9041_v9 = vmov 2  }
   0xa   :  { %8604 = vset.pattern.permute.xlu1 %v9038_v0  ;;  %1234 = vperm.xlu0 %8602, %v9129_v8   ;;  %v9217_v29 = vld [vmem:[%s14361_s8 + $0x78] sm:$0xff]  ;;  %v8698_v30 = vld [vmem:[%s14362_s1 + $0x40] sm:$0xff]   ;;  %v8704_v31 = vld [vmem:[%s14362_s1 + $0xb0] sm:$0xff]  }
   0xb   :  { %1238 = vperm.xlu1 %8604, %v9137_v10   ;;  %v8705_v32 = vld [vmem:[%s14362_s1 + $0xe8] sm:$0xff]   ;;  %v8699_v33 = vld [vmem:[%s14362_s1] sm:$0xff]   ;;  %7518 = vmatprep.subr.bf16.mxu1 %v8700_v26  ;;  %v9244_v36 = vld [vmem:[%s14361_s8 + $0x38] sm:$0xff] }
   0xc   :  { %7457 = vmatpush3.bf16.msra.mxu0 %v8687_v11  ;;  %633 = vmatprep.mubr.bf16.mxu0 %v8703_v28  ;;  %v8706_v34 = vld [vmem:[%s14362_s1 + $0xa8] sm:$0xff]   ;;  %v8707_v35 = vld [vmem:[%s14362_s1 + $0xe0] sm:$0xff]   ;;  %v8712_v40 = vld [vmem:[%s14362_s1 + $0xd8] sm:$0xff]  }
   0xd   :  { %7458 = vmatprep.subr.bf16.mxu0 %v8688_v12  ;;  %7519 = vmatpush3.bf16.msra.mxu1 %v8704_v31  ;;  %v8701_v37 = vld [vmem:[%s14363_s0] ss:$20 sps:$4 sm:$0xff]   ;;  %v8713_v41 = vld [vmem:[%s14362_s1 + $0x98] sm:$0xff]   ;;  %v8719_v47 = vld [vmem:[%s14362_s1 + $0xc8] sm:$0xff]  }
   0xe   :  { %1246 = vperm.xlu0 %8602, %v9151_v13   ;;  %7520 = vmatprep.subr.bf16.mxu1 %v8705_v32  ;;  %v8708_v38 = vld [vmem:[%s14363_s0 + $0x2c] ss:$20 sps:$4 sm:$0xff]   ;;  %v8714_v42 = vld [vmem:[%s14362_s1 + $0xd0] sm:$0xff]   ;;  %v8711_v44 = vld [vmem:[%s14363_s0 + $0x28] ss:$20 sps:$4 sm:$0xff]  }
   0xf   :  { %8605 = vset.pattern.permute.xlu1 %v9039_v1  ;;  %v8710_v39 = vld [vmem:[%s14362_s1 + $0xa0] sm:$0xff]   ;;  %v8715_v45 = vld [vmem:[%s14363_s0 + $0x54] ss:$20 sps:$4 sm:$0xff]   ;;  %v9293_v48 = vld [vmem:[%s14361_s8 + $0x58] sm:$0xff] }
  0x10   :  { %1072 = vperm.xlu1 %8605, %v9137_v10   ;;  %7459 = vmatpush3.bf16.msra.mxu0 %v8689_v14  ;;  %v9273_v43 = vld [vmem:[%s14361_s8 + $0x40] sm:$0xff]  ;;  %v8717_v46 = vld [vmem:[%s14362_s1 + $0x90] sm:$0xff]   ;;  %v8720_v50 = vld [vmem:[%s14362_s1 + $0x88] sm:$0xff]  }
  0x11   :  { %7460 = vmatprep.subr.bf16.mxu0 %v8690_v15  ;;  %7521 = vmatpush3.bf16.msra.mxu1 %v8706_v34  ;;  %v8728_v49 = vld [vmem:[%s14363_s0 + $0xc] ss:$20 sps:$4 sm:$0xff]   ;;  %v9309_v52 = vld [vmem:[%s14361_s8 + $0x70] sm:$0xff]  ;;  %v8744_v57 = vld [vmem:[%s14362_s1 + $0x118] sm:$0xff]  }
  0x12   :  { %1250 = vperm.xlu0 %8602, %v9164_v16   ;;  %7522 = vmatprep.subr.bf16.mxu1 %v8707_v35  ;;  %v8721_v51 = vld [vmem:[%s14362_s1 + $0xc0] sm:$0xff]   ;;  %v8722_v55 = vld [vmem:[%s14363_s0 + $0x7c] ss:$20 sps:$4 sm:$0xff]   ;;  %v8732_v59 = vld [vmem:[%s14363_s0 + $0x34] ss:$20 sps:$4 sm:$0xff]   ;;  %v14377_v35 = vmov 4  }
  0x13   :  { %730 = vmatprep.mubr.bf16.mxu1 %v8728_v49  ;;  %v8718_v53 = vld [vmem:[%s14363_s0 + $0x50] ss:$20 sps:$4 sm:$0xff]   ;;  %v8726_v58 = vld [vmem:[%s14363_s0 + $0x8] ss:$20 sps:$4 sm:$0xff]   ;;  %v8725_v61 = vld [vmem:[%s14363_s0 + $0x78] ss:$20 sps:$4 sm:$0xff]  }
  0x14   :  { %8606 = vset.pattern.permute.xlu1 %v9038_v0  ;;  %7461 = vmatpush3.bf16.msra.mxu0 %v8691_v18  ;;  %v8724_v56 = vld [vmem:[%s14362_s1 + $0x80] sm:$0xff]   ;;  %v8748_v60 = vld [vmem:[%s14362_s1 + $0x110] sm:$0xff]   ;;  %v8752_v63 = vld [vmem:[%s14362_s1 + $0x108] sm:$0xff]  }
  0x15   :  { %1242 = vperm.xlu1 %8606, %v9170_v17   ;;  %7462 = vmatprep.subr.bf16.mxu0 %v8692_v20  ;;  %v8729_v62 = vld [vmem:[%s14363_s0 + $0xa4] ss:$20 sps:$4 sm:$0xff]   ;;  %v9353_v3 = vld [vmem:[%s14361_s8 + $0x50] sm:$0xff]  ;;  %v9370_v11 = vld [vmem:[%s14361_s8 + $0x68] sm:$0xff] }
  0x16   :  { %1262 = vperm.xlu0 %8602, %v9178_v19   ;;  %7523 = vmatpush3.bf16.msra.mxu1 %v8710_v39  ;;  %v8734_v4 = vld [vmem:[%s14363_s0 + $0x30] ss:$20 sps:$4 sm:$0xff]   ;;  %v8731_v12 = vld [vmem:[%s14363_s0 + $0xa0] ss:$20 sps:$4 sm:$0xff]   ;;  %v8740_v15 = vld [vmem:[%s14363_s0 + $0x58] ss:$20 sps:$4 sm:$0xff]  }
  0x17   :  { %7524 = vmatprep.subr.bf16.mxu1 %v8712_v40  ;;  %v8738_v6 = vld [vmem:[%s14363_s0 + $0x5c] ss:$20 sps:$4 sm:$0xff]   ;;  %v8756_v7 = vld [vmem:[%s14362_s1 + $0x100] sm:$0xff]   ;;  %v8741_v21 = vld [vmem:[%s14363_s0 + $0xf4] ss:$20 sps:$4 sm:$0xff]  }
  0x18   :  { %7463 = vmatpush3.bf16.msra.mxu0 %v8693_v23  ;;  %v8735_v14 = vld [vmem:[%s14363_s0 + $0xcc] ss:$20 sps:$4 sm:$0xff]   ;;  %v8745_v18 = vld [vmem:[%s14363_s0 + $0x84] ss:$20 sps:$4 sm:$0xff]   ;;  %v8737_v20 = vld [vmem:[%s14363_s0 + $0xc8] ss:$20 sps:$4 sm:$0xff]  }
  0x19   :  { %8607 = vset.pattern.permute.xlu1 %v9039_v1  ;;  %7464 = vmatprep.subr.bf16.mxu0 %v8694_v25  ;;  %v8747_v22 = vld [vmem:[%s14363_s0 + $0x80] ss:$20 sps:$4 sm:$0xff]   ;;  %v8743_v25 = vld [vmem:[%s14363_s0 + $0xf0] ss:$20 sps:$4 sm:$0xff]   ;;  %v8758_v34 = vld [vmem:[%s14363_s0 + $0x38] ss:$20 sps:$4 sm:$0xff]  }
  0x1a   :  { %1077 = vperm.xlu1 %8607, %v9170_v17   ;;  %1274 = vperm.xlu0 %8602, %v9199_v24   ;;  %v8753_v23 = vld [vmem:[%s14363_s0 + $0xac] ss:$20 sps:$4 sm:$0xff]   ;;  %v8749_v26 = vld [vmem:[%s14363_s0 + $0x11c] ss:$20 sps:$4 sm:$0xff]   ;;  %v8759_v28 = vld [vmem:[%s14363_s0 + $0xd4] ss:$20 sps:$4 sm:$0xff]  }
  0x1b   :  { %7525 = vmatpush3.bf16.msra.mxu1 %v8713_v41  ;;  %v8757_v31 = vld [vmem:[%s14363_s0 + $0x10] ss:$20 sps:$4 sm:$0xff]   ;;  %v8763_v39 = vld [vmem:[%s14363_s0 + $0x88] ss:$20 sps:$4 sm:$0xff]  }
  0x1c   :  { %7465 = vmatpush3.bf16.msra.mxu0 %v8695_v27  ;;  %7526 = vmatprep.subr.bf16.mxu1 %v8714_v42  ;;  %v8755_v27 = vld [vmem:[%s14363_s0 + $0xa8] ss:$20 sps:$4 sm:$0xff]   ;;  %v8761_v32 = vld [vmem:[%s14363_s0 + $0xd0] ss:$20 sps:$4 sm:$0xff]   ;;  %v8768_v42 = vld [vmem:[%s14363_s0 + $0xd8] ss:$20 sps:$4 sm:$0xff]  }
  0x1d   :  { %7466 = vmatprep.subr.bf16.mxu0 %v8698_v30  ;;  %v8751_v30 = vld [vmem:[%s14363_s0 + $0x118] ss:$20 sps:$4 sm:$0xff]   ;;  %v8767_v41 = vld [vmem:[%s14363_s0 + $0xb0] ss:$20 sps:$4 sm:$0xff]  }
  0x1e   :  { %1082 = vperm.xlu1 %8607, %v9151_v13   ;;  %1286 = vperm.xlu0 %8602, %v9217_v29   ;;  %v8769_v40 = vld [vmem:[%s14363_s0 + $0x124] ss:$20 sps:$4 sm:$0xff]  }
  0x1f   :  { %7527 = vmatpush3.bf16.msra.mxu1 %v8717_v46  ;;  %v14373_v46 = vmov 5  }
  0x20   :  { %7467 = vmatpush3.bf16.msra.mxu0 %v8699_v33  ;;  %7528 = vmatprep.subr.bf16.mxu1 %v8719_v47  ;;  %v8764_v33 = vld [vmem:[%s14363_s0 + $0xfc] ss:$20 sps:$4 sm:$0xff]  }
  0x21   :  { %8424 = vmatprep.subr.bf16.mxu0 %v8744_v57  ;;  %v8773_v47 = vld [vmem:[%s14363_s0 + $0x128] ss:$20 sps:$4 sm:$0xff]  }
  0x22   :  { %8608 = vset.pattern.permute.xlu1 %v9038_v0  ;;  %8623 = vset.pattern.permute.xlu0 %v9039_v1 }
  0x23   :  { %1254 = vperm.xlu1 %8608, %v9244_v36   ;;  %1067 = vperm.xlu0 %8623, %v9129_v8  }
  0x24   :  { %634 = vmatmul.mubr.bf16.vlgmr.msra.gmra.mxu0 %v8701_v37  ;;  %7529 = vmatpush3.bf16.msra.mxu1 %v8720_v50  ;;  %v8762_v37 = vld [vmem:[%s14363_s0 + $0x60] ss:$20 sps:$4 sm:$0xff]  }
  0x25   :  { %641 = vmatprep.mubr.bf16.mxu0 %v8708_v38  ;;  %7530 = vmatprep.subr.bf16.mxu1 %v8721_v51  ;;  %v8766_v38 = vld [vmem:[%s14363_s0 + $0xf8] ss:$20 sps:$4 sm:$0xff]   ;;  %v14382_v51 = vmov 7  }
  0x26   :  { %8425 = vmatpush3.bf16.msra.mxu0 %v8744_v57 }
  0x27   :  { %8609 = vset.pattern.permute.xlu1 %v9039_v1  ;;  %1087 = vperm.xlu0 %8623, %v9164_v16  }
  0x28   :  { %1092 = vperm.xlu1 %8609, %v9244_v36   ;;  %7531 = vmatpush3.bf16.msra.mxu1 %v8724_v56  ;;  %v14375_v56 = vmov 6  }
  0x29   :  { %8426 = vmatprep.subr.bf16.mxu0 %v8748_v60 }
  0x2a   :  { %8427 = vmatpush3.bf16.msra.mxu0 %v8748_v60 }
  0x2b   :  { %1097 = vperm.xlu0 %8623, %v9273_v43   ;;  %731 = vmatmul.mubr.bf16.vlgmr.msra.gmra.mxu1 %v8726_v58 }
  0x2c   :  { %8610 = vset.pattern.permute.xlu1 %v9038_v0  ;;  %642 = vmatmul.mubr.bf16.gmra.mxu0 %v8711_v44  ;;  %v8771_v44 = vld [vmem:[%s14363_s0 + $0x120] ss:$20 sps:$4 sm:$0xff]  }
  0x2d   :  { %1258 = vperm.xlu1 %8610, %v9273_v43   ;;  %649 = vmatprep.mubr.bf16.mxu0 %v8715_v45  ;;  %v8772_v45 = vld [vmem:[%s14363_s0 + $0x100] ss:$20 sps:$4 sm:$0xff]  }
  0x2e   :  { %738 = vmatprep.mubr.bf16.mxu1 %v8732_v59  ;;  %8428 = vmatprep.subr.bf16.mxu0 %v8752_v63 }
  0x2f   :  { %1112 = vperm.xlu0 %8623, %v9293_v48   ;;  %8429 = vmatpush3.bf16.msra.mxu0 %v8752_v63  ;;  %v8777_v63 = vld [vmem:[%s14364_s3 + $0xb8] sm:$0xff]  }
  0x30   :  { %8430 = vmatprep.subr.bf16.mxu0 %v8756_v7 }
  0x31   :  { %8611 = vset.pattern.permute.xlu1 %v9040_v54 }
  0x32   :  { %1502 = vperm.xlu1 %8611, %v9103_v2  }
  0x33   :  { %1127 = vperm.xlu0 %8623, %v9309_v52   ;;  %739 = vmatmul.mubr.bf16.gmra.mxu1 %v8734_v4 }
  0x34   :  { %650 = vmatmul.mubr.bf16.gmra.mxu0 %v8718_v53  ;;  %746 = vmatprep.mubr.bf16.mxu1 %v8738_v6  ;;  %v8779_v6 = vld [vmem:[%s14364_s3 + $0xf0] sm:$0xff]  }
  0x35   :  { %657 = vmatprep.mubr.bf16.mxu0 %v8722_v55  ;;  %8431 = vmatpush3.bf16.msra.mxu0 %v8756_v7  ;;  %v8780_v7 = vld [vmem:[%s14364_s3 + $0x30] sm:$0xff]  }
  0x36   :  { %1506 = vperm.xlu1 %8611, %v9116_v5  }
  0x37   :  { %8625 = vset.pattern.permute.xlu0 %v9040_v54 }
  0x38   :  { %1510 = vperm.xlu0 %8625, %v9129_v8  }
  0x3a   :  { %8612 = vset.pattern.permute.xlu1 %v9039_v1 }
  0x3b   :  { %1102 = vperm.xlu1 %8612, %v9178_v19   ;;  %747 = vmatmul.mubr.bf16.gmra.mxu1 %v8740_v15  ;;  %v14371_v15 = vmov 8  }
  0x3c   :  { %1522 = vperm.xlu0 %8625, %v9151_v13   ;;  %658 = vmatmul.mubr.bf16.gmra.mxu0 %v8725_v61 }
  0x3d   :  { %665 = vmatprep.mubr.bf16.mxu0 %v8729_v62  ;;  %754 = vmatprep.mubr.bf16.mxu1 %v8745_v18  ;;  %v8776_v62 = vld [vmem:[%s14364_s3 + $0x38] sm:$0xff]  }
  0x3f   :  { %8613 = vset.pattern.permute.xlu1 %v9041_v9 }
  0x40   :  { %1364 = vperm.xlu1 %8613, %v9103_v2   ;;  %1542 = vperm.xlu0 %8625, %v9353_v3  }
  0x43   :  { %755 = vmatmul.mubr.bf16.gmra.mxu1 %v8747_v22  ;;  %v8785_v22 = vld [vmem:[%s14364_s3 + $0xa8] sm:$0xff]  }
  0x44   :  { %8614 = vset.pattern.permute.xlu1 %v9038_v0  ;;  %1554 = vperm.xlu0 %8625, %v9370_v11  }
  0x45   :  { %666 = vmatmul.mubr.bf16.gmra.mxu0 %v8731_v12  ;;  %1266 = vperm.xlu1 %8614, %v9353_v3  }
  0x46   :  { %673 = vmatprep.mubr.bf16.mxu0 %v8735_v14  ;;  %762 = vmatprep.mubr.bf16.mxu1 %v8753_v23  ;;  %v8781_v14 = vld [vmem:[%s14364_s3 + $0xb0] sm:$0xff]  }
  0x48   :  { %8637 = vset.pattern.permute.xlu0 %v9041_v9 }
  0x49   :  { %1270 = vperm.xlu1 %8614, %v9293_v48   ;;  %1368 = vperm.xlu0 %8637, %v9116_v5  }
  0x4b   :  { %763 = vmatmul.mubr.bf16.gmra.mxu1 %v8755_v27  ;;  %v8787_v27 = vld [vmem:[%s14364_s3 + $0xe0] sm:$0xff]  }
  0x4c   :  { %770 = vmatprep.mubr.bf16.mxu1 %v8759_v28  ;;  %v8788_v28 = vld [vmem:[%s14364_s3 + $0x20] sm:$0xff]  }
  0x4d   :  { %674 = vmatmul.mubr.bf16.gmra.mxu0 %v8737_v20  ;;  %8615 = vset.pattern.permute.xlu1 %v9040_v54  ;;  %v8783_v20 = vld [vmem:[%s14364_s3 + $0xe8] sm:$0xff]  }
  0x4e   :  { %1380 = vperm.xlu0 %8637, %v9170_v17   ;;  %1514 = vperm.xlu1 %8615, %v9137_v10  }
  0x4f   :  { %681 = vmatprep.mubr.bf16.mxu0 %v8741_v21  ;;  %v8784_v21 = vld [vmem:[%s14364_s3 + $0x28] sm:$0xff]  }
  0x52   :  { %1392 = vperm.xlu0 %8637, %v9244_v36   ;;  %8616 = vset.pattern.permute.xlu1 %v9039_v1 }
  0x53   :  { %1107 = vperm.xlu1 %8616, %v9353_v3   ;;  %771 = vmatmul.mubr.bf16.gmra.mxu1 %v8761_v32 }
  0x54   :  { %778 = vmatprep.mubr.bf16.mxu1 %v8764_v33  ;;  %v8791_v33 = vld [vmem:[%s14364_s3 + $0xd8] sm:$0xff]  }
  0x55   :  { %682 = vmatmul.mubr.bf16.gmra.mxu0 %v8743_v25  ;;  %v8786_v25 = vld [vmem:[%s14364_s3 + $0x60] sm:$0xff]  }
  0x56   :  { %1400 = vperm.xlu0 %8637, %v9178_v19   ;;  %689 = vmatprep.mubr.bf16.mxu0 %v8749_v26 }
  0x57   :  { %8617 = vset.pattern.permute.xlu1 %v9041_v9 }
  0x58   :  { %1372 = vperm.xlu1 %8617, %v9129_v8  }
  0x5a   :  { %1412 = vperm.xlu0 %8637, %v9199_v24  }
  0x5b   :  { %779 = vmatmul.mubr.bf16.gmra.mxu1 %v8766_v38 }
  0x5c   :  { %1376 = vperm.xlu1 %8617, %v9137_v10   ;;  %786 = vmatprep.mubr.bf16.mxu1 %v8769_v40 }
  0x5d   :  { %690 = vmatmul.mubr.bf16.gmra.mxu0 %v8751_v30  ;;  %v8789_v30 = vld [vmem:[%s14364_s3 + $0xa0] sm:$0xff]  }
  0x5e   :  { %1424 = vperm.xlu0 %8637, %v9217_v29   ;;  %8432 = vmatprep.mubr.msk.bf16.mxu0 %vm576_vm0, %v8757_v31  ;;  %v8790_v31 = vld [vmem:[%s14364_s3 + $0x58] sm:$0xff]  }
  0x60   :  { %8618 = vset.pattern.permute.xlu1 %v9038_v0 }
  0x61   :  { %1278 = vperm.xlu1 %8618, %v9370_v11  }
  0x62   :  { %8644 = vset.pattern.permute.xlu0 %v14377_v35 }
  0x63   :  { %1598 = vperm.xlu0 %8644, %v9129_v8   ;;  %787 = vmatmul.mubr.bf16.gmra.mxu1 %v8771_v44  ;;  %v9675_v44 = vld [vmem:[%s14361_s8 + $0x28] sm:$0xff] }
  0x65   :  { %8433 = vmatmul.mubr.msk.bf16.vlgmr.msra.gmra.mxu0 %vm576_vm0, %v8758_v34  ;;  %8619 = vset.pattern.permute.xlu1 %v9040_v54  ;;  %v8793_v34 = vld [vmem:[%s14364_s3 + $0x98] sm:$0xff]  }
  0x66   :  { %1518 = vperm.xlu1 %8619, %v9170_v17   ;;  %8436 = vmatprep.mubr.msk.bf16.mxu0 %vm576_vm0, %v8762_v37  ;;  %v8794_v37 = vld [vmem:[%s14364_s3 + $0x50] sm:$0xff]  }
  0x67   :  { %1610 = vperm.xlu0 %8644, %v9151_v13  }
  0x6a   :  { %8620 = vset.pattern.permute.xlu1 %v9039_v1 }
  0x6b   :  { %1630 = vperm.xlu0 %8644, %v9353_v3   ;;  %1117 = vperm.xlu1 %8620, %v9199_v24  }
  0x6d   :  { %8437 = vmatmul.mubr.msk.bf16.gmra.mxu0 %vm576_vm0, %v8763_v39  ;;  %v8795_v39 = vld [vmem:[%s14364_s3 + $0xd0] sm:$0xff]  }
  0x6e   :  { %8440 = vmatprep.mubr.msk.bf16.mxu0 %vm576_vm0, %v8767_v41  ;;  %v8797_v41 = vld [vmem:[%s14364_s3 + $0x90] sm:$0xff]  }
  0x6f   :  { %1642 = vperm.xlu0 %8644, %v9370_v11   ;;  %1122 = vperm.xlu1 %8620, %v9370_v11  }
  0x73   :  { %8657 = vset.pattern.permute.xlu0 %v14373_v46  ;;  %8621 = vset.pattern.permute.xlu1 %v9041_v9 }
  0x74   :  { %1678 = vperm.xlu0 %8657, %v9103_v2   ;;  %1384 = vperm.xlu1 %8621, %v9151_v13  }
  0x75   :  { %8441 = vmatmul.mubr.msk.bf16.gmra.mxu0 %vm576_vm0, %v8768_v42  ;;  %v8798_v42 = vld [vmem:[%s14364_s3 + $0x48] sm:$0xff]  }
  0x76   :  { %8444 = vmatprep.mubr.msk.bf16.mxu0 %vm576_vm0, %v8772_v45  ;;  %v8800_v45 = vld [vmem:[%s14364_s3 + $0x8] sm:$0xff]  }
  0x78   :  { %1690 = vperm.xlu0 %8657, %v9137_v10   ;;  %8622 = vset.pattern.permute.xlu1 %v9038_v0 }
  0x79   :  { %1282 = vperm.xlu1 %8622, %v9309_v52  }
  0x7c   :  { %1702 = vperm.xlu0 %8657, %v9164_v16  }
  0x7d   :  { %8445 = vmatmul.mubr.msk.bf16.gmra.mxu0 %vm576_vm0, %v8773_v47  ;;  %8624 = vset.pattern.permute.xlu1 %v9040_v54  ;;  %v9497_v13 = vpop.permute.xlu1 %1057  ;;  %v9547_v59 = vpop.permute.xlu0 %1226  ;;  %v8801_v47 = vld [vmem:[%s14364_s3 + $0x88] sm:$0xff]  }
  0x7e   :  { %14703 = vst [vmem:[#allocation2_spill] sm:$0xff] %v9497_v13  ;;  %1526 = vperm.xlu1 %8624, %v9164_v16   ;;  %14713 = vst [vmem:[#allocation12_spill] sm:$0xff] %v9547_v59 }
  0x80   :  { %1710 = vperm.xlu0 %8657, %v9273_v43  }
  0x81   :  { %v9501_v49 = vpop.permute.xlu1 %1062  ;;  %v9564_v61 = vpop.permute.xlu0 %1230 }
  0x82   :  { %14704 = vst [vmem:[#allocation3_spill] sm:$0xff] %v9501_v49  ;;  %1530 = vperm.xlu1 %8624, %v9244_v36   ;;  %14716 = vst [vmem:[#allocation15_spill] sm:$0xff] %v9564_v61 }
  0x84   :  { %1722 = vperm.xlu0 %8657, %v9293_v48  }
  0x85   :  { %v9586_v12 = vpop.permute.xlu0 %1234 }
  0x86   :  { %8626 = vset.pattern.permute.xlu1 %v9039_v1  ;;  %v9506_v0 = vpop.permute.xlu1 %1238  ;;  %14718 = vst [vmem:[#allocation17_spill] sm:$0xff] %v9586_v12 }
  0x87   :  { %14705 = vst [vmem:[#allocation4_spill] sm:$0xff] %v9506_v0  ;;  %1132 = vperm.xlu1 %8626, %v9217_v29  }
  0x88   :  { %1734 = vperm.xlu0 %8657, %v9309_v52  }
  0x89   :  { %v9608_v23 = vpop.permute.xlu0 %1246 }
  0x8a   :  { %14720 = vst [vmem:[#allocation19_spill] sm:$0xff] %v9608_v23 }
  0x8b   :  { %8627 = vset.pattern.permute.xlu1 %v9041_v9  ;;  %v9511_v50 = vpop.permute.xlu1 %1072 }
  0x8c   :  { %14706 = vst [vmem:[#allocation5_spill] sm:$0xff] %v9511_v50  ;;  %8659 = vset.pattern.permute.xlu0 %v14382_v51  ;;  %1388 = vperm.xlu1 %8627, %v9164_v16  }
  0x8d   :  { %1908 = vperm.xlu0 %8659, %v9116_v5   ;;  %v9634_v32 = vpop.permute.xlu0 %1250 }
  0x8e   :  { %14723 = vst [vmem:[#allocation22_spill] sm:$0xff] %v9634_v32 }
  0x90   :  { %8628 = vset.pattern.permute.xlu1 %v9040_v54  ;;  %v9517_v1 = vpop.permute.xlu1 %1242 }
  0x91   :  { %14707 = vst [vmem:[#allocation6_spill] sm:$0xff] %v9517_v1  ;;  %1920 = vperm.xlu0 %8659, %v9170_v17   ;;  %1534 = vperm.xlu1 %8628, %v9273_v43   ;;  %v9660_v40 = vpop.permute.xlu0 %1262 }
  0x92   :  { %14725 = vst [vmem:[#allocation24_spill] sm:$0xff] %v9660_v40 }
  0x95   :  { %1932 = vperm.xlu0 %8659, %v9244_v36   ;;  %1538 = vperm.xlu1 %8628, %v9178_v19   ;;  %v9523_v53 = vpop.permute.xlu1 %1077 }
  0x96   :  { %14708 = vst [vmem:[#allocation7_spill] sm:$0xff] %v9523_v53 }
  0x99   :  { %1940 = vperm.xlu0 %8659, %v9178_v19   ;;  %8629 = vset.pattern.permute.xlu1 %v14373_v46  ;;  %v9527_v55 = vpop.permute.xlu1 %1082 }
  0x9a   :  { %14709 = vst [vmem:[#allocation8_spill] sm:$0xff] %v9527_v55  ;;  %1682 = vperm.xlu1 %8629, %v9116_v5  }
  0x9d   :  { %8665 = vset.pattern.permute.xlu0 %v14375_v56 }
  0x9e   :  { %1816 = vperm.xlu0 %8665, %v9103_v2   ;;  %8630 = vset.pattern.permute.xlu1 %v9041_v9  ;;  %v9533_v57 = vpop.permute.xlu1 %1254 }
  0x9f   :  { %14710 = vst [vmem:[#allocation9_spill] sm:$0xff] %v9533_v57  ;;  %1396 = vperm.xlu1 %8630, %v9273_v43  }
  0xa2   :  { %1828 = vperm.xlu0 %8665, %v9137_v10  }
  0xa3   :  { %8631 = vset.pattern.permute.xlu1 %v14377_v35  ;;  %v9538_v19 = vpop.permute.xlu1 %1092 }
  0xa4   :  { %14711 = vst [vmem:[#allocation10_spill] sm:$0xff] %v9538_v19  ;;  %1590 = vperm.xlu1 %8631, %v9103_v2  }
  0xa6   :  { %1840 = vperm.xlu0 %8665, %v9164_v16   ;;  %v8775_v16 = vld [vmem:[%s14364_s3 + $0xf8] sm:$0xff]  }
  0xa7   :  { %7656 = vmatprep.subr.bf16.mxu0 %v8775_v16  ;;  %v9690_v16 = vpop.permute.xlu0 %1274 }
  0xa8   :  { %1594 = vperm.xlu1 %8631, %v9116_v5   ;;  %v9543_v58 = vpop.permute.xlu1 %1258  ;;  %v8774_v5 = vld [vmem:[%s14364_s3 + $0x78] sm:$0xff]   ;;  %7657 = vmatpush3.bf16.msra.mxu0 %v8777_v63  ;;  %14727 = vst [vmem:[#allocation26_spill] sm:$0xff] %v9690_v16 }
  0xa9   :  { %14712 = vst [vmem:[#allocation11_spill] sm:$0xff] %v9543_v58  ;;  %7592 = vmatprep.subr.bf16.mxu1 %v8774_v5  ;;  %7658 = vmatprep.subr.bf16.mxu0 %v8779_v6  ;;  %v8802_v5 = vld [vmem:[%s14364_s3 + $0x40] sm:$0xff]   ;;  %v14753_v58 = vmov 5  }
  0xaa   :  { %1848 = vperm.xlu0 %8665, %v9273_v43   ;;  %7593 = vmatpush3.bf16.msra.mxu1 %v8776_v62  ;;  %v8803_v62 = vld [vmem:[%s14364_s3 + $0xc0] sm:$0xff]  }
  0xab   :  { %v9706_v6 = vpop.permute.xlu0 %1286 }
  0xac   :  { %8632 = vset.pattern.permute.xlu1 %v9040_v54  ;;  %7659 = vmatpush3.bf16.msra.mxu0 %v8781_v14  ;;  %14729 = vst [vmem:[#allocation28_spill] sm:$0xff] %v9706_v6 }
  0xad   :  { %1546 = vperm.xlu1 %8632, %v9293_v48   ;;  %v9550_v60 = vpop.permute.xlu1 %1502  ;;  %7660 = vmatprep.subr.bf16.mxu0 %v8783_v20 }
  0xae   :  { %14714 = vst [vmem:[#allocation13_spill] sm:$0xff] %v9550_v60  ;;  %1856 = vperm.xlu0 %8665, %v9353_v3  }
  0xaf   :  { %v9720_v14 = vpop.permute.xlu0 %1067 }
  0xb0   :  { %7661 = vmatpush3.bf16.msra.mxu0 %v8785_v22  ;;  %14732 = vst [vmem:[#allocation31_spill] sm:$0xff] %v9720_v14 }
  0xb1   :  { %8633 = vset.pattern.permute.xlu1 %v14373_v46  ;;  %v9554_v2 = vpop.permute.xlu1 %1506  ;;  %7662 = vmatprep.subr.bf16.mxu0 %v8787_v27 }
  0xb2   :  { %14715 = vst [vmem:[#allocation14_spill] sm:$0xff] %v9554_v2  ;;  %1864 = vperm.xlu0 %8665, %v9199_v24   ;;  %1686 = vperm.xlu1 %8633, %v9129_v8   ;;  %v8778_v8 = vld [vmem:[%s14364_s3 + $0x70] sm:$0xff]  }
  0xb3   :  { %7594 = vmatprep.subr.bf16.mxu1 %v8778_v8  ;;  %v8805_v8 = vld [vmem:[%s14364_s3 + $0x80] sm:$0xff]  }
  0xb4   :  { %7595 = vmatpush3.bf16.msra.mxu1 %v8780_v7  ;;  %7663 = vmatpush3.bf16.msra.mxu0 %v8789_v30 }
  0xb5   :  { %7664 = vmatprep.subr.bf16.mxu0 %v8791_v33 }
  0xb6   :  { %1872 = vperm.xlu0 %8665, %v9309_v52   ;;  %8634 = vset.pattern.permute.xlu1 %v9041_v9  ;;  %v9577_v4 = vpop.permute.xlu1 %1102 }
  0xb7   :  { %14717 = vst [vmem:[#allocation16_spill] sm:$0xff] %v9577_v4  ;;  %1404 = vperm.xlu1 %8634, %v9353_v3   ;;  %v8782_v3 = vld [vmem:[%s14364_s3 + $0x68] sm:$0xff]  }
  0xb8   :  { %7596 = vmatprep.subr.bf16.mxu1 %v8782_v3  ;;  %7665 = vmatpush3.bf16.msra.mxu0 %v8793_v34  ;;  %v9006_v3 = vld [vmem:[%s14361_s8 + $0x78] sm:$0xff] }
  0xb9   :  { %7597 = vmatpush3.bf16.msra.mxu1 %v8784_v21  ;;  %7666 = vmatprep.subr.bf16.mxu0 %v8795_v39  ;;  %v9728_v21 = vpop.permute.xlu0 %1087 }
  0xba   :  { %8679 = vset.pattern.permute.xlu0 %v14371_v15  ;;  %7598 = vmatprep.subr.bf16.mxu1 %v8786_v25  ;;  %14734 = vst [vmem:[#allocation33_spill] sm:$0xff] %v9728_v21  ;;  %v9010_v15 = vld [vmem:[%s14361_s8] sm:$0xff] }
  0xbb   :  { %2004 = vperm.xlu0 %8679, %v9137_v10   ;;  %1408 = vperm.xlu1 %8634, %v9293_v48   ;;  %v9597_v18 = vpop.permute.xlu1 %1364 }
  0xbc   :  { %14719 = vst [vmem:[#allocation18_spill] sm:$0xff] %v9597_v18  ;;  %7667 = vmatpush3.bf16.msra.mxu0 %v8797_v41 }
  0xbd   :  { %7599 = vmatpush3.bf16.msra.mxu1 %v8788_v28 }
  0xbe   :  { %7600 = vmatprep.subr.bf16.mxu1 %v8790_v31  ;;  %v9740_v31 = vpop.permute.xlu0 %1097 }
  0xbf   :  { %2008 = vperm.xlu0 %8679, %v9170_v17   ;;  %8635 = vset.pattern.permute.xlu1 %v14377_v35  ;;  %14736 = vst [vmem:[#allocation35_spill] sm:$0xff] %v9740_v31 }
  0xc0   :  { %1602 = vperm.xlu1 %8635, %v9137_v10   ;;  %v9616_v26 = vpop.permute.xlu1 %1266 }
  0xc1   :  { %14721 = vst [vmem:[#allocation20_spill] sm:$0xff] %v9616_v26 }
  0xc2   :  { %v9748_v39 = vpop.permute.xlu0 %1112 }
  0xc3   :  { %2020 = vperm.xlu0 %8679, %v9244_v36   ;;  %v8792_v36 = vld [vmem:[%s14364_s3 + $0x18] sm:$0xff]   ;;  %14738 = vst [vmem:[#allocation37_spill] sm:$0xff] %v9748_v39 }
  0xc4   :  { %8636 = vset.pattern.permute.xlu1 %v9040_v54  ;;  %v9629_v10 = vpop.permute.xlu1 %1270  ;;  %7601 = vmatpush3.bf16.msra.mxu1 %v8792_v36 }
  0xc5   :  { %14722 = vst [vmem:[#allocation21_spill] sm:$0xff] %v9629_v10  ;;  %1550 = vperm.xlu1 %8636, %v9199_v24   ;;  %7602 = vmatprep.subr.bf16.mxu1 %v8794_v37 }
  0xc7   :  { %2024 = vperm.xlu0 %8679, %v9273_v43   ;;  %v8796_v43 = vld [vmem:[%s14364_s3 + $0x10] sm:$0xff]  }
  0xc8   :  { %7603 = vmatpush3.bf16.msra.mxu1 %v8796_v43 }
  0xc9   :  { %8638 = vset.pattern.permute.xlu1 %v14373_v46  ;;  %v9651_v38 = vpop.permute.xlu1 %1514  ;;  %7604 = vmatprep.subr.bf16.mxu1 %v8798_v42 }
  0xca   :  { %14724 = vst [vmem:[#allocation23_spill] sm:$0xff] %v9651_v38  ;;  %1694 = vperm.xlu1 %8638, %v9170_v17   ;;  %v8799_v17 = vld [vmem:[%s14364_s3 + $0xc8] sm:$0xff]  }
  0xcb   :  { %2036 = vperm.xlu0 %8679, %v9293_v48   ;;  %7668 = vmatprep.subr.bf16.mxu0 %v8799_v17  ;;  %v8806_v17 = vld [vmem:[%s14364_s3 + $0x178] sm:$0xff]  }
  0xcc   :  { %7605 = vmatpush3.bf16.msra.mxu1 %v8800_v45  ;;  %7669 = vmatpush3.bf16.msra.mxu0 %v8801_v47  ;;  %v8807_v45 = vld [vmem:[%s14364_s3 + $0x1f8] sm:$0xff]  }
  0xcd   :  { %7606 = vmatprep.subr.bf16.mxu1 %v8802_v5  ;;  %7670 = vmatprep.subr.bf16.mxu0 %v8803_v62  ;;  %v9773_v62 = vpop.permute.xlu0 %1127 }
  0xce   :  { %1698 = vperm.xlu1 %8638, %v9675_v44   ;;  %v9678_v48 = vpop.permute.xlu1 %1107  ;;  %14741 = vst [vmem:[#allocation40_spill] sm:$0xff] %v9773_v62 }
  0xcf   :  { %14726 = vst [vmem:[#allocation25_spill] sm:$0xff] %v9678_v48  ;;  %2040 = vperm.xlu0 %8679, %v9199_v24   ;;  %v8804_v24 = vld [vmem:[%s14364_s3] sm:$0xff]  }
  0xd0   :  { %7607 = vmatpush3.bf16.msra.mxu1 %v8804_v24  ;;  %7671 = vmatpush3.bf16.msra.mxu0 %v8805_v8 }
  0xd1   :  { %7720 = vmatprep.subr.bf16.mxu1 %v8806_v17  ;;  %7784 = vmatprep.subr.bf16.mxu0 %v8807_v45 }
  0xd2   :  { %8639 = vset.pattern.permute.xlu1 %v9041_v9 }
  0xd3   :  { %2052 = vperm.xlu0 %8679, %v9217_v29   ;;  %1416 = vperm.xlu1 %8639, %v9370_v11   ;;  %v9701_v63 = vpop.permute.xlu1 %1372  ;;  %v9714_v29 = vld [vmem:[%s14361_s8 + $0x20] sm:$0xff] }
  0xd4   :  { %14728 = vst [vmem:[#allocation27_spill] sm:$0xff] %v9701_v63 }
  0xd7   :  { %8640 = vset.pattern.permute.xlu1 %v14377_v35  ;;  %v9709_v7 = vpop.permute.xlu1 %1376 }
  0xd8   :  { %14730 = vst [vmem:[#allocation29_spill] sm:$0xff] %v9709_v7  ;;  %1606 = vperm.xlu1 %8640, %v9714_v29   ;;  %v9880_v7 = vld [vmem:[%s14365_s2] ss:$0 sm:$0xff] }
  0xdc   :  { %8641 = vset.pattern.permute.xlu1 %v9040_v54  ;;  %v9718_v11 = vpop.permute.xlu1 %1278  ;;  %v9007_v54 = vld [vmem:[%s14361_s8 + $0x38] sm:$0xff] }
  0xdd   :  { %14731 = vst [vmem:[#allocation30_spill] sm:$0xff] %v9718_v11  ;;  %1558 = vperm.xlu1 %8641, %v9309_v52  }
  0xe1   :  { %1562 = vperm.xlu1 %8641, %v9006_v3   ;;  %v9726_v20 = vpop.permute.xlu1 %1518 }
  0xe2   :  { %14733 = vst [vmem:[#allocation32_spill] sm:$0xff] %v9726_v20 }
  0xe4   :  { %v7468_v22 = vpop.f32.mrf.mxu0 }
  0xe5   :  { %8642 = vset.pattern.permute.xlu1 %v14373_v46 }
  0xe6   :  { %1706 = vperm.xlu1 %8642, %v9007_v54   ;;  %v9734_v25 = vpop.permute.xlu1 %1117  ;;  %v7469_v27 = vpop.f32.mrf.mxu0 }
  0xe7   :  { %14735 = vst [vmem:[#allocation34_spill] sm:$0xff] %v9734_v25  ;;  %v9736_v28 = vadd.f32 %v7469_v27, %v7468_v22  ;;  %v9009_v22 = vld [vmem:[%s14361_s8 + $0x48] sm:$0xff] }
  0xe8   :  { %v9738_v30 = vpop.f32.mrf.mxu0 }
  0xea   :  { %8643 = vset.pattern.permute.xlu1 %v9041_v9  ;;  %v9743_v33 = vpop.permute.xlu1 %1122  ;;  %v9745_v36 = vpop.f32.mrf.mxu0  ;;  %v9758_v9 = vld [vmem:[%s14361_s8 + $0x30] sm:$0xff] }
  0xeb   :  { %14737 = vst [vmem:[#allocation36_spill] sm:$0xff] %v9743_v33  ;;  %1420 = vperm.xlu1 %8643, %v9309_v52   ;;  %v9785_v27 = vpop.f32.mrf.mxu1 }
  0xec   :  { %v7474_v34 = vpop.f32.mrf.mxu0 }
  0xed   :  { %v9791_v17 = vpop.f32.mrf.mxu1 }
  0xee   :  { %v7475_v37 = vpop.f32.mrf.mxu0 }
  0xef   :  { %v9750_v43 = vadd.f32 %v7475_v37, %v7474_v34  ;;  %8645 = vset.pattern.permute.xlu1 %v14377_v35  ;;  %v9753_v41 = vpop.permute.xlu1 %1384  ;;  %v9789_v37 = vpop.permute.xlu0 %1510 }
  0xf0   :  { %14739 = vst [vmem:[#allocation38_spill] sm:$0xff] %v9753_v41  ;;  %1614 = vperm.xlu1 %8645, %v9758_v9   ;;  %v9761_v42 = vpop.f32.mrf.mxu0  ;;  %14743 = vst [vmem:[#allocation42_spill] sm:$0xff] %v9789_v37 }
  0xf1   :  { %v644_v38 = vadd.f32 %v9750_v43, %v9880_v7  ;;  %v7534_v43 = vadd.f32 %v9791_v17, %v9785_v27  ;;  %v7473_v27 = vadd.f32 %v9745_v36, %v9738_v30  ;;  %v894_v17 = vld [vmem:[%s14366_s7 + $0x10] sm:$0xff] }
  0xf2   :  { %v9763_v52 = vpop.f32.mrf.mxu0 }
  0xf3   :  { %v9807_v25 = vpop.permute.xlu0 %1522  ;;  %v7479_v18 = vadd.f32 %v9763_v52, %v9761_v42 }
  0xf4   :  { %1618 = vperm.xlu1 %8645, %v9007_v54   ;;  %v9771_v47 = vpop.permute.xlu1 %1282  ;;  %v7480_v5 = vpop.f32.mrf.mxu0  ;;  %14745 = vst [vmem:[#allocation44_spill] sm:$0xff] %v9807_v25 }
  0xf5   :  { %14740 = vst [vmem:[#allocation39_spill] sm:$0xff] %v9771_v47  ;;  %v647_v42 = vadd.f32 %v7479_v18, %v9880_v7 }
  0xf6   :  { %v7481_v24 = vpop.f32.mrf.mxu0 }
  0xf7   :  { %v9775_v8 = vadd.f32 %v7481_v24, %v7480_v5  ;;  %v9796_v24 = vpop.f32.mrf.mxu1  ;;  %v9821_v48 = vpop.permute.xlu0 %1542 }
  0xf8   :  { %8646 = vset.pattern.permute.xlu1 %v14373_v46  ;;  %v9778_v3 = vpop.f32.mrf.mxu0  ;;  %14749 = vst [vmem:[#allocation47_spill] sm:$0xff] %v9821_v48 }
  0xf9   :  { %1714 = vperm.xlu1 %8646, %v9009_v22   ;;  %v9783_v54 = vpop.permute.xlu1 %1526  ;;  %v9803_v35 = vpop.f32.mrf.mxu1  ;;  %v652_v18 = vadd.f32 %v9775_v8, %v9880_v7  ;;  %v639_v8 = vadd.f32 %v7473_v27, %v9880_v7 }
  0xfa   :  { %14742 = vst [vmem:[#allocation41_spill] sm:$0xff] %v9783_v54  ;;  %v9787_v34 = vpop.f32.mrf.mxu0 }
  0xfb   :  { %v7538_v6 = vpop.f32.mrf.mxu1 }
  0xfc   :  { %v7486_v45 = vpop.f32.mrf.mxu0 }
  0xfd   :  { %8647 = vset.pattern.permute.xlu1 %v14382_v51  ;;  %v9794_v5 = vpop.permute.xlu1 %1530  ;;  %v14746_v51 = vmov 4  }
  0xfe   :  { %14744 = vst [vmem:[#allocation43_spill] sm:$0xff] %v9794_v5  ;;  %1904 = vperm.xlu1 %8647, %v9010_v15   ;;  %v7487_v46 = vpop.f32.mrf.mxu0  ;;  %v9011_v15 = vld [vmem:[%s14361_s8 + $0x40] sm:$0xff] }
  0xff   :  { %v9801_v56 = vadd.f32 %v7487_v46, %v7486_v45  ;;  %v7539_v46 = vpop.f32.mrf.mxu1 }
 0x100   :  { %v9805_v62 = vpop.f32.mrf.mxu0  ;;  %v7540_v37 = vadd.f32 %v7539_v46, %v7538_v6  ;;  %v636_v6 = vadd.f32 %v9736_v28, %v9880_v7 }
 0x101   :  { %v9817_v11 = vpop.f32.mrf.mxu1  ;;  %v660_v27 = vadd.f32 %v9801_v56, %v9880_v7 }
 0x102   :  { %8648 = vset.pattern.permute.xlu1 %v14746_v51  ;;  %v9810_v47 = vpop.permute.xlu1 %1132  ;;  %v9812_v33 = vpop.f32.mrf.mxu0 }
 0x103   :  { %14747 = vst [vmem:[#allocation45_spill] sm:$0xff] %v9810_v47  ;;  %1622 = vperm.xlu1 %8648, %v9011_v15   ;;  %v9825_v47 = vpop.f32.mrf.mxu1  ;;  %v14750_v15 = vmov 6  }
 0x104   :  { %v7543_v28 = vadd.f32 %v9825_v47, %v9817_v11  ;;  %v7485_v11 = vadd.f32 %v9787_v34, %v9778_v3  ;;  %v7537_v3 = vadd.f32 %v9803_v35, %v9796_v24  ;;  %v892_v34 = vld [vmem:[%s14366_s7] sm:$0xff] }
 0x105   :  { %v7492_v45 = vpop.f32.mrf.mxu0  ;;  %v9829_v4 = vpop.f32.mrf.mxu1 }
 0x107   :  { %v7493_v16 = vpop.f32.mrf.mxu0  ;;  %1626 = vperm.xlu1 %8648, %v9009_v22   ;;  %v9819_v39 = vpop.permute.xlu1 %1388  ;;  %v9012_v22 = vld [vmem:[%s14361_s8 + $0x8] sm:$0xff] }
 0x108   :  { %14748 = vst [vmem:[#allocation46_spill] sm:$0xff] %v9819_v39  ;;  %v9823_v10 = vadd.f32 %v7493_v16, %v7492_v45  ;;  %v9839_v16 = vpop.f32.mrf.mxu1  ;;  %v9841_v45 = vpop.permute.xlu0 %1554 }
 0x109   :  { %v9827_v26 = vpop.f32.mrf.mxu0  ;;  %14752 = vst [vmem:[#allocation49_spill] sm:$0xff] %v9841_v45  ;;  %v7546_v47 = vadd.f32 %v9839_v16, %v9829_v4 }
 0x10a   :  { %v9843_v21 = vpop.f32.mrf.mxu1 }
 0x10b   :  { %v9831_v31 = vpop.f32.mrf.mxu0  ;;  %8649 = vset.pattern.permute.xlu1 %v14750_v15 }
 0x10c   :  { %1820 = vperm.xlu1 %8649, %v9012_v22   ;;  %v9837_v19 = vpop.permute.xlu1 %1534  ;;  %v9013_v22 = vld [vmem:[%s14361_s8 + $0x50] sm:$0xff]  ;;  %v9861_v54 = vpop.permute.xlu0 %1368 }
 0x10d   :  { %14751 = vst [vmem:[#allocation48_spill] sm:$0xff] %v9837_v19  ;;  %v7498_v48 = vpop.f32.mrf.mxu0  ;;  %v9855_v19 = vpop.f32.mrf.mxu1  ;;  %14755 = vst [vmem:[#allocation51_spill] sm:$0xff] %v9861_v54 }
 0x10e   :  { %v7549_v35 = vadd.f32 %v9855_v19, %v9843_v21  ;;  %v895_v19 = vld [vmem:[%s14366_s7 + $0x18] sm:$0xff] }
 0x10f   :  { %v7499_v39 = vpop.f32.mrf.mxu0  ;;  %v9859_v45 = vpop.f32.mrf.mxu1 }
 0x110   :  { %v9845_v40 = vadd.f32 %v7499_v39, %v7498_v48  ;;  %8650 = vset.pattern.permute.xlu1 %v14753_v58  ;;  %v9848_v5 = vpop.permute.xlu1 %1538  ;;  %v14756_v39 = vmov 7  }
 0x111   :  { %14754 = vst [vmem:[#allocation50_spill] sm:$0xff] %v9848_v5  ;;  %v9850_v57 = vpop.f32.mrf.mxu0  ;;  %1718 = vperm.xlu1 %8650, %v9013_v22   ;;  %v9014_v5 = vld [vmem:[%s14361_s8 + $0x10] sm:$0xff]  ;;  %v9869_v55 = vpop.f32.mrf.mxu1 }
 0x113   :  { %v9857_v53 = vpop.f32.mrf.mxu0  ;;  %v9873_v25 = vpop.f32.mrf.mxu1 }
 0x114   :  { %v7503_v56 = vadd.f32 %v9857_v53, %v9850_v57  ;;  %v7497_v53 = vadd.f32 %v9831_v31, %v9827_v26 }
 0x115   :  { %v7504_v48 = vpop.f32.mrf.mxu0  ;;  %8651 = vset.pattern.permute.xlu1 %v14756_v39  ;;  %v9864_v32 = vpop.permute.xlu1 %1682 }
 0x116   :  { %14757 = vst [vmem:[#allocation52_spill] sm:$0xff] %v9864_v32  ;;  %1912 = vperm.xlu1 %8651, %v9014_v5   ;;  %v9015_v32 = vld [vmem:[%s14361_s8 + $0x18] sm:$0xff]  ;;  %v9887_v23 = vpop.f32.mrf.mxu1  ;;  %v679_v26 = vadd.f32 %v7503_v56, %v9880_v7  ;;  %v897_v56 = vld [vmem:[%s14366_s7 + $0x28] sm:$0xff] }
 0x117   :  { %v7505_v22 = vpop.f32.mrf.mxu0 }
 0x118   :  { %v9871_v41 = vadd.f32 %v7505_v22, %v7504_v48  ;;  %v9889_v48 = vpop.permute.xlu0 %1380  ;;  %v9893_v1 = vpop.f32.mrf.mxu1 }
 0x119   :  { %v9875_v20 = vpop.f32.mrf.mxu0  ;;  %14759 = vst [vmem:[#allocation54_spill] sm:$0xff] %v9889_v48 }
 0x11a   :  { %1916 = vperm.xlu1 %8651, %v9015_v32   ;;  %v9885_v50 = vpop.permute.xlu1 %1396  ;;  %v9896_v14 = vpop.f32.mrf.mxu1 }
 0x11b   :  { %14758 = vst [vmem:[#allocation53_spill] sm:$0xff] %v9885_v50  ;;  %v9891_v22 = vpop.f32.mrf.mxu0  ;;  %v9016_v50 = vld [vmem:[%s14361_s8 + $0x58] sm:$0xff] }
 0x11c   :  { %v9907_v54 = vpop.f32.mrf.mxu1  ;;  %v9909_v12 = vpop.permute.xlu0 %1392 }
 0x11d   :  { %v7510_v63 = vpop.f32.mrf.mxu0  ;;  %14761 = vst [vmem:[#allocation56_spill] sm:$0xff] %v9909_v12  ;;  %v733_v12 = vadd.f32 %v7534_v43, %v636_v6  ;;  %v9950_v43 = vld [vmem:[%s14361_s8 + $0x60] sm:$0xff] }
 0x11e   :  { %8652 = vset.pattern.permute.xlu1 %v14746_v51 }
 0x11f   :  { %v7511_v32 = vpop.f32.mrf.mxu0  ;;  %1634 = vperm.xlu1 %8652, %v9016_v50   ;;  %v9903_v48 = vpop.permute.xlu1 %1590 }
 0x120   :  { %14760 = vst [vmem:[#allocation55_spill] sm:$0xff] %v9903_v48  ;;  %v9905_v0 = vadd.f32 %v7511_v32, %v7510_v63  ;;  %v9919_v50 = vpop.f32.mrf.mxu1  ;;  %v741_v32 = vadd.f32 %v7540_v37, %v644_v38 }
 0x121   :  { %v9913_v60 = vpop.f32.mrf.mxu0 }
 0x122   :  { %v9926_v48 = vpop.f32.mrf.mxu1 }
 0x123   :  { %v9921_v46 = vpop.f32.mrf.mxu0  ;;  %8653 = vset.pattern.permute.xlu1 %v14750_v15  ;;  %v9924_v63 = vpop.permute.xlu1 %1594 }
 0x124   :  { %14762 = vst [vmem:[#allocation57_spill] sm:$0xff] %v9924_v63  ;;  %1824 = vperm.xlu1 %8653, %v9014_v5   ;;  %v7563_v59 = vpop.f32.mrf.mxu1  ;;  %v9936_v63 = vpop.permute.xlu0 %1400  ;;  %v744_v5 = vadd.f32 %v7543_v28, %v647_v42 }
 0x125   :  { %v8434_v52 = vpop.f32.mrf.mxu0  ;;  %14763 = vst [vmem:[#allocation58_spill] sm:$0xff] %v9936_v63  ;;  %v749_v63 = vadd.f32 %v7546_v47, %v652_v18  ;;  %v7555_v18 = vadd.f32 %v9887_v23, %v9873_v25 }
 0x126   :  { %v838_v38 = vadd.f32 %v8434_v52, %v741_v32  ;;  %v7565_v36 = vpop.f32.mrf.mxu1  ;;  %v7491_v32 = vadd.f32 %v9812_v33, %v9805_v62  ;;  %v655_v52 = vadd.f32 %v7485_v11, %v9880_v7  ;;  %v9018_v33 = vld [vmem:[%s14361_s8 + $0x68] sm:$0xff] }
 0x127   :  { %v829_v37 = vpop.f32.mrf.mxu0 }
 0x128   :  { %8654 = vset.pattern.permute.xlu1 %v14753_v58  ;;  %v9945_v30 = vpop.permute.xlu1 %1546  ;;  %v830_v4 = vadd.f32 %v829_v37, %v733_v12  ;;  %v7566_v16 = vpop.f32.mrf.mxu1  ;;  %v910_v42 = vmul.f32 %v894_v17, %v838_v38  ;;  %v7552_v12 = vadd.f32 %v9869_v55, %v9859_v45  ;;  %v736_v55 = vadd.f32 %v7537_v3, %v639_v8 }
 0x129   :  { %14764 = vst [vmem:[#allocation59_spill] sm:$0xff] %v9945_v30  ;;  %v8435_v6 = vpop.f32.mrf.mxu0  ;;  %1726 = vperm.xlu1 %8654, %v9950_v43   ;;  %v9975_v17 = vpop.permute.xlu0 %1412  ;;  %v663_v45 = vadd.f32 %v7491_v32, %v9880_v7  ;;  %v676_v3 = vadd.f32 %v9845_v40, %v9880_v7  ;;  %v893_v40 = vld [vmem:[%s14366_s7 + $0x8] sm:$0xff] }
 0x12a   :  { %v9962_v30 = vpop.f32.mrf.mxu1  ;;  %v841_v24 = vadd.f32 %v8435_v6, %v744_v5  ;;  %14766 = vst [vmem:[#allocation61_spill] sm:$0xff] %v9975_v17  ;;  %v908_v38 = vmul.f32 %v892_v34, %v830_v4  ;;  %v942_v11 = vmul.f32 0.2, %v910_v42  ;;  %v668_v5 = vadd.f32 %v9823_v10, %v9880_v7  ;;  %v896_v6 = vld [vmem:[%s14366_s7 + $0x20] sm:$0xff] }
 0x12b   :  { %v832_v28 = vpop.f32.mrf.mxu0  ;;  %vm926_vm1 = vcmp.ge.f32.partialorder %v910_v42, 0.0  ;;  %v757_v25 = vadd.f32 %v7552_v12, %v660_v27  ;;  %v752_v10 = vadd.f32 %v7549_v35, %v655_v52  ;;  %v760_v52 = vadd.f32 %v7555_v18, %v663_v45 }
 0x12c   :  { %v9982_v21 = vpop.f32.mrf.mxu1  ;;  %v9998_v23 = vmul.f32 %v895_v19, %v841_v24  ;;  %v940_v31 = vmul.f32 0.2, %v908_v38  ;;  %v833_v34 = vadd.f32 %v832_v28, %v736_v55  ;;  %vm924_vm2 = vcmp.ge.f32.partialorder %v908_v38, 0.0 }
 0x12d   :  { %v8438_v37 = vpop.f32.mrf.mxu0  ;;  %1730 = vperm.xlu1 %8654, %v9018_v33   ;;  %v9973_v62 = vpop.permute.xlu1 %1686  ;;  %v10007_v33 = vsel %vm926_vm1, %v910_v42, %v942_v11  ;;  %v898_v42 = vld [vmem:[%s14366_s7 + $0x30] sm:$0xff] }
 0x12e   :  { %14765 = vst [vmem:[#allocation60_spill] sm:$0xff] %v9973_v62  ;;  %v9994_v8 = vpop.f32.mrf.mxu1  ;;  %14768 = vst [vmem:[#allocation63_spill] sm:$0xff] %v10007_v33  ;;  %v10014_v24 = vpop.permute.xlu0 %1424  ;;  %v1181_v28 = vrot.slane %v10007_v33, 1  ;;  %vm927_vm3 = vcmp.ge.f32.partialorder %v9998_v23, 0.0  ;;  %v854_v19 = vadd.f32 %v8438_v37, %v757_v25  ;;  %v671_v25 = vadd.f32 %v7497_v53, %v9880_v7 }
 0x12f   :  { %v845_v47 = vpop.f32.mrf.mxu0  ;;  %14769 = vst [vmem:[#allocation64_spill] sm:$0xff] %v10014_v24 }
 0x130   :  { %v846_v57 = vadd.f32 %v845_v47, %v749_v63  ;;  %v7564_v63 = vadd.f32 %v7563_v59, %v9926_v48  ;;  %v10012_v12 = vpop.f32.mrf.mxu1  ;;  %v7558_v59 = vadd.f32 %v9896_v14, %v9893_v1  ;;  %v7567_v48 = vadd.f32 %v7566_v16, %v7565_v36 }
 0x131   :  { %v8439_v4 = vpop.f32.mrf.mxu0  ;;  %8655 = vset.pattern.permute.xlu1 %v14756_v39  ;;  %v10032_v14 = vsel %vm924_vm2, %v908_v38, %v940_v31  ;;  %v909_v36 = vmul.f32 %v893_v40, %v833_v34  ;;  %v10044_v31 = vmul.f32 %v898_v42, %v854_v19  ;;  %v900_v42 = vld [vmem:[%s14366_s7 + $0x40] sm:$0xff] }
 0x132   :  { %1924 = vperm.xlu1 %8655, %v9675_v44   ;;  %v10004_v32 = vpop.permute.xlu1 %1404  ;;  %v912_v27 = vmul.f32 %v896_v6, %v846_v57  ;;  %v7515_v44 = vadd.f32 %v9921_v46, %v9913_v60  ;;  %v10028_v1 = vpop.f32.mrf.mxu1  ;;  %14770 = vst [vmem:[#allocation65_spill] sm:$0xff] %v10032_v14  ;;  %v943_v46 = vmul.f32 0.2, %v9998_v23  ;;  %v773_v16 = vadd.f32 %v7564_v63, %v676_v3  ;;  %v899_v63 = vld [vmem:[%s14366_s7 + $0x38] sm:$0xff] }
 0x133   :  { %14767 = vst [vmem:[#allocation62_spill] sm:$0xff] %v10004_v32  ;;  %v848_v35 = vpop.f32.mrf.mxu0  ;;  %v1316_v11 = vrot.slane %v10032_v14, 2  ;;  %v1178_v38 = vrot.slane %v10032_v14, 1  ;;  %v776_v3 = vadd.f32 %v7567_v48, %v679_v26  ;;  %vm925_vm7 = vcmp.ge.f32.partialorder %v909_v36, 0.0 }
 0x134   :  { %v849_v55 = vadd.f32 %v848_v35, %v752_v10  ;;  %v944_v37 = vmul.f32 0.2, %v912_v27  ;;  %v10040_v6 = vpop.f32.mrf.mxu1  ;;  %v765_v10 = vadd.f32 %v7558_v59, %v668_v5  ;;  %vm928_vm5 = vcmp.ge.f32.partialorder %v912_v27, 0.0  ;;  %v10049_v35 = vpop.permute.xlu0 %1598 }
 0x135   :  { %v8442_v45 = vpop.f32.mrf.mxu0  ;;  %14772 = vst [vmem:[#allocation67_spill] sm:$0xff] %v10049_v35  ;;  %v1454_v53 = vrot.slane %v10032_v14, 7  ;;  %v695_v5 = vadd.f32 %v7515_v44, %v9880_v7  ;;  %v7561_v26 = vadd.f32 %v9919_v50, %v9907_v54  ;;  %v10058_v59 = vsel %vm927_vm3, %v9998_v23, %v943_v46  ;;  %v902_v50 = vld [vmem:[%s14366_s7 + $0x50] sm:$0xff]  ;;  %v14802_v35 = vld [vmem:[#allocation23_spill] sm:$0xff] }
 0x136   :  { %8656 = vset.pattern.permute.xlu1 %v14746_v51  ;;  %v10036_v18 = vpop.permute.xlu1 %1408  ;;  %v913_v47 = vmul.f32 %v897_v56, %v849_v55  ;;  %v941_v56 = vmul.f32 0.2, %v909_v36  ;;  %v857_v55 = vadd.f32 %v8439_v4, %v760_v52  ;;  %14773 = vst [vmem:[#allocation68_spill] sm:$0xff] %v10058_v59  ;;  %v870_v48 = vadd.f32 %v8442_v45, %v773_v16  ;;  %v903_v45 = vld [vmem:[%s14366_s7 + $0x58] sm:$0xff] }
 0x137   :  { %14771 = vst [vmem:[#allocation66_spill] sm:$0xff] %v10036_v18  ;;  %v861_v57 = vpop.f32.mrf.mxu0  ;;  %1638 = vperm.xlu1 %8656, %v9950_v43   ;;  %v7577_v43 = vpop.f32.mrf.mxu1  ;;  %v10067_v52 = vsel %vm928_vm5, %v912_v27, %v944_v37  ;;  %v684_v27 = vadd.f32 %v9871_v41, %v9880_v7  ;;  %v7509_v16 = vadd.f32 %v9891_v22, %v9875_v20  ;;  %vm930_vm8 = vcmp.ge.f32.partialorder %v10044_v31, 0.0  ;;  %v907_v20 = vld [vmem:[%s14366_s7 + $0x78] sm:$0xff] }
 0x138   :  { %vm929_vm6 = vcmp.ge.f32.partialorder %v913_v47, 0.0  ;;  %v945_v34 = vmul.f32 0.2, %v913_v47  ;;  %v862_v23 = vadd.f32 %v861_v57, %v765_v10  ;;  %v14437_v57 = vrot.slane %v10058_v59, 1 }
 0x139   :  { %v8443_v40 = vpop.f32.mrf.mxu0  ;;  %v7578_v46 = vpop.f32.mrf.mxu1  ;;  %v915_v10 = vmul.f32 %v899_v63, %v857_v55  ;;  %v14436_v22 = vrot.slane %v10067_v52, 1  ;;  %v768_v55 = vadd.f32 %v7561_v26, %v671_v25  ;;  %v7576_v25 = vadd.f32 %v10040_v6, %v10028_v1 }
 0x13a   :  { %v10070_v54 = vsel %vm929_vm6, %v913_v47, %v945_v34  ;;  %v873_v44 = vadd.f32 %v8443_v40, %v776_v3  ;;  %v7579_v37 = vadd.f32 %v7578_v46, %v7577_v43  ;;  %v10086_v34 = vsel %vm925_vm7, %v909_v36, %v941_v56  ;;  %v10099_v40 = vpop.permute.xlu0 %1610 }
 0x13b   :  { %v864_v19 = vpop.f32.mrf.mxu0  ;;  %8658 = vset.pattern.permute.xlu1 %v14750_v15  ;;  %v10064_v4 = vpop.permute.xlu1 %1602  ;;  %14775 = vst [vmem:[#allocation70_spill] sm:$0xff] %v10086_v34  ;;  %v10090_v3 = vmul.f32 %v902_v50, %v870_v48  ;;  %v14435_v36 = vrot.slane %v10070_v54, 1  ;;  %14776 = vst [vmem:[#allocation71_spill] sm:$0xff] %v10099_v40  ;;  %v7570_v43 = vadd.f32 %v9982_v21, %v9962_v30  ;;  %v946_v50 = vmul.f32 0.2, %v10044_v31 }
 0x13c   :  { %14774 = vst [vmem:[#allocation69_spill] sm:$0xff] %v10064_v4  ;;  %1832 = vperm.xlu1 %8658, %v9714_v29   ;;  %v792_v41 = vadd.f32 %v7579_v37, %v695_v5  ;;  %v916_v63 = vmul.f32 %v900_v42, %v862_v23  ;;  %v919_v56 = vmul.f32 %v903_v45, %v873_v44  ;;  %v10106_v5 = vld [vmem:[%s14361_s8 + $0x28] sm:$0xff]  ;;  %v1179_v21 = vrot.slane %v10086_v34, 1  ;;  %v14817_v4 = vld [vmem:[#allocation44_spill] sm:$0xff] }
 0x13d   :  { %v10083_v47 = vpop.f32.mrf.mxu0  ;;  %14777 = vst [vmem:[#allocation72_spill] sm:$0xff] %v10106_v5  ;;  %v10117_v30 = vsel %vm1177_vm4, %v14436_v22, %v14435_v36  ;;  %vm931_vm10 = vcmp.ge.f32.partialorder %v915_v10, 0.0  ;;  %v947_v26 = vmul.f32 0.2, %v915_v10  ;;  %v1455_v23 = vrot.slane %v10086_v34, 7 }
 0x13e   :  { %v687_v44 = vadd.f32 %v7509_v16, %v9880_v7  ;;  %v692_v45 = vadd.f32 %v9905_v0, %v9880_v7  ;;  %v7573_v37 = vadd.f32 %v10012_v12, %v9994_v8  ;;  %v10128_v36 = vmul.f32 0.2, %v10090_v3  ;;  %v10146_v12 = vld [vmem:[%s14361_s8 + $0x78] sm:$0xff]  ;;  %v10155_v6 = vpop.permute.xlu0 %1630 }
 0x13f   :  { %v10092_v29 = vpop.f32.mrf.mxu0  ;;  %v948_v22 = vmul.f32 0.2, %v916_v63  ;;  %v951_v60 = vmul.f32 0.2, %v919_v56  ;;  %v10141_v0 = vsel %vm1177_vm4, %v1181_v28, %v14437_v57  ;;  %v865_v7 = vadd.f32 %v864_v19, %v768_v55  ;;  %14780 = vst [vmem:[#allocation75_spill] sm:$0xff] %v10155_v6 }
 0x140   :  { %1836 = vperm.xlu1 %8658, %v10106_v5   ;;  %v10109_v48 = vpop.permute.xlu1 %1550  ;;  %v781_v8 = vadd.f32 %v7570_v43, %v684_v27  ;;  %v10160_v19 = vsel %vm930_vm8, %v10044_v31, %v946_v50  ;;  %vm932_vm12 = vcmp.ge.f32.partialorder %v916_v63, 0.0  ;;  %v10163_v16 = vsel %vm931_vm10, %v915_v10, %v947_v26  ;;  %v14850_v5 = vld [vmem:[#allocation50_spill] sm:$0xff] }
 0x141   :  { %14778 = vst [vmem:[#allocation73_spill] sm:$0xff] %v10109_v48  ;;  %v8447_v46 = vpop.f32.mrf.mxu0  ;;  %vm935_vm14 = vcmp.ge.f32.partialorder %v919_v56, 0.0  ;;  %v789_v55 = vadd.f32 %v7576_v25, %v692_v45  ;;  %v10171_v57 = vsel %vm1177_vm4, %v1178_v38, %v1179_v21  ;;  %v10176_v31 = vsel %vm1453_vm9, %v1454_v53, %v1455_v23 }
 0x142   :  { %v889_v42 = vadd.f32 %v8447_v46, %v792_v41  ;;  %v901_v41 = vld [vmem:[%s14366_s7 + $0x48] sm:$0xff]  ;;  %14781 = vst [vmem:[#allocation76_spill] sm:$0xff] %v10171_v57  ;;  %14782 = vst [vmem:[#allocation77_spill] sm:$0xff] %v10176_v31  ;;  %v10178_v50 = vsel %vm932_vm12, %v916_v63, %v948_v22  ;;  %v10187_v45 = vsel %vm935_vm14, %v919_v56, %v951_v60  ;;  %v10208_v56 = vpop.permute.xlu0 %1642  ;;  %vm934_vm15 = vcmp.ge.f32.partialorder %v10090_v3, 0.0 }
 0x143   :  { %v10180_v10 = vmul.f32 %v901_v41, %v865_v7  ;;  %v10195_v22 = vsel %vm1177_vm4, %v1179_v21, %v1181_v28  ;;  %v878_v63 = vadd.f32 %v10092_v29, %v781_v8  ;;  %v1290_v41 = vmul.f32 %v9564_v61, %v10171_v57  ;;  %14785 = vst [vmem:[#allocation80_spill] sm:$0xff] %v10208_v56  ;;  %v880_v7 = vpop.f32.mrf.mxu0  ;;  %v14788_v8 = vld [vmem:[#allocation12_spill] sm:$0xff]  ;;  %v14791_v61 = vld [vmem:[#allocation17_spill] sm:$0xff] }
 0x144   :  { %v923_v46 = vmul.f32 %v907_v20, %v889_v42  ;;  %8660 = vset.pattern.permute.xlu1 %v14753_v58  ;;  %v10153_v58 = vmul.f32 %v9501_v49, %v10032_v14  ;;  %v784_v20 = vadd.f32 %v7573_v37, %v687_v44  ;;  %v1317_v44 = vrot.slane %v10086_v34, 2  ;;  %14784 = vst [vmem:[#allocation79_spill] sm:$0xff] %v10195_v22  ;;  %v14834_v14 = vld [vmem:[#allocation9_spill] sm:$0xff] }
 0x145   :  { %1738 = vperm.xlu1 %8660, %v10146_v12   ;;  %v10149_v1 = vpop.permute.xlu1 %1694  ;;  %v1291_v49 = vmul.f32 %v14791_v61, %v10195_v22  ;;  %v14794_v56 = vrot.slane %v10007_v33, 7  ;;  %vm933_vm0 = vcmp.ge.f32.partialorder %v10180_v10, 0.0  ;;  %vm1765_vm5 = vcmask 1041408  }
 0x146   :  { %14779 = vst [vmem:[#allocation74_spill] sm:$0xff] %v10149_v1  ;;  %vm939_vm13 = vcmp.ge.f32.partialorder %v923_v46, 0.0  ;;  %v955_v27 = vmul.f32 0.2, %v923_v46  ;;  %v1318_v60 = vsel %vm1315_vm11, %v1316_v11, %v1317_v44 }
 0x148   :  { %v10166_v42 = vsel %vm939_vm13, %v923_v46, %v955_v27 }
 0x149   :  { %v14438_v26 = vrot.slane %v10166_v42, 2  ;;  %8661 = vset.pattern.permute.xlu1 %v14756_v39  ;;  %v10184_v25 = vpop.permute.xlu1 %1698  ;;  %v14439_v37 = vrot.slane %v10166_v42, 1  ;;  %v14444_v46 = vrot.slane %v10166_v42, 7  ;;  %v1135_v21 = vmul.f32 %v9497_v13, %v10166_v42 }
 0x14a   :  { %14783 = vst [vmem:[#allocation78_spill] sm:$0xff] %v10184_v25  ;;  %1928 = vperm.xlu1 %8661, %v9758_v9  }
 0x14b   :  { %v1362_v9 = vsel %vm1315_vm11, %v14438_v26, %v1316_v11  ;;  %v10215_v28 = vsel %vm1177_vm4, %v14439_v37, %v1178_v38  ;;  %v10222_v29 = vsel %vm1453_vm9, %v14444_v46, %v1454_v53  ;;  %v1566_v11 = vmul.f32 %v9554_v2, %v10176_v31  ;;  %v14789_v26 = vld [vmem:[#allocation13_spill] sm:$0xff]  ;;  %v14790_v37 = vld [vmem:[#allocation18_spill] sm:$0xff]  ;;  %v14793_v2 = vld [vmem:[#allocation51_spill] sm:$0xff] }
 0x14c   :  { %14786 = vst [vmem:[#allocation81_spill] sm:$0xff] %v10215_v28  ;;  %14787 = vst [vmem:[#allocation82_spill] sm:$0xff] %v10222_v29  ;;  %v1289_v27 = vmul.f32 %v14788_v8, %v10215_v28  ;;  %v1565_v38 = vmul.f32 %v14789_v26, %v10222_v29  ;;  %v1427_v43 = vmul.f32 %v14790_v37, %v1362_v9  ;;  %v10236_v53 = vmul.f32 0.2, %v10180_v10  ;;  %v14801_v28 = vld [vmem:[#allocation42_spill] sm:$0xff] }
 0x14d   :  { %v1428_v13 = vmul.f32 %v14793_v2, %v1318_v60  ;;  %v10245_v8 = vsel %vm1453_vm9, %v1455_v23, %v14794_v56  ;;  %v14796_v26 = vrot.slane %v10058_v59, 7  ;;  %v14797_v9 = vmov %v14794_v56  ;;  %v905_v60 = vld [vmem:[%s14366_s7 + $0x68] sm:$0xff]  ;;  %v10263_v23 = vld [vmem:[%s14361_s8 + $0x70] sm:$0xff] }
 0x14e   :  { %8662 = vset.pattern.permute.xlu1 %v14746_v51  ;;  %v10239_v46 = vpop.permute.xlu1 %1416  ;;  %14795 = vst [vmem:[#allocation84_spill] sm:$0xff] %v10245_v8  ;;  %v904_v51 = vld [vmem:[%s14366_s7 + $0x60] sm:$0xff]  ;;  %v881_v37 = vadd.f32 %v880_v7, %v784_v20  ;;  %14799 = vst [vmem:[#allocation86_spill] sm:$0xff] %v10263_v23  ;;  %v1305_v56 = vpack.c.bf16 %v1290_v41, %v1289_v27  ;;  %v1581_v2 = vpack.c.bf16 %v1566_v11, %v1565_v38  ;;  %v8808_v20 = vld [vmem:[%s14364_s3 + $0x138] sm:$0xff]  }
 0x14f   :  { %14792 = vst [vmem:[#allocation83_spill] sm:$0xff] %v10239_v46  ;;  %v10252_v61 = vsel %vm1453_vm9, %v14797_v9, %v14796_v26  ;;  %1646 = vperm.xlu1 %8662, %v10263_v23   ;;  %v14800_v26 = vld [vmem:[#allocation4_spill] sm:$0xff]  ;;  %v1151_v7 = vpack.c.bf16 %v10153_v58, %v1135_v21  ;;  %v1443_v29 = vpack.c.bf16 %v1428_v13, %v1427_v43  ;;  %v8809_v41 = vld [vmem:[%s14364_s3 + $0x1b8] sm:$0xff]   ;;  %v1319_v38 = vrot.slane %v10007_v33, 2  ;;  %v10288_v43 = vpop.permute.xlu0 %1678 }
 0x150   :  { %14798 = vst [vmem:[#allocation85_spill] sm:$0xff] %v10252_v61  ;;  %v1292_v9 = vmul.f32 %v14800_v26, %v10141_v0  ;;  %v1567_v6 = vmul.f32 %v14801_v28, %v10245_v8  ;;  %v1568_v23 = vmul.f32 %v14802_v35, %v10252_v61  ;;  %v10281_v11 = vadd.f32 %v10083_v47, %v789_v55  ;;  %v8810_v58 = vld [vmem:[%s14364_s3 + $0x170] sm:$0xff]   ;;  %v14807_v35 = vld [vmem:[#allocation31_spill] sm:$0xff] }
 0x151   :  { %2691 = vmatprep.mubr.bf16.mxu1 %v1305_v56  ;;  %2788 = vmatprep.mubr.bf16.mxu0 %v1581_v2  ;;  %v1321_v13 = vrot.slane %v10058_v59, 2  ;;  %14803 = vst [vmem:[#allocation87_spill] sm:$0xff] %v10288_v43  ;;  %v14804_v47 = vrot.slane %v10067_v52, 1  ;;  %v14805_v2 = vrot.slane %v10058_v59, 1  ;;  %v1461_v55 = vrot.slane %v10067_v52, 7  ;;  %v8811_v56 = vld [vmem:[%s14364_s3 + $0x1f0] sm:$0xff]  }
 0x152   :  { %v1306_v27 = vpack.c.bf16 %v1292_v9, %v1291_v49  ;;  %2692 = vmatmul.mubr.bf16.vlgmr.msra.gmra.mxu1 %v1151_v7  ;;  %2789 = vmatmul.mubr.bf16.vlgmr.msra.gmra.mxu0 %v1443_v29  ;;  %v1582_v21 = vpack.c.bf16 %v1568_v23, %v1567_v6  ;;  %v1320_v6 = vsel %vm1315_vm11, %v1317_v44, %v1319_v38  ;;  %v1463_v7 = vrot.slane %v10070_v54, 7  ;;  %v14808_v9 = vld [vmem:[#allocation27_spill] sm:$0xff]  ;;  %v14809_v44 = vld [vmem:[#allocation6_spill] sm:$0xff]  ;;  %v14841_v43 = vld [vmem:[#allocation24_spill] sm:$0xff] }
 0x153   :  { %v10296_v49 = vsel %vm1177_vm4, %v14805_v2, %v14804_v47  ;;  %1650 = vperm.xlu1 %8662, %v10146_v12   ;;  %v10304_v29 = vpop.permute.xlu1 %1606  ;;  %v1322_v23 = vsel %vm1315_vm11, %v1319_v38, %v1321_v13  ;;  %v10309_v47 = vmul.f32 %v904_v51, %v878_v63  ;;  %v10311_v2 = vmul.f32 %v905_v60, %v881_v37  ;;  %v8812_v12 = vld [vmem:[%s14364_s3 + $0x130] sm:$0xff]   ;;  %v14810_v38 = vld [vmem:[#allocation19_spill] sm:$0xff]  ;;  %v14814_v60 = vld [vmem:[#allocation5_spill] sm:$0xff] }
 0x154   :  { %2699 = vmatprep.mubr.bf16.mxu1 %v1306_v27  ;;  %14806 = vst [vmem:[#allocation88_spill] sm:$0xff] %v10304_v29  ;;  %2796 = vmatprep.mubr.bf16.mxu0 %v1582_v21  ;;  %v1137_v28 = vmul.f32 %v14807_v35, %v10086_v34  ;;  %v1429_v27 = vmul.f32 %v14808_v9, %v1320_v6  ;;  %v14811_v63 = vrot.slane %v10058_v59, 7  ;;  %v14815_v6 = vld [vmem:[#allocation29_spill] sm:$0xff]  ;;  %v14816_v35 = vld [vmem:[#allocation32_spill] sm:$0xff]  ;;  %v14818_v8 = vrot.slane %v10160_v19, 1 }
 0x155   :  { %v1293_v26 = vmul.f32 %v14809_v44, %v10296_v49  ;;  %v1294_v61 = vmul.f32 %v14810_v38, %v10117_v30  ;;  %v10329_v51 = vsel %vm1453_vm9, %v1461_v55, %v1463_v7  ;;  %7721 = vmatpush3.bf16.msra.mxu1 %v8808_v20  ;;  %v1138_v21 = vmul.f32 %v14814_v60, %v10007_v33 }
 0x156   :  { %v10326_v37 = vsel %vm1453_vm9, %v14811_v63, %v1461_v55  ;;  %14813 = vst [vmem:[#allocation90_spill] sm:$0xff] %v10329_v51  ;;  %v1430_v9 = vmul.f32 %v14815_v6, %v1322_v23  ;;  %v1570_v38 = vmul.f32 %v14817_v4, %v10329_v51  ;;  %7785 = vmatpush3.bf16.msra.mxu0 %v8809_v41  ;;  %v14819_v63 = vrot.slane %v10070_v54, 1  ;;  %v906_v41 = vld [vmem:[%s14366_s7 + $0x70] sm:$0xff]  ;;  %v9022_v4 = vld [vmem:[%s14361_s8 + $0x38] sm:$0xff]  ;;  %v8814_v23 = vld [vmem:[%s14364_s3 + $0x168] sm:$0xff]  }
 0x157   :  { %14812 = vst [vmem:[#allocation89_spill] sm:$0xff] %v10326_v37  ;;  %v1569_v44 = vmul.f32 %v14816_v35, %v10326_v37  ;;  %8663 = vset.pattern.permute.xlu1 %v14750_v15  ;;  %v1307_v20 = vpack.c.bf16 %v1294_v61, %v1293_v26  ;;  %v1323_v60 = vrot.slane %v10067_v52, 2  ;;  %7722 = vmatprep.subr.bf16.mxu1 %v8810_v58  ;;  %v10348_v35 = vpop.permute.xlu0 %1690  ;;  %v1191_v6 = vrot.slane %v10163_v16, 1  ;;  %v8813_v58 = vld [vmem:[%s14364_s3 + $0x1b0] sm:$0xff]   ;;  %v14824_v37 = vld [vmem:[#allocation38_spill] sm:$0xff] }
 0x158   :  { %v10343_v55 = vsel %vm1177_vm4, %v14819_v63, %v14818_v8  ;;  %14820 = vst [vmem:[#allocation91_spill] sm:$0xff] %v10348_v35  ;;  %1844 = vperm.xlu1 %8663, %v9022_v4   ;;  %v10356_v8 = vpop.permute.xlu1 %1558  ;;  %v1152_v63 = vpack.c.bf16 %v1138_v21, %v1137_v28  ;;  %v1444_v61 = vpack.c.bf16 %v1430_v9, %v1429_v27  ;;  %v952_v51 = vmul.f32 0.2, %v10309_v47 }
 0x159   :  { %14821 = vst [vmem:[#allocation92_spill] sm:$0xff] %v10356_v8  ;;  %v1583_v26 = vpack.c.bf16 %v1570_v38, %v1569_v44  ;;  %7786 = vmatprep.subr.bf16.mxu0 %v8811_v56  ;;  %v10367_v4 = vmul.f32 0.2, %v10311_v2  ;;  %v1324_v28 = vsel %vm1315_vm11, %v1321_v13, %v1323_v60  ;;  %v14822_v9 = vrot.slane %v10070_v54, 2  ;;  %7723 = vmatpush3.bf16.msra.mxu1 %v8812_v12  ;;  %v8815_v56 = vld [vmem:[%s14364_s3 + $0x1e8] sm:$0xff]   ;;  %v14823_v38 = vld [vmem:[#allocation54_spill] sm:$0xff] }
 0x15a   :  { %v8816_v44 = vld [vmem:[%s14364_s3 + $0x128] sm:$0xff]   ;;  %2700 = vmatmul.mubr.bf16.gmra.mxu1 %v1152_v63  ;;  %2797 = vmatmul.mubr.bf16.gmra.mxu0 %v1444_v61  ;;  %v1431_v21 = vmul.f32 %v14823_v38, %v1324_v28  ;;  %v1193_v13 = vrot.slane %v10178_v50, 1  ;;  %v1465_v34 = vrot.slane %v10160_v19, 7  ;;  %v8818_v12 = vld [vmem:[%s14364_s3 + $0x160] sm:$0xff]   ;;  %vm936_vm1 = vcmp.ge.f32.partialorder %v10309_v47, 0.0 }
 0x15b   :  { %v1326_v27 = vsel %vm1315_vm11, %v1323_v60, %v14822_v9  ;;  %v10390_v60 = vsel %vm934_vm15, %v10090_v3, %v10128_v36  ;;  %2707 = vmatprep.mubr.bf16.mxu1 %v1307_v20  ;;  %2804 = vmatprep.mubr.bf16.mxu0 %v1583_v26  ;;  %v14825_v63 = vrot.slane %v10160_v19, 1  ;;  %v1467_v28 = vrot.slane %v10163_v16, 7  ;;  %v14827_v36 = vld [vmem:[#allocation8_spill] sm:$0xff] }
 0x15c   :  { %v1432_v33 = vmul.f32 %v14824_v37, %v1326_v27  ;;  %v10403_v9 = vsel %vm933_vm0, %v10180_v10, %v10236_v53  ;;  %8664 = vset.pattern.permute.xlu1 %v14756_v39  ;;  %v10406_v3 = vpop.permute.xlu1 %1562  ;;  %v1140_v20 = vmul.f32 %v14827_v36, %v10067_v52  ;;  %v10411_v27 = vsel %vm1453_vm9, %v1463_v7, %v1465_v34  ;;  %v9023_v37 = vld [vmem:[%s14361_s8 + $0x40] sm:$0xff]  ;;  %v14831_v36 = vld [vmem:[#allocation41_spill] sm:$0xff]  ;;  %v14833_v7 = vld [vmem:[#allocation7_spill] sm:$0xff] }
 0x15d   :  { %v10396_v61 = vsel %vm1177_vm4, %v14825_v63, %v1191_v6  ;;  %14826 = vst [vmem:[#allocation93_spill] sm:$0xff] %v10406_v3  ;;  %14828 = vst [vmem:[#allocation94_spill] sm:$0xff] %v10411_v27  ;;  %v10414_v63 = vmul.f32 %v906_v41, %v10281_v11  ;;  %1936 = vperm.xlu1 %8664, %v9023_v37   ;;  %v14829_v10 = vld [vmem:[#allocation22_spill] sm:$0xff]  ;;  %v10422_v38 = vsel %vm1453_vm9, %v1465_v34, %v1467_v28  ;;  %v14835_v34 = vld [vmem:[#allocation43_spill] sm:$0xff] }
 0x15e   :  { %v1445_v26 = vpack.c.bf16 %v1432_v33, %v1431_v21  ;;  %v1295_v53 = vmul.f32 %v14829_v10, %v10343_v55  ;;  %14830 = vst [vmem:[#allocation95_spill] sm:$0xff] %v10422_v38  ;;  %v1571_v33 = vmul.f32 %v14831_v36, %v10411_v27  ;;  %v10426_v21 = vpop.permute.xlu0 %1702  ;;  %v1139_v11 = vmul.f32 %v14833_v7, %v10058_v59 }
 0x15f   :  { %14832 = vst [vmem:[#allocation96_spill] sm:$0xff] %v10426_v21  ;;  %v10431_v41 = vsel %vm1177_vm4, %v1191_v6, %v1193_v13  ;;  %v1296_v37 = vmul.f32 %v14834_v14, %v10396_v61  ;;  %v1327_v31 = vrot.slane %v10160_v19, 2  ;;  %7787 = vmatpush3.bf16.msra.mxu0 %v8813_v58  ;;  %7724 = vmatprep.subr.bf16.mxu1 %v8814_v23  ;;  %v1329_v36 = vrot.slane %v10163_v16, 2  ;;  %v8817_v6 = vld [vmem:[%s14364_s3 + $0x1a8] sm:$0xff]   ;;  %v8820_v58 = vld [vmem:[%s14364_s3 + $0x120] sm:$0xff]   ;;  %v8822_v14 = vld [vmem:[%s14364_s3 + $0x158] sm:$0xff]  }
 0x160   :  { %v1572_v10 = vmul.f32 %v14835_v34, %v10422_v38  ;;  %7788 = vmatprep.subr.bf16.mxu0 %v8815_v56  ;;  %7725 = vmatpush3.bf16.msra.mxu1 %v8816_v44  ;;  %v10450_v23 = vsel %vm936_vm1, %v10309_v47, %v952_v51  ;;  %v1153_v34 = vpack.c.bf16 %v1140_v20, %v1139_v11  ;;  %v14836_v27 = vrot.slane %v10070_v54, 2  ;;  %v8819_v44 = vld [vmem:[%s14364_s3 + $0x1e0] sm:$0xff]   ;;  %v14840_v38 = vld [vmem:[#allocation11_spill] sm:$0xff] }
 0x161   :  { %v1469_v56 = vrot.slane %v10178_v50, 7  ;;  %7726 = vmatprep.subr.bf16.mxu1 %v8818_v12  ;;  %v14837_v7 = vmov 8   ;;  %v10463_v47 = vpop.permute.xlu1 %1706  ;;  %v1308_v51 = vpack.c.bf16 %v1296_v37, %v1295_v53  ;;  %v1330_v11 = vsel %vm1315_vm11, %v1327_v31, %v1329_v36 }
 0x162   :  { %v1328_v22 = vsel %vm1315_vm11, %v14836_v27, %v1327_v31  ;;  %8666 = vset.pattern.permute.xlu1 %v14837_v7  ;;  %14838 = vst [vmem:[#allocation97_spill] sm:$0xff] %v10463_v47  ;;  %v1584_v20 = vpack.c.bf16 %v1572_v10, %v1571_v33  ;;  %v14839_v27 = vrot.slane %v10403_v9, 1  ;;  %vm937_vm2 = vcmp.ge.f32.partialorder %v10311_v2, 0.0  ;;  %2708 = vmatmul.mubr.bf16.gmra.mxu1 %v1153_v34  ;;  %v14842_v31 = vld [vmem:[#allocation33_spill] sm:$0xff]  ;;  %v14843_v10 = vld [vmem:[#allocation46_spill] sm:$0xff] }
 0x163   :  { %2805 = vmatmul.mubr.bf16.gmra.mxu0 %v1445_v26  ;;  %v1297_v59 = vmul.f32 %v14840_v38, %v10431_v41  ;;  %v1331_v53 = vrot.slane %v10178_v50, 2  ;;  %vm938_vm3 = vcmp.ge.f32.partialorder %v10414_v63, 0.0  ;;  %2715 = vmatprep.mubr.bf16.mxu1 %v1308_v51  ;;  %v1433_v33 = vmul.f32 %v14843_v10, %v1328_v22  ;;  %v14847_v51 = vld [vmem:[#allocation56_spill] sm:$0xff]  ;;  %v14849_v10 = vld [vmem:[#allocation10_spill] sm:$0xff] }
 0x164   :  { %v10469_v12 = vsel %vm1177_vm4, %v1193_v13, %v14839_v27  ;;  %2812 = vmatprep.mubr.bf16.mxu0 %v1584_v20  ;;  %v1141_v13 = vmul.f32 %v14842_v31, %v10070_v54  ;;  %v14844_v37 = vrot.slane %v10403_v9, 7  ;;  %v10487_v27 = vpop.permute.xlu0 %1710  ;;  %v1434_v20 = vmul.f32 %v14847_v51, %v1330_v11  ;;  %7789 = vmatpush3.bf16.msra.mxu0 %v8817_v6 }
 0x165   :  { %v1298_v57 = vmul.f32 %v14841_v43, %v10469_v12  ;;  %14846 = vst [vmem:[#allocation99_spill] sm:$0xff] %v10487_v27  ;;  %v9024_v43 = vld [vmem:[%s14361_s8] sm:$0xff]  ;;  %v10494_v31 = vsel %vm1453_vm9, %v1467_v28, %v1469_v56  ;;  %v1332_v22 = vsel %vm1315_vm11, %v1329_v36, %v1331_v53  ;;  %v954_v34 = vmul.f32 0.2, %v10414_v63  ;;  %7727 = vmatpush3.bf16.msra.mxu1 %v8820_v58  ;;  %v14853_v28 = vld [vmem:[#allocation53_spill] sm:$0xff]  ;;  %v14855_v58 = vld [vmem:[#allocation48_spill] sm:$0xff] }
 0x166   :  { %v10484_v26 = vsel %vm1453_vm9, %v1469_v56, %v14844_v37  ;;  %1992 = vperm.xlu1 %8666, %v9024_v43   ;;  %14848 = vst [vmem:[#allocation100_spill] sm:$0xff] %v10494_v31  ;;  %v8821_v37 = vld [vmem:[%s14364_s3 + $0x1a0] sm:$0xff]   ;;  %v1142_v24 = vmul.f32 %v14849_v10, %v10160_v19  ;;  %v14851_v11 = vrot.slane %v10403_v9, 2  ;;  %v10511_v36 = vmul.f32 %v14853_v28, %v1332_v22  ;;  %v9025_v22 = vld [vmem:[%s14361_s8 + $0x8] sm:$0xff] }
 0x167   :  { %14845 = vst [vmem:[#allocation98_spill] sm:$0xff] %v10484_v26  ;;  %v1309_v38 = vpack.c.bf16 %v1298_v57, %v1297_v59  ;;  %v1574_v43 = vmul.f32 %v14850_v5, %v10484_v26  ;;  %v10508_v57 = vpop.permute.xlu1 %1420  ;;  %v14854_v56 = vld [vmem:[#allocation58_spill] sm:$0xff]  ;;  %v1197_v8 = vrot.slane %v10390_v60, 1  ;;  %7790 = vmatprep.subr.bf16.mxu0 %v8819_v44  ;;  %7728 = vmatprep.subr.bf16.mxu1 %v8822_v14  ;;  %v8823_v14 = vld [vmem:[%s14364_s3 + $0x1d8] sm:$0xff]   ;;  %v1473_v10 = vrot.slane %v10390_v60, 7  ;;  %v10587_v26 = vld [vmem:[%s14361_s8 + $0x48] sm:$0xff] }
 0x168   :  { %v1334_v59 = vsel %vm1315_vm11, %v1331_v53, %v14851_v11  ;;  %14852 = vst [vmem:[#allocation101_spill] sm:$0xff] %v10508_v57  ;;  %v10522_v6 = vsel %vm937_vm2, %v10311_v2, %v10367_v4  ;;  %v1573_v53 = vmul.f32 %v14855_v58, %v10494_v31  ;;  %v1154_v11 = vpack.c.bf16 %v1142_v24, %v1141_v13  ;;  %v8825_v24 = vld [vmem:[%s14364_s3 + $0x198] sm:$0xff]   ;;  %v10542_v13 = vpop.permute.xlu0 %1722 }
 0x169   :  { %v10514_v51 = vmul.f32 %v14854_v56, %v1334_v59  ;;  %v1446_v59 = vpack.c.bf16 %v1434_v20, %v1433_v33  ;;  %7791 = vmatpush3.bf16.msra.mxu0 %v8821_v37  ;;  %v8824_v56 = vld [vmem:[%s14364_s3 + $0x118] sm:$0xff]   ;;  %14856 = vst [vmem:[#allocation102_spill] sm:$0xff] %v10542_v13  ;;  %v14857_v37 = vrot.slane %v10403_v9, 1  ;;  %v14859_v33 = vrot.slane %v10403_v9, 7 }
 0x16a   :  { %1996 = vperm.xlu1 %8666, %v9025_v22   ;;  %v1585_v4 = vpack.c.bf16 %v1574_v43, %v1573_v53  ;;  %2716 = vmatmul.mubr.bf16.gmra.mxu1 %v1154_v11  ;;  %v8826_v53 = vld [vmem:[%s14364_s3 + $0x150] sm:$0xff]   ;;  %v1335_v11 = vrot.slane %v10390_v60, 2  ;;  %v14863_v28 = vrot.slane %v10187_v45, 1  ;;  %v14864_v5 = vrot.slane %v10450_v23, 7 }
 0x16b   :  { %2813 = vmatmul.mubr.bf16.gmra.mxu0 %v1446_v59  ;;  %v10550_v43 = vsel %vm1177_vm4, %v14857_v37, %v1197_v8  ;;  %2723 = vmatprep.mubr.bf16.mxu1 %v1309_v38  ;;  %v10555_v44 = vpop.permute.xlu1 %1614  ;;  %v10560_v20 = vsel %vm1453_vm9, %v14859_v33, %v1473_v10  ;;  %v8827_v37 = vld [vmem:[%s14364_s3 + $0x1d0] sm:$0xff]   ;;  %v14861_v38 = vld [vmem:[#allocation35_spill] sm:$0xff]  ;;  %v14865_v59 = vrot.slane %v10187_v45, 7  ;;  %v10599_v31 = vmul.f32 %v9973_v62, %v10141_v0 }
 0x16c   :  { %2820 = vmatprep.mubr.bf16.mxu0 %v1585_v4  ;;  %14858 = vst [vmem:[#allocation103_spill] sm:$0xff] %v10555_v44  ;;  %14860 = vst [vmem:[#allocation104_spill] sm:$0xff] %v10560_v20  ;;  %v1143_v4 = vmul.f32 %v14861_v38, %v10163_v16  ;;  %v14862_v22 = vld [vmem:[#allocation16_spill] sm:$0xff]  ;;  %v10575_v33 = vsel %vm1177_vm4, %v1197_v8, %v14863_v28  ;;  %7792 = vmatprep.subr.bf16.mxu0 %v8823_v14  ;;  %v1201_v0 = vrot.slane %v10450_v23, 1 }
 0x16d   :  { %v1144_v2 = vmul.f32 %v14862_v22, %v10178_v50  ;;  %v10582_v58 = vsel %vm1453_vm9, %v14865_v59, %v14864_v5  ;;  %v14867_v22 = vld [vmem:[#allocation20_spill] sm:$0xff]  ;;  %v14868_v8 = vmov %v14865_v59  ;;  %v10604_v5 = vsel %vm938_vm3, %v10414_v63, %v954_v34  ;;  %v14870_v59 = vld [vmem:[#allocation47_spill] sm:$0xff]  ;;  %7729 = vmatpush3.bf16.msra.mxu1 %v8824_v56  ;;  %7793 = vmatpush3.bf16.msra.mxu0 %v8825_v24  ;;  %v10618_v63 = vpop.permute.xlu0 %1734 }
 0x16e   :  { %8667 = vset.pattern.permute.xlu1 %v14750_v15  ;;  %14866 = vst [vmem:[#allocation105_spill] sm:$0xff] %v10582_v58  ;;  %v1299_v38 = vmul.f32 %v14867_v22, %v10550_v43  ;;  %v10595_v28 = vsel %vm1453_vm9, %v1473_v10, %v14868_v8  ;;  %v1575_v13 = vmul.f32 %v14870_v59, %v10560_v20  ;;  %v14872_v10 = vld [vmem:[#allocation21_spill] sm:$0xff]  ;;  %14873 = vst [vmem:[#allocation108_spill] sm:$0xff] %v10618_v63  ;;  %v8828_v56 = vld [vmem:[%s14364_s3 + $0x110] sm:$0xff]  }
 0x16f   :  { %1852 = vperm.xlu1 %8667, %v10587_v26   ;;  %14869 = vst [vmem:[#allocation106_spill] sm:$0xff] %v10595_v28  ;;  %v10610_v22 = vmul.f32 %v10149_v1, %v10117_v30  ;;  %v10612_v44 = vpop.permute.xlu1 %1618  ;;  %v1300_v8 = vmul.f32 %v14872_v10, %v10575_v33  ;;  %v10622_v34 = vmul.f32 %v10109_v48, %v10582_v58  ;;  %v14874_v30 = vrot.slane %v10522_v6, 2  ;;  %v14876_v10 = vld [vmem:[#allocation59_spill] sm:$0xff]  ;;  %v14877_v48 = vld [vmem:[#allocation25_spill] sm:$0xff] }
 0x170   :  { %14871 = vst [vmem:[#allocation107_spill] sm:$0xff] %v10612_v44  ;;  %v14875_v14 = vrot.slane %v10450_v23, 2  ;;  %v1155_v59 = vpack.c.bf16 %v1144_v2, %v1143_v4  ;;  %v1576_v20 = vmul.f32 %v14876_v10, %v10595_v28  ;;  %7730 = vmatprep.subr.bf16.mxu1 %v8826_v53  ;;  %v1481_v24 = vrot.slane %v10604_v5, 7  ;;  %7794 = vmatprep.subr.bf16.mxu0 %v8827_v37  ;;  %v8829_v53 = vld [vmem:[%s14364_s3 + $0x190] sm:$0xff]   ;;  %v8830_v37 = vld [vmem:[%s14364_s3 + $0x148] sm:$0xff]  }
 0x171   :  { %v1310_v62 = vpack.c.bf16 %v1300_v8, %v1299_v38  ;;  %v1145_v58 = vmul.f32 %v14877_v48, %v10403_v9  ;;  %v14878_v63 = vrot.slane %v10403_v9, 2  ;;  %v9027_v4 = vld [vmem:[%s14361_s8 + $0x10] sm:$0xff]  ;;  %v14879_v38 = vld [vmem:[#allocation37_spill] sm:$0xff]  ;;  %7731 = vmatpush3.bf16.msra.mxu1 %v8828_v56  ;;  %7795 = vmatpush3.bf16.msra.mxu0 %v8829_v53  ;;  %v8833_v56 = vld [vmem:[%s14364_s3 + $0x188] sm:$0xff]   ;;  %v10727_v28 = vmul.f32 %v10463_v47, %v10431_v41 }
 0x172   :  { %v1342_v1 = vsel %vm1315_vm11, %v14875_v14, %v14874_v30  ;;  %2724 = vmatmul.mubr.bf16.gmra.mxu1 %v1155_v59  ;;  %v1586_v30 = vpack.c.bf16 %v1576_v20, %v1575_v13  ;;  %v1146_v8 = vmul.f32 %v14879_v38, %v10390_v60  ;;  %v14880_v14 = vrot.slane %v10187_v45, 2  ;;  %v14893_v53 = vld [vmem:[#allocation49_spill] sm:$0xff]  ;;  %7732 = vmatprep.subr.bf16.mxu1 %v8830_v37 }
 0x173   :  { %8668 = vset.pattern.permute.xlu1 %v14837_v7  ;;  %v1336_v2 = vsel %vm1315_vm11, %v14878_v63, %v1335_v11  ;;  %v14881_v63 = vpack.c.bf16 %v10514_v51, %v10511_v36  ;;  %2731 = vmatprep.mubr.bf16.mxu1 %v1310_v62  ;;  %v14883_v20 = vrot.slane %v10522_v6, 1  ;;  %v8831_v62 = vld [vmem:[%s14364_s3 + $0x1c8] sm:$0xff]   ;;  %v10680_v51 = vmul.f32 %v10184_v25, %v10343_v55 }
 0x174   :  { %2000 = vperm.xlu1 %8668, %v9027_v4   ;;  %v1338_v10 = vsel %vm1315_vm11, %v1335_v11, %v14880_v14  ;;  %v14882_v4 = vrot.slane %v10187_v45, 1  ;;  %v14885_v11 = vrot.slane %v10522_v6, 7  ;;  %v14886_v14 = vrot.slane %v10450_v23, 7  ;;  %7796 = vmatprep.subr.bf16.mxu0 %v8831_v62 }
 0x175   :  { %2821 = vmatmul.mubr.bf16.gmra.mxu0 %v14881_v63  ;;  %v10666_v59 = vsel %vm1177_vm4, %v1201_v0, %v14883_v20  ;;  %v10683_v36 = vmul.f32 %v10239_v46, %v1342_v1  ;;  %v1437_v63 = vmul.f32 %v10004_v32, %v1336_v2  ;;  %v10693_v20 = vmul.f32 %v10304_v29, %v10067_v52  ;;  %v8834_v2 = vld [vmem:[%s14364_s3 + $0x140] sm:$0xff]  }
 0x176   :  { %v10661_v13 = vsel %vm1177_vm4, %v14882_v4, %v1201_v0  ;;  %14884 = vst [vmem:[#allocation109_spill] sm:$0xff] %v10666_v59  ;;  %v10673_v38 = vsel %vm1453_vm9, %v14886_v14, %v14885_v11  ;;  %2828 = vmatprep.mubr.bf16.mxu0 %v1586_v30  ;;  %v10685_v0 = vpop.permute.xlu1 %1714  ;;  %v8832_v4 = vld [vmem:[%s14364_s3 + $0x108] sm:$0xff]   ;;  %v14889_v55 = vmov %v14885_v11  ;;  %v1438_v1 = vmul.f32 %v10036_v18, %v1338_v10  ;;  %v10708_v14 = vpop.permute.xlu0 %1908  ;;  %v14892_v10 = vld [vmem:[#allocation30_spill] sm:$0xff] }
 0x177   :  { %14887 = vst [vmem:[#allocation110_spill] sm:$0xff] %v10673_v38  ;;  %14888 = vst [vmem:[#allocation111_spill] sm:$0xff] %v10685_v0  ;;  %v10698_v11 = vsel %vm1453_vm9, %v14889_v55, %v1481_v24  ;;  %v1205_v30 = vrot.slane %v10604_v5, 1  ;;  %v14891_v55 = vld [vmem:[#allocation26_spill] sm:$0xff]  ;;  %v1302_v25 = vmul.f32 %v14892_v10, %v10666_v59  ;;  %v1578_v46 = vmul.f32 %v14893_v53, %v10673_v38  ;;  %v10732_v10 = vld [vmem:[%s14361_s8 + $0x50] sm:$0xff] }
 0x178   :  { %14890 = vst [vmem:[#allocation112_spill] sm:$0xff] %v10708_v14  ;;  %8669 = vset.pattern.permute.xlu1 %v14756_v39  ;;  %v1301_v29 = vmul.f32 %v14891_v55, %v10661_v13  ;;  %v8835_v18 = vld [vmem:[%s14364_s3 + $0x1c0] sm:$0xff]   ;;  %v14894_v32 = vrot.slane %v10166_v42, 7  ;;  %v1156_v37 = vpack.c.bf16 %v1146_v8, %v1145_v58  ;;  %v1448_v53 = vpack.c.bf16 %v1438_v1, %v1437_v63  ;;  %v14895_v55 = vld [vmem:[#allocation36_spill] sm:$0xff] }
 0x179   :  { %1944 = vperm.xlu1 %8669, %v10732_v10   ;;  %v1148_v38 = vmul.f32 %v14895_v55, %v10450_v23  ;;  %7733 = vmatpush3.bf16.msra.mxu1 %v8832_v4  ;;  %v10744_v47 = vmul.f32 %v10348_v35, %v10296_v49  ;;  %v14899_v58 = vrot.slane %v10522_v6, 1  ;;  %v14900_v62 = vrot.slane %v10166_v42, 1  ;;  %v8836_v49 = vld [vmem:[%s14364_s3 + $0x100] sm:$0xff]  }
 0x17a   :  { %v10723_v48 = vsel %vm1453_vm9, %v1481_v24, %v14894_v32  ;;  %v14896_v32 = vrot.slane %v10450_v23, 2  ;;  %v14897_v24 = vrot.slane %v10187_v45, 2  ;;  %v10746_v59 = vpop.permute.xlu1 %1904  ;;  %7797 = vmatpush3.bf16.msra.mxu0 %v8833_v56  ;;  %7734 = vmatprep.subr.bf16.mxu1 %v8834_v2  ;;  %v8837_v4 = vld [vmem:[%s14364_s3 + $0x180] sm:$0xff]   ;;  %v10773_v2 = vld [vmem:[%s14364_s3 + $0x238] sm:$0xff]  }
 0x17b   :  { %14898 = vst [vmem:[#allocation113_spill] sm:$0xff] %v10746_v59  ;;  %v10751_v8 = vsel %vm1177_vm4, %v14899_v58, %v1205_v30  ;;  %v10756_v63 = vsel %vm1177_vm4, %v1205_v30, %v14900_v62  ;;  %2732 = vmatmul.mubr.bf16.gmra.mxu1 %v1156_v37  ;;  %7798 = vmatprep.subr.bf16.mxu0 %v8835_v18  ;;  %v1343_v58 = vrot.slane %v10604_v5, 2  ;;  %v9029_v18 = vld [vmem:[%s14361_s8 + $0x58] sm:$0xff]  ;;  %v14903_v37 = vld [vmem:[#allocation28_spill] sm:$0xff]  ;;  %v14906_v30 = vrot.slane %v10070_v54, 6 }
 0x17c   :  { %v1340_v41 = vsel %vm1315_vm11, %v14897_v24, %v14896_v32  ;;  %v1311_v32 = vpack.c.bf16 %v1302_v25, %v1301_v29  ;;  %v1587_v24 = vpack.c.bf16 %v1578_v46, %v10622_v34  ;;  %v10778_v62 = vmul.f32 %v10685_v0, %v10550_v43  ;;  %v10791_v29 = vpop.permute.xlu0 %1920  ;;  %v14902_v34 = vld [vmem:[#allocation39_spill] sm:$0xff]  ;;  %v14908_v0 = vld [vmem:[#allocation92_spill] sm:$0xff] }
 0x17d   :  { %2829 = vmatmul.mubr.bf16.gmra.mxu0 %v1448_v53  ;;  %1948 = vperm.xlu1 %8669, %v9029_v18   ;;  %v10785_v25 = vmul.f32 %v10099_v40, %v10070_v54  ;;  %v10789_v46 = vmul.f32 %v10426_v21, %v10396_v61  ;;  %14901 = vst [vmem:[#allocation114_spill] sm:$0xff] %v10791_v29  ;;  %v14907_v61 = vrot.slane %v10067_v52, 6  ;;  %v14909_v21 = vld [vmem:[#allocation72_spill] sm:$0xff] }
 0x17e   :  { %2739 = vmatprep.mubr.bf16.mxu1 %v1311_v32  ;;  %2836 = vmatprep.mubr.bf16.mxu0 %v1587_v24  ;;  %v1439_v43 = vmul.f32 %v9975_v17, %v1340_v41  ;;  %v1303_v53 = vmul.f32 %v14902_v34, %v10751_v8  ;;  %v1304_v1 = vmul.f32 %v14903_v37, %v10756_v63  ;;  %v10810_v40 = vpop.permute.xlu1 %1622  ;;  %v14519_v41 = vrot.slane %v10178_v50, 6 }
 0x17f   :  { %7735 = vmatpush3.bf16.msra.mxu1 %v8836_v49  ;;  %7799 = vmatpush3.bf16.msra.mxu0 %v8837_v4  ;;  %v10805_v32 = vmul.f32 %v10487_v27, %v10469_v12  ;;  %v1580_v24 = vmul.f32 %v10406_v3, %v10723_v48  ;;  %14904 = vst [vmem:[#allocation115_spill] sm:$0xff] %v10810_v40  ;;  %v14905_v49 = vld [vmem:[#allocation34_spill] sm:$0xff]  ;;  %v14910_v3 = vrot.slane %v10522_v6, 2  ;;  %v14911_v34 = vrot.slane %v10403_v9, 6 }
 0x180   :  { %v1147_v4 = vmul.f32 %v14905_v49, %v10187_v45  ;;  %v10819_v56 = vsel %vm1765_vm5, %v14907_v61, %v14906_v30  ;;  %8448 = vmatprep.subr.bf16.mxu1 %v10773_v2  ;;  %v1579_v27 = vmul.f32 %v14908_v0, %v10698_v11  ;;  %v1449_v61 = vpack.c.bf16 %v10683_v36, %v1439_v43  ;;  %v10840_v17 = vpop.permute.xlu0 %1932 }
 0x181   :  { %8670 = vset.pattern.permute.xlu1 %v14837_v7  ;;  %v1344_v30 = vsel %vm1315_vm11, %v14910_v3, %v1343_v58  ;;  %v1312_v37 = vpack.c.bf16 %v1304_v1, %v1303_v53  ;;  %v10838_v12 = vsel %vm1765_vm5, %v14519_v41, %v14911_v34  ;;  %14912 = vst [vmem:[#allocation72_spill] sm:$0xff] %v10840_v17  ;;  %v14917_v53 = vld [vmem:[#allocation76_spill] sm:$0xff] }
 0x182   :  { %2012 = vperm.xlu1 %8670, %v14909_v21   ;;  %v1157_v35 = vpack.c.bf16 %v1148_v38, %v1147_v4  ;;  %v1588_v0 = vpack.c.bf16 %v1580_v24, %v1579_v27  ;;  %v10842_v21 = vpop.permute.xlu1 %1626  ;;  %v14914_v38 = vrot.slane %v10166_v42, 2  ;;  %v10849_v36 = vmul.f32 %v10810_v40, %v10178_v50  ;;  %v14918_v24 = vld [vmem:[#allocation87_spill] sm:$0xff] }
 0x183   :  { %14913 = vst [vmem:[#allocation116_spill] sm:$0xff] %v10842_v21  ;;  %v10853_v1 = vmul.f32 %v10842_v21, %v10403_v9  ;;  %v1441_v43 = vmul.f32 %v10508_v57, %v1344_v30  ;;  %v1741_v4 = vmul.f32 %v14918_v24, %v14917_v53  ;;  %v14921_v21 = vld [vmem:[#allocation77_spill] sm:$0xff]  ;;  %v14927_v24 = vld [vmem:[#allocation63_spill] sm:$0xff] }
 0x184   :  { %2740 = vmatmul.mubr.bf16.gmra.mxu1 %v1157_v35  ;;  %v1345_v3 = vsel %vm1315_vm11, %v1343_v58, %v14914_v38  ;;  %v14915_v35 = vld [vmem:[#allocation40_spill] sm:$0xff]  ;;  %v14922_v30 = vld [vmem:[#allocation45_spill] sm:$0xff]  ;;  %v1769_v55 = vrot.slane %v14927_v24, 6 }
 0x185   :  { %2837 = vmatmul.mubr.bf16.gmra.mxu0 %v1449_v61  ;;  %2747 = vmatprep.mubr.bf16.mxu1 %v1312_v37  ;;  %v1149_v27 = vmul.f32 %v14915_v35, %v10522_v6  ;;  %v14916_v58 = vld [vmem:[#allocation64_spill] sm:$0xff]  ;;  %v14919_v61 = vld [vmem:[#allocation79_spill] sm:$0xff]  ;;  %v1150_v40 = vmul.f32 %v14922_v30, %v10604_v5 }
 0x186   :  { %2844 = vmatprep.mubr.bf16.mxu0 %v1588_v0  ;;  %8671 = vset.pattern.permute.xlu1 %v14750_v15  ;;  %v1442_v34 = vmul.f32 %v14916_v58, %v1345_v3  ;;  %v14920_v37 = vld [vmem:[#allocation52_spill] sm:$0xff]  ;;  %v1967_v0 = vmul.f32 %v10746_v59, %v14921_v21  ;;  %v10873_v3 = vpop.permute.xlu0 %1940  ;;  %v14926_v58 = vld [vmem:[#allocation70_spill] sm:$0xff] }
 0x187   :  { %1860 = vperm.xlu1 %8671, %v9029_v18   ;;  %v1742_v38 = vmul.f32 %v14920_v37, %v14919_v61  ;;  %v10870_v57 = vpop.permute.xlu1 %1820  ;;  %v14924_v18 = vld [vmem:[#allocation65_spill] sm:$0xff]  ;;  %14925 = vst [vmem:[#allocation79_spill] sm:$0xff] %v10873_v3  ;;  %v1767_v53 = vrot.slane %v14926_v58, 6  ;;  %v1158_v61 = vpack.c.bf16 %v1150_v40, %v1149_v27  ;;  %v14928_v37 = vld [vmem:[#allocation84_spill] sm:$0xff] }
 0x188   :  { %14923 = vst [vmem:[#allocation76_spill] sm:$0xff] %v10870_v57  ;;  %v1968_v41 = vmul.f32 %v10708_v14, %v14928_v37  ;;  %v1450_v21 = vpack.c.bf16 %v1442_v34, %v1441_v43  ;;  %v9030_v30 = vld [vmem:[%s14361_s8 + $0x30] sm:$0xff]  ;;  %v14929_v49 = vrot.slane %v14924_v18, 6  ;;  %v14931_v43 = vld [vmem:[#allocation57_spill] sm:$0xff] }
 0x189   :  { %v1757_v59 = vpack.c.bf16 %v1742_v38, %v1741_v4  ;;  %v1770_v27 = vsel %vm1765_vm5, %v1767_v53, %v1769_v55  ;;  %v1654_v34 = vmul.f32 %v14931_v43, %v14926_v58  ;;  %v8846_v43 = vld [vmem:[%s14364_s3 + $0x2b8] sm:$0xff]   ;;  %v8848_v14 = vld [vmem:[%s14364_s3 + $0x2b0] sm:$0xff]  }
 0x18a   :  { %v1983_v35 = vpack.c.bf16 %v1968_v41, %v1967_v0  ;;  %v1768_v40 = vsel %vm1765_vm5, %v14929_v49, %v1767_v53  ;;  %v1880_v4 = vmul.f32 %v10870_v57, %v1770_v27  ;;  %v10892_v38 = vpop.permute.xlu0 %1816  ;;  %v9031_v49 = vld [vmem:[%s14361_s8 + $0x60] sm:$0xff]  ;;  %v14936_v27 = vld [vmem:[#allocation69_spill] sm:$0xff]  ;;  %7864 = vmatprep.subr.bf16.mxu0 %v8846_v43  ;;  %v8850_v43 = vld [vmem:[%s14364_s3 + $0x2a8] sm:$0xff]  }
 0x18b   :  { %8672 = vset.pattern.permute.xlu1 %v14837_v7  ;;  %14932 = vst [vmem:[#allocation65_spill] sm:$0xff] %v10892_v38  ;;  %v1879_v0 = vmul.f32 %v10892_v38, %v1768_v40  ;;  %v14935_v40 = vld [vmem:[#allocation68_spill] sm:$0xff] }
 0x18c   :  { %2016 = vperm.xlu1 %8672, %v9030_v30   ;;  %2748 = vmatmul.mubr.bf16.gmra.mxu1 %v1158_v61  ;;  %v10887_v37 = vpop.permute.xlu1 %1718  ;;  %v8839_v61 = vld [vmem:[%s14364_s3 + $0x230] sm:$0xff]  }
 0x18d   :  { %2845 = vmatmul.mubr.bf16.gmra.mxu0 %v1450_v21  ;;  %2885 = vmatprep.mubr.bf16.mxu1 %v1757_v59  ;;  %14930 = vst [vmem:[#allocation77_spill] sm:$0xff] %v10887_v37  ;;  %v14933_v59 = vld [vmem:[#allocation55_spill] sm:$0xff]  ;;  %v1895_v30 = vpack.c.bf16 %v1880_v4, %v1879_v0 }
 0x18e   :  { %2982 = vmatprep.mubr.bf16.mxu0 %v1983_v35  ;;  %v1653_v41 = vmul.f32 %v14933_v59, %v14924_v18  ;;  %v10909_v21 = vld [vmem:[%s14361_s8 + $0x68] sm:$0xff]  ;;  %v8847_v59 = vld [vmem:[%s14364_s3 + $0x278] sm:$0xff]  }
 0x18f   :  { %v14938_v4 = vld [vmem:[#allocation67_spill] sm:$0xff] }
 0x190   :  { %8673 = vset.pattern.permute.xlu1 %v14756_v39  ;;  %v1669_v35 = vpack.c.bf16 %v1654_v34, %v1653_v41  ;;  %v14937_v34 = vpack.c.bf16 %v10744_v47, %v10599_v31  ;;  %v1655_v41 = vmul.f32 %v14938_v4, %v14927_v24 }
 0x191   :  { %1952 = vperm.xlu1 %8673, %v9031_v49   ;;  %v10901_v53 = vpop.permute.xlu1 %1912  ;;  %v1656_v49 = vmul.f32 %v14936_v27, %v14935_v40  ;;  %v14941_v27 = vld [vmem:[#allocation89_spill] sm:$0xff] }
 0x192   :  { %14934 = vst [vmem:[#allocation70_spill] sm:$0xff] %v10901_v53 }
 0x193   :  { %v1670_v47 = vpack.c.bf16 %v1656_v49, %v1655_v41 }
 0x194   :  { %2886 = vmatmul.mubr.bf16.vlgmr.msra.gmra.mxu1 %v1669_v35  ;;  %v8840_v35 = vld [vmem:[%s14364_s3 + $0x228] sm:$0xff]  }
 0x195   :  { %2983 = vmatmul.mubr.bf16.vlgmr.msra.gmra.mxu0 %v1895_v30  ;;  %1956 = vperm.xlu1 %8673, %v10909_v21   ;;  %v10920_v0 = vpop.permute.xlu1 %1916  ;;  %v14940_v30 = vld [vmem:[#allocation85_spill] sm:$0xff] }
 0x196   :  { %2893 = vmatprep.mubr.bf16.mxu1 %v14937_v34  ;;  %8449 = vmatpush3.bf16.msra.mxu1 %v10773_v2  ;;  %14939 = vst [vmem:[#allocation63_spill] sm:$0xff] %v10920_v0  ;;  %v1969_v57 = vmul.f32 %v10901_v53, %v14940_v30  ;;  %v1970_v38 = vmul.f32 %v10920_v0, %v14941_v27  ;;  %v1771_v2 = vrot.slane %v14935_v40, 6  ;;  %v8841_v34 = vld [vmem:[%s14364_s3 + $0x220] sm:$0xff]  }
 0x197   :  { %8450 = vmatprep.subr.bf16.mxu1 %v8839_v61  ;;  %v14943_v27 = vpack.c.bf16 %v10680_v51, %v10610_v22  ;;  %v14947_v30 = vpack.c.bf16 %v10785_v25, %v10693_v20  ;;  %v14950_v20 = vld [vmem:[#allocation103_spill] sm:$0xff]  ;;  %7865 = vmatpush3.bf16.msra.mxu0 %v8847_v59  ;;  %v8858_v59 = vld [vmem:[%s14364_s3 + $0x330] sm:$0xff]  }
 0x198   :  { %v1984_v31 = vpack.c.bf16 %v1970_v38, %v1969_v57  ;;  %v8842_v38 = vld [vmem:[%s14364_s3 + $0x218] sm:$0xff]   ;;  %v1772_v22 = vsel %vm1765_vm5, %v1769_v55, %v1771_v2  ;;  %v14948_v55 = vpack.c.bf16 %v10727_v28, %v10789_v46  ;;  %v1659_v25 = vmul.f32 %v14950_v20, %v10160_v19  ;;  %7866 = vmatprep.subr.bf16.mxu0 %v8848_v14  ;;  %v8851_v14 = vld [vmem:[%s14364_s3 + $0x268] sm:$0xff]  }
 0x199   :  { %8674 = vset.pattern.permute.xlu1 %v14837_v7 }
 0x19a   :  { %2028 = vperm.xlu1 %8674, %v10587_v26   ;;  %8451 = vmatpush3.bf16.msra.mxu1 %v8839_v61  ;;  %v10935_v4 = vpop.permute.xlu1 %1634  ;;  %v14944_v26 = vrot.slane %v10067_v52, 6  ;;  %v10948_v61 = vpop.permute.xlu0 %1828 }
 0x19b   :  { %8452 = vmatprep.subr.bf16.mxu1 %v8840_v35  ;;  %14942 = vst [vmem:[#allocation84_spill] sm:$0xff] %v10935_v4  ;;  %2990 = vmatprep.mubr.bf16.mxu0 %v1984_v31  ;;  %14945 = vst [vmem:[#allocation68_spill] sm:$0xff] %v10948_v61  ;;  %v1660_v31 = vmul.f32 %v10612_v44, %v10163_v16 }
 0x19c   :  { %2894 = vmatmul.mubr.bf16.gmra.mxu1 %v1670_v47  ;;  %v1774_v57 = vsel %vm1765_vm5, %v1771_v2, %v14944_v26  ;;  %v9033_v26 = vld [vmem:[%s14361_s8 + $0x78] sm:$0xff] }
 0x19d   :  { %2901 = vmatprep.mubr.bf16.mxu1 %v14943_v27  ;;  %v1882_v41 = vmul.f32 %v10948_v61, %v1774_v57  ;;  %v1672_v46 = vpack.c.bf16 %v1660_v31, %v1659_v25  ;;  %v8845_v27 = vld [vmem:[%s14364_s3 + $0x200] sm:$0xff]   ;;  %v1751_v57 = vmul.f32 %v10887_v37, %v10575_v33  ;;  %v14958_v33 = vpack.c.bf16 %v10853_v1, %v10849_v36  ;;  %v14961_v25 = vld [vmem:[#allocation109_spill] sm:$0xff] }
 0x19e   :  { %8675 = vset.pattern.permute.xlu1 %v14750_v15  ;;  %8453 = vmatpush3.bf16.msra.mxu1 %v8840_v35  ;;  %v8843_v35 = vld [vmem:[%s14364_s3 + $0x210] sm:$0xff]   ;;  %v1664_v31 = vmul.f32 %v10935_v4, %v10187_v45 }
 0x19f   :  { %1868 = vperm.xlu1 %8675, %v10909_v21   ;;  %8454 = vmatprep.subr.bf16.mxu1 %v8841_v34  ;;  %v10950_v49 = vpop.permute.xlu1 %1824 }
 0x1a0   :  { %14946 = vst [vmem:[#allocation85_spill] sm:$0xff] %v10950_v49  ;;  %v1881_v51 = vmul.f32 %v10950_v49, %v1772_v22  ;;  %v14955_v22 = vld [vmem:[#allocation94_spill] sm:$0xff] }
 0x1a2   :  { %8455 = vmatpush3.bf16.msra.mxu1 %v8841_v34  ;;  %v1896_v47 = vpack.c.bf16 %v1882_v41, %v1881_v51  ;;  %v14951_v34 = vld [vmem:[#allocation86_spill] sm:$0xff] }
 0x1a3   :  { %8676 = vset.pattern.permute.xlu1 %v14837_v7  ;;  %8456 = vmatprep.subr.bf16.mxu1 %v8842_v38  ;;  %v14956_v41 = vld [vmem:[#allocation90_spill] sm:$0xff] }
 0x1a4   :  { %2032 = vperm.xlu1 %8676, %v10732_v10   ;;  %2902 = vmatmul.mubr.bf16.gmra.mxu1 %v14947_v30  ;;  %v10968_v2 = vpop.permute.xlu1 %1726  ;;  %v8844_v10 = vld [vmem:[%s14364_s3 + $0x208] sm:$0xff]   ;;  %v14957_v30 = vld [vmem:[#allocation102_spill] sm:$0xff] }
 0x1a5   :  { %2909 = vmatprep.mubr.bf16.mxu1 %v14948_v55  ;;  %14949 = vst [vmem:[#allocation89_spill] sm:$0xff] %v10968_v2  ;;  %2991 = vmatmul.mubr.bf16.gmra.mxu0 %v1896_v47  ;;  %v1752_v47 = vmul.f32 %v14957_v30, %v10661_v13  ;;  %v1753_v36 = vmul.f32 %v10968_v2, %v14961_v25 }
 0x1a6   :  { %8457 = vmatpush3.bf16.msra.mxu1 %v8842_v38 }
 0x1a7   :  { %8458 = vmatprep.subr.bf16.mxu1 %v8843_v35 }
 0x1a8   :  { %8677 = vset.pattern.permute.xlu1 %v14756_v39  ;;  %v10977_v28 = vpop.permute.xlu1 %1730  ;;  %v14953_v39 = vpack.c.bf16 %v10778_v62, %v10805_v32  ;;  %v1762_v32 = vpack.c.bf16 %v1752_v47, %v1751_v57 }
 0x1a9   :  { %1960 = vperm.xlu1 %8677, %v14951_v34   ;;  %14952 = vst [vmem:[#allocation86_spill] sm:$0xff] %v10977_v28  ;;  %v1754_v13 = vmul.f32 %v10977_v28, %v10751_v8  ;;  %v1777_v34 = vrot.slane %v10160_v19, 6 }
 0x1aa   :  { %8459 = vmatpush3.bf16.msra.mxu1 %v8843_v35  ;;  %v1971_v35 = vmul.f32 %v10791_v29, %v14956_v41 }
 0x1ab   :  { %8460 = vmatprep.subr.bf16.mxu1 %v8844_v10 }
 0x1ac   :  { %2910 = vmatmul.mubr.bf16.gmra.mxu1 %v1672_v46 }
 0x1ad   :  { %1964 = vperm.xlu1 %8677, %v9033_v26   ;;  %2917 = vmatprep.mubr.bf16.mxu1 %v14953_v39  ;;  %v10990_v38 = vpop.permute.xlu1 %1924 }
 0x1ae   :  { %8461 = vmatpush3.bf16.msra.mxu1 %v8844_v10  ;;  %14954 = vst [vmem:[#allocation117_spill] sm:$0xff] %v10990_v38  ;;  %v1972_v51 = vmul.f32 %v10990_v38, %v14955_v22 }
 0x1af   :  { %8462 = vmatprep.subr.bf16.mxu1 %v8845_v27 }
 0x1b0   :  { %v1985_v62 = vpack.c.bf16 %v1972_v51, %v1971_v35  ;;  %v14965_v51 = vld [vmem:[#allocation80_spill] sm:$0xff] }
 0x1b1   :  { %8678 = vset.pattern.permute.xlu1 %v14837_v7  ;;  %v1666_v41 = vmul.f32 %v14965_v51, %v10522_v6 }
 0x1b2   :  { %2044 = vperm.xlu1 %8678, %v10909_v21   ;;  %8463 = vmatpush3.bf16.msra.mxu1 %v8845_v27  ;;  %v11003_v55 = vpop.permute.xlu1 %1638  ;;  %v14960_v21 = vld [vmem:[#allocation75_spill] sm:$0xff]  ;;  %v1763_v27 = vpack.c.bf16 %v1754_v13, %v1753_v36 }
 0x1b3   :  { %14959 = vst [vmem:[#allocation94_spill] sm:$0xff] %v11003_v55  ;;  %2998 = vmatprep.mubr.bf16.mxu0 %v1985_v62  ;;  %v1663_v10 = vmul.f32 %v14960_v21, %v10390_v60  ;;  %v1665_v57 = vmul.f32 %v11003_v55, %v10450_v23 }
 0x1b4   :  { %2918 = vmatmul.mubr.bf16.gmra.mxu1 %v14958_v33 }
 0x1b5   :  { %2925 = vmatprep.mubr.bf16.mxu1 %v1762_v32  ;;  %v1674_v46 = vpack.c.bf16 %v1664_v31, %v1663_v10  ;;  %v1675_v62 = vpack.c.bf16 %v1666_v41, %v1665_v57  ;;  %v14967_v32 = vld [vmem:[#allocation81_spill] sm:$0xff]  ;;  %v14968_v31 = vld [vmem:[#allocation108_spill] sm:$0xff] }
 0x1b6   :  { %8680 = vset.pattern.permute.xlu1 %v14750_v15  ;;  %v9034_v15 = vld [vmem:[%s14361_s8 + $0x70] sm:$0xff]  ;;  %v1755_v13 = vmul.f32 %v14968_v31, %v10756_v63  ;;  %v11050_v63 = vpop.permute.xlu0 %1840  ;;  %v14567_v31 = vrot.slane %v10604_v5, 6 }
 0x1b7   :  { %1876 = vperm.xlu1 %8680, %v9033_v26   ;;  %v11014_v1 = vpop.permute.xlu1 %1832  ;;  %v14964_v26 = vrot.slane %v10070_v54, 6  ;;  %14974 = vst [vmem:[#allocation119_spill] sm:$0xff] %v11050_v63 }
 0x1b8   :  { %14962 = vst [vmem:[#allocation90_spill] sm:$0xff] %v11014_v1 }
 0x1b9   :  { %v1778_v39 = vsel %vm1765_vm5, %v14964_v26, %v1777_v34 }
 0x1bb   :  { %8681 = vset.pattern.permute.xlu1 %v14837_v7  ;;  %v11021_v8 = vpop.permute.xlu1 %1836  ;;  %v1883_v7 = vmul.f32 %v11014_v1, %v10819_v56  ;;  %v14970_v56 = vld [vmem:[#allocation95_spill] sm:$0xff] }
 0x1bc   :  { %2048 = vperm.xlu1 %8681, %v9034_v15   ;;  %2926 = vmatmul.mubr.bf16.gmra.mxu1 %v1674_v46  ;;  %14963 = vst [vmem:[#allocation109_spill] sm:$0xff] %v11021_v8  ;;  %v1884_v22 = vmul.f32 %v11021_v8, %v1778_v39  ;;  %v14971_v46 = vld [vmem:[#allocation100_spill] sm:$0xff]  ;;  %v1779_v39 = vrot.slane %v10163_v16, 6 }
 0x1bd   :  { %2933 = vmatprep.mubr.bf16.mxu1 %v1763_v27  ;;  %v1974_v27 = vmul.f32 %v10840_v17, %v14971_v46 }
 0x1be   :  { %v1897_v35 = vpack.c.bf16 %v1884_v22, %v1883_v7 }
 0x1c0   :  { %v11033_v47 = vpop.permute.xlu1 %1738  ;;  %2999 = vmatmul.mubr.bf16.gmra.mxu0 %v1897_v35  ;;  %v1780_v35 = vsel %vm1765_vm5, %v1777_v34, %v1779_v39 }
 0x1c1   :  { %14966 = vst [vmem:[#allocation118_spill] sm:$0xff] %v11033_v47  ;;  %v1756_v33 = vmul.f32 %v11033_v47, %v14967_v32  ;;  %v14976_v32 = vrot.slane %v10178_v50, 6 }
 0x1c3   :  { %v1764_v10 = vpack.c.bf16 %v1756_v33, %v1755_v13  ;;  %v1782_v33 = vsel %vm1765_vm5, %v1779_v39, %v14976_v32 }
 0x1c4   :  { %2934 = vmatmul.mubr.bf16.gmra.mxu1 %v1675_v62 }
 0x1c5   :  { %v11039_v25 = vpop.permute.xlu1 %1928  ;;  %2941 = vmatprep.mubr.bf16.mxu1 %v1764_v10  ;;  %v1885_v10 = vmul.f32 %v11050_v63, %v1780_v35 }
 0x1c6   :  { %14969 = vst [vmem:[#allocation81_spill] sm:$0xff] %v11039_v25  ;;  %v1973_v36 = vmul.f32 %v11039_v25, %v14970_v56  ;;  %v11064_v56 = vpop.permute.xlu0 %1848 }
 0x1c7   :  { %14977 = vst [vmem:[#allocation121_spill] sm:$0xff] %v11064_v56 }
 0x1c8   :  { %v1986_v15 = vpack.c.bf16 %v1974_v27, %v1973_v36  ;;  %v14979_v27 = vld [vmem:[#allocation98_spill] sm:$0xff] }
 0x1ca   :  { %v11045_v26 = vpop.permute.xlu1 %1646  ;;  %3006 = vmatprep.mubr.bf16.mxu0 %v1986_v15  ;;  %v14980_v15 = vld [vmem:[#allocation104_spill] sm:$0xff] }
 0x1cb   :  { %14972 = vst [vmem:[#allocation95_spill] sm:$0xff] %v11045_v26  ;;  %v1667_v7 = vmul.f32 %v11045_v26, %v10604_v5 }
 0x1ce   :  { %v11048_v57 = vpop.permute.xlu1 %1650 }
 0x1cf   :  { %14973 = vst [vmem:[#allocation100_spill] sm:$0xff] %v11048_v57  ;;  %v1668_v22 = vmul.f32 %v11048_v57, %v10166_v42 }
 0x1d1   :  { %v1676_v41 = vpack.c.bf16 %v1668_v22, %v1667_v7  ;;  %v1976_v7 = vmul.f32 %v10873_v3, %v14980_v15  ;;  %v11072_v22 = vpop.permute.xlu0 %1856 }
 0x1d2   :  { %14981 = vst [vmem:[#allocation98_spill] sm:$0xff] %v11072_v22 }
 0x1d3   :  { %v11057_v62 = vpop.permute.xlu1 %1844  ;;  %2942 = vmatmul.mubr.bf16.gmra.mxu1 %v1676_v41 }
 0x1d4   :  { %14975 = vst [vmem:[#allocation120_spill] sm:$0xff] %v11057_v62  ;;  %v1886_v13 = vmul.f32 %v11057_v62, %v1782_v33 }
 0x1d5   :  { %v11076_v32 = vpop.permute.xlu0 %1864 }
 0x1d6   :  { %v1898_v36 = vpack.c.bf16 %v1886_v13, %v1885_v10  ;;  %14983 = vst [vmem:[#allocation123_spill] sm:$0xff] %v11076_v32  ;;  %v1785_v10 = vrot.slane %v10390_v60, 6 }
 0x1d8   :  { %v11066_v46 = vpop.permute.xlu1 %1936  ;;  %3007 = vmatmul.mubr.bf16.gmra.mxu0 %v1898_v36 }
 0x1d9   :  { %14978 = vst [vmem:[#allocation122_spill] sm:$0xff] %v11066_v46  ;;  %v1975_v34 = vmul.f32 %v11066_v46, %v14979_v27  ;;  %v11085_v27 = vpop.permute.xlu0 %1872 }
 0x1da   :  { %14985 = vst [vmem:[#allocation125_spill] sm:$0xff] %v11085_v27 }
 0x1db   :  { %v1987_v39 = vpack.c.bf16 %v1976_v7, %v1975_v34  ;;  %v14987_v34 = vrot.slane %v10403_v9, 6 }
 0x1dd   :  { %3014 = vmatprep.mubr.bf16.mxu0 %v1987_v39  ;;  %v1786_v7 = vsel %vm1765_vm5, %v14987_v34, %v1785_v10  ;;  %v11095_v57 = vpop.permute.xlu0 %2004 }
 0x1de   :  { %14988 = vst [vmem:[#allocation127_spill] sm:$0xff] %v11095_v57 }
 0x1e1   :  { %v11074_v41 = vpop.permute.xlu1 %1992  ;;  %v11112_v47 = vpop.permute.xlu0 %2008 }
 0x1e2   :  { %14982 = vst [vmem:[#allocation104_spill] sm:$0xff] %v11074_v41  ;;  %v2055_v33 = vmul.f32 %v11074_v41, %v14926_v58  ;;  %v1887_v58 = vmul.f32 %v11064_v56, %v10838_v12 }
 0x1e5   :  { %v11078_v35 = vpop.permute.xlu1 %1996 }
 0x1e6   :  { %14984 = vst [vmem:[#allocation124_spill] sm:$0xff] %v11078_v35  ;;  %v2056_v13 = vmul.f32 %v11078_v35, %v14927_v24 }
 0x1e8   :  { %v2071_v36 = vpack.c.bf16 %v2056_v13, %v2055_v33  ;;  %v2058_v33 = vmul.f32 %v11095_v57, %v10067_v52 }
 0x1ea   :  { %v11087_v15 = vpop.permute.xlu1 %1852  ;;  %8464 = vmatprep.mubr.bf16.mxu1 %v2071_v36 }
 0x1eb   :  { %14986 = vst [vmem:[#allocation126_spill] sm:$0xff] %v11087_v15  ;;  %v1888_v39 = vmul.f32 %v11087_v15, %v1786_v7  ;;  %v14992_v7 = vld [vmem:[#allocation106_spill] sm:$0xff] }
 0x1ec   :  { %14994 = vst [vmem:[#allocation106_spill] sm:$0xff] %v11112_v47 }
 0x1ed   :  { %v1899_v41 = vpack.c.bf16 %v1888_v39, %v1887_v58  ;;  %v14993_v39 = vld [vmem:[#allocation105_spill] sm:$0xff] }
 0x1ef   :  { %v11097_v24 = vpop.permute.xlu1 %2000  ;;  %3015 = vmatmul.mubr.bf16.gmra.mxu0 %v1899_v41  ;;  %v1787_v41 = vrot.slane %v10187_v45, 6 }
 0x1f0   :  { %14989 = vst [vmem:[#allocation128_spill] sm:$0xff] %v11097_v24  ;;  %v2057_v13 = vmul.f32 %v11097_v24, %v14935_v40  ;;  %v2059_v40 = vmul.f32 %v11112_v47, %v10070_v54  ;;  %v11127_v24 = vpop.permute.xlu0 %2020 }
 0x1f1   :  { %14997 = vst [vmem:[#allocation132_spill] sm:$0xff] %v11127_v24 }
 0x1f2   :  { %v2072_v35 = vpack.c.bf16 %v2058_v33, %v2057_v13  ;;  %v1789_v33 = vrot.slane %v10450_v23, 6 }
 0x1f4   :  { %v11103_v34 = vpop.permute.xlu1 %1944  ;;  %8465 = vmatmul.mubr.bf16.vlgmr.msra.gmra.mxu1 %v2072_v35 }
 0x1f5   :  { %14990 = vst [vmem:[#allocation129_spill] sm:$0xff] %v11103_v34  ;;  %v1977_v12 = vmul.f32 %v11103_v34, %v14992_v7  ;;  %v1788_v7 = vsel %vm1765_vm5, %v1785_v10, %v1787_v41 }
 0x1f8   :  { %v11105_v36 = vpop.permute.xlu1 %1948 }
 0x1f9   :  { %14991 = vst [vmem:[#allocation130_spill] sm:$0xff] %v11105_v36  ;;  %v1978_v58 = vmul.f32 %v11105_v36, %v14993_v39 }
 0x1fb   :  { %v1988_v26 = vpack.c.bf16 %v1978_v58, %v1977_v12  ;;  %v1790_v12 = vsel %vm1765_vm5, %v1787_v41, %v1789_v33 }
 0x1fd   :  { %v11114_v52 = vpop.permute.xlu1 %2012  ;;  %3022 = vmatprep.mubr.bf16.mxu0 %v1988_v26  ;;  %v1889_v26 = vmul.f32 %v11072_v22, %v1788_v7 }
 0x1fe   :  { %14995 = vst [vmem:[#allocation105_spill] sm:$0xff] %v11114_v52  ;;  %v2060_v35 = vmul.f32 %v11114_v52, %v10160_v19  ;;  %v2062_v19 = vmul.f32 %v11127_v24, %v10178_v50 }
 0x200   :  { %v2073_v13 = vpack.c.bf16 %v2060_v35, %v2059_v40  ;;  %v972_v40 = vlaneseq }
 0x202   :  { %v11122_v39 = vpop.permute.xlu1 %1860  ;;  %8468 = vmatprep.mubr.bf16.mxu1 %v2073_v13  ;;  %v11137_v13 = vshrl.u32 %v972_v40, 7  ;;  %v1791_v40 = vrot.slane %v10522_v6, 6 }
 0x203   :  { %14996 = vst [vmem:[#allocation131_spill] sm:$0xff] %v11122_v39  ;;  %v1890_v58 = vmul.f32 %v11122_v39, %v1790_v12  ;;  %v15002_v12 = vld [vmem:[#allocation110_spill] sm:$0xff] }
 0x204   :  { %15000 = vst [vmem:[#allocation135_spill] sm:$0xff] %v11137_v13  ;;  %v14558_v50 = vsub.s32 0, %v11137_v13  ;;  %v8857_v13 = vld [vmem:[%s14364_s3 + $0x2f8] sm:$0xff]  }
 0x205   :  { %v1900_v57 = vpack.c.bf16 %v1890_v58, %v1889_v26 }
 0x207   :  { %v11129_v54 = vpop.permute.xlu1 %2016  ;;  %3023 = vmatmul.mubr.bf16.gmra.mxu0 %v1900_v57 }
 0x208   :  { %14998 = vst [vmem:[#allocation133_spill] sm:$0xff] %v11129_v54  ;;  %v2061_v10 = vmul.f32 %v11129_v54, %v10163_v16  ;;  %v1037_v16 = vld [vmem:[%s14367_s4] sm:$0xff] }
 0x20a   :  { %v2074_v35 = vpack.c.bf16 %v2062_v19, %v2061_v10 }
 0x20c   :  { %v11135_v41 = vpop.permute.xlu1 %1952  ;;  %8469 = vmatmul.mubr.bf16.gmra.mxu1 %v2074_v35  ;;  %v11150_v35 = vpop.permute.xlu0 %2024 }
 0x20d   :  { %14999 = vst [vmem:[#allocation134_spill] sm:$0xff] %v11135_v41  ;;  %v1979_v58 = vmul.f32 %v11135_v41, %v15002_v12  ;;  %15003 = vst [vmem:[#allocation110_spill] sm:$0xff] %v11150_v35  ;;  %v11156_v12 = vrot.slane %v1037_v16, %v14558_v50 }
 0x20f   :  { %15005 = vst [vmem:[#allocation138_spill] sm:$0xff] %v11156_v12 }
 0x210   :  { %v11139_v7 = vpop.permute.xlu1 %1956  ;;  %v11175_v54 = vpop.permute.xlu0 %2036 }
 0x211   :  { %15001 = vst [vmem:[#allocation136_spill] sm:$0xff] %v11139_v7  ;;  %v1980_v57 = vmul.f32 %v11139_v7, %v10698_v11  ;;  %v2063_v11 = vmul.f32 %v11150_v35, %v10403_v9  ;;  %v1794_v9 = vsel %vm1765_vm5, %v1791_v40, %v14567_v31  ;;  %15007 = vst [vmem:[#allocation140_spill] sm:$0xff] %v11175_v54 }
 0x212   :  { %v7608_v19 = vpop.f32.mrf.mxu1  ;;  %v7672_v10 = vpop.f32.mrf.mxu0 }
 0x213   :  { %v1989_v26 = vpack.c.bf16 %v1980_v57, %v1979_v58 }
 0x214   :  { %v7609_v58 = vpop.f32.mrf.mxu1  ;;  %v7673_v57 = vpop.f32.mrf.mxu0 }
 0x215   :  { %v11152_v52 = vpop.permute.xlu1 %2028  ;;  %3030 = vmatprep.mubr.bf16.mxu0 %v1989_v26  ;;  %v7610_v51 = vadd.f32 %v7609_v58, %v7608_v19  ;;  %v7674_v55 = vadd.f32 %v7673_v57, %v7672_v10  ;;  %v1792_v26 = vsel %vm1765_vm5, %v1789_v33, %v1791_v40 }
 0x216   :  { %15004 = vst [vmem:[#allocation137_spill] sm:$0xff] %v11152_v52  ;;  %v2064_v47 = vmul.f32 %v11152_v52, %v10390_v60  ;;  %v7611_v8 = vpop.f32.mrf.mxu1  ;;  %v7675_v1 = vpop.f32.mrf.mxu0 }
 0x217   :  { %v2694_v16 = vadd.f32 %v7610_v51, %v11156_v12 }
 0x218   :  { %v2075_v24 = vpack.c.bf16 %v2064_v47, %v2063_v11  ;;  %v7612_v60 = vpop.f32.mrf.mxu1  ;;  %v7676_v58 = vpop.f32.mrf.mxu0  ;;  %v1891_v47 = vmul.f32 %v11076_v32, %v1792_v26 }
 0x219   :  { %v11170_v52 = vadd.f32 %v7674_v55, %v2694_v16  ;;  %v7613_v10 = vadd.f32 %v7612_v60, %v7611_v8  ;;  %v7677_v51 = vadd.f32 %v7676_v58, %v7675_v1  ;;  %v2066_v8 = vmul.f32 %v11175_v54, %v10450_v23 }
 0x21a   :  { %v11165_v50 = vpop.permute.xlu1 %1868  ;;  %8472 = vmatprep.mubr.bf16.mxu1 %v2075_v24  ;;  %v7614_v11 = vpop.f32.mrf.mxu1 }
 0x21b   :  { %15006 = vst [vmem:[#allocation139_spill] sm:$0xff] %v11165_v50  ;;  %v1892_v19 = vmul.f32 %v11165_v50, %v1794_v9  ;;  %v2697_v33 = vadd.f32 %v7613_v10, %v11156_v12  ;;  %v7678_v57 = vpop.f32.mrf.mxu0 }
 0x21c   :  { %v7615_v61 = vpop.f32.mrf.mxu1 }
 0x21d   :  { %v1901_v35 = vpack.c.bf16 %v1892_v19, %v1891_v47  ;;  %v11177_v40 = vadd.f32 %v7677_v51, %v2697_v33  ;;  %v7616_v24 = vadd.f32 %v7615_v61, %v7614_v11  ;;  %v7679_v55 = vpop.f32.mrf.mxu0 }
 0x21e   :  { %v7680_v26 = vadd.f32 %v7679_v55, %v7678_v57  ;;  %v7617_v1 = vpop.f32.mrf.mxu1 }
 0x21f   :  { %v11179_v16 = vpop.permute.xlu1 %2032  ;;  %3031 = vmatmul.mubr.bf16.gmra.mxu0 %v1901_v35  ;;  %v2702_v60 = vadd.f32 %v7616_v24, %v11156_v12  ;;  %v7681_v19 = vpop.f32.mrf.mxu0 }
 0x220   :  { %15008 = vst [vmem:[#allocation141_spill] sm:$0xff] %v11179_v16  ;;  %v2065_v9 = vmul.f32 %v11179_v16, %v10187_v45  ;;  %v7618_v10 = vpop.f32.mrf.mxu1 }
 0x221   :  { %v11186_v47 = vadd.f32 %v7680_v26, %v2702_v60  ;;  %v7619_v61 = vadd.f32 %v7618_v10, %v7617_v1  ;;  %v7682_v11 = vpop.f32.mrf.mxu0  ;;  %v15011_v1 = vld [vmem:[#allocation82_spill] sm:$0xff] }
 0x222   :  { %v2076_v58 = vpack.c.bf16 %v2066_v8, %v2065_v9  ;;  %v7620_v35 = vpop.f32.mrf.mxu1  ;;  %v7683_v51 = vadd.f32 %v7682_v11, %v7681_v19 }
 0x223   :  { %v2705_v23 = vadd.f32 %v7619_v61, %v11156_v12  ;;  %v7684_v57 = vpop.f32.mrf.mxu0 }
 0x224   :  { %v11188_v33 = vpop.permute.xlu1 %1960  ;;  %8473 = vmatmul.mubr.bf16.gmra.mxu1 %v2076_v58  ;;  %v7621_v55 = vpop.f32.mrf.mxu1 }
 0x225   :  { %15009 = vst [vmem:[#allocation142_spill] sm:$0xff] %v11188_v33  ;;  %v11191_v45 = vadd.f32 %v7683_v51, %v2705_v23  ;;  %v7622_v31 = vadd.f32 %v7621_v55, %v7620_v35  ;;  %v7685_v24 = vpop.f32.mrf.mxu0  ;;  %v1981_v26 = vmul.f32 %v11188_v33, %v10723_v48  ;;  %v11202_v23 = vpop.permute.xlu0 %2040 }
 0x226   :  { %v7686_v54 = vadd.f32 %v7685_v24, %v7684_v57  ;;  %v7623_v8 = vpop.f32.mrf.mxu1  ;;  %15012 = vst [vmem:[#allocation82_spill] sm:$0xff] %v11202_v23 }
 0x227   :  { %v2710_v9 = vadd.f32 %v7622_v31, %v11156_v12  ;;  %v7687_v10 = vpop.f32.mrf.mxu0  ;;  %v2067_v31 = vmul.f32 %v11202_v23, %v10522_v6 }
 0x228   :  { %v11193_v16 = vpop.permute.xlu1 %1964  ;;  %v7624_v19 = vpop.f32.mrf.mxu1 }
 0x229   :  { %15010 = vst [vmem:[#allocation143_spill] sm:$0xff] %v11193_v16  ;;  %v1982_v60 = vmul.f32 %v11193_v16, %v15011_v1  ;;  %v11200_v58 = vadd.f32 %v7686_v54, %v2710_v9  ;;  %v7625_v61 = vadd.f32 %v7624_v19, %v7623_v8  ;;  %v7688_v11 = vpop.f32.mrf.mxu0  ;;  %v1795_v8 = vrot.slane %v10166_v42, 6 }
 0x22a   :  { %v7626_v51 = vpop.f32.mrf.mxu1  ;;  %v7689_v55 = vadd.f32 %v7688_v11, %v7687_v10  ;;  %v15014_v11 = vrot.slane %v10604_v5, 6 }
 0x22b   :  { %v1990_v35 = vpack.c.bf16 %v1982_v60, %v1981_v26  ;;  %v2713_v57 = vadd.f32 %v7625_v61, %v11156_v12  ;;  %v7690_v24 = vpop.f32.mrf.mxu0 }
 0x22c   :  { %v7627_v9 = vpop.f32.mrf.mxu1 }
 0x22d   :  { %v11205_v48 = vpop.permute.xlu1 %2044  ;;  %3038 = vmatprep.mubr.bf16.mxu0 %v1990_v35  ;;  %v11212_v26 = vadd.f32 %v7689_v55, %v2713_v57  ;;  %v7628_v1 = vadd.f32 %v7627_v9, %v7626_v51  ;;  %v7691_v60 = vpop.f32.mrf.mxu0  ;;  %v1796_v35 = vsel %vm1765_vm5, %v15014_v11, %v1795_v8 }
 0x22e   :  { %15013 = vst [vmem:[#allocation144_spill] sm:$0xff] %v11205_v48  ;;  %v2068_v54 = vmul.f32 %v11205_v48, %v10604_v5  ;;  %v7692_v19 = vadd.f32 %v7691_v60, %v7690_v24  ;;  %v7629_v61 = vpop.f32.mrf.mxu1  ;;  %v15016_v48 = vrot.slane %v14924_v18, 6  ;;  %v1893_v5 = vmul.f32 %v11085_v27, %v1796_v35  ;;  %v11227_v9 = vpop.permute.xlu0 %2052 }
 0x22f   :  { %v2718_v16 = vadd.f32 %v7628_v1, %v11156_v12  ;;  %v7693_v6 = vpop.f32.mrf.mxu0  ;;  %15017 = vst [vmem:[#allocation146_spill] sm:$0xff] %v11227_v9 }
 0x230   :  { %v2077_v10 = vpack.c.bf16 %v2068_v54, %v2067_v31  ;;  %v1814_v33 = vsel %vm1765_vm5, %v1795_v8, %v15016_v48  ;;  %v7630_v57 = vpop.f32.mrf.mxu1 }
 0x231   :  { %v11223_v51 = vadd.f32 %v7692_v19, %v2718_v16  ;;  %v7631_v24 = vadd.f32 %v7630_v57, %v7629_v61  ;;  %v7694_v31 = vpop.f32.mrf.mxu0 }
 0x232   :  { %v11218_v23 = vpop.permute.xlu1 %1876  ;;  %8476 = vmatprep.mubr.bf16.mxu1 %v2077_v10  ;;  %v7632_v54 = vpop.f32.mrf.mxu1  ;;  %v7695_v60 = vadd.f32 %v7694_v31, %v7693_v6 }
 0x233   :  { %15015 = vst [vmem:[#allocation145_spill] sm:$0xff] %v11218_v23  ;;  %v1894_v55 = vmul.f32 %v11218_v23, %v1814_v33  ;;  %v2721_v1 = vadd.f32 %v7631_v24, %v11156_v12  ;;  %v2070_v33 = vmul.f32 %v11227_v9, %v14924_v18 }
 0x234   :  { %v7633_v32 = vpop.f32.mrf.mxu1 }
 0x235   :  { %v7696_v11 = vpop.f32.mrf.mxu0  ;;  %v1902_v50 = vpack.c.bf16 %v1894_v55, %v1893_v5  ;;  %v11230_v48 = vadd.f32 %v7695_v60, %v2721_v1  ;;  %v7634_v8 = vadd.f32 %v7633_v32, %v7632_v54 }
 0x236   :  { %v7635_v35 = vpop.f32.mrf.mxu1 }
 0x237   :  { %v7697_v16 = vpop.f32.mrf.mxu0  ;;  %v11232_v19 = vpop.permute.xlu1 %2048  ;;  %3039 = vmatmul.mubr.bf16.gmra.mxu0 %v1902_v50  ;;  %v2726_v6 = vadd.f32 %v7634_v8, %v11156_v12 }
 0x238   :  { %15018 = vst [vmem:[#allocation147_spill] sm:$0xff] %v11232_v19  ;;  %v7698_v61 = vadd.f32 %v7697_v16, %v7696_v11  ;;  %v2069_v10 = vmul.f32 %v11232_v19, %v10166_v42  ;;  %v7636_v24 = vpop.f32.mrf.mxu1 }
 0x239   :  { %v7699_v57 = vpop.f32.mrf.mxu0  ;;  %v7637_v32 = vadd.f32 %v7636_v24, %v7635_v35 }
 0x23a   :  { %v2078_v55 = vpack.c.bf16 %v2070_v33, %v2069_v10  ;;  %v11239_v31 = vadd.f32 %v7698_v61, %v2726_v6 }
 0x23b   :  { %v7700_v5 = vpop.f32.mrf.mxu0  ;;  %v7638_v54 = vpop.f32.mrf.mxu1  ;;  %v2729_v50 = vadd.f32 %v7637_v32, %v11156_v12 }
 0x23c   :  { %8477 = vmatmul.mubr.bf16.gmra.mxu1 %v2078_v55  ;;  %v7701_v1 = vadd.f32 %v7700_v5, %v7699_v57 }
 0x23d   :  { %v7702_v18 = vpop.f32.mrf.mxu0  ;;  %v7639_v60 = vpop.f32.mrf.mxu1 }
 0x23e   :  { %v11242_v11 = vadd.f32 %v7701_v1, %v2729_v50  ;;  %v7640_v42 = vadd.f32 %v7639_v60, %v7638_v54 }
 0x23f   :  { %v7703_v16 = vpop.f32.mrf.mxu0  ;;  %v7641_v8 = vpop.f32.mrf.mxu1 }
 0x240   :  { %v7704_v9 = vadd.f32 %v7703_v16, %v7702_v18  ;;  %v2734_v33 = vadd.f32 %v7640_v42, %v11156_v12 }
 0x241   :  { %v7705_v10 = vpop.f32.mrf.mxu0  ;;  %v7642_v61 = vpop.f32.mrf.mxu1 }
 0x242   :  { %v11245_v6 = vadd.f32 %v7704_v9, %v2734_v33  ;;  %v7643_v35 = vadd.f32 %v7642_v61, %v7641_v8 }
 0x243   :  { %v7706_v24 = vpop.f32.mrf.mxu0 }
 0x244   :  { %15019 = vst [vmem:[#allocation148_spill] sm:$0xff] %v11245_v6  ;;  %v7644_v55 = vpop.f32.mrf.mxu1  ;;  %v2737_v32 = vadd.f32 %v7643_v35, %v11156_v12  ;;  %v7707_v57 = vadd.f32 %v7706_v24, %v7705_v10  ;;  %v8861_v6 = vld [vmem:[%s14364_s3 + $0x250] sm:$0xff]  }
 0x245   :  { %v7708_v5 = vpop.f32.mrf.mxu0 }
 0x246   :  { %v7645_v19 = vpop.f32.mrf.mxu1  ;;  %v11248_v50 = vadd.f32 %v7707_v57, %v2737_v32 }
 0x247   :  { %v7646_v54 = vadd.f32 %v7645_v19, %v7644_v55  ;;  %v7709_v1 = vpop.f32.mrf.mxu0 }
 0x248   :  { %15020 = vst [vmem:[#allocation149_spill] sm:$0xff] %v11248_v50  ;;  %v7710_v18 = vadd.f32 %v7709_v1, %v7708_v5  ;;  %v7647_v60 = vpop.f32.mrf.mxu1 }
 0x249   :  { %v2742_v42 = vadd.f32 %v7646_v54, %v11156_v12  ;;  %v7711_v16 = vpop.f32.mrf.mxu0 }
 0x24a   :  { %v7648_v23 = vpop.f32.mrf.mxu1 }
 0x24b   :  { %v11251_v9 = vadd.f32 %v7710_v18, %v2742_v42  ;;  %v7649_v8 = vadd.f32 %v7648_v23, %v7647_v60  ;;  %v7712_v33 = vpop.f32.mrf.mxu0 }
 0x24c   :  { %v7650_v61 = vpop.f32.mrf.mxu1  ;;  %v7713_v10 = vadd.f32 %v7712_v33, %v7711_v16 }
 0x24d   :  { %15021 = vst [vmem:[#allocation150_spill] sm:$0xff] %v11251_v9  ;;  %v2745_v35 = vadd.f32 %v7649_v8, %v11156_v12  ;;  %v7714_v24 = vpop.f32.mrf.mxu0  ;;  %v8859_v9 = vld [vmem:[%s14364_s3 + $0x2f0] sm:$0xff]  }
 0x24e   :  { %v7651_v27 = vpop.f32.mrf.mxu1 }
 0x24f   :  { %v11254_v32 = vadd.f32 %v7713_v10, %v2745_v35  ;;  %v7652_v19 = vadd.f32 %v7651_v27, %v7650_v61  ;;  %v7715_v55 = vpop.f32.mrf.mxu0 }
 0x250   :  { %v11256_v57 = vpop.f32.mrf.mxu1  ;;  %v7716_v54 = vadd.f32 %v7715_v55, %v7714_v24 }
 0x251   :  { %15022 = vst [vmem:[#allocation151_spill] sm:$0xff] %v11254_v32  ;;  %v2750_v5 = vadd.f32 %v7652_v19, %v11156_v12  ;;  %v11296_v49 = vpop.f32.mrf.mxu0 }
 0x252   :  { %v11259_v1 = vpop.f32.mrf.mxu1  ;;  %15024 = vst [vmem:[#allocation153_spill] sm:$0xff] %v11296_v49 }
 0x253   :  { %v11261_v18 = vadd.f32 %v7716_v54, %v2750_v5  ;;  %v11300_v39 = vpop.f32.mrf.mxu0 }
 0x254   :  { %v7736_v23 = vpop.f32.mrf.mxu1  ;;  %15025 = vst [vmem:[#allocation154_spill] sm:$0xff] %v11300_v39 }
 0x255   :  { %15023 = vst [vmem:[#allocation152_spill] sm:$0xff] %v11261_v18  ;;  %v11304_v22 = vpop.f32.mrf.mxu0  ;;  %v8856_v18 = vld [vmem:[%s14364_s3 + $0x338] sm:$0xff]  }
 0x256   :  { %v7737_v60 = vpop.f32.mrf.mxu1  ;;  %7928 = vmatprep.subr.bf16.mxu1 %v8856_v18 }
 0x257   :  { %v7738_v42 = vadd.f32 %v7737_v60, %v7736_v23  ;;  %v11308_v2 = vpop.f32.mrf.mxu0  ;;  %7929 = vmatpush3.bf16.msra.mxu1 %v8857_v13  ;;  %v8852_v13 = vld [vmem:[%s14364_s3 + $0x2a0] sm:$0xff]  }
 0x258   :  { %v11263_v8 = vpop.f32.mrf.mxu1  ;;  %7930 = vmatprep.subr.bf16.mxu1 %v8858_v59  ;;  %v8853_v59 = vld [vmem:[%s14364_s3 + $0x260] sm:$0xff]  }
 0x259   :  { %v11266_v16 = vadd.f32 %v7738_v42, %v11170_v52  ;;  %v11312_v21 = vpop.f32.mrf.mxu0 }
 0x25a   :  { %v11268_v33 = vpop.f32.mrf.mxu1 }
 0x25b   :  { %v11316_v36 = vpop.f32.mrf.mxu0  ;;  %7931 = vmatpush3.bf16.msra.mxu1 %v8859_v9 }
 0x25c   :  { %v11270_v27 = vpop.f32.mrf.mxu1 }
 0x25e   :  { %v11272_v61 = vpop.f32.mrf.mxu1 }
 0x260   :  { %v11274_v35 = vpop.f32.mrf.mxu1 }
 0x262   :  { %v11276_v10 = vpop.f32.mrf.mxu1 }
 0x264   :  { %v11278_v24 = vpop.f32.mrf.mxu1 }
 0x265   :  { %v11318_v56 = vpop.f32.mrf.mxu0 }
 0x266   :  { %v11280_v19 = vpop.f32.mrf.mxu1 }
 0x267   :  { %v11322_v30 = vpop.f32.mrf.mxu0 }
 0x268   :  { %v11282_v55 = vpop.f32.mrf.mxu1 }
 0x269   :  { %v11326_v62 = vpop.f32.mrf.mxu0 }
 0x26a   :  { %v11284_v5 = vpop.f32.mrf.mxu1 }
 0x26b   :  { %v11330_v63 = vpop.f32.mrf.mxu0 }
 0x26c   :  { %v11286_v52 = vpop.f32.mrf.mxu1 }
 0x26e   :  { %v11288_v54 = vpop.f32.mrf.mxu1 }
 0x270   :  { %v11290_v23 = vpop.f32.mrf.mxu1 }
 0x272   :  { %v11292_v60 = vpop.f32.mrf.mxu1 }
 0x274   :  { %v11294_v42 = vpop.f32.mrf.mxu1 }
 0x276   :  { %v11298_v7 = vpop.f32.mrf.mxu1 }
 0x278   :  { %v11302_v41 = vpop.f32.mrf.mxu1 }
 0x27a   :  { %v11306_v28 = vpop.f32.mrf.mxu1 }
 0x27c   :  { %v11310_v4 = vpop.f32.mrf.mxu1 }
 0x27e   :  { %v11314_v15 = vpop.f32.mrf.mxu1 }
 0x280   :  { %v11320_v34 = vpop.f32.mrf.mxu1  ;;  %v11334_v44 = vpop.f32.mrf.mxu0 }
 0x281   :  { %15026 = vst [vmem:[#allocation155_spill] sm:$0xff] %v11320_v34 }
 0x282   :  { %v11324_v37 = vpop.f32.mrf.mxu1  ;;  %v11338_v17 = vpop.f32.mrf.mxu0 }
 0x283   :  { %15027 = vst [vmem:[#allocation156_spill] sm:$0xff] %v11324_v37  ;;  %v7741_v37 = vadd.f32 %v11268_v33, %v11263_v8  ;;  %v8866_v33 = vld [vmem:[%s14364_s3 + $0x288] sm:$0xff]  }
 0x284   :  { %v11328_v3 = vpop.f32.mrf.mxu1  ;;  %v11342_v38 = vpop.f32.mrf.mxu0 }
 0x285   :  { %15028 = vst [vmem:[#allocation157_spill] sm:$0xff] %v11328_v3  ;;  %v2891_v8 = vadd.f32 %v7741_v37, %v11177_v40  ;;  %v8867_v37 = vld [vmem:[%s14364_s3 + $0x248] sm:$0xff]  }
 0x286   :  { %v11332_v46 = vpop.f32.mrf.mxu1  ;;  %v11346_v29 = vpop.f32.mrf.mxu0  ;;  %v8874_v40 = vld [vmem:[%s14364_s3 + $0x308] sm:$0xff]  }
 0x287   :  { %15029 = vst [vmem:[#allocation158_spill] sm:$0xff] %v11332_v46 }
 0x288   :  { %v11336_v20 = vpop.f32.mrf.mxu1 }
 0x289   :  { %15030 = vst [vmem:[#allocation159_spill] sm:$0xff] %v11336_v20  ;;  %v8849_v20 = vld [vmem:[%s14364_s3 + $0x270] sm:$0xff]  }
 0x28a   :  { %v11340_v25 = vpop.f32.mrf.mxu1  ;;  %7867 = vmatpush3.bf16.msra.mxu0 %v8849_v20  ;;  %v8863_v20 = vld [vmem:[%s14364_s3 + $0x2e8] sm:$0xff]  }
 0x28b   :  { %15031 = vst [vmem:[#allocation160_spill] sm:$0xff] %v11340_v25  ;;  %7868 = vmatprep.subr.bf16.mxu0 %v8850_v43  ;;  %v8864_v43 = vld [vmem:[%s14364_s3 + $0x320] sm:$0xff]  }
 0x28e   :  { %7869 = vmatpush3.bf16.msra.mxu0 %v8851_v14  ;;  %v8865_v14 = vld [vmem:[%s14364_s3 + $0x2e0] sm:$0xff]  }
 0x28f   :  { %7870 = vmatprep.subr.bf16.mxu0 %v8852_v13  ;;  %v8868_v13 = vld [vmem:[%s14364_s3 + $0x318] sm:$0xff]  }
 0x292   :  { %7871 = vmatpush3.bf16.msra.mxu0 %v8853_v59  ;;  %v8869_v59 = vld [vmem:[%s14364_s3 + $0x2d8] sm:$0xff]  }
 0x293   :  { %v11344_v0 = vpop.f32.mrf.mxu1 }
 0x294   :  { %15032 = vst [vmem:[#allocation161_spill] sm:$0xff] %v11344_v0 }
 0x295   :  { %v11348_v53 = vpop.f32.mrf.mxu1 }
 0x296   :  { %15033 = vst [vmem:[#allocation162_spill] sm:$0xff] %v11348_v53  ;;  %v8862_v53 = vld [vmem:[%s14364_s3 + $0x328] sm:$0xff]  }
 0x297   :  { %v11361_v25 = vpop.f32.mrf.mxu1  ;;  %7932 = vmatprep.subr.bf16.mxu1 %v8862_v53  ;;  %v8855_v53 = vld [vmem:[%s14364_s3 + $0x258] sm:$0xff]  }
 0x298   :  { %v11359_v32 = vpop.f32.mrf.mxu0  ;;  %15034 = vst [vmem:[#allocation163_spill] sm:$0xff] %v11361_v25  ;;  %7933 = vmatpush3.bf16.msra.mxu1 %v8863_v20  ;;  %v8860_v20 = vld [vmem:[%s14364_s3 + $0x290] sm:$0xff]  }
 0x299   :  { %v11383_v50 = vpop.f32.mrf.mxu1  ;;  %7934 = vmatprep.subr.bf16.mxu1 %v8864_v43 }
 0x29a   :  { %v11378_v25 = vpop.f32.mrf.mxu0  ;;  %15035 = vst [vmem:[#allocation164_spill] sm:$0xff] %v11383_v50  ;;  %v8854_v50 = vld [vmem:[%s14364_s3 + $0x298] sm:$0xff]  }
 0x29b   :  { %7872 = vmatprep.subr.bf16.mxu0 %v8854_v50  ;;  %v8870_v50 = vld [vmem:[%s14364_s3 + $0x310] sm:$0xff]  }
 0x29c   :  { %v11394_v18 = vpop.f32.mrf.mxu0  ;;  %7935 = vmatpush3.bf16.msra.mxu1 %v8865_v14  ;;  %7873 = vmatpush3.bf16.msra.mxu0 %v8855_v53  ;;  %v7805_v53 = vadd.f32 %v11316_v36, %v11312_v21  ;;  %v7802_v21 = vadd.f32 %v11308_v2, %v11304_v22  ;;  %v7744_v36 = vadd.f32 %v11272_v61, %v11270_v27  ;;  %v8875_v2 = vld [vmem:[%s14364_s3 + $0x2c8] sm:$0xff]   ;;  %v8873_v61 = vld [vmem:[%s14364_s3 + $0x240] sm:$0xff]  }
 0x29d   :  { %7936 = vmatprep.subr.bf16.mxu1 %v8868_v13  ;;  %7874 = vmatprep.subr.bf16.mxu0 %v8860_v20  ;;  %v8871_v13 = vld [vmem:[%s14364_s3 + $0x2d0] sm:$0xff]  }
 0x29e   :  { %v11410_v9 = vpop.f32.mrf.mxu0  ;;  %v2988_v20 = vadd.f32 %v7805_v53, %v2891_v8  ;;  %v7750_v8 = vadd.f32 %v11280_v19, %v11278_v24  ;;  %v7753_v53 = vadd.f32 %v11284_v5, %v11282_v55  ;;  %v7817_v24 = vadd.f32 %v11346_v29, %v11342_v38 }
 0x2a0   :  { %7937 = vmatpush3.bf16.msra.mxu1 %v8869_v59  ;;  %7875 = vmatpush3.bf16.msra.mxu0 %v8861_v6  ;;  %v8872_v6 = vld [vmem:[%s14364_s3 + $0x280] sm:$0xff]   ;;  %v7808_v59 = vadd.f32 %v11322_v30, %v11318_v56  ;;  %v2896_v56 = vadd.f32 %v7744_v36, %v11186_v47  ;;  %v7811_v47 = vadd.f32 %v11330_v63, %v11326_v62 }
 0x2a1   :  { %7938 = vmatprep.subr.bf16.mxu1 %v8870_v50  ;;  %7876 = vmatprep.subr.bf16.mxu0 %v8866_v33  ;;  %v2985_v50 = vadd.f32 %v7802_v21, %v11266_v16  ;;  %v8876_v30 = vld [vmem:[%s14364_s3 + $0x300] sm:$0xff]   ;;  %v7747_v16 = vadd.f32 %v11276_v10, %v11274_v35  ;;  %v7814_v35 = vadd.f32 %v11338_v17, %v11334_v44 }
 0x2a2   :  { %v2993_v10 = vadd.f32 %v7808_v59, %v2896_v56  ;;  %v2904_v62 = vadd.f32 %v7750_v8, %v11200_v58  ;;  %v2907_v55 = vadd.f32 %v7753_v53, %v11212_v26  ;;  %v7756_v21 = vadd.f32 %v11288_v54, %v11286_v52 }
 0x2a3   :  { %v2899_v63 = vadd.f32 %v7747_v16, %v11191_v45  ;;  %v7759_v45 = vadd.f32 %v11292_v60, %v11290_v23  ;;  %v7820_v52 = vadd.f32 %v11378_v25, %v11359_v32  ;;  %v8887_v23 = vld [vmem:[%s14364_s3 + $0x438] sm:$0xff]   ;;  %v7762_v56 = vadd.f32 %v11298_v7, %v11294_v42 }
 0x2a4   :  { %7939 = vmatpush3.bf16.msra.mxu1 %v8871_v13  ;;  %7877 = vmatpush3.bf16.msra.mxu0 %v8867_v37  ;;  %v3001_v38 = vadd.f32 %v7814_v35, %v2904_v62  ;;  %v3004_v58 = vadd.f32 %v7817_v24, %v2907_v55  ;;  %v2912_v60 = vadd.f32 %v7756_v21, %v11223_v51  ;;  %v15036_v55 = vld [vmem:[#allocation138_spill] sm:$0xff]  ;;  %v15037_v21 = vld [vmem:[#allocation153_spill] sm:$0xff] }
 0x2a5   :  { %7940 = vmatprep.subr.bf16.mxu1 %v8874_v40  ;;  %7878 = vmatprep.subr.bf16.mxu0 %v8872_v6  ;;  %v2996_v40 = vadd.f32 %v7811_v47, %v2899_v63  ;;  %v7823_v8 = vadd.f32 %v11410_v9, %v11394_v18 }
 0x2a8   :  { %7941 = vmatpush3.bf16.msra.mxu1 %v8875_v2  ;;  %7879 = vmatpush3.bf16.msra.mxu0 %v8873_v61 }
 0x2a9   :  { %7942 = vmatprep.subr.bf16.mxu1 %v8876_v30 }
 0x2af   :  { %v11415_v3 = vpop.f32.mrf.mxu0 }
 0x2b1   :  { %v11433_v43 = vpop.f32.mrf.mxu0 }
 0x2b2   :  { %v7826_v53 = vadd.f32 %v11433_v43, %v11415_v3  ;;  %v2920_v3 = vadd.f32 %v7762_v56, %v11239_v31  ;;  %v15043_v56 = vld [vmem:[#allocation158_spill] sm:$0xff] }
 0x2b3   :  { %v11450_v39 = vpop.f32.mrf.mxu0 }
 0x2b4   :  { %v11396_v0 = vpop.f32.mrf.mxu1  ;;  %v3017_v31 = vadd.f32 %v7826_v53, %v2920_v3  ;;  %v15045_v53 = vld [vmem:[#allocation162_spill] sm:$0xff] }
 0x2b5   :  { %v11473_v22 = vpop.f32.mrf.mxu0  ;;  %v3090_v17 = vadd.f32 %v11396_v0, %v2993_v10  ;;  %v7655_v10 = vadd.f32 %v11259_v1, %v11256_v57 }
 0x2b6   :  { %v3081_v46 = vpop.f32.mrf.mxu1  ;;  %v7829_v7 = vadd.f32 %v11473_v22, %v11450_v39 }
 0x2b7   :  { %v3082_v33 = vadd.f32 %v3081_v46, %v2985_v50  ;;  %v8877_v46 = vld [vmem:[%s14364_s3 + $0x2c0] sm:$0xff]   ;;  %v3162_v36 = vmul.f32 0.2, %v3090_v17  ;;  %vm3146_vm8 = vcmp.ge.f32.partialorder %v3090_v17, 0.0 }
 0x2b8   :  { %v11428_v34 = vpop.f32.mrf.mxu1  ;;  %7943 = vmatpush3.bf16.msra.mxu1 %v8877_v46  ;;  %v7768_v46 = vadd.f32 %v11314_v15, %v11310_v4 }
 0x2b9   :  { %v3160_v44 = vmul.f32 0.2, %v3082_v33  ;;  %vm3144_vm7 = vcmp.ge.f32.partialorder %v3082_v33, 0.0  ;;  %v3093_v26 = vadd.f32 %v11428_v34, %v2996_v40  ;;  %v2915_v34 = vadd.f32 %v7759_v45, %v11230_v48  ;;  %8056 = vmatprep.subr.bf16.mxu1 %v8887_v23  ;;  %v15038_v45 = vld [vmem:[#allocation154_spill] sm:$0xff] }
 0x2ba   :  { %v3084_v14 = vpop.f32.mrf.mxu1  ;;  %v7765_v48 = vadd.f32 %v11306_v28, %v11302_v41  ;;  %v2753_v40 = vadd.f32 %v7655_v10, %v15036_v55 }
 0x2bb   :  { %v3085_v12 = vadd.f32 %v3084_v14, %v2988_v20  ;;  %v8878_v14 = vld [vmem:[%s14364_s3 + $0x3b8] sm:$0xff]   ;;  %v11516_v20 = vsel %vm3144_vm7, %v3082_v33, %v3160_v44  ;;  %v3163_v61 = vmul.f32 0.2, %v3093_v26  ;;  %vm3147_vm10 = vcmp.ge.f32.partialorder %v3093_v26, 0.0 }
 0x2bc   :  { %7992 = vmatprep.subr.bf16.mxu0 %v8878_v14  ;;  %v3230_v2 = vmul.f32 %v11516_v20, %v11516_v20  ;;  %v3009_v33 = vadd.f32 %v7820_v52, %v2912_v60  ;;  %v2923_v39 = vadd.f32 %v7765_v48, %v11242_v11  ;;  %v3012_v22 = vadd.f32 %v7823_v8, %v2915_v34  ;;  %v15040_v60 = vld [vmem:[#allocation155_spill] sm:$0xff]  ;;  %v15041_v34 = vld [vmem:[#allocation156_spill] sm:$0xff] }
 0x2bd   :  { %v3161_v37 = vmul.f32 0.2, %v3085_v12  ;;  %vm3145_vm6 = vcmp.ge.f32.partialorder %v3085_v12, 0.0  ;;  %v11550_v35 = vsel %vm3147_vm10, %v3093_v26, %v3163_v61 }
 0x2be   :  { %v3020_v11 = vadd.f32 %v7829_v7, %v2923_v39 }
 0x2bf   :  { %v11510_v29 = vsel %vm3145_vm6, %v3085_v12, %v3161_v37 }
 0x2c0   :  { %v3231_v12 = vmul.f32 %v11510_v29, %v11510_v29  ;;  %v3208_v25 = vadd.f32 %v11510_v29, %v11516_v20 }
 0x2c2   :  { %v3246_v16 = vadd.f32 %v3231_v12, %v3230_v2  ;;  %v7771_v2 = vadd.f32 %v15041_v34, %v15040_v60 }
 0x2c7   :  { %v11491_v13 = vpop.f32.mrf.mxu0 }
 0x2c9   :  { %v11508_v5 = vpop.f32.mrf.mxu0 }
 0x2cb   :  { %v11521_v59 = vpop.f32.mrf.mxu0 }
 0x2cc   :  { %v11452_v49 = vpop.f32.mrf.mxu1 }
 0x2cd   :  { %v7834_v51 = vpop.f32.mrf.mxu0  ;;  %v3106_v41 = vadd.f32 %v11452_v49, %v3009_v33  ;;  %v3233_v49 = vmul.f32 %v11550_v35, %v11550_v35 }
 0x2ce   :  { %v3097_v27 = vpop.f32.mrf.mxu1 }
 0x2cf   :  { %v3098_v6 = vadd.f32 %v3097_v27, %v3001_v38  ;;  %v11534_v27 = vsel %vm3146_vm8, %v3090_v17, %v3162_v36  ;;  %v3166_v62 = vmul.f32 0.2, %v3106_v41  ;;  %vm3150_vm14 = vcmp.ge.f32.partialorder %v3106_v41, 0.0 }
 0x2d0   :  { %v11502_v19 = vpop.f32.mrf.mxu1  ;;  %v3232_v47 = vmul.f32 %v11534_v27, %v11534_v27  ;;  %v3209_v28 = vadd.f32 %v3208_v25, %v11534_v27 }
 0x2d1   :  { %v3164_v32 = vmul.f32 0.2, %v3098_v6  ;;  %vm3148_vm12 = vcmp.ge.f32.partialorder %v3098_v6, 0.0  ;;  %v3109_v57 = vadd.f32 %v11502_v19, %v3012_v22  ;;  %v11581_v52 = vsel %vm3150_vm14, %v3106_v41, %v3166_v62  ;;  %v15046_v41 = vld [vmem:[#allocation149_spill] sm:$0xff] }
 0x2d2   :  { %v3100_v0 = vpop.f32.mrf.mxu1  ;;  %v3247_v43 = vadd.f32 %v3246_v16, %v3232_v47  ;;  %v3210_v17 = vadd.f32 %v3209_v28, %v11550_v35  ;;  %v7835_v16 = vadd.f32 %v7834_v51, %v11521_v59  ;;  %v2931_v3 = vadd.f32 %v7771_v2, %v15046_v41  ;;  %v15047_v59 = vld [vmem:[#allocation150_spill] sm:$0xff] }
 0x2d3   :  { %v3101_v54 = vadd.f32 %v3100_v0, %v3004_v58  ;;  %v11554_v18 = vsel %vm3148_vm12, %v3098_v6, %v3164_v32  ;;  %v7719_v58 = vadd.f32 %v15038_v45, %v15037_v21  ;;  %v7832_v0 = vadd.f32 %v11508_v5, %v11491_v13  ;;  %v15039_v6 = vld [vmem:[#allocation148_spill] sm:$0xff] }
 0x2d4   :  { %v3234_v24 = vmul.f32 %v11554_v18, %v11554_v18  ;;  %v3248_v44 = vadd.f32 %v3247_v43, %v3233_v49  ;;  %v3211_v38 = vadd.f32 %v3210_v17, %v11554_v18  ;;  %v2928_v12 = vadd.f32 %v7768_v46, %v15039_v6  ;;  %v15048_v46 = vld [vmem:[#allocation163_spill] sm:$0xff]  ;;  %v15049_v49 = vld [vmem:[#allocation164_spill] sm:$0xff] }
 0x2d5   :  { %v3165_v14 = vmul.f32 0.2, %v3101_v54  ;;  %vm3149_vm13 = vcmp.ge.f32.partialorder %v3101_v54, 0.0  ;;  %vm3151_vm15 = vcmp.ge.f32.partialorder %v3109_v57, 0.0  ;;  %v2850_v32 = vadd.f32 %v7719_v58, %v2753_v40  ;;  %v15053_v21 = vld [vmem:[#allocation160_spill] sm:$0xff] }
 0x2d6   :  { %v3249_v36 = vadd.f32 %v3248_v44, %v3234_v24  ;;  %v3236_v5 = vmul.f32 %v11581_v52, %v11581_v52  ;;  %v3025_v48 = vadd.f32 %v7832_v0, %v2928_v12  ;;  %v7783_v24 = vadd.f32 %v15049_v49, %v15048_v46 }
 0x2d7   :  { %v11562_v37 = vsel %vm3149_vm13, %v3101_v54, %v3165_v14  ;;  %v3167_v54 = vmul.f32 0.2, %v3109_v57  ;;  %v15044_v14 = vld [vmem:[#allocation161_spill] sm:$0xff] }
 0x2d8   :  { %v3235_v4 = vmul.f32 %v11562_v37, %v11562_v37  ;;  %v3212_v23 = vadd.f32 %v3211_v38, %v11562_v37  ;;  %v7780_v47 = vadd.f32 %v15045_v53, %v15044_v14  ;;  %v15052_v38 = vld [vmem:[#allocation159_spill] sm:$0xff] }
 0x2d9   :  { %v11593_v7 = vsel %vm3151_vm15, %v3109_v57, %v3167_v54  ;;  %v7777_v45 = vadd.f32 %v15053_v21, %v15052_v38  ;;  %v2947_v54 = vadd.f32 %v7783_v24, %v2850_v32  ;;  %v9047_v32 = vmov 0.0  }
 0x2da   :  { %v3250_v61 = vadd.f32 %v3249_v36, %v3235_v4  ;;  %v3213_v28 = vadd.f32 %v3212_v23, %v11581_v52  ;;  %v3237_v17 = vmul.f32 %v11593_v7, %v11593_v7  ;;  %v15051_v4 = vld [vmem:[#allocation152_spill] sm:$0xff] }
 0x2dc   :  { %v3251_v43 = vadd.f32 %v3250_v61, %v3236_v5 }
 0x2de   :  { %v3252_v0 = vadd.f32 %v3251_v43, %v3237_v17 }
 0x2df   :  { %v7836_v42 = vpop.f32.mrf.mxu0 }
 0x2e1   :  { %v7837_v63 = vpop.f32.mrf.mxu0 }
 0x2e2   :  { %v7838_v57 = vadd.f32 %v7837_v63, %v7836_v42 }
 0x2e3   :  { %v7839_v19 = vpop.f32.mrf.mxu0 }
 0x2e4   :  { %v11525_v50 = vpop.f32.mrf.mxu1 }
 0x2e5   :  { %v7840_v8 = vpop.f32.mrf.mxu0  ;;  %v3122_v10 = vadd.f32 %v11525_v50, %v3025_v48  ;;  %v2944_v50 = vadd.f32 %v7780_v47, %v15051_v4 }
 0x2e6   :  { %v3113_v30 = vpop.f32.mrf.mxu1  ;;  %v7841_v23 = vadd.f32 %v7840_v8, %v7839_v19 }
 0x2e7   :  { %v3114_v15 = vadd.f32 %v3113_v30, %v3017_v31  ;;  %v15042_v30 = vld [vmem:[#allocation157_spill] sm:$0xff]  ;;  %v15050_v31 = vld [vmem:[#allocation135_spill] sm:$0xff]  ;;  %v3170_v58 = vmul.f32 0.2, %v3122_v10  ;;  %vm3154_vm2 = vcmp.ge.f32.partialorder %v3122_v10, 0.0 }
 0x2e8   :  { %v11556_v9 = vpop.f32.mrf.mxu1  ;;  %v7774_v13 = vadd.f32 %v15043_v56, %v15042_v30  ;;  %v985_v62 = vadd.s32 96, %v15050_v31  ;;  %v15054_v56 = vld [vmem:[#allocation151_spill] sm:$0xff] }
 0x2e9   :  { %v3168_v25 = vmul.f32 0.2, %v3114_v15  ;;  %vm3152_vm0 = vcmp.ge.f32.partialorder %v3114_v15, 0.0  ;;  %v11621_v5 = vsel %vm3154_vm2, %v3122_v10, %v3170_v58 }
 0x2ea   :  { %v3116_v1 = vpop.f32.mrf.mxu1  ;;  %v2936_v51 = vadd.f32 %v7774_v13, %v15047_v59  ;;  %vm1001_vm3 = vcmp.lt.s32.totalorder %v985_v62, 98  ;;  %v2939_v13 = vadd.f32 %v7777_v45, %v15054_v56  ;;  %v3240_v41 = vmul.f32 %v11621_v5, %v11621_v5 }
 0x2eb   :  { %v3117_v26 = vadd.f32 %v3116_v1, %v3020_v11  ;;  %v11598_v39 = vsel %vm3152_vm0, %v3114_v15, %v3168_v25  ;;  %v3028_v11 = vadd.f32 %v7835_v16, %v2931_v3  ;;  %v3214_v15 = vadd.f32 %v3213_v28, %v11593_v7 }
 0x2ec   :  { %v3238_v55 = vmul.f32 %v11598_v39, %v11598_v39  ;;  %v3033_v34 = vadd.f32 %v7838_v57, %v2936_v51  ;;  %v11623_v19 = vsel %vm1001_vm3, 1.0, %v9047_v32  ;;  %v3036_v28 = vadd.f32 %v7841_v23, %v2939_v13 }
 0x2ed   :  { %v3169_v33 = vmul.f32 0.2, %v3117_v26  ;;  %vm3153_vm1 = vcmp.ge.f32.partialorder %v3117_v26, 0.0  ;;  %v3125_v36 = vadd.f32 %v11556_v9, %v3028_v11  ;;  %v3215_v63 = vadd.f32 %v3214_v15, %v11598_v39  ;;  %15055 = vst [vmem:[#allocation138_spill] sm:$0xff] %v11623_v19 }
 0x2ee   :  { %v3253_v2 = vadd.f32 %v3252_v0, %v3238_v55 }
 0x2ef   :  { %v11606_v1 = vsel %vm3153_vm1, %v3117_v26, %v3169_v33  ;;  %v3171_v16 = vmul.f32 0.2, %v3125_v36  ;;  %vm3155_vm6 = vcmp.ge.f32.partialorder %v3125_v36, 0.0 }
 0x2f0   :  { %v3239_v26 = vmul.f32 %v11606_v1, %v11606_v1  ;;  %v3216_v61 = vadd.f32 %v3215_v63, %v11606_v1 }
 0x2f2   :  { %v3254_v33 = vadd.f32 %v3253_v2, %v3239_v26  ;;  %v3217_v3 = vadd.f32 %v3216_v61, %v11621_v5 }
 0x2f4   :  { %v3255_v46 = vadd.f32 %v3254_v33, %v3240_v41 }
 0x2f7   :  { %v7842_v22 = vpop.f32.mrf.mxu0 }
 0x2f9   :  { %v7843_v44 = vpop.f32.mrf.mxu0 }
 0x2fa   :  { %v7844_v40 = vadd.f32 %v7843_v44, %v7842_v22  ;;  %v11628_v22 = vsel %vm3155_vm6, %v3125_v36, %v3171_v16 }
 0x2fb   :  { %v7845_v42 = vpop.f32.mrf.mxu0  ;;  %v3241_v57 = vmul.f32 %v11628_v22, %v11628_v22  ;;  %v3218_v11 = vadd.f32 %v3217_v3, %v11628_v22  ;;  %v9035_v3 = vld [vmem:[%s14367_s4] sm:$0xff] }
 0x2fc   :  { %v3041_v6 = vadd.f32 %v7844_v40, %v2944_v50  ;;  %v8478_v12 = vpop.f32.mrf.mxu1 }
 0x2fd   :  { %v7846_v60 = vpop.f32.mrf.mxu0  ;;  %v3256_v40 = vadd.f32 %v3255_v46, %v3241_v57 }
 0x2fe   :  { %v3138_v25 = vadd.f32 %v8478_v12, %v3041_v6  ;;  %v7847_v30 = vadd.f32 %v7846_v60, %v7845_v42  ;;  %v3129_v9 = vpop.f32.mrf.mxu1 }
 0x2ff   :  { %v3130_v48 = vadd.f32 %v3129_v9, %v3033_v34 }
 0x300   :  { %v3044_v8 = vadd.f32 %v7847_v30, %v2947_v54  ;;  %v8479_v14 = vpop.f32.mrf.mxu1  ;;  %v3174_v53 = vmul.f32 0.2, %v3138_v25  ;;  %vm3158_vm8 = vcmp.ge.f32.partialorder %v3138_v25, 0.0 }
 0x301   :  { %vm3156_vm7 = vcmp.ge.f32.partialorder %v3130_v48, 0.0  ;;  %v3172_v47 = vmul.f32 0.2, %v3130_v48 }
 0x302   :  { %v3141_v43 = vadd.f32 %v8479_v14, %v3044_v8  ;;  %v3132_v10 = vpop.f32.mrf.mxu1  ;;  %v11634_v62 = vsel %vm3158_vm8, %v3138_v25, %v3174_v53 }
 0x303   :  { %v11630_v59 = vsel %vm3156_vm7, %v3130_v48, %v3172_v47  ;;  %v3133_v51 = vadd.f32 %v3132_v10, %v3036_v28  ;;  %v3206_v15 = vmul.f32 0.0, %v11634_v62  ;;  %v3281_v28 = vsub.s32 1, %v15050_v31 }
 0x304   :  { %v3204_v49 = vmul.f32 %v11623_v19, %v11630_v59  ;;  %vm3159_vm10 = vcmp.ge.f32.partialorder %v3141_v43, 0.0  ;;  %v3175_v24 = vmul.f32 0.2, %v3141_v43 }
 0x305   :  { %vm3157_vm12 = vcmp.ge.f32.partialorder %v3133_v51, 0.0  ;;  %v3173_v17 = vmul.f32 0.2, %v3133_v51  ;;  %v3244_v36 = vmul.f32 %v3206_v15, %v11634_v62 }
 0x306   :  { %v3242_v44 = vmul.f32 %v3204_v49, %v11630_v59  ;;  %v3191_v4 = vsel %vm3159_vm10, %v3141_v43, %v3175_v24  ;;  %v3219_v55 = vadd.f32 %v3218_v11, %v3204_v49  ;;  %v3301_v24 = vsub.s32 2, %v15050_v31 }
 0x307   :  { %v3189_v50 = vsel %vm3157_vm12, %v3133_v51, %v3173_v17  ;;  %v3207_v45 = vmul.f32 0.0, %v3191_v4 }
 0x308   :  { %v3205_v38 = vmul.f32 0.0, %v3189_v50  ;;  %v3257_v21 = vadd.f32 %v3256_v40, %v3242_v44 }
 0x309   :  { %v3245_v26 = vmul.f32 %v3207_v45, %v3191_v4 }
 0x30a   :  { %v3220_v58 = vadd.f32 %v3219_v55, %v3205_v38  ;;  %v3243_v0 = vmul.f32 %v3205_v38, %v3189_v50 }
 0x30c   :  { %v3221_v42 = vadd.f32 %v3220_v58, %v3206_v15  ;;  %v3258_v63 = vadd.f32 %v3257_v21, %v3243_v0 }
 0x30e   :  { %v3222_v6 = vadd.f32 %v3221_v42, %v3207_v45  ;;  %v3259_v12 = vadd.f32 %v3258_v63, %v3244_v36 }
 0x310   :  { %v3223_v54 = vrot.slane %v3222_v6, 4  ;;  %v3260_v23 = vadd.f32 %v3259_v12, %v3245_v26  ;;  %v15063_v26 = vld [vmem:[#allocation2_spill] sm:$0xff]  ;;  %v15064_v12 = vld [vmem:[#allocation3_spill] sm:$0xff] }
 0x312   :  { %v3224_v60 = vadd.f32 %v3223_v54, %v3222_v6  ;;  %v3261_v34 = vrot.slane %v3260_v23, 4 }
 0x314   :  { %v3225_v2 = vrot.slane %v3224_v60, 2  ;;  %v3262_v61 = vadd.f32 %v3261_v34, %v3260_v23 }
 0x316   :  { %v3226_v25 = vadd.f32 %v3225_v2, %v3224_v60  ;;  %v3263_v30 = vrot.slane %v3262_v61, 2 }
 0x318   :  { %v3227_v9 = vrot.slane %v3226_v25, 1  ;;  %v3264_v56 = vadd.f32 %v3263_v30, %v3262_v61  ;;  %v15066_v61 = vld [vmem:[#allocation12_spill] sm:$0xff]  ;;  %v15067_v30 = vld [vmem:[#allocation15_spill] sm:$0xff] }
 0x31a   :  { %v3228_v13 = vadd.f32 %v3227_v9, %v3226_v25  ;;  %v3265_v16 = vrot.slane %v3264_v56, 1 }
 0x31c   :  { %v3229_v48 = vmul.f32 0.010204081, %v3228_v13  ;;  %v3266_v33 = vadd.f32 %v3265_v16, %v3264_v56  ;;  %v15069_v16 = vld [vmem:[#allocation13_spill] sm:$0xff] }
 0x31e   :  { %v3267_v32 = vmul.f32 0.010204081, %v3266_v33  ;;  %v3268_v8 = vmul.f32 %v3229_v48, %v3229_v48  ;;  %v15070_v33 = vld [vmem:[#allocation14_spill] sm:$0xff] }
 0x320   :  { %v3269_v14 = vsub.f32 %v3267_v32, %v3268_v8 }
 0x322   :  { %v3270_v53 = vmax.f32 %v3269_v14, 0.0 }
 0x324   :  { %v3271_v47 = vadd.f32 1e-05, %v3270_v53 }
 0x326   :  { %8998 = vrsqrt.f32 %v3271_v47 }
 0x333   :  { %v8999_v41 = vpop.eup %8998 }
 0x334   :  { %v3273_v43 = vmul.f32 %v9035_v3, %v8999_v41 }
 0x336   :  { %v3274_v10 = vmul.f32 %v3273_v43, %v3229_v48  ;;  %v3282_v51 = vrot.slane %v3273_v43, %v3281_v28  ;;  %v8879_v28 = vld [vmem:[%s14364_s3 + $0x378] sm:$0xff]  }
 0x338   :  { %v3276_v46 = vrot.slane %v3274_v10, 7  ;;  %v3296_v49 = vmul.f32 %v3282_v51, %v3189_v50  ;;  %v3298_v17 = vmul.f32 %v3282_v51, %v3191_v4  ;;  %v3283_v11 = vmul.f32 %v3282_v51, %v11516_v20 }
 0x339   :  { %v3284_v44 = vmul.f32 %v3282_v51, %v11510_v29  ;;  %v3285_v15 = vmul.f32 %v3282_v51, %v11534_v27  ;;  %v3286_v55 = vmul.f32 %v3282_v51, %v11550_v35  ;;  %v3287_v40 = vmul.f32 %v3282_v51, %v11554_v18 }
 0x33a   :  { %v3278_v57 = vsub.f32 %v9035_v3, %v3276_v46  ;;  %v3288_v38 = vmul.f32 %v3282_v51, %v11562_v37  ;;  %v11654_v21 = vmul.f32 %v3282_v51, %v11581_v52  ;;  %v11659_v4 = vmul.f32 %v3282_v51, %v11593_v7 }
 0x33b   :  { %v11662_v20 = vmul.f32 %v3282_v51, %v11630_v59  ;;  %v11665_v29 = vmul.f32 %v3282_v51, %v11634_v62  ;;  %v11668_v27 = vmul.f32 %v3282_v51, %v11598_v39  ;;  %v11671_v35 = vmul.f32 %v3282_v51, %v11606_v1 }
 0x33c   :  { %v11656_v50 = vrot.slane %v3278_v57, %v3301_v24  ;;  %v11674_v18 = vmul.f32 %v3282_v51, %v11621_v5  ;;  %v11677_v37 = vmul.f32 %v3282_v51, %v11628_v22  ;;  %v15071_v51 = vld [vmem:[#allocation18_spill] sm:$0xff]  ;;  %v8880_v24 = vld [vmem:[%s14364_s3 + $0x3b0] sm:$0xff]  }
 0x33e   :  { %v11680_v52 = vadd.f32 %v11656_v50, %v3296_v49  ;;  %v11683_v7 = vadd.f32 %v11656_v50, %v3283_v11  ;;  %v11686_v59 = vadd.f32 %v11656_v50, %v3284_v44  ;;  %v11689_v39 = vadd.f32 %v11656_v50, %v3298_v17  ;;  %v15072_v17 = vld [vmem:[#allocation51_spill] sm:$0xff] }
 0x33f   :  { %v11692_v1 = vadd.f32 %v11656_v50, %v3285_v15  ;;  %v11695_v5 = vadd.f32 %v11656_v50, %v3286_v55  ;;  %v11698_v22 = vadd.f32 %v11656_v50, %v3287_v40  ;;  %v11701_v62 = vadd.f32 %v11656_v50, %v3288_v38  ;;  %v15073_v55 = vld [vmem:[#allocation17_spill] sm:$0xff]  ;;  %v15074_v38 = vld [vmem:[#allocation4_spill] sm:$0xff] }
 0x340   :  { %15056 = vst [vmem:[#allocation153_spill] sm:$0xff] %v11680_v52  ;;  %15057 = vst [vmem:[#allocation154_spill] sm:$0xff] %v11683_v7  ;;  %v14647_v45 = vrot.slane %v11689_v39, 1  ;;  %v3361_v58 = vrot.slane %v11683_v7, 1  ;;  %v3362_v0 = vrot.slane %v11686_v59, 1  ;;  %v14646_v36 = vrot.slane %v11689_v39, 7 }
 0x341   :  { %15058 = vst [vmem:[#allocation148_spill] sm:$0xff] %v11686_v59  ;;  %15059 = vst [vmem:[#allocation155_spill] sm:$0xff] %v11689_v39  ;;  %v3507_v42 = vrot.slane %v11683_v7, 7  ;;  %v3508_v63 = vrot.slane %v11686_v59, 7  ;;  %v3319_v6 = vmul.f32 %v11689_v39, %v15063_v26  ;;  %v3320_v54 = vmul.f32 %v11683_v7, %v15064_v12  ;;  %v15107_v26 = vld [vmem:[#allocation53_spill] sm:$0xff] }
 0x342   :  { %15060 = vst [vmem:[#allocation156_spill] sm:$0xff] %v11692_v1  ;;  %15061 = vst [vmem:[#allocation157_spill] sm:$0xff] %v11695_v5  ;;  %v11714_v23 = vsel %vm1177_vm4, %v3361_v58, %v3362_v0  ;;  %v11719_v60 = vsel %vm1177_vm4, %v14647_v45, %v3361_v58  ;;  %v14645_v34 = vrot.slane %v11689_v39, 2  ;;  %v3434_v2 = vrot.slane %v11683_v7, 2 }
 0x343   :  { %15062 = vst [vmem:[#allocation158_spill] sm:$0xff] %v11701_v62  ;;  %15065 = vst [vmem:[#allocation161_spill] sm:$0xff] %v11719_v60  ;;  %v3408_v25 = vmul.f32 %v11719_v60, %v15066_v61  ;;  %v3409_v9 = vmul.f32 %v11714_v23, %v15067_v30  ;;  %v11728_v56 = vsel %vm1453_vm9, %v3507_v42, %v3508_v63  ;;  %v3435_v14 = vrot.slane %v11686_v59, 2  ;;  %v15104_v30 = vld [vmem:[#allocation24_spill] sm:$0xff]  ;;  %v15118_v60 = vld [vmem:[#allocation62_spill] sm:$0xff] }
 0x344   :  { %v11733_v13 = vsel %vm1453_vm9, %v14646_v36, %v3507_v42  ;;  %v3555_v32 = vmul.f32 %v11728_v56, %v15070_v33  ;;  %v3335_v8 = vpack.c.bf16 %v3320_v54, %v3319_v6  ;;  %v3480_v47 = vsel %vm1315_vm11, %v14645_v34, %v3434_v2 }
 0x345   :  { %15068 = vst [vmem:[#allocation162_spill] sm:$0xff] %v11733_v13  ;;  %v3554_v48 = vmul.f32 %v11733_v13, %v15069_v16  ;;  %v3424_v53 = vpack.c.bf16 %v3409_v9, %v3408_v25  ;;  %v3364_v41 = vrot.slane %v11692_v1, 1  ;;  %v3366_v3 = vrot.slane %v11695_v5, 1  ;;  %v15075_v25 = vld [vmem:[#allocation42_spill] sm:$0xff] }
 0x346   :  { %v3436_v10 = vsel %vm1315_vm11, %v3434_v2, %v3435_v14  ;;  %v3481_v46 = vmul.f32 %v3480_v47, %v15071_v51  ;;  %v3510_v49 = vrot.slane %v11692_v1, 7  ;;  %v3512_v15 = vrot.slane %v11695_v5, 7  ;;  %v15099_v51 = vld [vmem:[#allocation46_spill] sm:$0xff] }
 0x347   :  { %v3570_v43 = vpack.c.bf16 %v3555_v32, %v3554_v48  ;;  %4360 = vmatprep.mubr.bf16.mxu0 %v3424_v53  ;;  %v3482_v57 = vmul.f32 %v3436_v10, %v15072_v17  ;;  %v11756_v11 = vsel %vm1177_vm4, %v3362_v0, %v3364_v41  ;;  %v11759_v44 = vsel %vm1177_vm4, %v3364_v41, %v3366_v3  ;;  %v8889_v0 = vld [vmem:[%s14364_s3 + $0x3f8] sm:$0xff]   ;;  %v15076_v48 = vld [vmem:[#allocation31_spill] sm:$0xff] }
 0x348   :  { %4361 = vmatmul.mubr.bf16.vlgmr.msra.gmra.mxu0 %v3335_v8  ;;  %v3410_v40 = vmul.f32 %v11756_v11, %v15073_v55  ;;  %v3411_v58 = vmul.f32 %v11759_v44, %v15074_v38  ;;  %v11767_v42 = vsel %vm1453_vm9, %v3508_v63, %v3510_v49  ;;  %v3437_v6 = vrot.slane %v11692_v1, 2  ;;  %v8881_v63 = vld [vmem:[%s14364_s3 + $0x370] sm:$0xff]   ;;  %v15077_v53 = vld [vmem:[#allocation23_spill] sm:$0xff]  ;;  %v15078_v41 = vld [vmem:[#allocation5_spill] sm:$0xff] }
 0x349   :  { %4457 = vmatprep.mubr.bf16.mxu1 %v3570_v43  ;;  %v3497_v54 = vpack.c.bf16 %v3482_v57, %v3481_v46  ;;  %7993 = vmatpush3.bf16.msra.mxu0 %v8879_v28  ;;  %v11774_v2 = vsel %vm1453_vm9, %v3510_v49, %v3512_v15  ;;  %v3556_v9 = vmul.f32 %v11767_v42, %v15075_v25  ;;  %v3439_v10 = vrot.slane %v11695_v5, 2  ;;  %v15079_v46 = vld [vmem:[#allocation27_spill] sm:$0xff]  ;;  %v15088_v25 = vld [vmem:[#allocation44_spill] sm:$0xff] }
 0x34a   :  { %v3321_v32 = vmul.f32 %v11686_v59, %v15076_v48  ;;  %v3425_v8 = vpack.c.bf16 %v3411_v58, %v3410_v40  ;;  %v3557_v47 = vmul.f32 %v11774_v2, %v15077_v53  ;;  %7994 = vmatprep.subr.bf16.mxu0 %v8880_v24  ;;  %v3322_v28 = vmul.f32 %v11692_v1, %v15078_v41  ;;  %v8882_v40 = vld [vmem:[%s14364_s3 + $0x3a8] sm:$0xff]   ;;  %v8890_v24 = vld [vmem:[%s14364_s3 + $0x430] sm:$0xff]  }
 0x34b   :  { %v3438_v43 = vsel %vm1315_vm11, %v3435_v14, %v3437_v6  ;;  %4458 = vmatmul.mubr.bf16.vlgmr.msra.gmra.mxu1 %v3497_v54  ;;  %v3368_v57 = vrot.slane %v11698_v22, 1  ;;  %v3514_v54 = vrot.slane %v11698_v22, 7  ;;  %v3516_v36 = vrot.slane %v11701_v62, 7  ;;  %v15086_v53 = vld [vmem:[#allocation32_spill] sm:$0xff] }
 0x34c   :  { %v3483_v49 = vmul.f32 %v3438_v43, %v15079_v46  ;;  %4368 = vmatprep.mubr.bf16.mxu0 %v3425_v8  ;;  %v3571_v58 = vpack.c.bf16 %v3557_v47, %v3556_v9  ;;  %v3336_v14 = vpack.c.bf16 %v3322_v28, %v3321_v32  ;;  %8057 = vmatpush3.bf16.msra.mxu1 %v8889_v0  ;;  %v8891_v43 = vld [vmem:[%s14364_s3 + $0x3f0] sm:$0xff]   ;;  %v15080_v46 = vrot.slane %v11701_v62, 1  ;;  %v15082_v32 = vld [vmem:[#allocation7_spill] sm:$0xff]  ;;  %v15083_v47 = vld [vmem:[#allocation29_spill] sm:$0xff] }
 0x34d   :  { %v3440_v45 = vsel %vm1315_vm11, %v3437_v6, %v3439_v10  ;;  %7995 = vmatpush3.bf16.msra.mxu0 %v8881_v63  ;;  %v11805_v34 = vsel %vm1177_vm4, %v3366_v3, %v3368_v57  ;;  %v11814_v8 = vmul.f32 %v11695_v5, %v15082_v32  ;;  %v8883_v0 = vld [vmem:[%s14364_s3 + $0x368] sm:$0xff]   ;;  %v15084_v63 = vld [vmem:[#allocation6_spill] sm:$0xff]  ;;  %v11831_v32 = vsel %vm1453_vm9, %v3514_v54, %v3516_v36 }
 0x34e   :  { %v11810_v9 = vsel %vm1177_vm4, %v3368_v57, %v15080_v46  ;;  %4465 = vmatprep.mubr.bf16.mxu1 %v3571_v58  ;;  %v3484_v6 = vmul.f32 %v3440_v45, %v15083_v47  ;;  %v3412_v3 = vmul.f32 %v11805_v34, %v15084_v63  ;;  %v15085_v28 = vld [vmem:[#allocation19_spill] sm:$0xff]  ;;  %v11825_v46 = vsel %vm1453_vm9, %v3512_v15, %v3514_v54  ;;  %v8884_v57 = vld [vmem:[%s14364_s3 + $0x3a0] sm:$0xff]   ;;  %v15087_v45 = vld [vmem:[#allocation8_spill] sm:$0xff] }
 0x34f   :  { %15081 = vst [vmem:[#allocation149_spill] sm:$0xff] %v11810_v9  ;;  %v3413_v41 = vmul.f32 %v11810_v9, %v15085_v28  ;;  %v3558_v58 = vmul.f32 %v11825_v46, %v15086_v53  ;;  %7996 = vmatprep.subr.bf16.mxu0 %v8882_v40  ;;  %v3324_v63 = vmul.f32 %v11698_v22, %v15087_v45  ;;  %v3441_v47 = vrot.slane %v11698_v22, 2  ;;  %v8894_v15 = vld [vmem:[%s14364_s3 + $0x428] sm:$0xff]   ;;  %v15097_v53 = vld [vmem:[#allocation41_spill] sm:$0xff] }
 0x350   :  { %8058 = vmatprep.subr.bf16.mxu1 %v8890_v24  ;;  %4369 = vmatmul.mubr.bf16.gmra.mxu0 %v3336_v14  ;;  %v3498_v28 = vpack.c.bf16 %v3484_v6, %v3483_v49  ;;  %v3559_v54 = vmul.f32 %v11831_v32, %v15088_v25  ;;  %v3443_v38 = vrot.slane %v11701_v62, 2  ;;  %v8895_v40 = vld [vmem:[%s14364_s3 + $0x3e8] sm:$0xff]   ;;  %v11851_v14 = vadd.f32 %v11656_v50, %v11654_v21  ;;  %v8885_v49 = vld [vmem:[%s14364_s3 + $0x360] sm:$0xff]   ;;  %v8886_v21 = vld [vmem:[%s14364_s3 + $0x398] sm:$0xff]  }
 0x351   :  { %v3426_v48 = vpack.c.bf16 %v3413_v41, %v3412_v3  ;;  %8059 = vmatpush3.bf16.msra.mxu1 %v8891_v43  ;;  %v3337_v45 = vpack.c.bf16 %v3324_v63, %v11814_v8  ;;  %v3442_v24 = vsel %vm1315_vm11, %v3439_v10, %v3441_v47  ;;  %7997 = vmatpush3.bf16.msra.mxu0 %v8883_v0  ;;  %v15089_v8 = vld [vmem:[#allocation54_spill] sm:$0xff] }
 0x352   :  { %v11855_v41 = vadd.f32 %v11656_v50, %v11659_v4  ;;  %v3572_v43 = vpack.c.bf16 %v3559_v54, %v3558_v58  ;;  %v3444_v6 = vsel %vm1315_vm11, %v3441_v47, %v3443_v38  ;;  %v3485_v63 = vmul.f32 %v3442_v24, %v15089_v8  ;;  %7998 = vmatprep.subr.bf16.mxu0 %v8884_v57  ;;  %v15090_v4 = vld [vmem:[#allocation38_spill] sm:$0xff]  ;;  %v15091_v58 = vld [vmem:[#allocation33_spill] sm:$0xff] }
 0x353   :  { %4376 = vmatprep.mubr.bf16.mxu0 %v3426_v48  ;;  %4466 = vmatmul.mubr.bf16.gmra.mxu1 %v3498_v28  ;;  %v3486_v0 = vmul.f32 %v3444_v6, %v15090_v4  ;;  %v3372_v3 = vrot.slane %v11851_v14, 1  ;;  %v3518_v48 = vrot.slane %v11851_v14, 7  ;;  %v8896_v47 = vld [vmem:[%s14364_s3 + $0x420] sm:$0xff]   ;;  %v11876_v54 = vmul.f32 %v11701_v62, %v15091_v58 }
 0x354   :  { %v3374_v25 = vrot.slane %v11855_v41, 1  ;;  %8060 = vmatprep.subr.bf16.mxu1 %v8894_v15  ;;  %4473 = vmatprep.mubr.bf16.mxu1 %v3572_v43  ;;  %v3520_v57 = vrot.slane %v11855_v41, 7  ;;  %v15092_v28 = vld [vmem:[#allocation10_spill] sm:$0xff]  ;;  %v3445_v6 = vrot.slane %v11851_v14, 2  ;;  %v15093_v15 = vrot.slane %v11701_v62, 1 }
 0x355   :  { %v11880_v24 = vmul.f32 %v11851_v14, %v15092_v28  ;;  %8061 = vmatpush3.bf16.msra.mxu1 %v8895_v40  ;;  %v3499_v10 = vpack.c.bf16 %v3486_v0, %v3485_v63  ;;  %v11892_v8 = vsel %vm1453_vm9, %v3516_v36, %v3518_v48  ;;  %7999 = vmatpush3.bf16.msra.mxu0 %v8885_v49  ;;  %v8888_v28 = vld [vmem:[%s14364_s3 + $0x358] sm:$0xff]   ;;  %v15095_v58 = vld [vmem:[#allocation22_spill] sm:$0xff]  ;;  %v8892_v36 = vld [vmem:[%s14364_s3 + $0x390] sm:$0xff]  }
 0x356   :  { %v11886_v4 = vsel %vm1177_vm4, %v15093_v15, %v3372_v3  ;;  %v11889_v43 = vsel %vm1177_vm4, %v3372_v3, %v3374_v25  ;;  %v15096_v63 = vld [vmem:[#allocation9_spill] sm:$0xff]  ;;  %v11902_v15 = vsel %vm1453_vm9, %v3518_v48, %v3520_v57  ;;  %v3560_v3 = vmul.f32 %v11892_v8, %v15097_v53  ;;  %8000 = vmatprep.subr.bf16.mxu0 %v8886_v21  ;;  %v15098_v49 = vld [vmem:[#allocation43_spill] sm:$0xff] }
 0x357   :  { %15094 = vst [vmem:[#allocation150_spill] sm:$0xff] %v11886_v4  ;;  %v3414_v40 = vmul.f32 %v11886_v4, %v15095_v58  ;;  %v3415_v0 = vmul.f32 %v11889_v43, %v15096_v63  ;;  %v3561_v55 = vmul.f32 %v11902_v15, %v15098_v49  ;;  %v3338_v58 = vpack.c.bf16 %v11880_v24, %v11876_v54 }
 0x358   :  { %v3446_v17 = vsel %vm1315_vm11, %v3443_v38, %v3445_v6  ;;  %v3447_v63 = vrot.slane %v11855_v41, 2  ;;  %8062 = vmatprep.subr.bf16.mxu1 %v8896_v47  ;;  %4377 = vmatmul.mubr.bf16.gmra.mxu0 %v3337_v45  ;;  %v11920_v21 = vadd.f32 %v11656_v50, %v11668_v27  ;;  %v11924_v49 = vadd.f32 %v11656_v50, %v11671_v35  ;;  %v15100_v38 = vld [vmem:[#allocation35_spill] sm:$0xff]  ;;  %v8893_v27 = vld [vmem:[%s14364_s3 + $0x350] sm:$0xff]  }
 0x359   :  { %v3427_v48 = vpack.c.bf16 %v3415_v0, %v3414_v40  ;;  %v11916_v53 = vmul.f32 %v3446_v17, %v15099_v51  ;;  %v3573_v33 = vpack.c.bf16 %v3561_v55, %v3560_v3  ;;  %v11929_v24 = vmul.f32 %v11855_v41, %v15100_v38  ;;  %8001 = vmatpush3.bf16.msra.mxu0 %v8888_v28  ;;  %v15101_v45 = vld [vmem:[#allocation56_spill] sm:$0xff]  ;;  %v8897_v28 = vld [vmem:[%s14364_s3 + $0x3e0] sm:$0xff]   ;;  %v8900_v38 = vld [vmem:[%s14364_s3 + $0x418] sm:$0xff]  }
 0x35a   :  { %v3448_v54 = vsel %vm1315_vm11, %v3445_v6, %v3447_v63  ;;  %v11933_v17 = vadd.f32 %v11656_v50, %v11674_v18  ;;  %v3376_v55 = vrot.slane %v11920_v21, 1  ;;  %v3378_v47 = vrot.slane %v11924_v49, 1  ;;  %8002 = vmatprep.subr.bf16.mxu0 %v8892_v36  ;;  %v15102_v40 = vld [vmem:[#allocation16_spill] sm:$0xff]  ;;  %v15103_v51 = vld [vmem:[#allocation11_spill] sm:$0xff]  ;;  %8063 = vmatpush3.bf16.msra.mxu1 %v8897_v28 }
 0x35b   :  { %4384 = vmatprep.mubr.bf16.mxu0 %v3427_v48  ;;  %v3488_v35 = vmul.f32 %v3448_v54, %v15101_v45  ;;  %v3522_v6 = vrot.slane %v11920_v21, 7  ;;  %4474 = vmatmul.mubr.bf16.gmra.mxu1 %v3499_v10  ;;  %v3524_v18 = vrot.slane %v11924_v49, 7  ;;  %v11948_v0 = vmul.f32 %v11920_v21, %v15102_v40  ;;  %v8898_v54 = vld [vmem:[%s14364_s3 + $0x388] sm:$0xff]  }
 0x35c   :  { %v3449_v3 = vrot.slane %v11920_v21, 2  ;;  %v3451_v48 = vrot.slane %v11924_v49, 2  ;;  %4481 = vmatprep.mubr.bf16.mxu1 %v3573_v33  ;;  %v11957_v45 = vsel %vm1177_vm4, %v3374_v25, %v3376_v55  ;;  %v11960_v10 = vsel %vm1177_vm4, %v3376_v55, %v3378_v47  ;;  %v15105_v25 = vld [vmem:[#allocation48_spill] sm:$0xff]  ;;  %v15106_v55 = vld [vmem:[#allocation50_spill] sm:$0xff]  ;;  %8064 = vmatprep.subr.bf16.mxu1 %v8900_v38 }
 0x35d   :  { %v3500_v36 = vpack.c.bf16 %v3488_v35, %v11916_v53  ;;  %v11963_v40 = vsel %vm1453_vm9, %v3520_v57, %v3522_v6  ;;  %v3416_v16 = vmul.f32 %v11957_v45, %v15103_v51  ;;  %v3417_v33 = vmul.f32 %v11960_v10, %v15104_v30  ;;  %8003 = vmatpush3.bf16.msra.mxu0 %v8893_v27  ;;  %v8899_v57 = vld [vmem:[%s14364_s3 + $0x348] sm:$0xff]   ;;  %v8904_v27 = vld [vmem:[%s14364_s3 + $0x380] sm:$0xff]  }
 0x35e   :  { %v11973_v53 = vsel %vm1453_vm9, %v3522_v6, %v3524_v18  ;;  %v3562_v35 = vmul.f32 %v11963_v40, %v15105_v25  ;;  %v3339_v51 = vpack.c.bf16 %v11948_v0, %v11929_v24  ;;  %v3450_v12 = vsel %vm1315_vm11, %v3447_v63, %v3449_v3  ;;  %v8901_v6 = vld [vmem:[%s14364_s3 + $0x3d8] sm:$0xff]   ;;  %8004 = vmatprep.subr.bf16.mxu0 %v8898_v54  ;;  %v8905_v38 = vld [vmem:[%s14364_s3 + $0x340] sm:$0xff]  }
 0x35f   :  { %v3563_v61 = vmul.f32 %v11973_v53, %v15106_v55  ;;  %v3452_v30 = vsel %vm1315_vm11, %v3449_v3, %v3451_v48  ;;  %v3428_v25 = vpack.c.bf16 %v3417_v33, %v3416_v16  ;;  %v11993_v19 = vmul.f32 %v3450_v12, %v15107_v26  ;;  %v15108_v55 = vld [vmem:[#allocation58_spill] sm:$0xff]  ;;  %v15109_v3 = vld [vmem:[#allocation25_spill] sm:$0xff]  ;;  %8065 = vmatpush3.bf16.msra.mxu1 %v8901_v6  ;;  %v8906_v6 = vld [vmem:[%s14364_s3 + $0x408] sm:$0xff]  }
 0x360   :  { %v11996_v31 = vmul.f32 %v3452_v30, %v15108_v55  ;;  %v12000_v63 = vadd.f32 %v11656_v50, %v11677_v37  ;;  %4385 = vmatmul.mubr.bf16.gmra.mxu0 %v3338_v58  ;;  %v3380_v28 = vrot.slane %v11933_v17, 1  ;;  %v3526_v0 = vrot.slane %v11933_v17, 7  ;;  %v15110_v54 = vld [vmem:[#allocation37_spill] sm:$0xff]  ;;  %v8902_v58 = vld [vmem:[%s14364_s3 + $0x410] sm:$0xff]  }
 0x361   :  { %v3574_v24 = vpack.c.bf16 %v3563_v61, %v3562_v35  ;;  %v12006_v16 = vmul.f32 %v11924_v49, %v15109_v3  ;;  %4392 = vmatprep.mubr.bf16.mxu0 %v3428_v25  ;;  %v12014_v61 = vmul.f32 %v11933_v17, %v15110_v54  ;;  %8005 = vmatpush3.bf16.msra.mxu0 %v8899_v57  ;;  %v8903_v35 = vld [vmem:[%s14364_s3 + $0x3d0] sm:$0xff]   ;;  %v15114_v3 = vld [vmem:[#allocation47_spill] sm:$0xff] }
 0x362   :  { %v3501_v12 = vpack.c.bf16 %v11996_v31, %v11993_v19  ;;  %v3382_v30 = vrot.slane %v12000_v63, 1  ;;  %v3528_v37 = vrot.slane %v12000_v63, 7  ;;  %v12023_v33 = vsel %vm1177_vm4, %v3378_v47, %v3380_v28  ;;  %8006 = vmatprep.subr.bf16.mxu0 %v8904_v27  ;;  %v15112_v54 = vld [vmem:[#allocation20_spill] sm:$0xff]  ;;  %v15116_v27 = vld [vmem:[#allocation21_spill] sm:$0xff]  ;;  %8066 = vmatprep.subr.bf16.mxu1 %v8902_v58 }
 0x363   :  { %v12026_v31 = vsel %vm1453_vm9, %v3524_v18, %v3526_v0  ;;  %v3453_v19 = vrot.slane %v11933_v17, 2  ;;  %v3455_v25 = vrot.slane %v12000_v63, 2  ;;  %4482 = vmatmul.mubr.bf16.gmra.mxu1 %v3500_v36  ;;  %v3418_v47 = vmul.f32 %v12023_v33, %v15112_v54  ;;  %v12049_v36 = vld [vmem:[%s14364_s3 + $0x478] sm:$0xff]   ;;  %v15117_v54 = vld [vmem:[#allocation59_spill] sm:$0xff] }
 0x364   :  { %v12034_v57 = vsel %vm1177_vm4, %v3380_v28, %v3382_v30  ;;  %v12039_v18 = vsel %vm1453_vm9, %v3526_v0, %v3528_v37  ;;  %v3564_v55 = vmul.f32 %v12026_v31, %v15114_v3  ;;  %15115 = vst [vmem:[#allocation152_spill] sm:$0xff] %v12049_v36  ;;  %4489 = vmatprep.mubr.bf16.mxu1 %v3574_v24  ;;  %v3532_v24 = vrot.slane %v11680_v52, 7 }
 0x365   :  { %15111 = vst [vmem:[#allocation163_spill] sm:$0xff] %v12034_v57  ;;  %15113 = vst [vmem:[#allocation164_spill] sm:$0xff] %v12039_v18  ;;  %v3419_v28 = vmul.f32 %v12034_v57, %v15116_v27  ;;  %v3565_v0 = vmul.f32 %v12039_v18, %v15117_v54  ;;  %v3340_v26 = vpack.c.bf16 %v12014_v61, %v12006_v16  ;;  %8007 = vmatpush3.bf16.msra.mxu0 %v8905_v38  ;;  %v15119_v54 = vld [vmem:[#allocation66_spill] sm:$0xff]  ;;  %v15121_v61 = vld [vmem:[#allocation36_spill] sm:$0xff] }
 0x366   :  { %v3454_v3 = vsel %vm1315_vm11, %v3451_v48, %v3453_v19  ;;  %v3456_v13 = vsel %vm1315_vm11, %v3453_v19, %v3455_v25  ;;  %v12062_v4 = vadd.f32 %v11656_v50, %v11662_v20  ;;  %v15120_v57 = vld [vmem:[#allocation34_spill] sm:$0xff]  ;;  %8067 = vmatpush3.bf16.msra.mxu1 %v8903_v35  ;;  %v8907_v48 = vld [vmem:[%s14364_s3 + $0x3c8] sm:$0xff]   ;;  %8480 = vmatprep.subr.bf16.mxu0 %v12049_v36  ;;  %v3459_v19 = vrot.slane %v11680_v52, 2 }
 0x367   :  { %v3491_v62 = vmul.f32 %v3454_v3, %v15118_v60  ;;  %v3429_v27 = vpack.c.bf16 %v3419_v28, %v3418_v47  ;;  %v3575_v9 = vpack.c.bf16 %v3565_v0, %v3564_v55  ;;  %v3492_v18 = vmul.f32 %v3456_v13, %v15119_v54  ;;  %8068 = vmatprep.subr.bf16.mxu1 %v8906_v6  ;;  %v8908_v13 = vld [vmem:[%s14364_s3 + $0x400] sm:$0xff]   ;;  %v15129_v54 = vld [vmem:[#allocation83_spill] sm:$0xff] }
 0x368   :  { %v12068_v16 = vmul.f32 %v12000_v63, %v15120_v57  ;;  %v3384_v20 = vrot.slane %v12062_v4, 1  ;;  %v3530_v3 = vrot.slane %v12062_v4, 7  ;;  %v12077_v58 = vmul.f32 %v12062_v4, %v15121_v61  ;;  %4393 = vmatmul.mubr.bf16.gmra.mxu0 %v3339_v51  ;;  %v15124_v51 = vld [vmem:[#allocation26_spill] sm:$0xff]  ;;  %v15127_v61 = vld [vmem:[#allocation49_spill] sm:$0xff] }
 0x369   :  { %v3457_v55 = vrot.slane %v12062_v4, 2  ;;  %v3502_v38 = vpack.c.bf16 %v3492_v18, %v3491_v62  ;;  %v12087_v35 = vadd.f32 %v11656_v50, %v11665_v29  ;;  %4400 = vmatprep.mubr.bf16.mxu0 %v3429_v27  ;;  %v15122_v6 = vrot.slane %v11680_v52, 1  ;;  %v15125_v50 = vld [vmem:[#allocation30_spill] sm:$0xff]  ;;  %v15126_v27 = vld [vmem:[#allocation73_spill] sm:$0xff] }
 0x36a   :  { %v12090_v47 = vsel %vm1177_vm4, %v3382_v30, %v3384_v20  ;;  %v12098_v0 = vsel %vm1453_vm9, %v3528_v37, %v3530_v3  ;;  %v12101_v62 = vsel %vm1453_vm9, %v3530_v3, %v3532_v24  ;;  %8069 = vmatpush3.bf16.msra.mxu1 %v8907_v48  ;;  %v8909_v37 = vld [vmem:[%s14364_s3 + $0x3c0] sm:$0xff]  }
 0x36b   :  { %v12095_v28 = vsel %vm1177_vm4, %v3384_v20, %v15122_v6  ;;  %15123 = vst [vmem:[#allocation159_spill] sm:$0xff] %v12101_v62  ;;  %v3420_v18 = vmul.f32 %v12090_v47, %v15124_v51  ;;  %v3566_v30 = vmul.f32 %v12098_v0, %v15126_v27  ;;  %v3567_v57 = vmul.f32 %v12101_v62, %v15127_v61  ;;  %v15128_v61 = vld [vmem:[#allocation61_spill] sm:$0xff] }
 0x36c   :  { %v3421_v29 = vmul.f32 %v12095_v28, %v15125_v50  ;;  %4490 = vmatmul.mubr.bf16.gmra.mxu1 %v3501_v12  ;;  %v3341_v20 = vpack.c.bf16 %v12077_v58, %v12068_v16  ;;  %v3458_v3 = vsel %vm1315_vm11, %v3455_v25, %v3457_v55  ;;  %v3460_v6 = vsel %vm1315_vm11, %v3457_v55, %v3459_v19 }
 0x36d   :  { %v3388_v50 = vrot.slane %v12087_v35, 1  ;;  %8070 = vmatprep.subr.bf16.mxu1 %v8908_v13  ;;  %4497 = vmatprep.mubr.bf16.mxu1 %v3575_v9  ;;  %v3576_v51 = vpack.c.bf16 %v3567_v57, %v3566_v30  ;;  %v3493_v48 = vmul.f32 %v3458_v3, %v15128_v61  ;;  %v3494_v60 = vmul.f32 %v3460_v6, %v15129_v54  ;;  %v15135_v13 = vld [vmem:[#allocation39_spill] sm:$0xff]  ;;  %v15139_v6 = vld [vmem:[#allocation92_spill] sm:$0xff] }
 0x36e   :  { %v3430_v27 = vpack.c.bf16 %v3421_v29, %v3420_v18  ;;  %v3534_v62 = vrot.slane %v12087_v35, 7  ;;  %v3461_v36 = vrot.slane %v12087_v35, 2  ;;  %8071 = vmatpush3.bf16.msra.mxu1 %v8909_v37  ;;  %v15130_v25 = vrot.slane %v11680_v52, 1  ;;  %v15136_v29 = vld [vmem:[#allocation28_spill] sm:$0xff] }
 0x36f   :  { %v3503_v12 = vpack.c.bf16 %v3494_v60, %v3493_v48  ;;  %v15131_v58 = vrot.slane %v11689_v39, 1  ;;  %v15133_v60 = vrot.slane %v11689_v39, 7  ;;  %v15145_v54 = vld [vmem:[#allocation52_spill] sm:$0xff] }
 0x370   :  { %v12126_v16 = vsel %vm1177_vm4, %v15130_v25, %v3388_v50  ;;  %4401 = vmatmul.mubr.bf16.gmra.mxu0 %v3340_v26  ;;  %v12134_v57 = vsel %vm1453_vm9, %v3532_v24, %v3534_v62  ;;  %v3462_v37 = vsel %vm1315_vm11, %v3459_v19, %v3461_v36  ;;  %v15138_v24 = vld [vmem:[#allocation40_spill] sm:$0xff]  ;;  %v15140_v25 = vld [vmem:[#allocation93_spill] sm:$0xff] }
 0x371   :  { %v12131_v9 = vsel %vm1177_vm4, %v3388_v50, %v15131_v58  ;;  %4408 = vmatprep.mubr.bf16.mxu0 %v3430_v27  ;;  %v12139_v55 = vsel %vm1453_vm9, %v3534_v62, %v15133_v60  ;;  %v3422_v18 = vmul.f32 %v12126_v16, %v15135_v13  ;;  %v15137_v50 = vrot.slane %v11689_v39, 2  ;;  %v15141_v19 = vld [vmem:[#allocation45_spill] sm:$0xff]  ;;  %v15144_v13 = vld [vmem:[#allocation87_spill] sm:$0xff] }
 0x372   :  { %15132 = vst [vmem:[#allocation160_spill] sm:$0xff] %v12131_v9  ;;  %15134 = vst [vmem:[#allocation151_spill] sm:$0xff] %v12139_v55  ;;  %v3423_v30 = vmul.f32 %v12131_v9, %v15136_v29  ;;  %v3333_v27 = vmul.f32 %v11680_v52, %v15138_v24  ;;  %v3627_v62 = vrot.slane %v11686_v59, 6  ;;  %v3568_v48 = vmul.f32 %v12134_v57, %v15139_v6  ;;  %v15143_v29 = vld [vmem:[#allocation64_spill] sm:$0xff]  ;;  %v15146_v6 = vld [vmem:[#allocation113_spill] sm:$0xff] }
 0x373   :  { %v3463_v26 = vsel %vm1315_vm11, %v3461_v36, %v15137_v50  ;;  %v3569_v58 = vmul.f32 %v12139_v55, %v15140_v25  ;;  %v3334_v60 = vmul.f32 %v12087_v35, %v15141_v19  ;;  %v3629_v36 = vrot.slane %v11692_v1, 6  ;;  %v15147_v25 = vld [vmem:[#allocation112_spill] sm:$0xff]  ;;  %v15148_v19 = vld [vmem:[#allocation55_spill] sm:$0xff] }
 0x374   :  { %4498 = vmatmul.mubr.bf16.gmra.mxu1 %v3502_v38  ;;  %v15142_v38 = vld [vmem:[#allocation101_spill] sm:$0xff]  ;;  %v3496_v24 = vmul.f32 %v3463_v26, %v15143_v29  ;;  %v3602_v3 = vmul.f32 %v11714_v23, %v15144_v13  ;;  %v3431_v61 = vpack.c.bf16 %v3423_v30, %v3422_v18  ;;  %v3699_v39 = vmul.f32 %v11728_v56, %v15146_v6  ;;  %v15151_v30 = vld [vmem:[#allocation60_spill] sm:$0xff] }
 0x375   :  { %4505 = vmatprep.mubr.bf16.mxu1 %v3576_v51  ;;  %v3495_v50 = vmul.f32 %v3462_v37, %v15142_v38  ;;  %v3603_v51 = vmul.f32 %v11756_v11, %v15145_v54  ;;  %v3700_v55 = vmul.f32 %v11767_v42, %v15147_v25  ;;  %v12172_v9 = vmul.f32 %v11683_v7, %v15148_v19  ;;  %v15149_v37 = vld [vmem:[#allocation57_spill] sm:$0xff]  ;;  %v15152_v25 = vld [vmem:[#allocation91_spill] sm:$0xff]  ;;  %v15153_v54 = vld [vmem:[#allocation70_spill] sm:$0xff] }
 0x376   :  { %v12176_v26 = vmul.f32 %v11686_v59, %v15149_v37  ;;  %v15150_v23 = vrot.slane %v11683_v7, 6  ;;  %v3630_v11 = vsel %vm1765_vm5, %v3627_v62, %v3629_v36  ;;  %v3577_v18 = vpack.c.bf16 %v3569_v58, %v3568_v48  ;;  %v15157_v58 = vld [vmem:[#allocation63_spill] sm:$0xff] }
 0x377   :  { %v3342_v56 = vpack.c.bf16 %v3334_v60, %v3333_v27  ;;  %v12184_v42 = vmul.f32 %v11759_v44, %v15151_v30  ;;  %v12188_v19 = vmul.f32 %v11805_v34, %v15152_v25  ;;  %v3504_v37 = vpack.c.bf16 %v3496_v24, %v3495_v50  ;;  %v15155_v27 = vld [vmem:[#allocation65_spill] sm:$0xff]  ;;  %v15156_v44 = vld [vmem:[#allocation76_spill] sm:$0xff]  ;;  %v15197_v7 = vld [vmem:[#allocation131_spill] sm:$0xff] }
 0x378   :  { %v3628_v13 = vsel %vm1765_vm5, %v15150_v23, %v3627_v62  ;;  %4409 = vmatmul.mubr.bf16.gmra.mxu0 %v3341_v20  ;;  %v3618_v6 = vpack.c.bf16 %v3603_v51, %v3602_v3  ;;  %v12192_v29 = vmul.f32 %v11774_v2, %v15153_v54  ;;  %v15154_v23 = vld [vmem:[#allocation114_spill] sm:$0xff]  ;;  %v12202_v48 = vmul.f32 %v3630_v11, %v15156_v44  ;;  %v15159_v3 = vld [vmem:[#allocation67_spill] sm:$0xff]  ;;  %v15164_v50 = vld [vmem:[#allocation72_spill] sm:$0xff] }
 0x379   :  { %4416 = vmatprep.mubr.bf16.mxu0 %v3431_v61  ;;  %v12196_v20 = vmul.f32 %v11831_v32, %v15154_v23  ;;  %v12199_v62 = vmul.f32 %v3628_v13, %v15155_v27  ;;  %v12206_v34 = vmul.f32 %v11825_v46, %v15157_v58  ;;  %v15158_v61 = vld [vmem:[#allocation117_spill] sm:$0xff]  ;;  %v3715_v2 = vpack.c.bf16 %v3700_v55, %v3699_v39  ;;  %v15165_v11 = vld [vmem:[#allocation103_spill] sm:$0xff]  ;;  %v15183_v27 = vld [vmem:[#allocation130_spill] sm:$0xff] }
 0x37a   :  { %v12210_v24 = vmul.f32 %v11892_v8, %v15158_v61  ;;  %v3594_v32 = vpack.c.bf16 %v12176_v26, %v12172_v9  ;;  %v12216_v13 = vmul.f32 %v11692_v1, %v15159_v3  ;;  %v3631_v60 = vrot.slane %v11695_v5, 6  ;;  %v15160_v8 = vld [vmem:[#allocation96_spill] sm:$0xff]  ;;  %v15161_v39 = vld [vmem:[#allocation97_spill] sm:$0xff]  ;;  %v15171_v3 = vld [vmem:[#allocation122_spill] sm:$0xff] }
 0x37b   :  { %v3619_v46 = vpack.c.bf16 %v12188_v19, %v12184_v42  ;;  %v12229_v9 = vmul.f32 %v11957_v45, %v15161_v39  ;;  %v15162_v55 = vld [vmem:[#allocation69_spill] sm:$0xff]  ;;  %v15167_v42 = vld [vmem:[#allocation99_spill] sm:$0xff]  ;;  %v15170_v45 = vrot.slane %v11851_v14, 6  ;;  %v15186_v54 = vld [vmem:[#allocation84_spill] sm:$0xff]  ;;  %v3651_v25 = vrot.slane %v11680_v52, 6 }
 0x37c   :  { %4506 = vmatmul.mubr.bf16.gmra.mxu1 %v3503_v12  ;;  %v12225_v12 = vmul.f32 %v11889_v43, %v15160_v8  ;;  %v12233_v51 = vmul.f32 %v11695_v5, %v15162_v55  ;;  %v15163_v19 = vld [vmem:[#allocation81_spill] sm:$0xff]  ;;  %v3691_v43 = vpack.c.bf16 %v12202_v48, %v12199_v62  ;;  %v12249_v55 = vmul.f32 %v11963_v40, %v15164_v50  ;;  %v15168_v50 = vld [vmem:[#allocation111_spill] sm:$0xff]  ;;  %v15195_v5 = vld [vmem:[#allocation78_spill] sm:$0xff] }
 0x37d   :  { %4513 = vmatprep.mubr.bf16.mxu1 %v3577_v18  ;;  %v12239_v18 = vmul.f32 %v11902_v15, %v15163_v19  ;;  %v12252_v26 = vsel %vm1765_vm5, %v3629_v36, %v3631_v60  ;;  %v12256_v15 = vmul.f32 %v11851_v14, %v15165_v11  ;;  %v15166_v19 = vld [vmem:[#allocation107_spill] sm:$0xff]  ;;  %v3639_v48 = vrot.slane %v11855_v41, 6  ;;  %v15180_v58 = vld [vmem:[#allocation129_spill] sm:$0xff]  ;;  %v15196_v1 = vld [vmem:[#allocation150_spill] sm:$0xff] }
 0x37e   :  { %v12260_v62 = vmul.f32 %v11855_v41, %v15166_v19  ;;  %v3641_v40 = vrot.slane %v11920_v21, 6  ;;  %v12268_v36 = vmul.f32 %v11960_v10, %v15167_v42  ;;  %v12272_v11 = vmul.f32 %v12023_v33, %v15168_v50  ;;  %v15172_v33 = vld [vmem:[#allocation119_spill] sm:$0xff]  ;;  %v15194_v30 = vld [vmem:[#allocation149_spill] sm:$0xff] }
 0x37f   :  { %v15169_v19 = vrot.slane %v11698_v22, 6  ;;  %v3640_v8 = vsel %vm1765_vm5, %v15170_v45, %v3639_v48  ;;  %v12284_v10 = vmul.f32 %v11973_v53, %v15171_v3  ;;  %v15175_v45 = vld [vmem:[#allocation115_spill] sm:$0xff]  ;;  %v15176_v3 = vld [vmem:[#allocation116_spill] sm:$0xff]  ;;  %v3607_v59 = vmul.f32 %v15196_v1, %v15195_v5 }
 0x380   :  { %4417 = vmatmul.mubr.bf16.gmra.mxu0 %v3342_v56  ;;  %v3642_v42 = vsel %vm1765_vm5, %v3639_v48, %v3641_v40  ;;  %v12288_v50 = vmul.f32 %v3640_v8, %v15172_v33  ;;  %v15174_v56 = vld [vmem:[#allocation120_spill] sm:$0xff]  ;;  %v12301_v53 = vmul.f32 %v11920_v21, %v15175_v45  ;;  %v12305_v48 = vmul.f32 %v11924_v49, %v15176_v3 }
 0x381   :  { %4554 = vmatprep.mubr.bf16.mxu0 %v3618_v6  ;;  %v3634_v39 = vsel %vm1765_vm5, %v3631_v60, %v15169_v19  ;;  %v15173_v60 = vld [vmem:[#allocation79_spill] sm:$0xff]  ;;  %v12297_v61 = vmul.f32 %v3642_v42, %v15174_v56  ;;  %v3643_v8 = vrot.slane %v11924_v49, 6  ;;  %v15179_v56 = vld [vmem:[#allocation102_spill] sm:$0xff]  ;;  %v15181_v6 = vld [vmem:[#allocation164_spill] sm:$0xff]  ;;  %v12339_v33 = vmul.f32 %v12098_v0, %v15183_v27 }
 0x382   :  { %v12294_v19 = vmul.f32 %v12026_v31, %v15173_v60  ;;  %v3645_v31 = vrot.slane %v11933_v17, 6  ;;  %v15178_v60 = vld [vmem:[#allocation163_spill] sm:$0xff]  ;;  %v12317_v45 = vmul.f32 %v12090_v47, %v15179_v56  ;;  %v12326_v44 = vmul.f32 %v15181_v6, %v15180_v58  ;;  %v15182_v47 = vld [vmem:[#allocation121_spill] sm:$0xff] }
 0x383   :  { %v15185_v6 = vld [vmem:[#allocation75_spill] sm:$0xff]  ;;  %v3649_v0 = vrot.slane %v12062_v4, 6  ;;  %v15187_v27 = vld [vmem:[#allocation89_spill] sm:$0xff] }
 0x384   :  { %4514 = vmatmul.mubr.bf16.gmra.mxu1 %v3504_v37  ;;  %v15177_v37 = vld [vmem:[#allocation77_spill] sm:$0xff]  ;;  %v12346_v58 = vmul.f32 %v11933_v17, %v15185_v6 }
 0x385   :  { %4651 = vmatprep.mubr.bf16.mxu1 %v3715_v2  ;;  %v12313_v42 = vmul.f32 %v15178_v60, %v15177_v37  ;;  %v3644_v2 = vsel %vm1765_vm5, %v3641_v40, %v3643_v8  ;;  %v8911_v60 = vld [vmem:[%s14364_s3 + $0x470] sm:$0xff]   ;;  %v3646_v37 = vsel %vm1765_vm5, %v3643_v8, %v3645_v31  ;;  %v15184_v40 = vld [vmem:[#allocation126_spill] sm:$0xff]  ;;  %v12350_v8 = vmul.f32 %v12000_v63, %v15186_v54 }
 0x386   :  { %v12333_v56 = vmul.f32 %v3644_v2, %v15182_v47  ;;  %v12342_v23 = vmul.f32 %v3646_v37, %v15184_v40  ;;  %v3647_v2 = vrot.slane %v12000_v63, 6  ;;  %v12358_v37 = vmul.f32 %v12095_v28, %v15187_v27  ;;  %v15188_v40 = vld [vmem:[#allocation86_spill] sm:$0xff]  ;;  %v15189_v47 = vld [vmem:[#allocation152_spill] sm:$0xff]  ;;  %v8912_v28 = vld [vmem:[%s14364_s3 + $0x468] sm:$0xff]  }
 0x387   :  { %v12362_v6 = vmul.f32 %v12126_v16, %v15188_v40  ;;  %v15190_v40 = vld [vmem:[#allocation98_spill] sm:$0xff]  ;;  %v15192_v27 = vld [vmem:[#allocation159_spill] sm:$0xff] }
 0x388   :  { %4555 = vmatmul.mubr.bf16.vlgmr.msra.gmra.mxu0 %v3594_v32  ;;  %v3648_v3 = vsel %vm1765_vm5, %v3645_v31, %v3647_v2  ;;  %v3650_v16 = vsel %vm1765_vm5, %v3647_v2, %v3649_v0  ;;  %v15191_v54 = vld [vmem:[#allocation134_spill] sm:$0xff]  ;;  %v15198_v2 = vld [vmem:[#allocation136_spill] sm:$0xff] }
 0x389   :  { %8481 = vmatpush3.bf16.msra.mxu0 %v15189_v47  ;;  %4562 = vmatprep.mubr.bf16.mxu0 %v3619_v46  ;;  %v12376_v47 = vmul.f32 %v3648_v3, %v15190_v40  ;;  %v12382_v32 = vmul.f32 %v15192_v27, %v15191_v54  ;;  %v15193_v31 = vld [vmem:[#allocation74_spill] sm:$0xff]  ;;  %v12389_v52 = vmul.f32 %v3650_v16, %v15197_v7  ;;  %v15200_v27 = vld [vmem:[#allocation85_spill] sm:$0xff] }
 0x38a   :  { %8482 = vmatprep.subr.bf16.mxu0 %v8911_v60  ;;  %v3606_v38 = vmul.f32 %v15194_v30, %v15193_v31  ;;  %v12393_v3 = vmul.f32 %v12134_v57, %v15198_v2  ;;  %v15199_v46 = vpack.c.bf16 %v12206_v34, %v12192_v29  ;;  %v3652_v54 = vsel %vm1765_vm5, %v3649_v0, %v3651_v25  ;;  %v15201_v31 = vld [vmem:[#allocation68_spill] sm:$0xff]  ;;  %v15202_v2 = vld [vmem:[#allocation123_spill] sm:$0xff]  ;;  %v15203_v34 = vld [vmem:[#allocation158_spill] sm:$0xff] }
 0x38b   :  { %v14672_v30 = vrot.slane %v12087_v35, 6  ;;  %v3678_v1 = vmul.f32 %v3634_v39, %v15201_v31  ;;  %v12408_v7 = vmul.f32 %v3652_v54, %v15202_v2  ;;  %v3595_v29 = vpack.c.bf16 %v12233_v51, %v12216_v13  ;;  %v8913_v39 = vld [vmem:[%s14364_s3 + $0x460] sm:$0xff]   ;;  %v15205_v51 = vld [vmem:[#allocation88_spill] sm:$0xff]  ;;  %v15206_v2 = vld [vmem:[#allocation71_spill] sm:$0xff] }
 0x38c   :  { %4652 = vmatmul.mubr.bf16.vlgmr.msra.gmra.mxu1 %v3691_v43  ;;  %v3677_v43 = vmul.f32 %v12252_v26, %v15200_v27  ;;  %v3635_v26 = vrot.slane %v15203_v34, 6  ;;  %v3620_v0 = vpack.c.bf16 %v3607_v59, %v3606_v38  ;;  %v3582_v16 = vmul.f32 %v11698_v22, %v15205_v51  ;;  %v8934_v51 = vld [vmem:[%s14364_s3 + $0x568] sm:$0xff]   ;;  %v8936_v40 = vld [vmem:[%s14364_s3 + $0x560] sm:$0xff]  }
 0x38d   :  { %4659 = vmatprep.mubr.bf16.mxu1 %v15199_v46  ;;  %8483 = vmatpush3.bf16.msra.mxu0 %v8911_v60  ;;  %v3654_v60 = vsel %vm1765_vm5, %v3651_v25, %v14672_v30  ;;  %v15204_v46 = vld [vmem:[#allocation139_spill] sm:$0xff]  ;;  %v3583_v31 = vmul.f32 %v15203_v34, %v15206_v2  ;;  %v15207_v27 = vrot.slane %v11698_v22, 6  ;;  %v15208_v25 = vrot.slane %v11851_v14, 6  ;;  %v15216_v2 = vld [vmem:[#allocation141_spill] sm:$0xff] }
 0x38e   :  { %8484 = vmatprep.subr.bf16.mxu0 %v8912_v28  ;;  %v12420_v57 = vmul.f32 %v3654_v60, %v15204_v46  ;;  %v3692_v54 = vpack.c.bf16 %v3678_v1, %v3677_v43  ;;  %v15209_v43 = vld [vmem:[#allocation133_spill] sm:$0xff]  ;;  %v15211_v60 = vld [vmem:[#allocation132_spill] sm:$0xff] }
 0x38f   :  { %v3636_v59 = vsel %vm1765_vm5, %v15207_v27, %v3635_v26  ;;  %v3638_v38 = vsel %vm1765_vm5, %v3635_v26, %v15208_v25  ;;  %v12439_v1 = vmul.f32 %v11855_v41, %v15209_v43  ;;  %v12446_v27 = vmul.f32 %v11920_v21, %v15211_v60  ;;  %v15213_v25 = vld [vmem:[#allocation137_spill] sm:$0xff] }
 0x390   :  { %4563 = vmatmul.mubr.bf16.gmra.mxu0 %v3595_v29  ;;  %v15210_v29 = vpack.c.bf16 %v12210_v24, %v12196_v20  ;;  %v12454_v13 = vmul.f32 %v11933_v17, %v15213_v25  ;;  %v15215_v41 = vld [vmem:[#allocation109_spill] sm:$0xff]  ;;  %v12460_v20 = vmul.f32 %v12000_v63, %v15216_v2  ;;  %v15217_v24 = vld [vmem:[#allocation140_spill] sm:$0xff] }
 0x391   :  { %4570 = vmatprep.mubr.bf16.mxu0 %v3620_v0  ;;  %8485 = vmatpush3.bf16.msra.mxu0 %v8912_v28  ;;  %v8914_v28 = vld [vmem:[%s14364_s3 + $0x458] sm:$0xff]   ;;  %v15212_v0 = vld [vmem:[#allocation110_spill] sm:$0xff]  ;;  %v3680_v43 = vmul.f32 %v3638_v38, %v15215_v41  ;;  %v12464_v21 = vmul.f32 %v12062_v4, %v15217_v24  ;;  %v3742_v17 = vpack.c.bf16 %v12446_v27, %v12439_v1 }
 0x392   :  { %8486 = vmatprep.subr.bf16.mxu0 %v8913_v39  ;;  %v12450_v26 = vmul.f32 %v11924_v49, %v15212_v0  ;;  %v8915_v49 = vld [vmem:[%s14364_s3 + $0x450] sm:$0xff]   ;;  %v15218_v38 = vpack.c.bf16 %v12229_v9, %v12225_v12  ;;  %v15220_v12 = vpack.c.bf16 %v12260_v62, %v12256_v15  ;;  %v15221_v9 = vpack.c.bf16 %v12272_v11, %v12268_v36  ;;  %v15230_v36 = vld [vmem:[#allocation94_spill] sm:$0xff]  ;;  %v8928_v24 = vld [vmem:[%s14364_s3 + $0x578] sm:$0xff]  }
 0x393   :  { %v3744_v63 = vpack.c.bf16 %v12464_v21, %v12460_v20  ;;  %v15225_v15 = vpack.c.bf16 %v12317_v45, %v12313_v42  ;;  %v15226_v11 = vpack.c.bf16 %v12342_v23, %v12333_v56  ;;  %v15229_v62 = vpack.c.bf16 %v12362_v6, %v12358_v37  ;;  %v15232_v45 = vld [vmem:[#allocation153_spill] sm:$0xff]  ;;  %v15235_v56 = vld [vmem:[#allocation160_spill] sm:$0xff]  ;;  %v15239_v37 = vld [vmem:[#allocation142_spill] sm:$0xff] }
 0x394   :  { %4660 = vmatmul.mubr.bf16.gmra.mxu1 %v3692_v54  ;;  %v15214_v54 = vld [vmem:[#allocation90_spill] sm:$0xff]  ;;  %v15233_v23 = vpack.c.bf16 %v12389_v52, %v12376_v47  ;;  %v15238_v6 = vpack.c.bf16 %v12393_v3, %v12382_v32  ;;  %v15246_v3 = vrot.slane %v12087_v35, 6  ;;  %v8929_v2 = vld [vmem:[%s14364_s3 + $0x538] sm:$0xff]   ;;  %v8931_v0 = vld [vmem:[%s14364_s3 + $0x530] sm:$0xff]  }
 0x395   :  { %4667 = vmatprep.mubr.bf16.mxu1 %v15210_v29  ;;  %v3679_v30 = vmul.f32 %v3636_v59, %v15214_v54  ;;  %8487 = vmatpush3.bf16.msra.mxu0 %v8913_v39  ;;  %v3596_v29 = vpack.c.bf16 %v3583_v31, %v3582_v16  ;;  %v3743_v39 = vpack.c.bf16 %v12454_v13, %v12450_v26  ;;  %v8916_v31 = vld [vmem:[%s14364_s3 + $0x448] sm:$0xff]   ;;  %v15264_v27 = vld [vmem:[#allocation146_spill] sm:$0xff] }
 0x396   :  { %8488 = vmatprep.subr.bf16.mxu0 %v8914_v28  ;;  %v15219_v16 = vpack.c.bf16 %v12249_v55, %v12239_v18  ;;  %v15222_v55 = vpack.c.bf16 %v12297_v61, %v12288_v50  ;;  %v15223_v18 = vpack.c.bf16 %v12294_v19, %v12284_v10  ;;  %v15227_v61 = vpack.c.bf16 %v12339_v33, %v12326_v44  ;;  %v15231_v19 = vld [vmem:[#allocation80_spill] sm:$0xff]  ;;  %v15265_v26 = vld [vmem:[#allocation135_spill] sm:$0xff] }
 0x397   :  { %v3693_v59 = vpack.c.bf16 %v3680_v43, %v3679_v30  ;;  %v8917_v30 = vld [vmem:[%s14364_s3 + $0x440] sm:$0xff]   ;;  %v15228_v50 = vpack.c.bf16 %v12350_v8, %v12346_v58  ;;  %v3590_v10 = vmul.f32 %v12062_v4, %v15230_v36  ;;  %v15234_v44 = vld [vmem:[#allocation108_spill] sm:$0xff]  ;;  %v15237_v58 = vld [vmem:[#allocation161_spill] sm:$0xff] }
 0x398   :  { %4571 = vmatmul.mubr.bf16.gmra.mxu0 %v3596_v29  ;;  %v3616_v33 = vmul.f32 %v15235_v56, %v15234_v44  ;;  %v15240_v4 = vld [vmem:[#allocation151_spill] sm:$0xff]  ;;  %v8921_v36 = vld [vmem:[%s14364_s3 + $0x4b0] sm:$0xff]  }
 0x399   :  { %4578 = vmatprep.mubr.bf16.mxu0 %v15218_v38  ;;  %8489 = vmatpush3.bf16.msra.mxu0 %v8914_v28  ;;  %v15224_v28 = vpack.c.bf16 %v12305_v48, %v12301_v53  ;;  %v3591_v53 = vmul.f32 %v15232_v45, %v15231_v19  ;;  %v15236_v48 = vld [vmem:[#allocation118_spill] sm:$0xff]  ;;  %v3713_v43 = vmul.f32 %v15240_v4, %v15239_v37  ;;  %v15241_v29 = vld [vmem:[#allocation143_spill] sm:$0xff]  ;;  %v15256_v4 = vld [vmem:[#allocation128_spill] sm:$0xff] }
 0x39a   :  { %8490 = vmatprep.subr.bf16.mxu0 %v8915_v49  ;;  %v3617_v42 = vmul.f32 %v15237_v58, %v15236_v48  ;;  %v15243_v38 = vld [vmem:[#allocation155_spill] sm:$0xff]  ;;  %v8920_v37 = vld [vmem:[%s14364_s3 + $0x4f0] sm:$0xff]  }
 0x39b   :  { %v3600_v8 = vpack.c.bf16 %v3591_v53, %v3590_v10  ;;  %v3655_v52 = vrot.slane %v15243_v38, 6  ;;  %v15253_v10 = vld [vmem:[#allocation156_spill] sm:$0xff] }
 0x39c   :  { %4668 = vmatmul.mubr.bf16.gmra.mxu1 %v3693_v59  ;;  %v3625_v47 = vpack.c.bf16 %v3617_v42, %v3616_v33  ;;  %v15255_v33 = vld [vmem:[#allocation145_spill] sm:$0xff] }
 0x39d   :  { %4675 = vmatprep.mubr.bf16.mxu1 %v15219_v16  ;;  %8491 = vmatpush3.bf16.msra.mxu0 %v8915_v49  ;;  %v15242_v49 = vld [vmem:[#allocation162_spill] sm:$0xff] }
 0x39e   :  { %8492 = vmatprep.subr.bf16.mxu0 %v8916_v31  ;;  %v3714_v59 = vmul.f32 %v15242_v49, %v15241_v29  ;;  %v8919_v29 = vld [vmem:[%s14364_s3 + $0x4b8] sm:$0xff]  }
 0x3a0   :  { %4579 = vmatmul.mubr.bf16.gmra.mxu0 %v15220_v12  ;;  %v15245_v12 = vld [vmem:[#allocation100_spill] sm:$0xff] }
 0x3a1   :  { %4586 = vmatprep.mubr.bf16.mxu0 %v15221_v9  ;;  %8493 = vmatpush3.bf16.msra.mxu0 %v8916_v31  ;;  %v15244_v31 = vld [vmem:[#allocation95_spill] sm:$0xff]  ;;  %v3593_v32 = vmul.f32 %v15243_v38, %v15245_v12  ;;  %v3656_v9 = vsel %vm1765_vm5, %v15246_v3, %v3655_v52 }
 0x3a2   :  { %8494 = vmatprep.subr.bf16.mxu0 %v8917_v30  ;;  %v3592_v16 = vmul.f32 %v12087_v35, %v15244_v31  ;;  %v8918_v31 = vld [vmem:[%s14364_s3 + $0x4f8] sm:$0xff]  }
 0x3a3   :  { %8136 = vmatprep.subr.bf16.mxu1 %v8918_v31  ;;  %v8922_v31 = vld [vmem:[%s14364_s3 + $0x4e8] sm:$0xff]  }
 0x3a4   :  { %4676 = vmatmul.mubr.bf16.gmra.mxu1 %v15222_v55  ;;  %v15247_v55 = vld [vmem:[#allocation154_spill] sm:$0xff]  ;;  %v3601_v42 = vpack.c.bf16 %v3593_v32, %v3592_v16  ;;  %v15262_v32 = vld [vmem:[#allocation144_spill] sm:$0xff] }
 0x3a5   :  { %4683 = vmatprep.mubr.bf16.mxu1 %v15223_v18  ;;  %8495 = vmatpush3.bf16.msra.mxu0 %v8917_v30  ;;  %v3722_v30 = vpack.c.bf16 %v3714_v59, %v3713_v43  ;;  %v15248_v18 = vrot.slane %v15247_v55, 6  ;;  %v15257_v43 = vld [vmem:[#allocation157_spill] sm:$0xff]  ;;  %v15259_v59 = vld [vmem:[#allocation106_spill] sm:$0xff] }
 0x3a6   :  { %8137 = vmatpush3.bf16.msra.mxu1 %v8919_v29  ;;  %v8930_v29 = vld [vmem:[%s14364_s3 + $0x570] sm:$0xff]   ;;  %8200 = vmatprep.subr.bf16.mxu0 %v8928_v24 }
 0x3a7   :  { %8138 = vmatprep.subr.bf16.mxu1 %v8920_v37  ;;  %v8923_v37 = vld [vmem:[%s14364_s3 + $0x4a8] sm:$0xff]  }
 0x3a8   :  { %4587 = vmatmul.mubr.bf16.gmra.mxu0 %v15224_v28  ;;  %v3674_v28 = vsel %vm1765_vm5, %v3655_v52, %v15248_v18  ;;  %v3727_v52 = vmul.f32 %v15203_v34, %v15259_v59  ;;  %v3736_v34 = vmul.f32 %v12087_v35, %v15262_v32  ;;  %v12584_v35 = vld [vmem:[%s14367_s4] sm:$0xff] }
 0x3a9   :  { %4594 = vmatprep.mubr.bf16.mxu0 %v15225_v15  ;;  %v15249_v15 = vpack.c.bf16 %v12420_v57, %v12408_v7  ;;  %v3690_v58 = vmul.f32 %v3674_v28, %v15255_v33  ;;  %v3725_v7 = vmul.f32 %v15257_v43, %v15256_v4  ;;  %v15258_v57 = vld [vmem:[#allocation127_spill] sm:$0xff]  ;;  %15266 = vst [vmem:[#allocation163_spill] sm:$0xff] %v12584_v35 }
 0x3aa   :  { %v3726_v49 = vmul.f32 %v11698_v22, %v15258_v57  ;;  %v15261_v22 = vld [vmem:[#allocation82_spill] sm:$0xff]  ;;  %8139 = vmatpush3.bf16.msra.mxu1 %v8921_v36  ;;  %v8935_v36 = vld [vmem:[%s14364_s3 + $0x528] sm:$0xff]  }
 0x3ab   :  { %v3735_v16 = vmul.f32 %v15232_v45, %v15261_v22  ;;  %8140 = vmatprep.subr.bf16.mxu1 %v8922_v31  ;;  %v8925_v31 = vld [vmem:[%s14364_s3 + $0x4a0] sm:$0xff]  }
 0x3ac   :  { %4684 = vmatmul.mubr.bf16.gmra.mxu1 %v15226_v11  ;;  %v15250_v11 = vld [vmem:[#allocation104_spill] sm:$0xff]  ;;  %v3740_v3 = vpack.c.bf16 %v3726_v49, %v3725_v7 }
 0x3ad   :  { %4691 = vmatprep.mubr.bf16.mxu1 %v15227_v61  ;;  %v15251_v61 = vld [vmem:[#allocation148_spill] sm:$0xff]  ;;  %v3745_v18 = vpack.c.bf16 %v3736_v34, %v3735_v16 }
 0x3ae   :  { %8141 = vmatpush3.bf16.msra.mxu1 %v8923_v37 }
 0x3b0   :  { %4595 = vmatmul.mubr.bf16.gmra.mxu0 %v15228_v50  ;;  %v3723_v50 = vmul.f32 %v15251_v61, %v15250_v11 }
 0x3b1   :  { %4602 = vmatprep.mubr.bf16.mxu0 %v15229_v62  ;;  %v15252_v62 = vld [vmem:[#allocation124_spill] sm:$0xff] }
 0x3b2   :  { %v3724_v53 = vmul.f32 %v15253_v10, %v15252_v62 }
 0x3b4   :  { %4692 = vmatmul.mubr.bf16.gmra.mxu1 %v15233_v23  ;;  %v15254_v23 = vld [vmem:[#allocation125_spill] sm:$0xff] }
 0x3b5   :  { %4699 = vmatprep.mubr.bf16.mxu1 %v15238_v6  ;;  %v3689_v56 = vmul.f32 %v3656_v9, %v15254_v23  ;;  %v3739_v6 = vpack.c.bf16 %v3724_v53, %v3723_v50 }
 0x3b8   :  { %4603 = vmatmul.mubr.bf16.gmra.mxu0 %v3600_v8  ;;  %v3698_v8 = vpack.c.bf16 %v3690_v58, %v3689_v56 }
 0x3b9   :  { %4610 = vmatprep.mubr.bf16.mxu0 %v3625_v47  ;;  %v15260_v47 = vld [vmem:[#allocation105_spill] sm:$0xff] }
 0x3bc   :  { %4700 = vmatmul.mubr.bf16.gmra.mxu1 %v15249_v15 }
 0x3bd   :  { %4707 = vmatprep.mubr.bf16.mxu1 %v3722_v30  ;;  %v3728_v30 = vmul.f32 %v11851_v14, %v15260_v47  ;;  %v15263_v14 = vld [vmem:[#allocation147_spill] sm:$0xff] }
 0x3be   :  { %v3737_v1 = vmul.f32 %v15243_v38, %v15263_v14 }
 0x3bf   :  { %v3741_v9 = vpack.c.bf16 %v3728_v30, %v3727_v52 }
 0x3c0   :  { %4611 = vmatmul.mubr.bf16.gmra.mxu0 %v3601_v42 }
 0x3c1   :  { %8496 = vmatprep.mubr.bf16.mxu0 %v3739_v6 }
 0x3c4   :  { %4708 = vmatmul.mubr.bf16.gmra.mxu1 %v3698_v8 }
 0x3c8   :  { %8497 = vmatmul.mubr.bf16.vlgmr.msra.gmra.mxu0 %v3740_v3 }
 0x3c9   :  { %8500 = vmatprep.mubr.bf16.mxu0 %v3741_v9  ;;  %8201 = vmatpush3.bf16.msra.mxu0 %v8929_v2  ;;  %v8924_v2 = vld [vmem:[%s14364_s3 + $0x4e0] sm:$0xff]  }
 0x3ca   :  { %8202 = vmatprep.subr.bf16.mxu0 %v8930_v29  ;;  %8142 = vmatprep.subr.bf16.mxu1 %v8924_v2  ;;  %v8927_v2 = vld [vmem:[%s14364_s3 + $0x498] sm:$0xff]  }
 0x3cb   :  { %8143 = vmatpush3.bf16.msra.mxu1 %v8925_v31 }
 0x3cd   :  { %8203 = vmatpush3.bf16.msra.mxu0 %v8931_v0  ;;  %v8926_v0 = vld [vmem:[%s14364_s3 + $0x4d8] sm:$0xff]  }
 0x3ce   :  { %8204 = vmatprep.subr.bf16.mxu0 %v8934_v51  ;;  %v8937_v51 = vld [vmem:[%s14364_s3 + $0x520] sm:$0xff]   ;;  %8144 = vmatprep.subr.bf16.mxu1 %v8926_v0  ;;  %v8933_v0 = vld [vmem:[%s14364_s3 + $0x490] sm:$0xff]  }
 0x3cf   :  { %8145 = vmatpush3.bf16.msra.mxu1 %v8927_v2  ;;  %v8939_v2 = vld [vmem:[%s14364_s3 + $0x488] sm:$0xff]  }
 0x3d0   :  { %8501 = vmatmul.mubr.bf16.gmra.mxu0 %v3742_v17  ;;  %v3738_v17 = vmul.f32 %v15247_v55, %v15264_v27 }
 0x3d1   :  { %8504 = vmatprep.mubr.bf16.mxu0 %v3743_v39  ;;  %v3894_v39 = vsub.s32 3, %v15265_v26  ;;  %8205 = vmatpush3.bf16.msra.mxu0 %v8935_v36  ;;  %v8932_v36 = vld [vmem:[%s14364_s3 + $0x4d0] sm:$0xff]  }
 0x3d2   :  { %v3746_v13 = vpack.c.bf16 %v3738_v17, %v3737_v1  ;;  %8206 = vmatprep.subr.bf16.mxu0 %v8936_v40  ;;  %v8941_v40 = vld [vmem:[%s14364_s3 + $0x518] sm:$0xff]   ;;  %8146 = vmatprep.subr.bf16.mxu1 %v8932_v36  ;;  %v8946_v36 = vld [vmem:[%s14364_s3 + $0x548] sm:$0xff]  }
 0x3d3   :  { %v12587_v20 = vrot.slane %v12584_v35, %v3894_v39  ;;  %8147 = vmatpush3.bf16.msra.mxu1 %v8933_v0  ;;  %v8945_v0 = vld [vmem:[%s14364_s3 + $0x480] sm:$0xff]  }
 0x3d5   :  { %8207 = vmatpush3.bf16.msra.mxu0 %v8937_v51  ;;  %v8938_v51 = vld [vmem:[%s14364_s3 + $0x4c8] sm:$0xff]  }
 0x3d6   :  { %8148 = vmatprep.subr.bf16.mxu1 %v8938_v51  ;;  %v8948_v51 = vld [vmem:[%s14364_s3 + $0x540] sm:$0xff]  }
 0x3d7   :  { %8149 = vmatpush3.bf16.msra.mxu1 %v8939_v2  ;;  %v8950_v2 = vld [vmem:[%s14364_s3 + $0x5f8] sm:$0xff]  }
 0x3d8   :  { %8505 = vmatmul.mubr.bf16.gmra.mxu0 %v3744_v63 }
 0x3d9   :  { %8508 = vmatprep.mubr.bf16.mxu0 %v3745_v18 }
 0x3e0   :  { %8509 = vmatmul.mubr.bf16.gmra.mxu0 %v3746_v13 }
 0x408   :  { %v7880_v45 = vpop.f32.mrf.mxu0 }
 0x40a   :  { %v7881_v21 = vpop.f32.mrf.mxu0 }
 0x40b   :  { %v7944_v63 = vpop.f32.mrf.mxu1  ;;  %v7882_v28 = vadd.f32 %v7881_v21, %v7880_v45 }
 0x40c   :  { %v7883_v38 = vpop.f32.mrf.mxu0 }
 0x40d   :  { %v4363_v15 = vadd.f32 %v7882_v28, %v12587_v20  ;;  %v7945_v55 = vpop.f32.mrf.mxu1 }
 0x40e   :  { %v7946_v61 = vadd.f32 %v7945_v55, %v7944_v63  ;;  %v7884_v50 = vpop.f32.mrf.mxu0 }
 0x40f   :  { %v7947_v10 = vpop.f32.mrf.mxu1  ;;  %v7885_v53 = vadd.f32 %v7884_v50, %v7883_v38 }
 0x410   :  { %v12590_v56 = vadd.f32 %v7946_v61, %v4363_v15  ;;  %v7886_v58 = vpop.f32.mrf.mxu0 }
 0x411   :  { %v4366_v42 = vadd.f32 %v7885_v53, %v12587_v20  ;;  %v7948_v6 = vpop.f32.mrf.mxu1 }
 0x412   :  { %v7949_v8 = vadd.f32 %v7948_v6, %v7947_v10  ;;  %v7887_v43 = vpop.f32.mrf.mxu0 }
 0x413   :  { %v7950_v7 = vpop.f32.mrf.mxu1  ;;  %v7888_v49 = vadd.f32 %v7887_v43, %v7886_v58 }
 0x414   :  { %v12593_v52 = vadd.f32 %v7949_v8, %v4366_v42  ;;  %v7889_v30 = vpop.f32.mrf.mxu0 }
 0x415   :  { %v4371_v3 = vadd.f32 %v7888_v49, %v12587_v20  ;;  %v7951_v9 = vpop.f32.mrf.mxu1 }
 0x416   :  { %v7952_v16 = vadd.f32 %v7951_v9, %v7950_v7  ;;  %v7890_v34 = vpop.f32.mrf.mxu0 }
 0x417   :  { %v7953_v18 = vpop.f32.mrf.mxu1  ;;  %v7891_v1 = vadd.f32 %v7890_v34, %v7889_v30 }
 0x418   :  { %v12596_v17 = vadd.f32 %v7952_v16, %v4371_v3  ;;  %v7892_v13 = vpop.f32.mrf.mxu0 }
 0x419   :  { %v4374_v39 = vadd.f32 %v7891_v1, %v12587_v20  ;;  %v7954_v45 = vpop.f32.mrf.mxu1 }
 0x41a   :  { %v7955_v21 = vadd.f32 %v7954_v45, %v7953_v18  ;;  %v7893_v63 = vpop.f32.mrf.mxu0 }
 0x41b   :  { %v7956_v28 = vpop.f32.mrf.mxu1  ;;  %v7894_v38 = vadd.f32 %v7893_v63, %v7892_v13 }
 0x41c   :  { %v12599_v15 = vadd.f32 %v7955_v21, %v4374_v39  ;;  %v7895_v55 = vpop.f32.mrf.mxu0 }
 0x41d   :  { %v4379_v61 = vadd.f32 %v7894_v38, %v12587_v20  ;;  %v7957_v50 = vpop.f32.mrf.mxu1 }
 0x41e   :  { %v7958_v10 = vadd.f32 %v7957_v50, %v7956_v28  ;;  %v7896_v53 = vpop.f32.mrf.mxu0 }
 0x41f   :  { %v7959_v58 = vpop.f32.mrf.mxu1  ;;  %v7897_v42 = vadd.f32 %v7896_v53, %v7895_v55 }
 0x420   :  { %v12602_v6 = vadd.f32 %v7958_v10, %v4379_v61  ;;  %v7898_v8 = vpop.f32.mrf.mxu0 }
 0x421   :  { %v4382_v43 = vadd.f32 %v7897_v42, %v12587_v20  ;;  %v7960_v7 = vpop.f32.mrf.mxu1 }
 0x422   :  { %v7961_v49 = vadd.f32 %v7960_v7, %v7959_v58  ;;  %v7899_v30 = vpop.f32.mrf.mxu0 }
 0x423   :  { %v7962_v3 = vpop.f32.mrf.mxu1  ;;  %v7900_v9 = vadd.f32 %v7899_v30, %v7898_v8 }
 0x424   :  { %v12605_v16 = vadd.f32 %v7961_v49, %v4382_v43  ;;  %v7901_v34 = vpop.f32.mrf.mxu0 }
 0x425   :  { %v4387_v18 = vadd.f32 %v7900_v9, %v12587_v20  ;;  %v7963_v1 = vpop.f32.mrf.mxu1 }
 0x426   :  { %v7964_v13 = vadd.f32 %v7963_v1, %v7962_v3  ;;  %v7902_v39 = vpop.f32.mrf.mxu0 }
 0x427   :  { %v7965_v45 = vpop.f32.mrf.mxu1  ;;  %v7903_v21 = vadd.f32 %v7902_v39, %v7901_v34 }
 0x428   :  { %v12608_v63 = vadd.f32 %v7964_v13, %v4387_v18  ;;  %v7904_v28 = vpop.f32.mrf.mxu0 }
 0x429   :  { %v4390_v38 = vadd.f32 %v7903_v21, %v12587_v20  ;;  %v7966_v55 = vpop.f32.mrf.mxu1 }
 0x42a   :  { %v7967_v61 = vadd.f32 %v7966_v55, %v7965_v45  ;;  %v7905_v50 = vpop.f32.mrf.mxu0 }
 0x42b   :  { %v7906_v53 = vadd.f32 %v7905_v50, %v7904_v28 }
 0x42c   :  { %v7968_v10 = vpop.f32.mrf.mxu1  ;;  %v12611_v58 = vadd.f32 %v7967_v61, %v4390_v38  ;;  %v7907_v42 = vpop.f32.mrf.mxu0 }
 0x42d   :  { %v4395_v8 = vadd.f32 %v7906_v53, %v12587_v20 }
 0x42e   :  { %v7969_v43 = vpop.f32.mrf.mxu1  ;;  %v7908_v49 = vpop.f32.mrf.mxu0 }
 0x42f   :  { %v7970_v7 = vadd.f32 %v7969_v43, %v7968_v10  ;;  %v7909_v3 = vadd.f32 %v7908_v49, %v7907_v42 }
 0x430   :  { %v7971_v30 = vpop.f32.mrf.mxu1  ;;  %v7910_v34 = vpop.f32.mrf.mxu0 }
 0x431   :  { %v12614_v9 = vadd.f32 %v7970_v7, %v4395_v8  ;;  %v4398_v18 = vadd.f32 %v7909_v3, %v12587_v20 }
 0x432   :  { %v7972_v1 = vpop.f32.mrf.mxu1  ;;  %v7911_v39 = vpop.f32.mrf.mxu0 }
 0x433   :  { %v7973_v13 = vadd.f32 %v7972_v1, %v7971_v30  ;;  %v7912_v21 = vadd.f32 %v7911_v39, %v7910_v34 }
 0x434   :  { %v7974_v45 = vpop.f32.mrf.mxu1  ;;  %v7913_v38 = vpop.f32.mrf.mxu0 }
 0x435   :  { %v12617_v28 = vadd.f32 %v7973_v13, %v4398_v18  ;;  %v4403_v55 = vadd.f32 %v7912_v21, %v12587_v20 }
 0x436   :  { %v7975_v61 = vpop.f32.mrf.mxu1  ;;  %v7914_v10 = vpop.f32.mrf.mxu0 }
 0x437   :  { %v7976_v50 = vadd.f32 %v7975_v61, %v7974_v45  ;;  %v7915_v42 = vadd.f32 %v7914_v10, %v7913_v38 }
 0x438   :  { %v7977_v53 = vpop.f32.mrf.mxu1  ;;  %v7916_v43 = vpop.f32.mrf.mxu0 }
 0x439   :  { %v12620_v8 = vadd.f32 %v7976_v50, %v4403_v55  ;;  %v4406_v7 = vadd.f32 %v7915_v42, %v12587_v20 }
 0x43a   :  { %v7978_v49 = vpop.f32.mrf.mxu1  ;;  %v7917_v3 = vpop.f32.mrf.mxu0 }
 0x43b   :  { %15267 = vst [vmem:[#allocation164_spill] sm:$0xff] %v12620_v8  ;;  %v7979_v30 = vadd.f32 %v7978_v49, %v7977_v53  ;;  %v7918_v34 = vadd.f32 %v7917_v3, %v7916_v43 }
 0x43c   :  { %v7980_v1 = vpop.f32.mrf.mxu1  ;;  %v7919_v13 = vpop.f32.mrf.mxu0 }
 0x43d   :  { %v12623_v18 = vadd.f32 %v7979_v30, %v4406_v7  ;;  %v4411_v39 = vadd.f32 %v7918_v34, %v12587_v20 }
 0x43e   :  { %v7981_v21 = vpop.f32.mrf.mxu1  ;;  %v7920_v61 = vpop.f32.mrf.mxu0 }
 0x43f   :  { %15268 = vst [vmem:[#allocation152_spill] sm:$0xff] %v12623_v18  ;;  %v7982_v45 = vadd.f32 %v7981_v21, %v7980_v1  ;;  %v7921_v38 = vadd.f32 %v7920_v61, %v7919_v13 }
 0x440   :  { %v7983_v27 = vpop.f32.mrf.mxu1  ;;  %v7922_v50 = vpop.f32.mrf.mxu0 }
 0x441   :  { %v12626_v55 = vadd.f32 %v7982_v45, %v4411_v39  ;;  %v4414_v10 = vadd.f32 %v7921_v38, %v12587_v20 }
 0x442   :  { %v7984_v42 = vpop.f32.mrf.mxu1  ;;  %v7923_v49 = vpop.f32.mrf.mxu0 }
 0x443   :  { %15269 = vst [vmem:[#allocation159_spill] sm:$0xff] %v12626_v55  ;;  %v7985_v53 = vadd.f32 %v7984_v42, %v7983_v27  ;;  %v7924_v43 = vadd.f32 %v7923_v49, %v7922_v50 }
 0x444   :  { %v7986_v14 = vpop.f32.mrf.mxu1  ;;  %v12631_v30 = vpop.f32.mrf.mxu0 }
 0x445   :  { %v12629_v7 = vadd.f32 %v7985_v53, %v4414_v10  ;;  %v4419_v3 = vadd.f32 %v7924_v43, %v12587_v20 }
 0x446   :  { %v7987_v1 = vpop.f32.mrf.mxu1  ;;  %v12634_v21 = vpop.f32.mrf.mxu0 }
 0x447   :  { %15270 = vst [vmem:[#allocation149_spill] sm:$0xff] %v12629_v7  ;;  %v7988_v34 = vadd.f32 %v7987_v1, %v7986_v14  ;;  %v8940_v7 = vld [vmem:[%s14364_s3 + $0x558] sm:$0xff]  }
 0x448   :  { %v12636_v13 = vpop.f32.mrf.mxu1  ;;  %v8008_v45 = vpop.f32.mrf.mxu0  ;;  %8208 = vmatprep.subr.bf16.mxu0 %v8940_v7  ;;  %v8943_v7 = vld [vmem:[%s14364_s3 + $0x510] sm:$0xff]  }
 0x449   :  { %v12638_v39 = vadd.f32 %v7988_v34, %v4419_v3  ;;  %8209 = vmatpush3.bf16.msra.mxu0 %v8941_v40  ;;  %v8944_v40 = vld [vmem:[%s14364_s3 + $0x4c0] sm:$0xff]  }
 0x44a   :  { %v12640_v61 = vpop.f32.mrf.mxu1  ;;  %v8009_v27 = vpop.f32.mrf.mxu0  ;;  %8150 = vmatprep.subr.bf16.mxu1 %v8944_v40 }
 0x44b   :  { %15271 = vst [vmem:[#allocation150_spill] sm:$0xff] %v12638_v39  ;;  %v8010_v50 = vadd.f32 %v8009_v27, %v8008_v45  ;;  %8151 = vmatpush3.bf16.msra.mxu1 %v8945_v0 }
 0x44c   :  { %v12642_v38 = vpop.f32.mrf.mxu1  ;;  %v12644_v10 = vpop.f32.mrf.mxu0  ;;  %8264 = vmatprep.subr.bf16.mxu1 %v8950_v2 }
 0x44d   :  { %v12647_v42 = vadd.f32 %v8010_v50, %v12590_v56 }
 0x44e   :  { %v12649_v53 = vpop.f32.mrf.mxu1  ;;  %v12651_v14 = vpop.f32.mrf.mxu0 }
 0x450   :  { %v12653_v49 = vpop.f32.mrf.mxu1  ;;  %v12655_v43 = vpop.f32.mrf.mxu0 }
 0x452   :  { %v12657_v3 = vpop.f32.mrf.mxu1  ;;  %v12659_v1 = vpop.f32.mrf.mxu0 }
 0x454   :  { %v12661_v34 = vpop.f32.mrf.mxu1  ;;  %v12663_v45 = vpop.f32.mrf.mxu0 }
 0x456   :  { %v12665_v27 = vpop.f32.mrf.mxu1  ;;  %v12667_v56 = vpop.f32.mrf.mxu0 }
 0x458   :  { %v12669_v50 = vpop.f32.mrf.mxu1  ;;  %v12671_v32 = vpop.f32.mrf.mxu0 }
 0x45a   :  { %v12673_v22 = vpop.f32.mrf.mxu1  ;;  %v12675_v47 = vpop.f32.mrf.mxu0 }
 0x45c   :  { %v12677_v59 = vpop.f32.mrf.mxu1  ;;  %v12679_v57 = vpop.f32.mrf.mxu0 }
 0x45e   :  { %v12681_v4 = vpop.f32.mrf.mxu1  ;;  %v12683_v33 = vpop.f32.mrf.mxu0 }
 0x460   :  { %v12685_v23 = vpop.f32.mrf.mxu1  ;;  %v12687_v62 = vpop.f32.mrf.mxu0 }
 0x462   :  { %v12689_v11 = vpop.f32.mrf.mxu1  ;;  %v12691_v12 = vpop.f32.mrf.mxu0 }
 0x464   :  { %v12702_v48 = vpop.f32.mrf.mxu1  ;;  %v12704_v44 = vpop.f32.mrf.mxu0 }
 0x466   :  { %v12706_v19 = vpop.f32.mrf.mxu1  ;;  %v12717_v41 = vpop.f32.mrf.mxu0 }
 0x468   :  { %v12725_v54 = vpop.f32.mrf.mxu1  ;;  %v12727_v25 = vpop.f32.mrf.mxu0 }
 0x46a   :  { %v12732_v60 = vpop.f32.mrf.mxu1  ;;  %v12740_v24 = vpop.f32.mrf.mxu0 }
 0x46c   :  { %v12745_v46 = vpop.f32.mrf.mxu1  ;;  %v12747_v5 = vpop.f32.mrf.mxu0 }
 0x46e   :  { %v12752_v29 = vpop.f32.mrf.mxu1  ;;  %v12760_v35 = vpop.f32.mrf.mxu0 }
 0x46f   :  { %15272 = vst [vmem:[#allocation158_spill] sm:$0xff] %v12752_v29 }
 0x470   :  { %v12765_v26 = vpop.f32.mrf.mxu1  ;;  %v12767_v39 = vpop.f32.mrf.mxu0 }
 0x471   :  { %15273 = vst [vmem:[#allocation153_spill] sm:$0xff] %v12765_v26 }
 0x472   :  { %v12772_v37 = vpop.f32.mrf.mxu1  ;;  %v12780_v55 = vpop.f32.mrf.mxu0 }
 0x473   :  { %15274 = vst [vmem:[#allocation160_spill] sm:$0xff] %v12772_v37  ;;  %v8942_v37 = vld [vmem:[%s14364_s3 + $0x550] sm:$0xff]  }
 0x474   :  { %v12785_v18 = vpop.f32.mrf.mxu1  ;;  %v12787_v8 = vpop.f32.mrf.mxu0  ;;  %8210 = vmatprep.subr.bf16.mxu0 %v8942_v37  ;;  %v8947_v37 = vld [vmem:[%s14364_s3 + $0x508] sm:$0xff]  }
 0x475   :  { %15275 = vst [vmem:[#allocation161_spill] sm:$0xff] %v12785_v18  ;;  %15276 = vst [vmem:[#allocation151_spill] sm:$0xff] %v12787_v8  ;;  %8211 = vmatpush3.bf16.msra.mxu0 %v8943_v7  ;;  %v8013_v7 = vadd.f32 %v12651_v14, %v12644_v10  ;;  %v7991_v14 = vadd.f32 %v12640_v61, %v12636_v13  ;;  %v8034_v13 = vadd.f32 %v12740_v24, %v12727_v25 }
 0x476   :  { %v12792_v31 = vpop.f32.mrf.mxu1  ;;  %v12800_v18 = vpop.f32.mrf.mxu0  ;;  %8212 = vmatprep.subr.bf16.mxu0 %v8946_v36  ;;  %v8016_v36 = vadd.f32 %v12659_v1, %v12655_v43 }
 0x477   :  { %15277 = vst [vmem:[#allocation162_spill] sm:$0xff] %v12792_v31  ;;  %15278 = vst [vmem:[#allocation155_spill] sm:$0xff] %v12800_v18  ;;  %v4560_v43 = vadd.f32 %v8013_v7, %v12593_v52  ;;  %v8031_v52 = vadd.f32 %v12717_v41, %v12704_v44 }
 0x478   :  { %v12805_v26 = vpop.f32.mrf.mxu1  ;;  %v12807_v31 = vpop.f32.mrf.mxu0 }
 0x479   :  { %15279 = vst [vmem:[#allocation154_spill] sm:$0xff] %v12805_v26  ;;  %15280 = vst [vmem:[#allocation148_spill] sm:$0xff] %v12807_v31  ;;  %8213 = vmatpush3.bf16.msra.mxu0 %v8947_v37 }
 0x47a   :  { %v12818_v18 = vpop.f32.mrf.mxu0  ;;  %v12823_v26 = vpop.f32.mrf.mxu1  ;;  %8214 = vmatprep.subr.bf16.mxu0 %v8948_v51 }
 0x47b   :  { %15281 = vst [vmem:[#allocation156_spill] sm:$0xff] %v12818_v18  ;;  %15282 = vst [vmem:[#allocation157_spill] sm:$0xff] %v12823_v26  ;;  %v7927_v26 = vadd.f32 %v12634_v21, %v12631_v30  ;;  %v8019_v18 = vadd.f32 %v12667_v56, %v12663_v45  ;;  %v8949_v30 = vld [vmem:[%s14364_s3 + $0x500] sm:$0xff]   ;;  %v8022_v21 = vadd.f32 %v12675_v47, %v12671_v32 }
 0x47c   :  { %v12825_v31 = vpop.f32.mrf.mxu0  ;;  %v12849_v8 = vpop.f32.mrf.mxu1  ;;  %v8074_v45 = vadd.f32 %v12649_v53, %v12642_v38  ;;  %v8077_v56 = vadd.f32 %v12657_v3, %v12653_v49  ;;  %v4565_v47 = vadd.f32 %v8016_v36, %v12596_v17  ;;  %v8080_v17 = vadd.f32 %v12665_v27, %v12661_v34 }
 0x47d   :  { %15283 = vst [vmem:[#allocation165_spill] sm:$0xff] %v12825_v31  ;;  %v4422_v10 = vadd.f32 %v7927_v26, %v12587_v20  ;;  %v4568_v32 = vadd.f32 %v8019_v18, %v12599_v15  ;;  %v8025_v26 = vadd.f32 %v12683_v33, %v12679_v57  ;;  %v8028_v20 = vadd.f32 %v12691_v12, %v12687_v62 }
 0x47e   :  { %v12840_v31 = vpop.f32.mrf.mxu0  ;;  %v8109_v40 = vpop.f32.mrf.mxu1  ;;  %8215 = vmatpush3.bf16.msra.mxu0 %v8949_v30  ;;  %v8083_v15 = vadd.f32 %v12673_v22, %v12669_v50  ;;  %v4573_v33 = vadd.f32 %v8022_v21, %v12602_v6  ;;  %v8037_v12 = vadd.f32 %v12760_v35, %v12747_v5  ;;  %v4654_v25 = vadd.f32 %v8074_v45, %v12647_v42  ;;  %v8959_v42 = vld [vmem:[%s14364_s3 + $0x678] sm:$0xff]   ;;  %v15286_v34 = vld [vmem:[#allocation155_spill] sm:$0xff] }
 0x47f   :  { %v12887_v62 = vadd.f32 %v7991_v14, %v4422_v10  ;;  %v4657_v44 = vadd.f32 %v8077_v56, %v4560_v43  ;;  %v8086_v57 = vadd.f32 %v12681_v4, %v12677_v59  ;;  %v8040_v18 = vadd.f32 %v12780_v55, %v12767_v39  ;;  %v15285_v39 = vld [vmem:[#allocation151_spill] sm:$0xff]  ;;  %8328 = vmatprep.subr.bf16.mxu0 %v8959_v42  ;;  %v15292_v21 = vld [vmem:[#allocation161_spill] sm:$0xff]  ;;  %v15293_v10 = vld [vmem:[#allocation162_spill] sm:$0xff] }
 0x480   :  { %v12851_v29 = vpop.f32.mrf.mxu0  ;;  %v8111_v38 = vpop.f32.mrf.mxu1  ;;  %v4662_v22 = vadd.f32 %v8080_v17, %v4565_v47  ;;  %v4665_v53 = vadd.f32 %v8083_v15, %v4568_v32  ;;  %v4576_v6 = vadd.f32 %v8025_v26, %v12605_v16  ;;  %v4581_v5 = vadd.f32 %v8028_v20, %v12608_v63  ;;  %v15287_v50 = vld [vmem:[#allocation148_spill] sm:$0xff]  ;;  %v15295_v26 = vld [vmem:[#allocation159_spill] sm:$0xff]  ;;  %v15297_v15 = vld [vmem:[#allocation154_spill] sm:$0xff] }
 0x481   :  { %v4584_v35 = vadd.f32 %v8031_v52, %v12611_v58  ;;  %v4589_v49 = vadd.f32 %v8034_v13, %v12614_v9  ;;  %v8089_v4 = vadd.f32 %v12689_v11, %v12685_v23  ;;  %v8092_v59 = vadd.f32 %v12706_v19, %v12702_v48  ;;  %v15284_v58 = vld [vmem:[#allocation158_spill] sm:$0xff]  ;;  %v15289_v11 = vld [vmem:[#allocation153_spill] sm:$0xff]  ;;  %v15290_v23 = vld [vmem:[#allocation160_spill] sm:$0xff] }
 0x482   :  { %v12862_v1 = vpop.f32.mrf.mxu0  ;;  %v4592_v55 = vadd.f32 %v8037_v12, %v12617_v28  ;;  %v4670_v16 = vadd.f32 %v8086_v57, %v4573_v33  ;;  %v8095_v63 = vadd.f32 %v12732_v60, %v12725_v54  ;;  %v8098_v9 = vadd.f32 %v15284_v58, %v12745_v46  ;;  %v15288_v24 = vld [vmem:[#allocation156_spill] sm:$0xff]  ;;  %v8112_v51 = vpop.f32.mrf.mxu1  ;;  %v15298_v33 = vld [vmem:[#allocation157_spill] sm:$0xff] }
 0x483   :  { %v8043_v27 = vadd.f32 %v15286_v34, %v15285_v39  ;;  %v8046_v37 = vadd.f32 %v15288_v24, %v15287_v50  ;;  %v8101_v19 = vadd.f32 %v15290_v23, %v15289_v11  ;;  %v15291_v48 = vld [vmem:[#allocation164_spill] sm:$0xff]  ;;  %v4678_v54 = vadd.f32 %v8092_v59, %v4581_v5 }
 0x484   :  { %v12878_v61 = vpop.f32.mrf.mxu0  ;;  %v4597_v28 = vadd.f32 %v8040_v18, %v15291_v48  ;;  %v4681_v36 = vadd.f32 %v8095_v63, %v4584_v35  ;;  %v4673_v46 = vadd.f32 %v8089_v4, %v4576_v6  ;;  %v12919_v30 = vadd.f32 %v8098_v9, %v4589_v49  ;;  %v15294_v47 = vld [vmem:[#allocation152_spill] sm:$0xff]  ;;  %v15296_v52 = vld [vmem:[#allocation165_spill] sm:$0xff] }
 0x485   :  { %v8104_v14 = vadd.f32 %v15293_v10, %v15292_v21  ;;  %v12923_v56 = vadd.f32 %v8101_v19, %v4592_v55  ;;  %v4600_v32 = vadd.f32 %v8043_v27, %v15294_v47  ;;  %v4605_v20 = vadd.f32 %v8046_v37, %v15295_v26  ;;  %v15300_v27 = vld [vmem:[#allocation150_spill] sm:$0xff] }
 0x486   :  { %v12889_v41 = vpop.f32.mrf.mxu0  ;;  %v8049_v13 = vadd.f32 %v12840_v31, %v15296_v52  ;;  %v8107_v12 = vadd.f32 %v15298_v33, %v15297_v15  ;;  %v8052_v6 = vadd.f32 %v12862_v1, %v12851_v29  ;;  %v12939_v4 = vadd.f32 %v8112_v51, %v8111_v38 }
 0x487   :  { %v8055_v10 = vadd.f32 %v12889_v41, %v12878_v61 }
 0x488   :  { %v8498_v3 = vpop.f32.mrf.mxu0  ;;  %v4697_v59 = vadd.f32 %v8107_v12, %v4600_v32  ;;  %v4613_v50 = vadd.f32 %v8052_v6, %v15300_v27 }
 0x489   :  { %v4759_v7 = vadd.f32 %v8498_v3, %v4662_v22  ;;  %v4694_v22 = vadd.f32 %v8104_v14, %v4597_v28  ;;  %v15299_v3 = vld [vmem:[#allocation149_spill] sm:$0xff] }
 0x48a   :  { %v4750_v0 = vpop.f32.mrf.mxu0  ;;  %v12937_v42 = vadd.f32 %v8049_v13, %v15299_v3 }
 0x48b   :  { %v4751_v2 = vadd.f32 %v4750_v0, %v4654_v25  ;;  %v8114_v25 = vpop.f32.mrf.mxu1  ;;  %v4831_v57 = vmul.f32 0.2, %v4759_v7  ;;  %vm4815_vm14 = vcmp.ge.f32.partialorder %v4759_v7, 0.0 }
 0x48c   :  { %v8499_v60 = vpop.f32.mrf.mxu0 }
 0x48d   :  { %v4829_v43 = vmul.f32 0.2, %v4751_v2  ;;  %v4762_v45 = vadd.f32 %v8499_v60, %v4665_v53  ;;  %vm4813_vm13 = vcmp.ge.f32.partialorder %v4751_v2, 0.0  ;;  %v8110_v53 = vadd.f32 %v8109_v40, %v12849_v8  ;;  %v8115_v8 = vpop.f32.mrf.mxu1 }
 0x48e   :  { %v4753_v17 = vpop.f32.mrf.mxu0  ;;  %v12943_v40 = vsel %vm4815_vm14, %v4759_v7, %v4831_v57  ;;  %v8116_v0 = vadd.f32 %v8115_v8, %v8114_v25  ;;  %v4616_v25 = vadd.f32 %v8055_v10, %v12887_v62 }
 0x48f   :  { %v4754_v18 = vadd.f32 %v4753_v17, %v4657_v44  ;;  %v4832_v5 = vmul.f32 0.2, %v4762_v45  ;;  %v12934_v49 = vsel %vm4813_vm13, %v4751_v2, %v4829_v43  ;;  %vm4816_vm15 = vcmp.ge.f32.partialorder %v4762_v45, 0.0  ;;  %v8117_v48 = vpop.f32.mrf.mxu1 }
 0x490   :  { %v8502_v35 = vpop.f32.mrf.mxu0  ;;  %v12941_v55 = vadd.f32 %v8110_v53, %v4605_v20  ;;  %v4899_v58 = vmul.f32 %v12934_v49, %v12934_v49 }
 0x491   :  { %vm4814_vm0 = vcmp.ge.f32.partialorder %v4754_v18, 0.0  ;;  %v4830_v31 = vmul.f32 0.2, %v4754_v18  ;;  %v4775_v1 = vadd.f32 %v8502_v35, %v4678_v54  ;;  %v12949_v9 = vsel %vm4816_vm15, %v4762_v45, %v4832_v5  ;;  %v8118_v26 = vpop.f32.mrf.mxu1 }
 0x492   :  { %v4766_v44 = vpop.f32.mrf.mxu0  ;;  %v4902_v28 = vmul.f32 %v12949_v9, %v12949_v9  ;;  %v8119_v53 = vadd.f32 %v8118_v26, %v8117_v48 }
 0x493   :  { %v12945_v29 = vsel %vm4814_vm0, %v4754_v18, %v4830_v31  ;;  %v4767_v63 = vadd.f32 %v4766_v44, %v4670_v16  ;;  %v4901_v16 = vmul.f32 %v12943_v40, %v12943_v40  ;;  %v4835_v51 = vmul.f32 0.2, %v4775_v1 }
 0x494   :  { %v4877_v38 = vadd.f32 %v12945_v29, %v12934_v49  ;;  %v4900_v39 = vmul.f32 %v12945_v29, %v12945_v29  ;;  %v8503_v34 = vpop.f32.mrf.mxu0  ;;  %vm4819_vm2 = vcmp.ge.f32.partialorder %v4775_v1, 0.0 }
 0x495   :  { %vm4817_vm1 = vcmp.ge.f32.partialorder %v4767_v63, 0.0  ;;  %v4833_v24 = vmul.f32 0.2, %v4767_v63  ;;  %v4778_v37 = vadd.f32 %v8503_v34, %v4681_v36  ;;  %v12969_v20 = vsel %vm4819_vm2, %v4775_v1, %v4835_v51 }
 0x496   :  { %v4878_v11 = vadd.f32 %v4877_v38, %v12943_v40  ;;  %v4915_v23 = vadd.f32 %v4900_v39, %v4899_v58  ;;  %v4769_v19 = vpop.f32.mrf.mxu0 }
 0x497   :  { %v12961_v7 = vsel %vm4817_vm1, %v4767_v63, %v4833_v24  ;;  %v4770_v2 = vadd.f32 %v4769_v19, %v4673_v46  ;;  %v4836_v36 = vmul.f32 0.2, %v4778_v37  ;;  %vm4820_vm3 = vcmp.ge.f32.partialorder %v4778_v37, 0.0 }
 0x498   :  { %v4916_v60 = vadd.f32 %v4915_v23, %v4901_v16  ;;  %v4879_v54 = vadd.f32 %v4878_v11, %v12949_v9  ;;  %v8506_v21 = vpop.f32.mrf.mxu0  ;;  %v4903_v45 = vmul.f32 %v12961_v7, %v12961_v7  ;;  %v4710_v46 = vadd.f32 %v8116_v0, %v4613_v50 }
 0x499   :  { %vm4818_vm6 = vcmp.ge.f32.partialorder %v4770_v2, 0.0  ;;  %v4834_v14 = vmul.f32 0.2, %v4770_v2  ;;  %v4791_v13 = vadd.f32 %v8506_v21, %v4694_v22  ;;  %v12974_v41 = vsel %vm4820_vm3, %v4778_v37, %v4836_v36 }
 0x49a   :  { %v4880_v43 = vadd.f32 %v4879_v54, %v12961_v7  ;;  %v4917_v47 = vadd.f32 %v4916_v60, %v4902_v28  ;;  %v4782_v32 = vpop.f32.mrf.mxu0  ;;  %v4905_v22 = vmul.f32 %v12969_v20, %v12969_v20  ;;  %v4906_v35 = vmul.f32 %v12974_v41, %v12974_v41 }
 0x49b   :  { %v12971_v52 = vsel %vm4818_vm6, %v4770_v2, %v4834_v14  ;;  %v4783_v17 = vadd.f32 %v4782_v32, %v12919_v30  ;;  %v4839_v31 = vmul.f32 0.2, %v4791_v13  ;;  %vm4823_vm8 = vcmp.ge.f32.partialorder %v4791_v13, 0.0 }
 0x49c   :  { %v4918_v61 = vadd.f32 %v4917_v47, %v4903_v45  ;;  %v4881_v15 = vadd.f32 %v4880_v43, %v12971_v52  ;;  %v4904_v33 = vmul.f32 %v12971_v52, %v12971_v52  ;;  %v8507_v12 = vpop.f32.mrf.mxu0  ;;  %v4713_v0 = vadd.f32 %v8119_v53, %v4616_v25  ;;  %v15301_v43 = vld [vmem:[#allocation138_spill] sm:$0xff] }
 0x49d   :  { %vm4821_vm7 = vcmp.ge.f32.partialorder %v4783_v17, 0.0  ;;  %v4837_v57 = vmul.f32 0.2, %v4783_v17  ;;  %v4794_v18 = vadd.f32 %v8507_v12, %v4697_v59  ;;  %v12994_v50 = vsel %vm4823_vm8, %v4791_v13, %v4839_v31 }
 0x49e   :  { %v4882_v30 = vadd.f32 %v4881_v15, %v12969_v20  ;;  %v4919_v6 = vadd.f32 %v4918_v61, %v4904_v33  ;;  %v4785_v5 = vpop.f32.mrf.mxu0 }
 0x49f   :  { %v12985_v3 = vsel %vm4821_vm7, %v4783_v17, %v4837_v57  ;;  %v4786_v44 = vadd.f32 %v4785_v5, %v12923_v56  ;;  %v4840_v8 = vmul.f32 0.2, %v4794_v18  ;;  %vm4824_vm10 = vcmp.ge.f32.partialorder %v4794_v18, 0.0 }
 0x4a0   :  { %v4920_v62 = vadd.f32 %v4919_v6, %v4905_v22  ;;  %v4883_v59 = vadd.f32 %v4882_v30, %v12974_v41  ;;  %v8510_v1 = vpop.f32.mrf.mxu0  ;;  %v4907_v39 = vmul.f32 %v12985_v3, %v12985_v3  ;;  %v4705_v56 = vadd.f32 %v12939_v4, %v12937_v42 }
 0x4a1   :  { %vm4822_vm12 = vcmp.ge.f32.partialorder %v4786_v44, 0.0  ;;  %v4838_v63 = vmul.f32 0.2, %v4786_v44  ;;  %v4807_v58 = vadd.f32 %v8510_v1, %v4710_v46  ;;  %v12999_v11 = vsel %vm4824_vm10, %v4794_v18, %v4840_v8 }
 0x4a2   :  { %v4884_v38 = vadd.f32 %v4883_v59, %v12985_v3  ;;  %v4921_v34 = vadd.f32 %v4920_v62, %v4906_v35  ;;  %v4798_v27 = vpop.f32.mrf.mxu0  ;;  %v4909_v4 = vmul.f32 %v12994_v50, %v12994_v50  ;;  %v4910_v54 = vmul.f32 %v12999_v11, %v12999_v11 }
 0x4a3   :  { %v12996_v24 = vsel %vm4822_vm12, %v4786_v44, %v4838_v63  ;;  %v4799_v37 = vadd.f32 %v4798_v27, %v12941_v55  ;;  %v4843_v28 = vmul.f32 0.2, %v4807_v58  ;;  %vm4827_vm14 = vcmp.ge.f32.partialorder %v4807_v58, 0.0 }
 0x4a4   :  { %v4922_v16 = vadd.f32 %v4921_v34, %v4907_v39  ;;  %v4885_v23 = vadd.f32 %v4884_v38, %v12996_v24  ;;  %v4908_v19 = vmul.f32 %v12996_v24, %v12996_v24  ;;  %v8511_v48 = vpop.f32.mrf.mxu0 }
 0x4a5   :  { %vm4825_vm13 = vcmp.ge.f32.partialorder %v4799_v37, 0.0  ;;  %v4841_v51 = vmul.f32 0.2, %v4799_v37  ;;  %v4810_v42 = vadd.f32 %v8511_v48, %v4713_v0  ;;  %v4859_v32 = vsel %vm4827_vm14, %v4807_v58, %v4843_v28 }
 0x4a6   :  { %v4886_v2 = vadd.f32 %v4885_v23, %v12994_v50  ;;  %v4923_v55 = vadd.f32 %v4922_v16, %v4908_v19  ;;  %v4801_v60 = vpop.f32.mrf.mxu0  ;;  %v4875_v33 = vmul.f32 0.0, %v4859_v32 }
 0x4a7   :  { %v13009_v36 = vsel %vm4825_vm13, %v4799_v37, %v4841_v51  ;;  %v4844_v21 = vmul.f32 0.2, %v4810_v42  ;;  %v4802_v10 = vadd.f32 %v4801_v60, %v4705_v56  ;;  %vm4828_vm15 = vcmp.ge.f32.partialorder %v4810_v42, 0.0  ;;  %v15302_v51 = vld [vmem:[#allocation135_spill] sm:$0xff] }
 0x4a8   :  { %v4924_v14 = vadd.f32 %v4923_v55, %v4909_v4  ;;  %v4873_v45 = vmul.f32 %v15301_v43, %v13009_v36  ;;  %v4887_v47 = vadd.f32 %v4886_v2, %v12999_v11  ;;  %v4913_v22 = vmul.f32 %v4875_v33, %v4859_v32  ;;  %v15303_v2 = vld [vmem:[#allocation163_spill] sm:$0xff] }
 0x4a9   :  { %vm4826_vm0 = vcmp.ge.f32.partialorder %v4802_v10, 0.0  ;;  %v4842_v46 = vmul.f32 0.2, %v4802_v10  ;;  %v4860_v61 = vsel %vm4828_vm15, %v4810_v42, %v4844_v21  ;;  %v4950_v42 = vsub.s32 4, %v15302_v51 }
 0x4aa   :  { %v4888_v26 = vadd.f32 %v4887_v47, %v4873_v45  ;;  %v4911_v13 = vmul.f32 %v4873_v45, %v13009_v36  ;;  %v4925_v17 = vadd.f32 %v4924_v14, %v4910_v54  ;;  %v4876_v57 = vmul.f32 0.0, %v4860_v61 }
 0x4ab   :  { %v4858_v15 = vsel %vm4826_vm0, %v4802_v10, %v4842_v46  ;;  %v4970_v14 = vsub.s32 5, %v15302_v51 }
 0x4ac   :  { %v4926_v12 = vadd.f32 %v4925_v17, %v4911_v13  ;;  %v4874_v25 = vmul.f32 0.0, %v4858_v15  ;;  %v4914_v5 = vmul.f32 %v4876_v57, %v4860_v61 }
 0x4ae   :  { %v4889_v18 = vadd.f32 %v4888_v26, %v4874_v25  ;;  %v4912_v53 = vmul.f32 %v4874_v25, %v4858_v15 }
 0x4b0   :  { %v4890_v30 = vadd.f32 %v4889_v18, %v4875_v33  ;;  %v4927_v6 = vadd.f32 %v4926_v12, %v4912_v53 }
 0x4b2   :  { %v4891_v35 = vadd.f32 %v4890_v30, %v4876_v57  ;;  %v4928_v31 = vadd.f32 %v4927_v6, %v4913_v22 }
 0x4b4   :  { %v4892_v44 = vrot.slane %v4891_v35, 4  ;;  %v4929_v62 = vadd.f32 %v4928_v31, %v4914_v5  ;;  %v15311_v5 = vld [vmem:[#allocation2_spill] sm:$0xff]  ;;  %v15312_v31 = vld [vmem:[#allocation3_spill] sm:$0xff] }
 0x4b6   :  { %v4893_v59 = vadd.f32 %v4892_v44, %v4891_v35  ;;  %v4930_v8 = vrot.slane %v4929_v62, 4 }
 0x4b8   :  { %v4894_v1 = vrot.slane %v4893_v59, 2  ;;  %v4931_v63 = vadd.f32 %v4930_v8, %v4929_v62 }
 0x4ba   :  { %v4895_v58 = vadd.f32 %v4894_v1, %v4893_v59  ;;  %v4932_v38 = vrot.slane %v4931_v63, 2 }
 0x4bc   :  { %v4896_v39 = vrot.slane %v4895_v58, 1  ;;  %v4933_v34 = vadd.f32 %v4932_v38, %v4931_v63  ;;  %v15314_v63 = vld [vmem:[#allocation12_spill] sm:$0xff]  ;;  %v15315_v38 = vld [vmem:[#allocation15_spill] sm:$0xff] }
 0x4be   :  { %v4897_v27 = vadd.f32 %v4896_v39, %v4895_v58  ;;  %v4934_v56 = vrot.slane %v4933_v34, 1 }
 0x4c0   :  { %v4898_v37 = vmul.f32 0.010204081, %v4897_v27  ;;  %v4935_v0 = vadd.f32 %v4934_v56, %v4933_v34  ;;  %v15317_v56 = vld [vmem:[#allocation13_spill] sm:$0xff] }
 0x4c2   :  { %v4936_v16 = vmul.f32 0.010204081, %v4935_v0  ;;  %v4937_v23 = vmul.f32 %v4898_v37, %v4898_v37  ;;  %v15318_v0 = vld [vmem:[#allocation14_spill] sm:$0xff] }
 0x4c4   :  { %v4938_v19 = vsub.f32 %v4936_v16, %v4937_v23 }
 0x4c6   :  { %v4939_v48 = vmax.f32 %v4938_v19, 0.0 }
 0x4c8   :  { %v4940_v28 = vadd.f32 1e-05, %v4939_v48 }
 0x4ca   :  { %9000 = vrsqrt.f32 %v4940_v28 }
 0x4d7   :  { %v9001_v4 = vpop.eup %9000 }
 0x4d8   :  { %v4942_v55 = vmul.f32 %v15303_v2, %v9001_v4 }
 0x4da   :  { %v4943_v60 = vmul.f32 %v4942_v55, %v4898_v37  ;;  %v4951_v54 = vrot.slane %v4942_v55, %v4950_v42  ;;  %v8951_v42 = vld [vmem:[%s14364_s3 + $0x5b8] sm:$0xff]  }
 0x4dc   :  { %v4945_v21 = vrot.slane %v4943_v60, 7  ;;  %v4965_v10 = vmul.f32 %v4951_v54, %v4858_v15  ;;  %v4967_v45 = vmul.f32 %v4951_v54, %v4860_v61  ;;  %v4952_v46 = vmul.f32 %v4951_v54, %v12934_v49 }
 0x4dd   :  { %v4953_v26 = vmul.f32 %v4951_v54, %v12945_v29  ;;  %v4954_v13 = vmul.f32 %v4951_v54, %v12943_v40  ;;  %v4955_v17 = vmul.f32 %v4951_v54, %v12949_v9  ;;  %v13024_v33 = vmul.f32 %v4951_v54, %v12985_v3 }
 0x4de   :  { %v4947_v47 = vsub.f32 %v15303_v2, %v4945_v21  ;;  %v13027_v12 = vmul.f32 %v4951_v54, %v12996_v24  ;;  %v13030_v15 = vmul.f32 %v4951_v54, %v12999_v11  ;;  %v4956_v25 = vmul.f32 %v4951_v54, %v12961_v7 }
 0x4df   :  { %v13036_v49 = vmul.f32 %v4951_v54, %v13009_v36  ;;  %v13038_v29 = vmul.f32 %v4951_v54, %v4859_v32  ;;  %v4957_v40 = vmul.f32 %v4951_v54, %v12971_v52  ;;  %v13042_v9 = vmul.f32 %v4951_v54, %v12969_v20 }
 0x4e0   :  { %v13032_v61 = vrot.slane %v4947_v47, %v4970_v14  ;;  %v13045_v3 = vmul.f32 %v4951_v54, %v12974_v41  ;;  %v13048_v24 = vmul.f32 %v4951_v54, %v12994_v50  ;;  %v15319_v54 = vld [vmem:[#allocation18_spill] sm:$0xff]  ;;  %v8952_v14 = vld [vmem:[%s14364_s3 + $0x5f0] sm:$0xff]  }
 0x4e2   :  { %v13051_v11 = vadd.f32 %v13032_v61, %v4965_v10  ;;  %v13054_v7 = vadd.f32 %v13032_v61, %v4952_v46  ;;  %v13057_v36 = vadd.f32 %v13032_v61, %v4953_v26  ;;  %v13060_v52 = vadd.f32 %v13032_v61, %v4967_v45  ;;  %v15320_v45 = vld [vmem:[#allocation51_spill] sm:$0xff] }
 0x4e3   :  { %v13063_v20 = vadd.f32 %v13032_v61, %v4954_v13  ;;  %v13066_v41 = vadd.f32 %v13032_v61, %v4955_v17  ;;  %v13069_v50 = vadd.f32 %v13032_v61, %v4956_v25  ;;  %v13072_v32 = vadd.f32 %v13032_v61, %v4957_v40  ;;  %v15321_v17 = vld [vmem:[#allocation17_spill] sm:$0xff]  ;;  %v15322_v40 = vld [vmem:[#allocation4_spill] sm:$0xff] }
 0x4e4   :  { %15304 = vst [vmem:[#allocation158_spill] sm:$0xff] %v13051_v11  ;;  %15305 = vst [vmem:[#allocation151_spill] sm:$0xff] %v13054_v7  ;;  %v14677_v57 = vrot.slane %v13060_v52, 1  ;;  %v5030_v18 = vrot.slane %v13054_v7, 1  ;;  %v5031_v53 = vrot.slane %v13057_v36, 1  ;;  %v14676_v22 = vrot.slane %v13060_v52, 7 }
 0x4e5   :  { %15306 = vst [vmem:[#allocation155_spill] sm:$0xff] %v13057_v36  ;;  %15307 = vst [vmem:[#allocation148_spill] sm:$0xff] %v13060_v52  ;;  %v5176_v30 = vrot.slane %v13054_v7, 7  ;;  %v5177_v6 = vrot.slane %v13057_v36, 7  ;;  %v4988_v35 = vmul.f32 %v13060_v52, %v15311_v5  ;;  %v4989_v44 = vmul.f32 %v13054_v7, %v15312_v31 }
 0x4e6   :  { %15308 = vst [vmem:[#allocation156_spill] sm:$0xff] %v13063_v20  ;;  %15309 = vst [vmem:[#allocation153_spill] sm:$0xff] %v13066_v41  ;;  %v13085_v62 = vsel %vm1177_vm4, %v5030_v18, %v5031_v53  ;;  %v13090_v59 = vsel %vm1177_vm4, %v14677_v57, %v5030_v18  ;;  %v14675_v8 = vrot.slane %v13060_v52, 2  ;;  %v5103_v1 = vrot.slane %v13054_v7, 2 }
 0x4e7   :  { %15310 = vst [vmem:[#allocation160_spill] sm:$0xff] %v13072_v32  ;;  %15313 = vst [vmem:[#allocation164_spill] sm:$0xff] %v13090_v59  ;;  %v5077_v58 = vmul.f32 %v13090_v59, %v15314_v63  ;;  %v5078_v39 = vmul.f32 %v13085_v62, %v15315_v38  ;;  %v13099_v34 = vsel %vm1453_vm9, %v5176_v30, %v5177_v6  ;;  %v5104_v19 = vrot.slane %v13057_v36, 2  ;;  %v15324_v63 = vld [vmem:[#allocation31_spill] sm:$0xff]  ;;  %v15364_v59 = vld [vmem:[#allocation62_spill] sm:$0xff] }
 0x4e8   :  { %v13104_v27 = vsel %vm1453_vm9, %v14676_v22, %v5176_v30  ;;  %v5224_v16 = vmul.f32 %v13099_v34, %v15318_v0  ;;  %v5004_v23 = vpack.c.bf16 %v4989_v44, %v4988_v35  ;;  %v5149_v28 = vsel %vm1315_vm11, %v14675_v8, %v5103_v1  ;;  %v15323_v44 = vld [vmem:[#allocation42_spill] sm:$0xff]  ;;  %v15350_v8 = vld [vmem:[#allocation24_spill] sm:$0xff] }
 0x4e9   :  { %15316 = vst [vmem:[#allocation161_spill] sm:$0xff] %v13104_v27  ;;  %v5223_v37 = vmul.f32 %v13104_v27, %v15317_v56  ;;  %v5093_v48 = vpack.c.bf16 %v5078_v39, %v5077_v58  ;;  %v5033_v4 = vrot.slane %v13063_v20, 1  ;;  %v5035_v2 = vrot.slane %v13066_v41, 1  ;;  %v15325_v39 = vld [vmem:[#allocation23_spill] sm:$0xff] }
 0x4ea   :  { %v5105_v60 = vsel %vm1315_vm11, %v5103_v1, %v5104_v19  ;;  %v5150_v21 = vmul.f32 %v5149_v28, %v15319_v54  ;;  %v5179_v10 = vrot.slane %v13063_v20, 7  ;;  %v5181_v13 = vrot.slane %v13066_v41, 7 }
 0x4eb   :  { %v5239_v55 = vpack.c.bf16 %v5224_v16, %v5223_v37  ;;  %6029 = vmatprep.mubr.bf16.mxu1 %v5093_v48  ;;  %v5151_v47 = vmul.f32 %v5105_v60, %v15320_v45  ;;  %v13127_v46 = vsel %vm1177_vm4, %v5031_v53, %v5033_v4  ;;  %v13130_v26 = vsel %vm1177_vm4, %v5033_v4, %v5035_v2  ;;  %v8961_v53 = vld [vmem:[%s14364_s3 + $0x638] sm:$0xff]   ;;  %v15327_v48 = vld [vmem:[#allocation27_spill] sm:$0xff]  ;;  %v8962_v60 = vld [vmem:[%s14364_s3 + $0x670] sm:$0xff]  }
 0x4ec   :  { %6030 = vmatmul.mubr.bf16.vlgmr.msra.gmra.mxu1 %v5004_v23  ;;  %v5079_v25 = vmul.f32 %v13127_v46, %v15321_v17  ;;  %v5080_v18 = vmul.f32 %v13130_v26, %v15322_v40  ;;  %v13138_v30 = vsel %vm1453_vm9, %v5177_v6, %v5179_v10  ;;  %v5106_v5 = vrot.slane %v13063_v20, 2  ;;  %v8953_v6 = vld [vmem:[%s14364_s3 + $0x5b0] sm:$0xff]   ;;  %v15326_v37 = vld [vmem:[#allocation5_spill] sm:$0xff] }
 0x4ed   :  { %6126 = vmatprep.mubr.bf16.mxu0 %v5239_v55  ;;  %v5166_v35 = vpack.c.bf16 %v5151_v47, %v5150_v21  ;;  %8265 = vmatpush3.bf16.msra.mxu1 %v8951_v42  ;;  %v13145_v31 = vsel %vm1453_vm9, %v5179_v10, %v5181_v13  ;;  %v5225_v1 = vmul.f32 %v13138_v30, %v15323_v44  ;;  %v5108_v23 = vrot.slane %v13066_v41, 2  ;;  %v8954_v55 = vld [vmem:[%s14364_s3 + $0x5e8] sm:$0xff]  }
 0x4ee   :  { %v4990_v58 = vmul.f32 %v13057_v36, %v15324_v63  ;;  %v5094_v38 = vpack.c.bf16 %v5080_v18, %v5079_v25  ;;  %v5226_v56 = vmul.f32 %v13145_v31, %v15325_v39  ;;  %8266 = vmatprep.subr.bf16.mxu1 %v8952_v14  ;;  %v4991_v0 = vmul.f32 %v13063_v20, %v15326_v37  ;;  %v8963_v14 = vld [vmem:[%s14364_s3 + $0x630] sm:$0xff]   ;;  %v15329_v25 = vld [vmem:[#allocation7_spill] sm:$0xff] }
 0x4ef   :  { %v5107_v16 = vsel %vm1315_vm11, %v5104_v19, %v5106_v5  ;;  %6127 = vmatmul.mubr.bf16.vlgmr.msra.gmra.mxu0 %v5166_v35  ;;  %v5037_v42 = vrot.slane %v13069_v50, 1  ;;  %v5039_v4 = vrot.slane %v13072_v32, 1  ;;  %v5183_v21 = vrot.slane %v13069_v50, 7  ;;  %v8955_v18 = vld [vmem:[%s14364_s3 + $0x5a8] sm:$0xff]   ;;  %v15331_v35 = vld [vmem:[#allocation6_spill] sm:$0xff] }
 0x4f0   :  { %v5152_v28 = vmul.f32 %v5107_v16, %v15327_v48  ;;  %6037 = vmatprep.mubr.bf16.mxu1 %v5094_v38  ;;  %v5240_v54 = vpack.c.bf16 %v5226_v56, %v5225_v1  ;;  %v5005_v19 = vpack.c.bf16 %v4991_v0, %v4990_v58  ;;  %v5185_v10 = vrot.slane %v13072_v32, 7  ;;  %8329 = vmatpush3.bf16.msra.mxu0 %v8961_v53  ;;  %v15330_v53 = vld [vmem:[#allocation29_spill] sm:$0xff]  ;;  %v15332_v44 = vld [vmem:[#allocation19_spill] sm:$0xff]  ;;  %v8956_v58 = vld [vmem:[%s14364_s3 + $0x5e0] sm:$0xff]  }
 0x4f1   :  { %v5109_v45 = vsel %vm1315_vm11, %v5106_v5, %v5108_v23  ;;  %8267 = vmatpush3.bf16.msra.mxu1 %v8953_v6  ;;  %v13176_v47 = vsel %vm1177_vm4, %v5035_v2, %v5037_v42  ;;  %v13181_v17 = vsel %vm1177_vm4, %v5037_v42, %v5039_v4  ;;  %v13185_v40 = vmul.f32 %v13066_v41, %v15329_v25  ;;  %v15333_v38 = vld [vmem:[#allocation32_spill] sm:$0xff] }
 0x4f2   :  { %15328 = vst [vmem:[#allocation162_spill] sm:$0xff] %v13181_v17  ;;  %6134 = vmatprep.mubr.bf16.mxu0 %v5240_v54  ;;  %v5153_v5 = vmul.f32 %v5109_v45, %v15330_v53  ;;  %v5081_v2 = vmul.f32 %v13176_v47, %v15331_v35  ;;  %v5082_v1 = vmul.f32 %v13181_v17, %v15332_v44  ;;  %v15334_v56 = vld [vmem:[#allocation8_spill] sm:$0xff]  ;;  %v5110_v0 = vrot.slane %v13069_v50, 2 }
 0x4f3   :  { %v13196_v63 = vsel %vm1453_vm9, %v5181_v13, %v5183_v21  ;;  %v13202_v6 = vsel %vm1453_vm9, %v5183_v21, %v5185_v10  ;;  %8268 = vmatprep.subr.bf16.mxu1 %v8954_v55  ;;  %v4993_v37 = vmul.f32 %v13069_v50, %v15334_v56  ;;  %8330 = vmatprep.subr.bf16.mxu0 %v8962_v60  ;;  %v8966_v13 = vld [vmem:[%s14364_s3 + $0x668] sm:$0xff]   ;;  %v15335_v42 = vld [vmem:[#allocation44_spill] sm:$0xff]  ;;  %v5112_v21 = vrot.slane %v13072_v32, 2  ;;  %v15339_v56 = vld [vmem:[#allocation10_spill] sm:$0xff] }
 0x4f4   :  { %v5227_v39 = vmul.f32 %v13196_v63, %v15333_v38  ;;  %6038 = vmatmul.mubr.bf16.gmra.mxu1 %v5005_v19  ;;  %v5167_v16 = vpack.c.bf16 %v5153_v5, %v5152_v28  ;;  %v5095_v48 = vpack.c.bf16 %v5082_v1, %v5081_v2  ;;  %v5228_v54 = vmul.f32 %v13202_v6, %v15335_v42  ;;  %v8967_v55 = vld [vmem:[%s14364_s3 + $0x628] sm:$0xff]   ;;  %v8968_v1 = vld [vmem:[%s14364_s3 + $0x660] sm:$0xff]   ;;  %v15338_v38 = vld [vmem:[#allocation33_spill] sm:$0xff] }
 0x4f5   :  { %8331 = vmatpush3.bf16.msra.mxu0 %v8963_v14  ;;  %v5006_v45 = vpack.c.bf16 %v4993_v37, %v13185_v40  ;;  %v5111_v60 = vsel %vm1315_vm11, %v5108_v23, %v5110_v0  ;;  %8269 = vmatpush3.bf16.msra.mxu1 %v8955_v18  ;;  %v13222_v19 = vadd.f32 %v13032_v61, %v13042_v9  ;;  %v8957_v14 = vld [vmem:[%s14364_s3 + $0x5a0] sm:$0xff]   ;;  %v8958_v9 = vld [vmem:[%s14364_s3 + $0x5d8] sm:$0xff]  }
 0x4f6   :  { %v13226_v28 = vadd.f32 %v13032_v61, %v13045_v3  ;;  %6045 = vmatprep.mubr.bf16.mxu1 %v5095_v48  ;;  %v5241_v25 = vpack.c.bf16 %v5228_v54, %v5227_v39  ;;  %v5113_v53 = vsel %vm1315_vm11, %v5110_v0, %v5112_v21  ;;  %v15336_v40 = vld [vmem:[#allocation54_spill] sm:$0xff]  ;;  %8270 = vmatprep.subr.bf16.mxu1 %v8956_v58  ;;  %v8960_v54 = vld [vmem:[%s14364_s3 + $0x598] sm:$0xff]  }
 0x4f7   :  { %v5154_v5 = vmul.f32 %v5111_v60, %v15336_v40  ;;  %6135 = vmatmul.mubr.bf16.gmra.mxu0 %v5167_v16  ;;  %v15337_v3 = vld [vmem:[#allocation38_spill] sm:$0xff]  ;;  %v5041_v35 = vrot.slane %v13222_v19, 1  ;;  %v5187_v44 = vrot.slane %v13222_v19, 7  ;;  %8332 = vmatprep.subr.bf16.mxu0 %v8966_v13  ;;  %v13247_v39 = vmul.f32 %v13072_v32, %v15338_v38  ;;  %v15343_v40 = vld [vmem:[#allocation41_spill] sm:$0xff] }
 0x4f8   :  { %v5155_v18 = vmul.f32 %v5113_v53, %v15337_v3  ;;  %v5043_v2 = vrot.slane %v13226_v28, 1  ;;  %6142 = vmatprep.mubr.bf16.mxu0 %v5241_v25  ;;  %v5189_v58 = vrot.slane %v13226_v28, 7  ;;  %v13251_v37 = vmul.f32 %v13222_v19, %v15339_v56  ;;  %v15341_v60 = vld [vmem:[#allocation22_spill] sm:$0xff]  ;;  %v15342_v25 = vld [vmem:[#allocation9_spill] sm:$0xff] }
 0x4f9   :  { %v5114_v0 = vrot.slane %v13222_v19, 2  ;;  %8333 = vmatpush3.bf16.msra.mxu0 %v8967_v55  ;;  %v13257_v13 = vsel %vm1177_vm4, %v5039_v4, %v5041_v35  ;;  %v13263_v42 = vsel %vm1453_vm9, %v5185_v10, %v5187_v44  ;;  %8271 = vmatpush3.bf16.msra.mxu1 %v8957_v14  ;;  %v8964_v10 = vld [vmem:[%s14364_s3 + $0x5d0] sm:$0xff]   ;;  %v15344_v14 = vld [vmem:[#allocation43_spill] sm:$0xff]  ;;  %v5116_v38 = vrot.slane %v13226_v28, 2  ;;  %v15345_v56 = vld [vmem:[#allocation46_spill] sm:$0xff] }
 0x4fa   :  { %v5168_v16 = vpack.c.bf16 %v5155_v18, %v5154_v5  ;;  %15340 = vst [vmem:[#allocation152_spill] sm:$0xff] %v13257_v13  ;;  %v13260_v48 = vsel %vm1177_vm4, %v5041_v35, %v5043_v2  ;;  %v5083_v55 = vmul.f32 %v13257_v13, %v15341_v60  ;;  %v13273_v4 = vsel %vm1453_vm9, %v5187_v44, %v5189_v58  ;;  %v15353_v23 = vld [vmem:[#allocation53_spill] sm:$0xff] }
 0x4fb   :  { %v5084_v53 = vmul.f32 %v13260_v48, %v15342_v25  ;;  %v5229_v5 = vmul.f32 %v13263_v42, %v15343_v40  ;;  %8272 = vmatprep.subr.bf16.mxu1 %v8958_v9  ;;  %v5230_v3 = vmul.f32 %v13273_v4, %v15344_v14  ;;  %v5007_v18 = vpack.c.bf16 %v13251_v37, %v13247_v39 }
 0x4fc   :  { %v5115_v35 = vsel %vm1315_vm11, %v5112_v21, %v5114_v0  ;;  %8334 = vmatprep.subr.bf16.mxu0 %v8968_v1  ;;  %6046 = vmatmul.mubr.bf16.gmra.mxu1 %v5006_v45  ;;  %v13291_v9 = vadd.f32 %v13032_v61, %v13024_v33  ;;  %v13295_v25 = vadd.f32 %v13032_v61, %v13027_v12  ;;  %v15346_v21 = vld [vmem:[#allocation35_spill] sm:$0xff]  ;;  %v8965_v33 = vld [vmem:[%s14364_s3 + $0x590] sm:$0xff]  }
 0x4fd   :  { %v5096_v44 = vpack.c.bf16 %v5084_v53, %v5083_v55  ;;  %v13287_v60 = vmul.f32 %v5115_v35, %v15345_v56  ;;  %v5242_v40 = vpack.c.bf16 %v5230_v3, %v5229_v5  ;;  %v5117_v39 = vsel %vm1315_vm11, %v5114_v0, %v5116_v38  ;;  %8273 = vmatpush3.bf16.msra.mxu1 %v8960_v54  ;;  %v15347_v1 = vld [vmem:[#allocation56_spill] sm:$0xff]  ;;  %v8969_v54 = vld [vmem:[%s14364_s3 + $0x620] sm:$0xff]  }
 0x4fe   :  { %v13300_v37 = vmul.f32 %v13226_v28, %v15346_v21  ;;  %v13304_v45 = vadd.f32 %v13032_v61, %v13048_v24  ;;  %v5157_v12 = vmul.f32 %v5117_v39, %v15347_v1  ;;  %v5045_v55 = vrot.slane %v13291_v9, 1  ;;  %8274 = vmatprep.subr.bf16.mxu1 %v8964_v10  ;;  %v15348_v5 = vld [vmem:[#allocation16_spill] sm:$0xff]  ;;  %v8972_v21 = vld [vmem:[%s14364_s3 + $0x658] sm:$0xff]   ;;  %v15349_v1 = vld [vmem:[#allocation11_spill] sm:$0xff]  ;;  %8335 = vmatpush3.bf16.msra.mxu0 %v8969_v54 }
 0x4ff   :  { %6053 = vmatprep.mubr.bf16.mxu1 %v5096_v44  ;;  %v5047_v0 = vrot.slane %v13295_v25, 1  ;;  %v5191_v53 = vrot.slane %v13291_v9, 7  ;;  %6143 = vmatmul.mubr.bf16.gmra.mxu0 %v5168_v16  ;;  %v5193_v24 = vrot.slane %v13295_v25, 7  ;;  %v13319_v14 = vmul.f32 %v13291_v9, %v15348_v5  ;;  %v8970_v44 = vld [vmem:[%s14364_s3 + $0x5c8] sm:$0xff]  }
 0x500   :  { %v5118_v3 = vrot.slane %v13291_v9, 2  ;;  %v5120_v35 = vrot.slane %v13295_v25, 2  ;;  %6150 = vmatprep.mubr.bf16.mxu0 %v5242_v40  ;;  %v5169_v10 = vpack.c.bf16 %v5157_v12, %v13287_v60  ;;  %v13328_v56 = vsel %vm1177_vm4, %v5043_v2, %v5045_v55  ;;  %v15351_v2 = vld [vmem:[#allocation48_spill] sm:$0xff]  ;;  %8336 = vmatprep.subr.bf16.mxu0 %v8972_v21  ;;  %v8977_v21 = vld [vmem:[%s14364_s3 + $0x580] sm:$0xff]  }
 0x501   :  { %v13331_v16 = vsel %vm1177_vm4, %v5045_v55, %v5047_v0  ;;  %v13334_v39 = vsel %vm1453_vm9, %v5189_v58, %v5191_v53  ;;  %v5085_v5 = vmul.f32 %v13328_v56, %v15349_v1  ;;  %v13344_v60 = vsel %vm1453_vm9, %v5191_v53, %v5193_v24  ;;  %8275 = vmatpush3.bf16.msra.mxu1 %v8965_v33  ;;  %v8971_v58 = vld [vmem:[%s14364_s3 + $0x588] sm:$0xff]   ;;  %v15352_v55 = vld [vmem:[#allocation50_spill] sm:$0xff]  ;;  %v8973_v53 = vld [vmem:[%s14364_s3 + $0x618] sm:$0xff]  }
 0x502   :  { %v5086_v40 = vmul.f32 %v13331_v16, %v15350_v8  ;;  %v5231_v12 = vmul.f32 %v13334_v39, %v15351_v2  ;;  %v5232_v22 = vmul.f32 %v13344_v60, %v15352_v55  ;;  %v5008_v1 = vpack.c.bf16 %v13319_v14, %v13300_v37  ;;  %v8976_v33 = vld [vmem:[%s14364_s3 + $0x5c0] sm:$0xff]   ;;  %8276 = vmatprep.subr.bf16.mxu1 %v8970_v44  ;;  %v15356_v44 = vld [vmem:[#allocation37_spill] sm:$0xff] }
 0x503   :  { %v5119_v57 = vsel %vm1315_vm11, %v5116_v38, %v5118_v3  ;;  %v5121_v8 = vsel %vm1315_vm11, %v5118_v3, %v5120_v35  ;;  %v15354_v55 = vld [vmem:[#allocation58_spill] sm:$0xff]  ;;  %v13371_v38 = vadd.f32 %v13032_v61, %v13030_v15  ;;  %v5049_v54 = vrot.slane %v13304_v45, 1  ;;  %v15355_v3 = vld [vmem:[#allocation25_spill] sm:$0xff]  ;;  %8337 = vmatpush3.bf16.msra.mxu0 %v8973_v53  ;;  %v8978_v53 = vld [vmem:[%s14364_s3 + $0x648] sm:$0xff]  }
 0x504   :  { %v5097_v2 = vpack.c.bf16 %v5086_v40, %v5085_v5  ;;  %v13364_v43 = vmul.f32 %v5119_v57, %v15353_v23  ;;  %v13367_v51 = vmul.f32 %v5121_v8, %v15354_v55  ;;  %6054 = vmatmul.mubr.bf16.gmra.mxu1 %v5007_v18  ;;  %v5243_v37 = vpack.c.bf16 %v5232_v22, %v5231_v12  ;;  %v8974_v18 = vld [vmem:[%s14364_s3 + $0x650] sm:$0xff]   ;;  %v15360_v55 = vld [vmem:[#allocation47_spill] sm:$0xff] }
 0x505   :  { %v5195_v14 = vrot.slane %v13304_v45, 7  ;;  %v13377_v5 = vmul.f32 %v13295_v25, %v15355_v3  ;;  %v5051_v23 = vrot.slane %v13371_v38, 1  ;;  %v5197_v15 = vrot.slane %v13371_v38, 7  ;;  %8277 = vmatpush3.bf16.msra.mxu1 %v8971_v58  ;;  %v8975_v58 = vld [vmem:[%s14364_s3 + $0x610] sm:$0xff]   ;;  %8338 = vmatprep.subr.bf16.mxu0 %v8974_v18 }
 0x506   :  { %6061 = vmatprep.mubr.bf16.mxu1 %v5097_v2  ;;  %v5170_v57 = vpack.c.bf16 %v13367_v51, %v13364_v43  ;;  %v13385_v22 = vmul.f32 %v13304_v45, %v15356_v44  ;;  %v13394_v40 = vsel %vm1177_vm4, %v5047_v0, %v5049_v54  ;;  %v5122_v51 = vrot.slane %v13304_v45, 2  ;;  %8278 = vmatprep.subr.bf16.mxu1 %v8976_v33  ;;  %v15358_v2 = vld [vmem:[#allocation20_spill] sm:$0xff]  ;;  %v15362_v33 = vld [vmem:[#allocation21_spill] sm:$0xff]  ;;  %v15363_v44 = vld [vmem:[#allocation59_spill] sm:$0xff] }
 0x507   :  { %v13397_v43 = vsel %vm1453_vm9, %v5193_v24, %v5195_v14  ;;  %v5124_v12 = vrot.slane %v13371_v38, 2  ;;  %6151 = vmatmul.mubr.bf16.gmra.mxu0 %v5169_v10  ;;  %v13405_v8 = vsel %vm1177_vm4, %v5049_v54, %v5051_v23  ;;  %v5087_v0 = vmul.f32 %v13394_v40, %v15358_v2  ;;  %v13420_v10 = vld [vmem:[%s14364_s3 + $0x6b8] sm:$0xff]  }
 0x508   :  { %15357 = vst [vmem:[#allocation159_spill] sm:$0xff] %v13405_v8  ;;  %v13410_v24 = vsel %vm1453_vm9, %v5195_v14, %v5197_v15  ;;  %v5233_v3 = vmul.f32 %v13397_v43, %v15360_v55  ;;  %15361 = vst [vmem:[#allocation154_spill] sm:$0xff] %v13420_v10  ;;  %6158 = vmatprep.mubr.bf16.mxu0 %v5243_v37  ;;  %v5088_v54 = vmul.f32 %v13405_v8, %v15362_v33  ;;  %v15366_v8 = vld [vmem:[#allocation34_spill] sm:$0xff] }
 0x509   :  { %15359 = vst [vmem:[#allocation165_spill] sm:$0xff] %v13410_v24  ;;  %v5234_v14 = vmul.f32 %v13410_v24, %v15363_v44  ;;  %v5009_v2 = vpack.c.bf16 %v13385_v22, %v13377_v5  ;;  %v5123_v55 = vsel %vm1315_vm11, %v5120_v35, %v5122_v51  ;;  %v5125_v27 = vsel %vm1315_vm11, %v5122_v51, %v5124_v12  ;;  %v15365_v44 = vld [vmem:[#allocation66_spill] sm:$0xff]  ;;  %v15367_v22 = vld [vmem:[#allocation36_spill] sm:$0xff] }
 0x50a   :  { %v5160_v32 = vmul.f32 %v5123_v55, %v15364_v59  ;;  %v13433_v13 = vadd.f32 %v13032_v61, %v13036_v49  ;;  %v5201_v37 = vrot.slane %v13051_v11, 7  ;;  %8279 = vmatpush3.bf16.msra.mxu1 %v8977_v21  ;;  %v5098_v33 = vpack.c.bf16 %v5088_v54, %v5087_v0  ;;  %8339 = vmatpush3.bf16.msra.mxu0 %v8975_v58  ;;  %v8979_v59 = vld [vmem:[%s14364_s3 + $0x608] sm:$0xff]   ;;  %v15373_v55 = vld [vmem:[#allocation49_spill] sm:$0xff] }
 0x50b   :  { %v5244_v17 = vpack.c.bf16 %v5234_v14, %v5233_v3  ;;  %v5161_v24 = vmul.f32 %v5125_v27, %v15365_v44  ;;  %v13439_v5 = vmul.f32 %v13371_v38, %v15366_v8  ;;  %8340 = vmatprep.subr.bf16.mxu0 %v8978_v53  ;;  %v8980_v27 = vld [vmem:[%s14364_s3 + $0x640] sm:$0xff]   ;;  %8512 = vmatprep.subr.bf16.mxu1 %v13420_v10  ;;  %v5128_v58 = vrot.slane %v13051_v11, 2  ;;  %v15372_v14 = vld [vmem:[#allocation73_spill] sm:$0xff] }
 0x50c   :  { %v5053_v49 = vrot.slane %v13433_v13, 1  ;;  %v5199_v35 = vrot.slane %v13433_v13, 7  ;;  %v13448_v18 = vmul.f32 %v13433_v13, %v15367_v22  ;;  %v5126_v21 = vrot.slane %v13433_v13, 2  ;;  %6062 = vmatmul.mubr.bf16.gmra.mxu1 %v5008_v1  ;;  %v15370_v1 = vld [vmem:[#allocation26_spill] sm:$0xff] }
 0x50d   :  { %v5171_v51 = vpack.c.bf16 %v5161_v24, %v5160_v32  ;;  %v13458_v8 = vadd.f32 %v13032_v61, %v13038_v29  ;;  %6069 = vmatprep.mubr.bf16.mxu1 %v5098_v33  ;;  %v15368_v3 = vrot.slane %v13051_v11, 1  ;;  %v15371_v61 = vld [vmem:[#allocation30_spill] sm:$0xff] }
 0x50e   :  { %v13461_v0 = vsel %vm1177_vm4, %v5051_v23, %v5053_v49  ;;  %v13469_v54 = vsel %vm1453_vm9, %v5197_v15, %v5199_v35  ;;  %v13472_v32 = vsel %vm1453_vm9, %v5199_v35, %v5201_v37  ;;  %8341 = vmatpush3.bf16.msra.mxu0 %v8979_v59  ;;  %v8981_v15 = vld [vmem:[%s14364_s3 + $0x600] sm:$0xff]   ;;  %v5010_v44 = vpack.c.bf16 %v13448_v18, %v13439_v5 }
 0x50f   :  { %v13466_v53 = vsel %vm1177_vm4, %v5053_v49, %v15368_v3  ;;  %15369 = vst [vmem:[#allocation157_spill] sm:$0xff] %v13472_v32  ;;  %v5089_v24 = vmul.f32 %v13461_v0, %v15370_v1  ;;  %v5235_v23 = vmul.f32 %v13469_v54, %v15372_v14  ;;  %v5236_v33 = vmul.f32 %v13472_v32, %v15373_v55  ;;  %v15375_v14 = vld [vmem:[#allocation83_spill] sm:$0xff] }
 0x510   :  { %v5090_v29 = vmul.f32 %v13466_v53, %v15371_v61  ;;  %6159 = vmatmul.mubr.bf16.gmra.mxu0 %v5170_v57  ;;  %v5127_v49 = vsel %vm1315_vm11, %v5124_v12, %v5126_v21  ;;  %v5129_v35 = vsel %vm1315_vm11, %v5126_v21, %v5128_v58  ;;  %v5057_v22 = vrot.slane %v13458_v8, 1  ;;  %8342 = vmatprep.subr.bf16.mxu0 %v8980_v27  ;;  %v15374_v61 = vld [vmem:[#allocation61_spill] sm:$0xff] }
 0x511   :  { %6166 = vmatprep.mubr.bf16.mxu0 %v5244_v17  ;;  %v5245_v1 = vpack.c.bf16 %v5236_v33, %v5235_v23  ;;  %v5162_v59 = vmul.f32 %v5127_v49, %v15374_v61  ;;  %v5163_v55 = vmul.f32 %v5129_v35, %v15375_v14  ;;  %v5203_v32 = vrot.slane %v13458_v8, 7  ;;  %v15382_v33 = vld [vmem:[#allocation28_spill] sm:$0xff]  ;;  %v15386_v14 = vld [vmem:[#allocation93_spill] sm:$0xff] }
 0x512   :  { %v5099_v3 = vpack.c.bf16 %v5090_v29, %v5089_v24  ;;  %v5130_v10 = vrot.slane %v13458_v8, 2  ;;  %8343 = vmatpush3.bf16.msra.mxu0 %v8981_v15  ;;  %v15376_v12 = vrot.slane %v13051_v11, 1  ;;  %v15377_v18 = vrot.slane %v13060_v52, 1  ;;  %v15381_v29 = vld [vmem:[#allocation39_spill] sm:$0xff]  ;;  %v15385_v61 = vld [vmem:[#allocation92_spill] sm:$0xff] }
 0x513   :  { %v5172_v57 = vpack.c.bf16 %v5163_v55, %v5162_v59  ;;  %v13505_v21 = vsel %vm1453_vm9, %v5201_v37, %v5203_v32  ;;  %v15379_v27 = vrot.slane %v13060_v52, 7  ;;  %v15383_v35 = vrot.slane %v13060_v52, 2  ;;  %v15384_v37 = vld [vmem:[#allocation40_spill] sm:$0xff] }
 0x514   :  { %v13497_v5 = vsel %vm1177_vm4, %v15376_v12, %v5057_v22  ;;  %v13502_v17 = vsel %vm1177_vm4, %v5057_v22, %v15377_v18  ;;  %6070 = vmatmul.mubr.bf16.gmra.mxu1 %v5009_v2  ;;  %v5131_v49 = vsel %vm1315_vm11, %v5128_v58, %v5130_v10  ;;  %v5002_v22 = vmul.f32 %v13051_v11, %v15384_v37  ;;  %v15387_v58 = vld [vmem:[#allocation45_spill] sm:$0xff]  ;;  %v15391_v37 = vld [vmem:[#allocation52_spill] sm:$0xff] }
 0x515   :  { %15378 = vst [vmem:[#allocation149_spill] sm:$0xff] %v13502_v17  ;;  %6077 = vmatprep.mubr.bf16.mxu1 %v5099_v3  ;;  %v13510_v24 = vsel %vm1453_vm9, %v5203_v32, %v15379_v27  ;;  %v5091_v23 = vmul.f32 %v13497_v5, %v15381_v29  ;;  %v5092_v15 = vmul.f32 %v13502_v17, %v15382_v33  ;;  %v5296_v32 = vrot.slane %v13057_v36, 6  ;;  %v15389_v27 = vld [vmem:[#allocation64_spill] sm:$0xff]  ;;  %v15390_v33 = vld [vmem:[#allocation87_spill] sm:$0xff] }
 0x516   :  { %15380 = vst [vmem:[#allocation150_spill] sm:$0xff] %v13510_v24  ;;  %v5132_v2 = vsel %vm1315_vm11, %v5130_v10, %v15383_v35  ;;  %v5237_v59 = vmul.f32 %v13505_v21, %v15385_v61  ;;  %v5238_v55 = vmul.f32 %v13510_v24, %v15386_v14  ;;  %v5003_v12 = vmul.f32 %v13458_v8, %v15387_v58  ;;  %v15392_v61 = vld [vmem:[#allocation113_spill] sm:$0xff]  ;;  %v15393_v14 = vld [vmem:[#allocation112_spill] sm:$0xff]  ;;  %v15394_v58 = vld [vmem:[#allocation55_spill] sm:$0xff] }
 0x517   :  { %v5298_v10 = vrot.slane %v13063_v20, 6  ;;  %v5165_v29 = vmul.f32 %v5132_v2, %v15389_v27  ;;  %v5271_v35 = vmul.f32 %v13085_v62, %v15390_v33  ;;  %v5100_v3 = vpack.c.bf16 %v5092_v15, %v5091_v23  ;;  %v15397_v15 = vld [vmem:[#allocation60_spill] sm:$0xff]  ;;  %v15398_v27 = vld [vmem:[#allocation91_spill] sm:$0xff] }
 0x518   :  { %6167 = vmatmul.mubr.bf16.gmra.mxu0 %v5171_v51  ;;  %v15388_v51 = vld [vmem:[#allocation101_spill] sm:$0xff]  ;;  %v5368_v52 = vmul.f32 %v13099_v34, %v15392_v61  ;;  %v5369_v24 = vmul.f32 %v13138_v30, %v15393_v14  ;;  %v13543_v17 = vmul.f32 %v13054_v7, %v15394_v58  ;;  %v15396_v62 = vrot.slane %v13054_v7, 6  ;;  %v15399_v14 = vld [vmem:[#allocation70_spill] sm:$0xff]  ;;  %v15441_v7 = vld [vmem:[#allocation131_spill] sm:$0xff] }
 0x519   :  { %6174 = vmatprep.mubr.bf16.mxu0 %v5245_v1  ;;  %v5164_v18 = vmul.f32 %v5131_v49, %v15388_v51  ;;  %v5272_v1 = vmul.f32 %v13127_v46, %v15391_v37  ;;  %v15395_v49 = vld [vmem:[#allocation57_spill] sm:$0xff]  ;;  %v5299_v46 = vsel %vm1765_vm5, %v5296_v32, %v5298_v10  ;;  %v5246_v23 = vpack.c.bf16 %v5238_v55, %v5237_v59  ;;  %v15403_v55 = vld [vmem:[#allocation63_spill] sm:$0xff] }
 0x51a   :  { %v13547_v2 = vmul.f32 %v13057_v36, %v15395_v49  ;;  %v5297_v51 = vsel %vm1765_vm5, %v15396_v62, %v5296_v32  ;;  %v5011_v34 = vpack.c.bf16 %v5003_v12, %v5002_v22  ;;  %v13555_v30 = vmul.f32 %v13130_v26, %v15397_v15  ;;  %v15400_v49 = vld [vmem:[#allocation114_spill] sm:$0xff]  ;;  %v15401_v22 = vld [vmem:[#allocation65_spill] sm:$0xff]  ;;  %v15402_v26 = vld [vmem:[#allocation76_spill] sm:$0xff] }
 0x51b   :  { %v13559_v33 = vmul.f32 %v13176_v47, %v15398_v27  ;;  %v5173_v37 = vpack.c.bf16 %v5165_v29, %v5164_v18  ;;  %v5287_v61 = vpack.c.bf16 %v5272_v1, %v5271_v35  ;;  %v13563_v58 = vmul.f32 %v13145_v31, %v15399_v14  ;;  %v15405_v18 = vld [vmem:[#allocation67_spill] sm:$0xff]  ;;  %v15430_v1 = vld [vmem:[#allocation84_spill] sm:$0xff] }
 0x51c   :  { %6078 = vmatmul.mubr.bf16.gmra.mxu1 %v5010_v44  ;;  %v13567_v44 = vmul.f32 %v13202_v6, %v15400_v49  ;;  %v13570_v32 = vmul.f32 %v5297_v51, %v15401_v22  ;;  %v13573_v59 = vmul.f32 %v5299_v46, %v15402_v26  ;;  %v13577_v47 = vmul.f32 %v13196_v63, %v15403_v55  ;;  %v15409_v46 = vld [vmem:[#allocation81_spill] sm:$0xff]  ;;  %v15411_v14 = vld [vmem:[#allocation103_spill] sm:$0xff]  ;;  %v15427_v26 = vld [vmem:[#allocation130_spill] sm:$0xff] }
 0x51d   :  { %6085 = vmatprep.mubr.bf16.mxu1 %v5100_v3  ;;  %v15404_v3 = vld [vmem:[#allocation117_spill] sm:$0xff]  ;;  %v5384_v31 = vpack.c.bf16 %v5369_v24, %v5368_v52  ;;  %v5263_v6 = vpack.c.bf16 %v13547_v2, %v13543_v17  ;;  %v13587_v29 = vmul.f32 %v13063_v20, %v15405_v18  ;;  %v5300_v35 = vrot.slane %v13066_v41, 6  ;;  %v15412_v49 = vld [vmem:[#allocation107_spill] sm:$0xff]  ;;  %v15440_v20 = vld [vmem:[#allocation152_spill] sm:$0xff] }
 0x51e   :  { %v13581_v12 = vmul.f32 %v13263_v42, %v15404_v3  ;;  %v5288_v63 = vpack.c.bf16 %v13559_v33, %v13555_v30  ;;  %v15406_v42 = vld [vmem:[#allocation96_spill] sm:$0xff]  ;;  %v15407_v52 = vld [vmem:[#allocation97_spill] sm:$0xff]  ;;  %v14694_v62 = vrot.slane %v13069_v50, 6  ;;  %v14693_v51 = vrot.slane %v13222_v19, 6  ;;  %v15414_v55 = vld [vmem:[#allocation111_spill] sm:$0xff] }
 0x51f   :  { %v13600_v17 = vmul.f32 %v13328_v56, %v15407_v52  ;;  %v15408_v24 = vld [vmem:[#allocation69_spill] sm:$0xff]  ;;  %v15410_v30 = vld [vmem:[#allocation72_spill] sm:$0xff]  ;;  %v13623_v33 = vsel %vm1765_vm5, %v5298_v10, %v5300_v35  ;;  %v13631_v22 = vmul.f32 %v13226_v28, %v15412_v49  ;;  %v13643_v3 = vmul.f32 %v13394_v40, %v15414_v55  ;;  %v15415_v52 = vld [vmem:[#allocation122_spill] sm:$0xff] }
 0x520   :  { %6175 = vmatmul.mubr.bf16.gmra.mxu0 %v5172_v57  ;;  %v13596_v57 = vmul.f32 %v13260_v48, %v15406_v42  ;;  %v13604_v2 = vmul.f32 %v13066_v41, %v15408_v24  ;;  %v5360_v48 = vpack.c.bf16 %v13573_v59, %v13570_v32  ;;  %v13620_v27 = vmul.f32 %v13334_v39, %v15410_v30  ;;  %v15413_v59 = vld [vmem:[#allocation99_spill] sm:$0xff]  ;;  %v15420_v55 = vld [vmem:[#allocation116_spill] sm:$0xff]  ;;  %v15439_v41 = vld [vmem:[#allocation78_spill] sm:$0xff] }
 0x521   :  { %6182 = vmatprep.mubr.bf16.mxu0 %v5246_v23  ;;  %v13610_v23 = vmul.f32 %v13273_v4, %v15409_v46  ;;  %v13627_v4 = vmul.f32 %v13222_v19, %v15411_v14  ;;  %v5308_v32 = vrot.slane %v13226_v28, 6  ;;  %v5310_v39 = vrot.slane %v13291_v9, 6  ;;  %v15416_v40 = vld [vmem:[#allocation119_spill] sm:$0xff]  ;;  %v15418_v14 = vld [vmem:[#allocation120_spill] sm:$0xff] }
 0x522   :  { %v13639_v10 = vmul.f32 %v13331_v16, %v15413_v59  ;;  %v5303_v18 = vsel %vm1765_vm5, %v5300_v35, %v14694_v62  ;;  %v13655_v16 = vmul.f32 %v13344_v60, %v15415_v52  ;;  %v15417_v35 = vld [vmem:[#allocation79_spill] sm:$0xff]  ;;  %v15425_v52 = vld [vmem:[#allocation165_spill] sm:$0xff]  ;;  %v15438_v62 = vld [vmem:[#allocation162_spill] sm:$0xff]  ;;  %v5276_v36 = vmul.f32 %v15440_v20, %v15439_v41 }
 0x523   :  { %v5309_v42 = vsel %vm1765_vm5, %v14693_v51, %v5308_v32  ;;  %v5311_v24 = vsel %vm1765_vm5, %v5308_v32, %v5310_v39  ;;  %v13665_v30 = vmul.f32 %v13397_v43, %v15417_v35  ;;  %v15419_v59 = vld [vmem:[#allocation115_spill] sm:$0xff]  ;;  %v13676_v32 = vmul.f32 %v13295_v25, %v15420_v55  ;;  %v15423_v35 = vld [vmem:[#allocation102_spill] sm:$0xff] }
 0x524   :  { %6086 = vmatmul.mubr.bf16.gmra.mxu1 %v5011_v34  ;;  %v13659_v46 = vmul.f32 %v5309_v42, %v15416_v40  ;;  %v13668_v49 = vmul.f32 %v5311_v24, %v15418_v14  ;;  %v13672_v60 = vmul.f32 %v13291_v9, %v15419_v59  ;;  %v5312_v42 = vrot.slane %v13295_v25, 6  ;;  %v15422_v40 = vld [vmem:[#allocation159_spill] sm:$0xff]  ;;  %v15433_v59 = vld [vmem:[#allocation154_spill] sm:$0xff] }
 0x525   :  { %6223 = vmatprep.mubr.bf16.mxu1 %v5287_v61  ;;  %v5314_v43 = vrot.slane %v13304_v45, 6  ;;  %v13688_v14 = vmul.f32 %v13461_v0, %v15423_v35  ;;  %v15424_v61 = vld [vmem:[#allocation129_spill] sm:$0xff]  ;;  %v13710_v55 = vmul.f32 %v13469_v54, %v15427_v26  ;;  %v5318_v54 = vrot.slane %v13433_v13, 6 }
 0x526   :  { %v13697_v34 = vmul.f32 %v15425_v52, %v15424_v61  ;;  %v15426_v0 = vld [vmem:[#allocation121_spill] sm:$0xff]  ;;  %v15429_v61 = vld [vmem:[#allocation75_spill] sm:$0xff]  ;;  %v5320_v51 = vrot.slane %v13051_v11, 6  ;;  %v15451_v41 = vrot.slane %v13069_v50, 6 }
 0x527   :  { %v13717_v52 = vmul.f32 %v13304_v45, %v15429_v61  ;;  %v15431_v26 = vld [vmem:[#allocation89_spill] sm:$0xff] }
 0x528   :  { %6183 = vmatmul.mubr.bf16.gmra.mxu0 %v5173_v37  ;;  %v15421_v37 = vld [vmem:[#allocation77_spill] sm:$0xff] }
 0x529   :  { %6320 = vmatprep.mubr.bf16.mxu0 %v5384_v31  ;;  %v13684_v24 = vmul.f32 %v15422_v40, %v15421_v37  ;;  %v5313_v31 = vsel %vm1765_vm5, %v5310_v39, %v5312_v42  ;;  %v8983_v37 = vld [vmem:[%s14364_s3 + $0x6b0] sm:$0xff]   ;;  %v5315_v40 = vsel %vm1765_vm5, %v5312_v42, %v5314_v43  ;;  %v15428_v39 = vld [vmem:[#allocation126_spill] sm:$0xff]  ;;  %v13721_v42 = vmul.f32 %v13371_v38, %v15430_v1  ;;  %v15436_v1 = vld [vmem:[#allocation157_spill] sm:$0xff] }
 0x52a   :  { %v13704_v35 = vmul.f32 %v5313_v31, %v15426_v0  ;;  %v13713_v56 = vmul.f32 %v5315_v40, %v15428_v39  ;;  %v5316_v31 = vrot.slane %v13371_v38, 6  ;;  %v13729_v40 = vmul.f32 %v13466_v53, %v15431_v26  ;;  %v15432_v39 = vld [vmem:[#allocation86_spill] sm:$0xff]  ;;  %v8984_v53 = vld [vmem:[%s14364_s3 + $0x6a8] sm:$0xff]  }
 0x52b   :  { %v13733_v61 = vmul.f32 %v13497_v5, %v15432_v39  ;;  %v15434_v26 = vld [vmem:[#allocation98_spill] sm:$0xff] }
 0x52c   :  { %6224 = vmatmul.mubr.bf16.vlgmr.msra.gmra.mxu1 %v5263_v6  ;;  %v5317_v0 = vsel %vm1765_vm5, %v5314_v43, %v5316_v31  ;;  %v5319_v5 = vsel %vm1765_vm5, %v5316_v31, %v5318_v54  ;;  %v15435_v39 = vld [vmem:[#allocation134_spill] sm:$0xff]  ;;  %v15442_v31 = vld [vmem:[#allocation136_spill] sm:$0xff] }
 0x52d   :  { %8513 = vmatpush3.bf16.msra.mxu1 %v15433_v59  ;;  %6231 = vmatprep.mubr.bf16.mxu1 %v5288_v63  ;;  %v13747_v59 = vmul.f32 %v5317_v0, %v15434_v26  ;;  %v5293_v63 = vpack.c.bf16 %v13733_v61, %v13729_v40  ;;  %v13753_v6 = vmul.f32 %v15436_v1, %v15435_v39  ;;  %v15437_v43 = vld [vmem:[#allocation74_spill] sm:$0xff]  ;;  %v15444_v1 = vld [vmem:[#allocation85_spill] sm:$0xff]  ;;  %v15483_v61 = vld [vmem:[#allocation143_spill] sm:$0xff] }
 0x52e   :  { %8514 = vmatprep.subr.bf16.mxu1 %v8983_v37  ;;  %v5275_v15 = vmul.f32 %v15438_v62, %v15437_v43  ;;  %v13760_v11 = vmul.f32 %v5319_v5, %v15441_v7  ;;  %v13764_v0 = vmul.f32 %v13505_v21, %v15442_v31  ;;  %v15443_v26 = vpack.c.bf16 %v13577_v47, %v13563_v58  ;;  %v15445_v43 = vld [vmem:[#allocation68_spill] sm:$0xff]  ;;  %v15446_v21 = vld [vmem:[#allocation123_spill] sm:$0xff] }
 0x52f   :  { %v5321_v39 = vsel %vm1765_vm5, %v5318_v54, %v5320_v51  ;;  %v5322_v62 = vrot.slane %v13458_v8, 6  ;;  %v5347_v20 = vmul.f32 %v5303_v18, %v15445_v43  ;;  %v5264_v58 = vpack.c.bf16 %v13604_v2, %v13587_v29  ;;  %v15447_v47 = vld [vmem:[#allocation160_spill] sm:$0xff]  ;;  %v8985_v18 = vld [vmem:[%s14364_s3 + $0x6a0] sm:$0xff]   ;;  %v15448_v31 = vld [vmem:[#allocation139_spill] sm:$0xff] }
 0x530   :  { %6321 = vmatmul.mubr.bf16.vlgmr.msra.gmra.mxu0 %v5360_v48  ;;  %v5346_v48 = vmul.f32 %v13623_v33, %v15444_v1  ;;  %v5365_v7 = vpack.c.bf16 %v13760_v11, %v13747_v59  ;;  %v13779_v5 = vmul.f32 %v5321_v39, %v15446_v21  ;;  %v5304_v33 = vrot.slane %v15447_v47, 6  ;;  %v15449_v2 = vld [vmem:[#allocation88_spill] sm:$0xff]  ;;  %v15450_v43 = vld [vmem:[#allocation71_spill] sm:$0xff] }
 0x531   :  { %6328 = vmatprep.mubr.bf16.mxu0 %v15443_v26  ;;  %8515 = vmatpush3.bf16.msra.mxu1 %v8983_v37  ;;  %v5323_v37 = vsel %vm1765_vm5, %v5320_v51, %v5322_v62  ;;  %v5289_v54 = vpack.c.bf16 %v5276_v36, %v5275_v15  ;;  %v5251_v39 = vmul.f32 %v13069_v50, %v15449_v2  ;;  %v15452_v51 = vrot.slane %v13222_v19, 6 }
 0x532   :  { %8516 = vmatprep.subr.bf16.mxu1 %v8984_v53  ;;  %v13791_v26 = vmul.f32 %v5323_v37, %v15448_v31  ;;  %v5361_v1 = vpack.c.bf16 %v5347_v20, %v5346_v48  ;;  %v5252_v21 = vmul.f32 %v15447_v47, %v15450_v43  ;;  %v5305_v36 = vsel %vm1765_vm5, %v15451_v41, %v5304_v33  ;;  %v15453_v48 = vld [vmem:[#allocation133_spill] sm:$0xff]  ;;  %v15455_v37 = vld [vmem:[#allocation132_spill] sm:$0xff] }
 0x533   :  { %v5307_v15 = vsel %vm1765_vm5, %v5304_v33, %v15452_v51  ;;  %v13810_v20 = vmul.f32 %v13226_v28, %v15453_v48  ;;  %v13817_v41 = vmul.f32 %v13291_v9, %v15455_v37  ;;  %v15457_v31 = vld [vmem:[#allocation137_spill] sm:$0xff]  ;;  %v8989_v37 = vld [vmem:[%s14364_s3 + $0x680] sm:$0xff]  }
 0x534   :  { %6232 = vmatmul.mubr.bf16.gmra.mxu1 %v5264_v58  ;;  %v5366_v29 = vpack.c.bf16 %v13791_v26, %v13779_v5  ;;  %v15454_v58 = vpack.c.bf16 %v13581_v12, %v13567_v44  ;;  %v13825_v2 = vmul.f32 %v13304_v45, %v15457_v31  ;;  %v15459_v28 = vld [vmem:[#allocation109_spill] sm:$0xff]  ;;  %v15461_v12 = vld [vmem:[#allocation140_spill] sm:$0xff]  ;;  %v15498_v26 = vld [vmem:[#allocation127_spill] sm:$0xff] }
 0x535   :  { %6239 = vmatprep.mubr.bf16.mxu1 %v5289_v54  ;;  %8517 = vmatpush3.bf16.msra.mxu1 %v8984_v53  ;;  %v8986_v53 = vld [vmem:[%s14364_s3 + $0x698] sm:$0xff]   ;;  %v15456_v54 = vld [vmem:[#allocation110_spill] sm:$0xff]  ;;  %v5349_v51 = vmul.f32 %v5307_v15, %v15459_v28  ;;  %v13835_v9 = vmul.f32 %v13433_v13, %v15461_v12  ;;  %v5411_v45 = vpack.c.bf16 %v13817_v41, %v13810_v20  ;;  %v15485_v31 = vld [vmem:[#allocation148_spill] sm:$0xff] }
 0x536   :  { %8518 = vmatprep.subr.bf16.mxu1 %v8985_v18  ;;  %v13821_v33 = vmul.f32 %v13295_v25, %v15456_v54  ;;  %v15460_v48 = vld [vmem:[#allocation141_spill] sm:$0xff]  ;;  %v8987_v25 = vld [vmem:[%s14364_s3 + $0x690] sm:$0xff]   ;;  %v15462_v15 = vpack.c.bf16 %v13600_v17, %v13596_v57  ;;  %v15464_v57 = vpack.c.bf16 %v13631_v22, %v13627_v4  ;;  %v15465_v17 = vpack.c.bf16 %v13643_v3, %v13639_v10  ;;  %v15504_v41 = vld [vmem:[#allocation146_spill] sm:$0xff] }
 0x537   :  { %v13831_v44 = vmul.f32 %v13371_v38, %v15460_v48  ;;  %v15469_v4 = vpack.c.bf16 %v13688_v14, %v13684_v24  ;;  %v15470_v22 = vpack.c.bf16 %v13713_v56, %v13704_v35  ;;  %v15471_v10 = vpack.c.bf16 %v13710_v55, %v13697_v34  ;;  %v15476_v56 = vld [vmem:[#allocation108_spill] sm:$0xff]  ;;  %v15477_v34 = vld [vmem:[#allocation149_spill] sm:$0xff]  ;;  %v15478_v24 = vld [vmem:[#allocation118_spill] sm:$0xff] }
 0x538   :  { %6329 = vmatmul.mubr.bf16.gmra.mxu0 %v5361_v1  ;;  %v15458_v1 = vld [vmem:[#allocation90_spill] sm:$0xff]  ;;  %v15472_v3 = vpack.c.bf16 %v13721_v42, %v13717_v52  ;;  %v15479_v14 = vld [vmem:[#allocation164_spill] sm:$0xff]  ;;  %v15480_v35 = vpack.c.bf16 %v13764_v0, %v13753_v6  ;;  %v5324_v11 = vrot.slane %v15485_v31, 6 }
 0x539   :  { %6336 = vmatprep.mubr.bf16.mxu0 %v15454_v58  ;;  %v5348_v43 = vmul.f32 %v5305_v36, %v15458_v1  ;;  %8519 = vmatpush3.bf16.msra.mxu1 %v8985_v18  ;;  %v5265_v58 = vpack.c.bf16 %v5252_v21, %v5251_v39  ;;  %v5412_v18 = vpack.c.bf16 %v13825_v2, %v13821_v33  ;;  %v8988_v39 = vld [vmem:[%s14364_s3 + $0x688] sm:$0xff]   ;;  %v15481_v42 = vld [vmem:[#allocation142_spill] sm:$0xff]  ;;  %v15487_v28 = vld [vmem:[#allocation100_spill] sm:$0xff] }
 0x53a   :  { %8520 = vmatprep.subr.bf16.mxu1 %v8986_v53  ;;  %v5413_v38 = vpack.c.bf16 %v13835_v9, %v13831_v44  ;;  %v15463_v21 = vpack.c.bf16 %v13620_v27, %v13610_v23  ;;  %v15466_v23 = vpack.c.bf16 %v13668_v49, %v13659_v46  ;;  %v15467_v27 = vpack.c.bf16 %v13665_v30, %v13655_v16  ;;  %v15473_v16 = vld [vmem:[#allocation94_spill] sm:$0xff]  ;;  %v15474_v30 = vld [vmem:[#allocation80_spill] sm:$0xff]  ;;  %v15505_v2 = vld [vmem:[#allocation135_spill] sm:$0xff] }
 0x53b   :  { %v5362_v36 = vpack.c.bf16 %v5349_v51, %v5348_v43  ;;  %v5259_v46 = vmul.f32 %v13433_v13, %v15473_v16  ;;  %v15475_v49 = vld [vmem:[#allocation158_spill] sm:$0xff]  ;;  %v5286_v55 = vmul.f32 %v15479_v14, %v15478_v24  ;;  %v5262_v6 = vmul.f32 %v15485_v31, %v15487_v28  ;;  %v15488_v51 = vld [vmem:[#allocation151_spill] sm:$0xff]  ;;  %v15500_v16 = vld [vmem:[#allocation105_spill] sm:$0xff] }
 0x53c   :  { %6240 = vmatmul.mubr.bf16.gmra.mxu1 %v5265_v58  ;;  %v15482_v13 = vld [vmem:[#allocation150_spill] sm:$0xff]  ;;  %v5325_v0 = vsel %vm1765_vm5, %v5322_v62, %v5324_v11  ;;  %v15489_v48 = vrot.slane %v15488_v51, 6  ;;  %v15490_v58 = vld [vmem:[#allocation104_spill] sm:$0xff] }
 0x53d   :  { %6247 = vmatprep.mubr.bf16.mxu1 %v15462_v15  ;;  %8521 = vmatpush3.bf16.msra.mxu1 %v8986_v53  ;;  %v15468_v53 = vpack.c.bf16 %v13676_v32, %v13672_v60  ;;  %v5260_v60 = vmul.f32 %v15475_v49, %v15474_v30  ;;  %v5285_v32 = vmul.f32 %v15477_v34, %v15476_v56  ;;  %v15492_v15 = vld [vmem:[#allocation124_spill] sm:$0xff] }
 0x53e   :  { %8522 = vmatprep.subr.bf16.mxu1 %v8987_v25  ;;  %v5382_v40 = vmul.f32 %v15482_v13, %v15481_v42  ;;  %v5343_v12 = vsel %vm1765_vm5, %v5324_v11, %v15489_v48  ;;  %v15502_v34 = vld [vmem:[#allocation144_spill] sm:$0xff] }
 0x53f   :  { %v5269_v52 = vpack.c.bf16 %v5260_v60, %v5259_v46  ;;  %v5294_v59 = vpack.c.bf16 %v5286_v55, %v5285_v32  ;;  %v5397_v46 = vmul.f32 %v13222_v19, %v15500_v16  ;;  %v15503_v19 = vld [vmem:[#allocation147_spill] sm:$0xff] }
 0x540   :  { %6337 = vmatmul.mubr.bf16.gmra.mxu0 %v5362_v36  ;;  %v5406_v20 = vmul.f32 %v15485_v31, %v15503_v19 }
 0x541   :  { %6344 = vmatprep.mubr.bf16.mxu0 %v15463_v21  ;;  %8523 = vmatpush3.bf16.msra.mxu1 %v8987_v25  ;;  %v15491_v25 = vld [vmem:[#allocation155_spill] sm:$0xff] }
 0x542   :  { %8524 = vmatprep.subr.bf16.mxu1 %v8988_v39  ;;  %v5392_v36 = vmul.f32 %v15491_v25, %v15490_v58 }
 0x544   :  { %6248 = vmatmul.mubr.bf16.gmra.mxu1 %v15464_v57 }
 0x545   :  { %6255 = vmatprep.mubr.bf16.mxu1 %v15465_v17  ;;  %8525 = vmatpush3.bf16.msra.mxu1 %v8988_v39  ;;  %v15493_v39 = vld [vmem:[#allocation156_spill] sm:$0xff]  ;;  %v15495_v17 = vld [vmem:[#allocation145_spill] sm:$0xff] }
 0x546   :  { %8526 = vmatprep.subr.bf16.mxu1 %v8989_v37  ;;  %v5393_v21 = vmul.f32 %v15493_v39, %v15492_v15 }
 0x548   :  { %6345 = vmatmul.mubr.bf16.gmra.mxu0 %v15466_v23  ;;  %v5359_v23 = vmul.f32 %v5343_v12, %v15495_v17 }
 0x549   :  { %6352 = vmatprep.mubr.bf16.mxu0 %v15467_v27  ;;  %8527 = vmatpush3.bf16.msra.mxu1 %v8989_v37  ;;  %v15494_v37 = vld [vmem:[#allocation125_spill] sm:$0xff]  ;;  %v5408_v27 = vpack.c.bf16 %v5393_v21, %v5392_v36 }
 0x54a   :  { %v5358_v57 = vmul.f32 %v5325_v0, %v15494_v37 }
 0x54c   :  { %6256 = vmatmul.mubr.bf16.gmra.mxu1 %v15468_v53  ;;  %v5367_v53 = vpack.c.bf16 %v5359_v23, %v5358_v57 }
 0x54d   :  { %6263 = vmatprep.mubr.bf16.mxu1 %v15469_v4  ;;  %v15496_v4 = vld [vmem:[#allocation128_spill] sm:$0xff] }
 0x550   :  { %6353 = vmatmul.mubr.bf16.gmra.mxu0 %v15470_v22  ;;  %v15497_v22 = vld [vmem:[#allocation153_spill] sm:$0xff] }
 0x551   :  { %6360 = vmatprep.mubr.bf16.mxu0 %v15471_v10  ;;  %v5394_v5 = vmul.f32 %v15497_v22, %v15496_v4  ;;  %v15499_v10 = vld [vmem:[#allocation106_spill] sm:$0xff] }
 0x554   :  { %6264 = vmatmul.mubr.bf16.gmra.mxu1 %v15472_v3  ;;  %v5396_v3 = vmul.f32 %v15447_v47, %v15499_v10  ;;  %v5405_v47 = vmul.f32 %v13458_v8, %v15502_v34 }
 0x555   :  { %6271 = vmatprep.mubr.bf16.mxu1 %v5293_v63  ;;  %v15484_v63 = vld [vmem:[#allocation161_spill] sm:$0xff] }
 0x556   :  { %v5383_v54 = vmul.f32 %v15484_v63, %v15483_v61  ;;  %v5410_v60 = vpack.c.bf16 %v5397_v46, %v5396_v3 }
 0x558   :  { %6361 = vmatmul.mubr.bf16.gmra.mxu0 %v5365_v7  ;;  %v15486_v7 = vld [vmem:[#allocation95_spill] sm:$0xff]  ;;  %v5391_v43 = vpack.c.bf16 %v5383_v54, %v5382_v40 }
 0x559   :  { %6368 = vmatprep.mubr.bf16.mxu0 %v15480_v35  ;;  %v5261_v1 = vmul.f32 %v13458_v8, %v15486_v7  ;;  %v13955_v8 = vld [vmem:[%s14367_s4] sm:$0xff] }
 0x55a   :  { %15506 = vst [vmem:[#allocation163_spill] sm:$0xff] %v13955_v8 }
 0x55b   :  { %v5270_v62 = vpack.c.bf16 %v5262_v6, %v5261_v1 }
 0x55c   :  { %6272 = vmatmul.mubr.bf16.gmra.mxu1 %v5269_v52 }
 0x55d   :  { %6279 = vmatprep.mubr.bf16.mxu1 %v5294_v59 }
 0x560   :  { %6369 = vmatmul.mubr.bf16.gmra.mxu0 %v5366_v29  ;;  %v5395_v29 = vmul.f32 %v13069_v50, %v15498_v26  ;;  %v15501_v50 = vld [vmem:[#allocation82_spill] sm:$0xff] }
 0x561   :  { %6376 = vmatprep.mubr.bf16.mxu0 %v5391_v43  ;;  %v5404_v56 = vmul.f32 %v15475_v49, %v15501_v50 }
 0x562   :  { %v5409_v30 = vpack.c.bf16 %v5395_v29, %v5394_v5 }
 0x563   :  { %v5414_v32 = vpack.c.bf16 %v5405_v47, %v5404_v56 }
 0x564   :  { %6280 = vmatmul.mubr.bf16.gmra.mxu1 %v5270_v62 }
 0x565   :  { %8528 = vmatprep.mubr.bf16.mxu1 %v5408_v27 }
 0x568   :  { %6377 = vmatmul.mubr.bf16.gmra.mxu0 %v5367_v53 }
 0x56c   :  { %8529 = vmatmul.mubr.bf16.vlgmr.msra.gmra.mxu1 %v5409_v30 }
 0x56d   :  { %8532 = vmatprep.mubr.bf16.mxu1 %v5410_v60 }
 0x574   :  { %8533 = vmatmul.mubr.bf16.gmra.mxu1 %v5411_v45  ;;  %v5407_v45 = vmul.f32 %v15488_v51, %v15504_v41 }
 0x575   :  { %8536 = vmatprep.mubr.bf16.mxu1 %v5412_v18  ;;  %v5563_v18 = vsub.s32 6, %v15505_v2 }
 0x576   :  { %v5415_v33 = vpack.c.bf16 %v5407_v45, %v5406_v20 }
 0x577   :  { %v13958_v44 = vrot.slane %v13955_v8, %v5563_v18 }
 0x57c   :  { %8537 = vmatmul.mubr.bf16.gmra.mxu1 %v5413_v38 }
 0x57d   :  { %8540 = vmatprep.mubr.bf16.mxu1 %v5414_v32 }
 0x584   :  { %8541 = vmatmul.mubr.bf16.gmra.mxu1 %v5415_v33 }
 0x5ac   :  { %v8152_v49 = vpop.f32.mrf.mxu1 }
 0x5ae   :  { %v8153_v9 = vpop.f32.mrf.mxu1 }
 0x5af   :  { %v8216_v38 = vpop.f32.mrf.mxu0  ;;  %v8154_v24 = vadd.f32 %v8153_v9, %v8152_v49 }
 0x5b0   :  { %v8155_v14 = vpop.f32.mrf.mxu1 }
 0x5b1   :  { %v6032_v55 = vadd.f32 %v8154_v24, %v13958_v44  ;;  %v8217_v35 = vpop.f32.mrf.mxu0 }
 0x5b2   :  { %v8218_v52 = vadd.f32 %v8217_v35, %v8216_v38  ;;  %v8156_v42 = vpop.f32.mrf.mxu1 }
 0x5b3   :  { %v8219_v13 = vpop.f32.mrf.mxu0  ;;  %v8157_v40 = vadd.f32 %v8156_v42, %v8155_v14 }
 0x5b4   :  { %v13961_v61 = vadd.f32 %v8218_v52, %v6032_v55  ;;  %v8158_v63 = vpop.f32.mrf.mxu1 }
 0x5b5   :  { %v6035_v54 = vadd.f32 %v8157_v40, %v13958_v44  ;;  %v8220_v31 = vpop.f32.mrf.mxu0 }
 0x5b6   :  { %v8221_v11 = vadd.f32 %v8220_v31, %v8219_v13  ;;  %v8159_v59 = vpop.f32.mrf.mxu1 }
 0x5b7   :  { %v8222_v7 = vpop.f32.mrf.mxu0  ;;  %v8160_v1 = vadd.f32 %v8159_v59, %v8158_v63 }
 0x5b8   :  { %v13964_v43 = vadd.f32 %v8221_v11, %v6035_v54  ;;  %v8161_v28 = vpop.f32.mrf.mxu1 }
 0x5b9   :  { %v6040_v6 = vadd.f32 %v8160_v1, %v13958_v44  ;;  %v8223_v0 = vpop.f32.mrf.mxu0 }
 0x5ba   :  { %v8224_v51 = vadd.f32 %v8223_v0, %v8222_v7  ;;  %v8162_v48 = vpop.f32.mrf.mxu1 }
 0x5bb   :  { %v8225_v12 = vpop.f32.mrf.mxu0  ;;  %v8163_v58 = vadd.f32 %v8162_v48, %v8161_v28 }
 0x5bc   :  { %v13967_v25 = vadd.f32 %v8224_v51, %v6040_v6  ;;  %v8164_v36 = vpop.f32.mrf.mxu1 }
 0x5bd   :  { %v6043_v15 = vadd.f32 %v8163_v58, %v13958_v44  ;;  %v8226_v39 = vpop.f32.mrf.mxu0 }
 0x5be   :  { %v8227_v21 = vadd.f32 %v8226_v39, %v8225_v12  ;;  %v8165_v37 = vpop.f32.mrf.mxu1 }
 0x5bf   :  { %v8228_v57 = vpop.f32.mrf.mxu0  ;;  %v8166_v17 = vadd.f32 %v8165_v37, %v8164_v36 }
 0x5c0   :  { %v13970_v23 = vadd.f32 %v8227_v21, %v6043_v15  ;;  %v8167_v62 = vpop.f32.mrf.mxu1 }
 0x5c1   :  { %v6048_v27 = vadd.f32 %v8166_v17, %v13958_v44  ;;  %v8229_v53 = vpop.f32.mrf.mxu0 }
 0x5c2   :  { %v8230_v4 = vadd.f32 %v8229_v53, %v8228_v57  ;;  %v8168_v22 = vpop.f32.mrf.mxu1 }
 0x5c3   :  { %v8231_v5 = vpop.f32.mrf.mxu0  ;;  %v8169_v26 = vadd.f32 %v8168_v22, %v8167_v62 }
 0x5c4   :  { %v13973_v29 = vadd.f32 %v8230_v4, %v6048_v27  ;;  %v8170_v10 = vpop.f32.mrf.mxu1 }
 0x5c5   :  { %v6051_v3 = vadd.f32 %v8169_v26, %v13958_v44  ;;  %v8232_v16 = vpop.f32.mrf.mxu0 }
 0x5c6   :  { %v8233_v46 = vadd.f32 %v8232_v16, %v8231_v5  ;;  %v8171_v30 = vpop.f32.mrf.mxu1 }
 0x5c7   :  { %v8234_v60 = vpop.f32.mrf.mxu0  ;;  %v8172_v50 = vadd.f32 %v8171_v30, %v8170_v10 }
 0x5c8   :  { %v13976_v56 = vadd.f32 %v8233_v46, %v6051_v3  ;;  %v8173_v34 = vpop.f32.mrf.mxu1 }
 0x5c9   :  { %v6056_v47 = vadd.f32 %v8172_v50, %v13958_v44  ;;  %v8235_v32 = vpop.f32.mrf.mxu0 }
 0x5ca   :  { %v8236_v19 = vadd.f32 %v8235_v32, %v8234_v60  ;;  %v8174_v20 = vpop.f32.mrf.mxu1 }
 0x5cb   :  { %v8237_v41 = vpop.f32.mrf.mxu0  ;;  %v8175_v45 = vadd.f32 %v8174_v20, %v8173_v34 }
 0x5cc   :  { %v13979_v33 = vadd.f32 %v8236_v19, %v6056_v47  ;;  %v8176_v18 = vpop.f32.mrf.mxu1 }
 0x5cd   :  { %v6059_v49 = vadd.f32 %v8175_v45, %v13958_v44  ;;  %v8238_v9 = vpop.f32.mrf.mxu0 }
 0x5ce   :  { %v8239_v38 = vadd.f32 %v8238_v9, %v8237_v41  ;;  %v8177_v24 = vpop.f32.mrf.mxu1 }
 0x5cf   :  { %v8178_v55 = vadd.f32 %v8177_v24, %v8176_v18 }
 0x5d0   :  { %v8240_v14 = vpop.f32.mrf.mxu0  ;;  %v13982_v35 = vadd.f32 %v8239_v38, %v6059_v49  ;;  %v8179_v52 = vpop.f32.mrf.mxu1 }
 0x5d1   :  { %v6064_v42 = vadd.f32 %v8178_v55, %v13958_v44 }
 0x5d2   :  { %v8241_v13 = vpop.f32.mrf.mxu0  ;;  %v8180_v63 = vpop.f32.mrf.mxu1 }
 0x5d3   :  { %v8242_v40 = vadd.f32 %v8241_v13, %v8240_v14  ;;  %v8181_v31 = vadd.f32 %v8180_v63, %v8179_v52 }
 0x5d4   :  { %v8243_v54 = vpop.f32.mrf.mxu0  ;;  %v8182_v59 = vpop.f32.mrf.mxu1 }
 0x5d5   :  { %v13985_v11 = vadd.f32 %v8242_v40, %v6064_v42  ;;  %v6067_v7 = vadd.f32 %v8181_v31, %v13958_v44 }
 0x5d6   :  { %v8244_v1 = vpop.f32.mrf.mxu0  ;;  %v8183_v6 = vpop.f32.mrf.mxu1 }
 0x5d7   :  { %v8245_v28 = vadd.f32 %v8244_v1, %v8243_v54  ;;  %v8184_v51 = vadd.f32 %v8183_v6, %v8182_v59 }
 0x5d8   :  { %v8246_v0 = vpop.f32.mrf.mxu0  ;;  %v8185_v12 = vpop.f32.mrf.mxu1 }
 0x5d9   :  { %v13988_v48 = vadd.f32 %v8245_v28, %v6067_v7  ;;  %v6072_v58 = vadd.f32 %v8184_v51, %v13958_v44 }
 0x5da   :  { %v8247_v36 = vpop.f32.mrf.mxu0  ;;  %v8186_v39 = vpop.f32.mrf.mxu1 }
 0x5db   :  { %v8248_v15 = vadd.f32 %v8247_v36, %v8246_v0  ;;  %v8187_v37 = vadd.f32 %v8186_v39, %v8185_v12 }
 0x5dc   :  { %v8249_v21 = vpop.f32.mrf.mxu0  ;;  %v8188_v17 = vpop.f32.mrf.mxu1 }
 0x5dd   :  { %v13991_v57 = vadd.f32 %v8248_v15, %v6072_v58  ;;  %v6075_v62 = vadd.f32 %v8187_v37, %v13958_v44 }
 0x5de   :  { %v8250_v27 = vpop.f32.mrf.mxu0  ;;  %v8189_v4 = vpop.f32.mrf.mxu1 }
 0x5df   :  { %15507 = vst [vmem:[#allocation2_spill] sm:$0xff] %v13991_v57  ;;  %v8251_v53 = vadd.f32 %v8250_v27, %v8249_v21  ;;  %v8190_v5 = vadd.f32 %v8189_v4, %v8188_v17 }
 0x5e0   :  { %v8252_v22 = vpop.f32.mrf.mxu0  ;;  %v8191_v10 = vpop.f32.mrf.mxu1 }
 0x5e1   :  { %v13994_v26 = vadd.f32 %v8251_v53, %v6075_v62  ;;  %v6080_v3 = vadd.f32 %v8190_v5, %v13958_v44 }
 0x5e2   :  { %v8253_v16 = vpop.f32.mrf.mxu0  ;;  %v8192_v30 = vpop.f32.mrf.mxu1 }
 0x5e3   :  { %15508 = vst [vmem:[#allocation3_spill] sm:$0xff] %v13994_v26  ;;  %v8254_v46 = vadd.f32 %v8253_v16, %v8252_v22  ;;  %v8193_v50 = vadd.f32 %v8192_v30, %v8191_v10  ;;  %v8990_v16 = vld [vmem:[%s14368_s5 + $0x38] sm:$0xff]   ;;  %v8991_v30 = vld [vmem:[%s14368_s5 + $0x30] sm:$0xff]  }
 0x5e4   :  { %v8255_v60 = vpop.f32.mrf.mxu0  ;;  %v8194_v47 = vpop.f32.mrf.mxu1  ;;  %8544 = vmatprep.subr.bf16.mxu0 %v8990_v16  ;;  %8576 = vmatprep.subr.bf16.mxu1 %v8990_v16 }
 0x5e5   :  { %v13997_v34 = vadd.f32 %v8254_v46, %v6080_v3  ;;  %v6083_v32 = vadd.f32 %v8193_v50, %v13958_v44  ;;  %8545 = vmatpush3.bf16.msra.mxu0 %v8990_v16  ;;  %8584 = vmatpush3.bf16.msra.mxu1 %v8990_v16 }
 0x5e6   :  { %v8256_v19 = vpop.f32.mrf.mxu0  ;;  %v8195_v41 = vpop.f32.mrf.mxu1  ;;  %8546 = vmatprep.subr.bf16.mxu0 %v8991_v30  ;;  %8577 = vmatprep.subr.bf16.mxu1 %v8991_v30 }
 0x5e7   :  { %15509 = vst [vmem:[#allocation12_spill] sm:$0xff] %v13997_v34  ;;  %v8257_v20 = vadd.f32 %v8256_v19, %v8255_v60  ;;  %v8196_v18 = vadd.f32 %v8195_v41, %v8194_v47 }
 0x5e8   :  { %v8258_v45 = vpop.f32.mrf.mxu0  ;;  %v8197_v9 = vpop.f32.mrf.mxu1 }
 0x5e9   :  { %v14000_v49 = vadd.f32 %v8257_v20, %v6083_v32  ;;  %v6088_v38 = vadd.f32 %v8196_v18, %v13958_v44  ;;  %v8992_v32 = vld [vmem:[%s14368_s5 + $0x28] sm:$0xff]   ;;  %8547 = vmatpush3.bf16.msra.mxu0 %v8991_v30  ;;  %8585 = vmatpush3.bf16.msra.mxu1 %v8991_v30  ;;  %v8993_v18 = vld [vmem:[%s14368_s5 + $0x20] sm:$0xff]   ;;  %v8995_v30 = vld [vmem:[%s14368_s5 + $0x10] sm:$0xff]  }
 0x5ea   :  { %v8259_v24 = vpop.f32.mrf.mxu0  ;;  %v8198_v55 = vpop.f32.mrf.mxu1  ;;  %8548 = vmatprep.subr.bf16.mxu0 %v8992_v32  ;;  %8578 = vmatprep.subr.bf16.mxu1 %v8992_v32 }
 0x5eb   :  { %15510 = vst [vmem:[#allocation15_spill] sm:$0xff] %v14000_v49  ;;  %v8260_v14 = vadd.f32 %v8259_v24, %v8258_v45  ;;  %v14005_v42 = vadd.f32 %v8198_v55, %v8197_v9  ;;  %v8994_v55 = vld [vmem:[%s14368_s5 + $0x18] sm:$0xff]  }
 0x5ec   :  { %v14003_v52 = vpop.f32.mrf.mxu0  ;;  %v8280_v40 = vpop.f32.mrf.mxu1 }
 0x5ed   :  { %v14007_v13 = vadd.f32 %v8260_v14, %v6088_v38  ;;  %8549 = vmatpush3.bf16.msra.mxu0 %v8992_v32  ;;  %8586 = vmatpush3.bf16.msra.mxu1 %v8992_v32 }
 0x5ee   :  { %v14009_v63 = vpop.f32.mrf.mxu0  ;;  %v8281_v54 = vpop.f32.mrf.mxu1  ;;  %8550 = vmatprep.subr.bf16.mxu0 %v8993_v18  ;;  %8579 = vmatprep.subr.bf16.mxu1 %v8993_v18 }
 0x5ef   :  { %15511 = vst [vmem:[#allocation13_spill] sm:$0xff] %v14007_v13  ;;  %v8282_v59 = vadd.f32 %v8281_v54, %v8280_v40 }
 0x5f0   :  { %v14011_v31 = vpop.f32.mrf.mxu0  ;;  %v14013_v7 = vpop.f32.mrf.mxu1 }
 0x5f1   :  { %v14016_v1 = vadd.f32 %v8282_v59, %v13961_v61  ;;  %8551 = vmatpush3.bf16.msra.mxu0 %v8993_v18  ;;  %8587 = vmatpush3.bf16.msra.mxu1 %v8993_v18  ;;  %v8996_v18 = vld [vmem:[%s14368_s5 + $0x8] sm:$0xff]  }
 0x5f2   :  { %v14018_v28 = vpop.f32.mrf.mxu0  ;;  %v14020_v6 = vpop.f32.mrf.mxu1  ;;  %8552 = vmatprep.subr.bf16.mxu0 %v8994_v55  ;;  %8580 = vmatprep.subr.bf16.mxu1 %v8994_v55 }
 0x5f4   :  { %v14022_v0 = vpop.f32.mrf.mxu0  ;;  %v14024_v51 = vpop.f32.mrf.mxu1 }
 0x5f5   :  { %8553 = vmatpush3.bf16.msra.mxu0 %v8994_v55  ;;  %8588 = vmatpush3.bf16.msra.mxu1 %v8994_v55  ;;  %v8997_v55 = vld [vmem:[%s14368_s5] sm:$0xff]  }
 0x5f6   :  { %v14026_v12 = vpop.f32.mrf.mxu0  ;;  %v14028_v58 = vpop.f32.mrf.mxu1  ;;  %8554 = vmatprep.subr.bf16.mxu0 %v8995_v30  ;;  %8581 = vmatprep.subr.bf16.mxu1 %v8995_v30 }
 0x5f8   :  { %v14030_v36 = vpop.f32.mrf.mxu0  ;;  %v14032_v15 = vpop.f32.mrf.mxu1 }
 0x5f9   :  { %8555 = vmatpush3.bf16.msra.mxu0 %v8995_v30  ;;  %8589 = vmatpush3.bf16.msra.mxu1 %v8995_v30  ;;  %v8288_v30 = vadd.f32 %v14028_v58, %v14024_v51 }
 0x5fa   :  { %v14034_v39 = vpop.f32.mrf.mxu0  ;;  %v14036_v61 = vpop.f32.mrf.mxu1  ;;  %8556 = vmatprep.subr.bf16.mxu0 %v8996_v18  ;;  %8582 = vmatprep.subr.bf16.mxu1 %v8996_v18 }
 0x5fc   :  { %v14038_v21 = vpop.f32.mrf.mxu0  ;;  %v14040_v37 = vpop.f32.mrf.mxu1 }
 0x5fd   :  { %8557 = vmatpush3.bf16.msra.mxu0 %v8996_v18  ;;  %8590 = vmatpush3.bf16.msra.mxu1 %v8996_v18 }
 0x5fe   :  { %v14042_v17 = vpop.f32.mrf.mxu0  ;;  %v14044_v62 = vpop.f32.mrf.mxu1  ;;  %8558 = vmatprep.subr.bf16.mxu0 %v8997_v55  ;;  %8583 = vmatprep.subr.bf16.mxu1 %v8997_v55 }
 0x5ff   :  { %v8294_v18 = vadd.f32 %v14044_v62, %v14040_v37 }
 0x600   :  { %v14046_v27 = vpop.f32.mrf.mxu0  ;;  %v14048_v53 = vpop.f32.mrf.mxu1 }
 0x601   :  { %8559 = vmatpush3.bf16.msra.mxu0 %v8997_v55  ;;  %8591 = vmatpush3.bf16.msra.mxu1 %v8997_v55  ;;  %v6234_v55 = vadd.f32 %v8288_v30, %v13967_v25  ;;  %v8352_v25 = vadd.f32 %v14034_v39, %v14030_v36 }
 0x602   :  { %v14050_v4 = vpop.f32.mrf.mxu0  ;;  %v14052_v22 = vpop.f32.mrf.mxu1 }
 0x603   :  { %v6331_v39 = vadd.f32 %v8352_v25, %v6234_v55 }
 0x604   :  { %v14054_v5 = vpop.f32.mrf.mxu0  ;;  %v14056_v10 = vpop.f32.mrf.mxu1 }
 0x606   :  { %v14058_v3 = vpop.f32.mrf.mxu0  ;;  %v14063_v46 = vpop.f32.mrf.mxu1 }
 0x608   :  { %v14068_v60 = vpop.f32.mrf.mxu0  ;;  %v14070_v50 = vpop.f32.mrf.mxu1 }
 0x60a   :  { %v14072_v47 = vpop.f32.mrf.mxu0  ;;  %v14077_v19 = vpop.f32.mrf.mxu1 }
 0x60c   :  { %v14079_v20 = vpop.f32.mrf.mxu0  ;;  %v14081_v41 = vpop.f32.mrf.mxu1 }
 0x60e   :  { %v14083_v45 = vpop.f32.mrf.mxu0  ;;  %v14088_v9 = vpop.f32.mrf.mxu1 }
 0x610   :  { %v14090_v38 = vpop.f32.mrf.mxu0  ;;  %v14092_v24 = vpop.f32.mrf.mxu1 }
 0x612   :  { %v14094_v14 = vpop.f32.mrf.mxu0  ;;  %v8308_v40 = vpop.f32.mrf.mxu1 }
 0x614   :  { %v14099_v54 = vpop.f32.mrf.mxu0  ;;  %v14101_v59 = vpop.f32.mrf.mxu1 }
 0x615   :  { %15512 = vst [vmem:[#allocation14_spill] sm:$0xff] %v14099_v54  ;;  %v8291_v54 = vadd.f32 %v14036_v61, %v14032_v15  ;;  %v8346_v15 = vadd.f32 %v14018_v28, %v14011_v31  ;;  %v8349_v61 = vadd.f32 %v14026_v12, %v14022_v0  ;;  %v8309_v31 = vadd.f32 %v8308_v40, %v14092_v24 }
 0x616   :  { %v14103_v16 = vpop.f32.mrf.mxu0  ;;  %v8311_v32 = vpop.f32.mrf.mxu1 }
 0x617   :  { %15513 = vst [vmem:[#allocation18_spill] sm:$0xff] %v14103_v16  ;;  %v6237_v37 = vadd.f32 %v8291_v54, %v13970_v23  ;;  %v8355_v23 = vadd.f32 %v14042_v17, %v14038_v21  ;;  %v6323_v12 = vadd.f32 %v8346_v15, %v14016_v1  ;;  %v8361_v1 = vadd.f32 %v14058_v3, %v14054_v5  ;;  %v15522_v5 = vld [vmem:[#allocation2_spill] sm:$0xff]  ;;  %v15526_v15 = vld [vmem:[#allocation12_spill] sm:$0xff] }
 0x618   :  { %v14108_v8 = vpop.f32.mrf.mxu0  ;;  %v14110_v2 = vpop.f32.mrf.mxu1 }
 0x619   :  { %15514 = vst [vmem:[#allocation51_spill] sm:$0xff] %v14108_v8  ;;  %15515 = vst [vmem:[#allocation17_spill] sm:$0xff] %v14110_v2 }
 0x61a   :  { %v14112_v13 = vpop.f32.mrf.mxu0  ;;  %v8314_v49 = vpop.f32.mrf.mxu1 }
 0x61b   :  { %15516 = vst [vmem:[#allocation4_spill] sm:$0xff] %v14112_v13 }
 0x61c   :  { %v14117_v34 = vpop.f32.mrf.mxu0  ;;  %v8316_v26 = vpop.f32.mrf.mxu1  ;;  %v15520_v40 = vld [vmem:[#allocation14_spill] sm:$0xff] }
 0x61d   :  { %15517 = vst [vmem:[#allocation42_spill] sm:$0xff] %v14117_v34  ;;  %v8285_v34 = vadd.f32 %v14020_v6, %v14013_v7  ;;  %v6091_v7 = vadd.f32 %v14005_v42, %v13958_v44  ;;  %v8263_v6 = vadd.f32 %v14009_v63, %v14003_v52  ;;  %v8297_v44 = vadd.f32 %v14052_v22, %v14048_v53 }
 0x61e   :  { %v8317_v8 = vpop.f32.mrf.mxu1  ;;  %v14122_v13 = vpop.f32.mrf.mxu0  ;;  %v8300_v52 = vadd.f32 %v14063_v46, %v14056_v10  ;;  %v6242_v63 = vadd.f32 %v8294_v18, %v13973_v29  ;;  %v8358_v22 = vadd.f32 %v14050_v4, %v14046_v27  ;;  %v8312_v10 = vadd.f32 %v8311_v32, %v14101_v59  ;;  %v15521_v54 = vld [vmem:[#allocation18_spill] sm:$0xff] }
 0x61f   :  { %15518 = vst [vmem:[#allocation31_spill] sm:$0xff] %v14122_v13  ;;  %v6229_v51 = vadd.f32 %v8285_v34, %v13964_v43  ;;  %v8303_v43 = vadd.f32 %v14077_v19, %v14070_v50  ;;  %v8306_v34 = vadd.f32 %v14088_v9, %v14081_v41  ;;  %v14169_v28 = vadd.f32 %v8263_v6, %v6091_v7  ;;  %v15525_v6 = vld [vmem:[#allocation3_spill] sm:$0xff] }
 0x620   :  { %v14124_v57 = vpop.f32.mrf.mxu1  ;;  %v14134_v2 = vpop.f32.mrf.mxu0  ;;  %v6334_v46 = vadd.f32 %v8355_v23, %v6237_v37  ;;  %v6245_v21 = vadd.f32 %v8297_v44, %v13976_v56  ;;  %v6250_v29 = vadd.f32 %v8300_v52, %v13979_v33  ;;  %v8364_v27 = vadd.f32 %v14072_v47, %v14068_v60  ;;  %v15519_v33 = vld [vmem:[#allocation17_spill] sm:$0xff] }
 0x621   :  { %v6326_v53 = vadd.f32 %v8349_v61, %v6229_v51  ;;  %v6253_v17 = vadd.f32 %v8303_v43, %v13982_v35  ;;  %v6258_v50 = vadd.f32 %v8306_v34, %v13985_v11  ;;  %v6261_v4 = vadd.f32 %v8309_v31, %v13988_v48 }
 0x622   :  { %v14128_v16 = vpop.f32.mrf.mxu1  ;;  %v8381_v62 = vpop.f32.mrf.mxu0  ;;  %v6339_v41 = vadd.f32 %v8358_v22, %v6242_v63  ;;  %v8367_v9 = vadd.f32 %v14083_v45, %v14079_v20  ;;  %v8370_v56 = vadd.f32 %v14094_v14, %v14090_v38  ;;  %v8315_v35 = vadd.f32 %v8314_v49, %v15519_v33  ;;  %v15523_v45 = vld [vmem:[#allocation51_spill] sm:$0xff]  ;;  %v15524_v38 = vld [vmem:[#allocation4_spill] sm:$0xff] }
 0x623   :  { %v8318_v24 = vadd.f32 %v8317_v8, %v8316_v26  ;;  %v8373_v59 = vadd.f32 %v15521_v54, %v15520_v40  ;;  %v6266_v3 = vadd.f32 %v8312_v10, %v15522_v5  ;;  %v6347_v30 = vadd.f32 %v8364_v27, %v6250_v29 }
 0x624   :  { %v14136_v13 = vpop.f32.mrf.mxu1  ;;  %v8383_v36 = vpop.f32.mrf.mxu0  ;;  %v6350_v18 = vadd.f32 %v8367_v9, %v6253_v17  ;;  %v6342_v7 = vadd.f32 %v8361_v1, %v6245_v21  ;;  %v14194_v20 = vadd.f32 %v8370_v56, %v6258_v50  ;;  %v8376_v14 = vadd.f32 %v15524_v38, %v15523_v45  ;;  %v15527_v44 = vld [vmem:[#allocation42_spill] sm:$0xff]  ;;  %v15530_v9 = vld [vmem:[#allocation13_spill] sm:$0xff] }
 0x625   :  { %v14198_v26 = vadd.f32 %v8373_v59, %v6261_v4  ;;  %v6269_v51 = vadd.f32 %v8315_v35, %v15525_v6  ;;  %v6274_v61 = vadd.f32 %v8318_v24, %v15526_v15  ;;  %v8321_v55 = vadd.f32 %v14128_v16, %v14124_v57  ;;  %v15529_v16 = vld [vmem:[#allocation15_spill] sm:$0xff] }
 0x626   :  { %v14145_v58 = vpop.f32.mrf.mxu1  ;;  %v8384_v32 = vpop.f32.mrf.mxu0  ;;  %v15528_v52 = vld [vmem:[#allocation31_spill] sm:$0xff]  ;;  %v6363_v63 = vadd.f32 %v8376_v14, %v6266_v3  ;;  %v8382_v31 = vadd.f32 %v8381_v62, %v14134_v2 }
 0x627   :  { %v8379_v43 = vadd.f32 %v15528_v52, %v15527_v44  ;;  %v14214_v21 = vadd.f32 %v8384_v32, %v8383_v36 }
 0x628   :  { %v14161_v42 = vpop.f32.mrf.mxu1  ;;  %v8386_v34 = vpop.f32.mrf.mxu0  ;;  %v14216_v17 = vadd.f32 %v8382_v31, %v6274_v61 }
 0x629   :  { %v6366_v29 = vadd.f32 %v8379_v43, %v6269_v51 }
 0x62a   :  { %v14171_v0 = vpop.f32.mrf.mxu1  ;;  %v8387_v2 = vpop.f32.mrf.mxu0 }
 0x62b   :  { %v8388_v24 = vadd.f32 %v8387_v2, %v8386_v34  ;;  %v8327_v45 = vadd.f32 %v14171_v0, %v14161_v42 }
 0x62c   :  { %v8530_v19 = vpop.f32.mrf.mxu1  ;;  %v8389_v59 = vpop.f32.mrf.mxu0 }
 0x62d   :  { %v6428_v60 = vadd.f32 %v8530_v19, %v6331_v39  ;;  %v6285_v34 = vadd.f32 %v8327_v45, %v14169_v28 }
 0x62e   :  { %v6419_v11 = vpop.f32.mrf.mxu1  ;;  %v8390_v51 = vpop.f32.mrf.mxu0 }
 0x62f   :  { %v6420_v47 = vadd.f32 %v6419_v11, %v6323_v12  ;;  %v6500_v25 = vmul.f32 0.2, %v6428_v60  ;;  %v8324_v12 = vadd.f32 %v14145_v58, %v14136_v13  ;;  %vm6484_vm9 = vcmp.ge.f32.partialorder %v6428_v60, 0.0 }
 0x630   :  { %v8531_v48 = vpop.f32.mrf.mxu1  ;;  %v8391_v31 = vadd.f32 %v8390_v51, %v8389_v59 }
 0x631   :  { %v6498_v49 = vmul.f32 0.2, %v6420_v47  ;;  %v6431_v8 = vadd.f32 %v8531_v48, %v6334_v46  ;;  %vm6482_vm4 = vcmp.ge.f32.partialorder %v6420_v47, 0.0  ;;  %v14212_v46 = vadd.f32 %v8321_v55, %v15529_v16 }
 0x632   :  { %v6422_v37 = vpop.f32.mrf.mxu1  ;;  %v14218_v62 = vsel %vm6484_vm9, %v6428_v60, %v6500_v25  ;;  %v6282_v56 = vadd.f32 %v8324_v12, %v15530_v9 }
 0x633   :  { %v6423_v23 = vadd.f32 %v6422_v37, %v6326_v53  ;;  %v6501_v22 = vmul.f32 0.2, %v6431_v8  ;;  %v14209_v39 = vsel %vm6482_vm4, %v6420_v47, %v6498_v49  ;;  %vm6485_vm11 = vcmp.ge.f32.partialorder %v6431_v8, 0.0 }
 0x634   :  { %v8534_v10 = vpop.f32.mrf.mxu1  ;;  %v6568_v19 = vmul.f32 %v14209_v39, %v14209_v39 }
 0x635   :  { %vm6483_vm5 = vcmp.ge.f32.partialorder %v6423_v23, 0.0  ;;  %v6499_v57 = vmul.f32 0.2, %v6423_v23  ;;  %v6444_v58 = vadd.f32 %v8534_v10, %v6347_v30  ;;  %v14224_v1 = vsel %vm6485_vm11, %v6431_v8, %v6501_v22 }
 0x636   :  { %v6435_v53 = vpop.f32.mrf.mxu1  ;;  %v6571_v5 = vmul.f32 %v14224_v1, %v14224_v1 }
 0x637   :  { %v14220_v13 = vsel %vm6483_vm5, %v6423_v23, %v6499_v57  ;;  %v6436_v50 = vadd.f32 %v6435_v53, %v6339_v41  ;;  %v6570_v41 = vmul.f32 %v14218_v62, %v14218_v62  ;;  %v6504_v3 = vmul.f32 0.2, %v6444_v58 }
 0x638   :  { %v6546_v36 = vadd.f32 %v14220_v13, %v14209_v39  ;;  %v6569_v27 = vmul.f32 %v14220_v13, %v14220_v13  ;;  %v8535_v4 = vpop.f32.mrf.mxu1  ;;  %vm6488_vm2 = vcmp.ge.f32.partialorder %v6444_v58, 0.0 }
 0x639   :  { %vm6486_vm1 = vcmp.ge.f32.partialorder %v6436_v50, 0.0  ;;  %v6502_v33 = vmul.f32 0.2, %v6436_v50  ;;  %v6447_v35 = vadd.f32 %v8535_v4, %v6350_v18  ;;  %v14244_v15 = vsel %vm6488_vm2, %v6444_v58, %v6504_v3 }
 0x63a   :  { %v6547_v11 = vadd.f32 %v6546_v36, %v14218_v62  ;;  %v6584_v40 = vadd.f32 %v6569_v27, %v6568_v19  ;;  %v6438_v54 = vpop.f32.mrf.mxu1 }
 0x63b   :  { %v14236_v32 = vsel %vm6486_vm1, %v6436_v50, %v6502_v33  ;;  %v6439_v60 = vadd.f32 %v6438_v54, %v6342_v7  ;;  %v6505_v30 = vmul.f32 0.2, %v6447_v35  ;;  %vm6489_vm3 = vcmp.ge.f32.partialorder %v6447_v35, 0.0 }
 0x63c   :  { %v6585_v47 = vadd.f32 %v6584_v40, %v6570_v41  ;;  %v6548_v48 = vadd.f32 %v6547_v11, %v14224_v1  ;;  %v8538_v18 = vpop.f32.mrf.mxu1  ;;  %v6572_v49 = vmul.f32 %v14236_v32, %v14236_v32  ;;  %v6379_v7 = vadd.f32 %v8388_v24, %v6282_v56 }
 0x63d   :  { %vm6487_vm6 = vcmp.ge.f32.partialorder %v6439_v60, 0.0  ;;  %v6503_v38 = vmul.f32 0.2, %v6439_v60  ;;  %v6460_v55 = vadd.f32 %v8538_v18, %v6363_v63  ;;  %v14249_v0 = vsel %vm6489_vm3, %v6447_v35, %v6505_v30 }
 0x63e   :  { %v6549_v14 = vadd.f32 %v6548_v48, %v14236_v32  ;;  %v6586_v8 = vadd.f32 %v6585_v47, %v6571_v5  ;;  %v6451_v6 = vpop.f32.mrf.mxu1  ;;  %v6574_v63 = vmul.f32 %v14244_v15, %v14244_v15  ;;  %v6575_v10 = vmul.f32 %v14249_v0, %v14249_v0 }
 0x63f   :  { %v14246_v61 = vsel %vm6487_vm6, %v6439_v60, %v6503_v38  ;;  %v6452_v37 = vadd.f32 %v6451_v6, %v14194_v20  ;;  %v6508_v57 = vmul.f32 0.2, %v6460_v55  ;;  %vm6492_vm8 = vcmp.ge.f32.partialorder %v6460_v55, 0.0 }
 0x640   :  { %v6587_v42 = vadd.f32 %v6586_v8, %v6572_v49  ;;  %v6550_v44 = vadd.f32 %v6549_v14, %v14246_v61  ;;  %v6573_v52 = vmul.f32 %v14246_v61, %v14246_v61  ;;  %v8539_v43 = vpop.f32.mrf.mxu1  ;;  %v6382_v24 = vadd.f32 %v8391_v31, %v6285_v34  ;;  %v15531_v14 = vld [vmem:[#allocation138_spill] sm:$0xff] }
 0x641   :  { %vm6490_vm7 = vcmp.ge.f32.partialorder %v6452_v37, 0.0  ;;  %v6506_v25 = vmul.f32 0.2, %v6452_v37  ;;  %v6463_v23 = vadd.f32 %v8539_v43, %v6366_v29  ;;  %v14269_v56 = vsel %vm6492_vm8, %v6460_v55, %v6508_v57 }
 0x642   :  { %v6551_v20 = vadd.f32 %v6550_v44, %v14244_v15  ;;  %v6588_v12 = vadd.f32 %v6587_v42, %v6573_v52  ;;  %v6454_v22 = vpop.f32.mrf.mxu1 }
 0x643   :  { %v14260_v16 = vsel %vm6490_vm7, %v6452_v37, %v6506_v25  ;;  %v6455_v53 = vadd.f32 %v6454_v22, %v14198_v26  ;;  %v6509_v2 = vmul.f32 0.2, %v6463_v23  ;;  %vm6493_vm10 = vcmp.ge.f32.partialorder %v6463_v23, 0.0 }
 0x644   :  { %v6589_v28 = vadd.f32 %v6588_v12, %v6574_v63  ;;  %v6552_v29 = vadd.f32 %v6551_v20, %v14249_v0  ;;  %v8542_v58 = vpop.f32.mrf.mxu1  ;;  %v6576_v27 = vmul.f32 %v14260_v16, %v14260_v16  ;;  %v6374_v26 = vadd.f32 %v14214_v21, %v14212_v46 }
 0x645   :  { %vm6491_vm12 = vcmp.ge.f32.partialorder %v6455_v53, 0.0  ;;  %v6507_v50 = vmul.f32 0.2, %v6455_v53  ;;  %v6476_v19 = vadd.f32 %v8542_v58, %v6379_v7  ;;  %v14274_v11 = vsel %vm6493_vm10, %v6463_v23, %v6509_v2 }
 0x646   :  { %v6553_v36 = vadd.f32 %v6552_v29, %v14260_v16  ;;  %v6590_v4 = vadd.f32 %v6589_v28, %v6575_v10  ;;  %v6467_v9 = vpop.f32.mrf.mxu1  ;;  %v6578_v21 = vmul.f32 %v14269_v56, %v14269_v56  ;;  %v6579_v48 = vmul.f32 %v14274_v11, %v14274_v11 }
 0x647   :  { %v14271_v33 = vsel %vm6491_vm12, %v6455_v53, %v6507_v50  ;;  %v6468_v35 = vadd.f32 %v6467_v9, %v14216_v17  ;;  %v6512_v5 = vmul.f32 0.2, %v6476_v19  ;;  %vm6496_vm14 = vcmp.ge.f32.partialorder %v6476_v19, 0.0 }
 0x648   :  { %v6591_v41 = vadd.f32 %v6590_v4, %v6576_v27  ;;  %v6554_v40 = vadd.f32 %v6553_v36, %v14271_v33  ;;  %v6577_v54 = vmul.f32 %v14271_v33, %v14271_v33  ;;  %v8543_v59 = vpop.f32.mrf.mxu1 }
 0x649   :  { %vm6494_vm13 = vcmp.ge.f32.partialorder %v6468_v35, 0.0  ;;  %v6510_v3 = vmul.f32 0.2, %v6468_v35  ;;  %v6479_v46 = vadd.f32 %v8543_v59, %v6382_v24  ;;  %v6528_v6 = vsel %vm6496_vm14, %v6476_v19, %v6512_v5 }
 0x64a   :  { %v6555_v60 = vadd.f32 %v6554_v40, %v14269_v56  ;;  %v6592_v17 = vadd.f32 %v6591_v41, %v6577_v54  ;;  %v6470_v47 = vpop.f32.mrf.mxu1  ;;  %v6544_v52 = vmul.f32 0.0, %v6528_v6 }
 0x64b   :  { %v14284_v30 = vsel %vm6494_vm13, %v6468_v35, %v6510_v3  ;;  %v6513_v18 = vmul.f32 0.2, %v6479_v46  ;;  %v6471_v45 = vadd.f32 %v6470_v47, %v6374_v26  ;;  %vm6497_vm15 = vcmp.ge.f32.partialorder %v6479_v46, 0.0  ;;  %v15532_v3 = vld [vmem:[#allocation135_spill] sm:$0xff] }
 0x64c   :  { %v6593_v38 = vadd.f32 %v6592_v17, %v6578_v21  ;;  %v6542_v49 = vmul.f32 %v15531_v14, %v14284_v30  ;;  %v6556_v8 = vadd.f32 %v6555_v60, %v14274_v11  ;;  %v6582_v63 = vmul.f32 %v6544_v52, %v6528_v6  ;;  %v15533_v60 = vld [vmem:[#allocation163_spill] sm:$0xff] }
 0x64d   :  { %vm6495_vm0 = vcmp.ge.f32.partialorder %v6471_v45, 0.0  ;;  %v6511_v7 = vmul.f32 0.2, %v6471_v45  ;;  %v6529_v42 = vsel %vm6497_vm15, %v6479_v46, %v6513_v18  ;;  %v6619_v46 = vsub.s32 7, %v15532_v3  ;;  %v1038_v18 = vld [vmem:[%s14367_s4 + $0x8] sm:$0x1] }
 0x64e   :  { %v6557_v51 = vadd.f32 %v6556_v8, %v6542_v49  ;;  %v6580_v55 = vmul.f32 %v6542_v49, %v14284_v30  ;;  %v6594_v37 = vadd.f32 %v6593_v38, %v6579_v48  ;;  %v6545_v25 = vmul.f32 0.0, %v6529_v42 }
 0x64f   :  { %v6527_v44 = vsel %vm6495_vm0, %v6471_v45, %v6511_v7 }
 0x650   :  { %v6595_v43 = vadd.f32 %v6594_v37, %v6580_v55  ;;  %v6543_v34 = vmul.f32 0.0, %v6527_v44  ;;  %v6583_v22 = vmul.f32 %v6545_v25, %v6529_v42 }
 0x652   :  { %v6558_v23 = vadd.f32 %v6557_v51, %v6543_v34  ;;  %v6581_v31 = vmul.f32 %v6543_v34, %v6527_v44  ;;  %v15534_v34 = vsub.s32 0, %v15532_v3 }
 0x654   :  { %v6559_v20 = vadd.f32 %v6558_v23, %v6544_v52  ;;  %v6596_v12 = vadd.f32 %v6595_v43, %v6581_v31 }
 0x656   :  { %v6560_v10 = vadd.f32 %v6559_v20, %v6545_v25  ;;  %v6597_v57 = vadd.f32 %v6596_v12, %v6582_v63 }
 0x658   :  { %v6561_v53 = vrot.slane %v6560_v10, 4  ;;  %v6598_v28 = vadd.f32 %v6597_v57, %v6583_v22 }
 0x65a   :  { %v6562_v29 = vadd.f32 %v6561_v53, %v6560_v10  ;;  %v6599_v2 = vrot.slane %v6598_v28, 4 }
 0x65c   :  { %v6563_v58 = vrot.slane %v6562_v29, 2  ;;  %v6600_v50 = vadd.f32 %v6599_v2, %v6598_v28 }
 0x65e   :  { %v6564_v19 = vadd.f32 %v6563_v58, %v6562_v29  ;;  %v6601_v36 = vrot.slane %v6600_v50, 2 }
 0x660   :  { %v6565_v27 = vrot.slane %v6564_v19, 1  ;;  %v6602_v4 = vadd.f32 %v6601_v36, %v6600_v50  ;;  %v7443_v36 = vld [vmem:[%s14369_s6] ss:$0 sm:$0xff] }
 0x662   :  { %v6566_v9 = vadd.f32 %v6565_v27, %v6564_v19  ;;  %v6603_v26 = vrot.slane %v6602_v4, 1 }
 0x664   :  { %v6567_v35 = vmul.f32 0.010204081, %v6566_v9  ;;  %v6604_v24 = vadd.f32 %v6603_v26, %v6602_v4 }
 0x666   :  { %v6605_v41 = vmul.f32 0.010204081, %v6604_v24  ;;  %v6606_v40 = vmul.f32 %v6567_v35, %v6567_v35 }
 0x668   :  { %v6607_v54 = vsub.f32 %v6605_v41, %v6606_v40 }
 0x66a   :  { %v6608_v59 = vmax.f32 %v6607_v54, 0.0 }
 0x66c   :  { %v6609_v5 = vadd.f32 1e-05, %v6608_v59 }
 0x66e   :  { %9002 = vrsqrt.f32 %v6609_v5 }
 0x67b   :  { %v9003_v21 = vpop.eup %9002 }
 0x67c   :  { %v6611_v17 = vmul.f32 %v15533_v60, %v9003_v21 }
 0x67e   :  { %v6612_v47 = vmul.f32 %v6611_v17, %v6567_v35  ;;  %v6620_v48 = vrot.slane %v6611_v17, %v6619_v46 }
 0x680   :  { %v6614_v45 = vrot.slane %v6612_v47, 7  ;;  %v6634_v38 = vmul.f32 %v6620_v48, %v6527_v44  ;;  %v6629_v14 = vmul.f32 %v6620_v48, %v14260_v16  ;;  %v6630_v49 = vmul.f32 %v6620_v48, %v14271_v33 }
 0x681   :  { %v6631_v7 = vmul.f32 %v6620_v48, %v14269_v56  ;;  %v6632_v51 = vmul.f32 %v6620_v48, %v14274_v11  ;;  %v6621_v55 = vmul.f32 %v6620_v48, %v14209_v39  ;;  %v6622_v37 = vmul.f32 %v6620_v48, %v14220_v13 }
 0x682   :  { %v6616_v8 = vsub.f32 %v1038_v18, %v6614_v45  ;;  %v6623_v52 = vmul.f32 %v6620_v48, %v14218_v62  ;;  %v6633_v43 = vmul.f32 %v6620_v48, %v14284_v30  ;;  %v6624_v16 = vmul.f32 %v6620_v48, %v14224_v1 }
 0x683   :  { %v6635_v25 = vmul.f32 %v6620_v48, %v6528_v6  ;;  %v6636_v33 = vmul.f32 %v6620_v48, %v6529_v42  ;;  %v6625_v23 = vmul.f32 %v6620_v48, %v14236_v32  ;;  %v6626_v56 = vmul.f32 %v6620_v48, %v14246_v61 }
 0x684   :  { %v6640_v44 = vrot.slane %v6616_v8, %v15534_v34  ;;  %v6627_v11 = vmul.f32 %v6620_v48, %v14244_v15  ;;  %v6628_v39 = vmul.f32 %v6620_v48, %v14249_v0 }
 0x686   :  { %v6641_v13 = vadd.f32 %v6640_v44, %v6621_v55  ;;  %v6642_v31 = vadd.f32 %v6640_v44, %v6622_v37  ;;  %v6649_v62 = vadd.f32 %v6640_v44, %v6629_v14  ;;  %v6650_v63 = vadd.f32 %v6640_v44, %v6630_v49 }
 0x687   :  { %v6643_v30 = vadd.f32 %v6640_v44, %v6623_v52  ;;  %v6644_v20 = vadd.f32 %v6640_v44, %v6624_v16  ;;  %v6651_v12 = vadd.f32 %v6640_v44, %v6631_v7  ;;  %v6652_v22 = vadd.f32 %v6640_v44, %v6632_v51 }
 0x688   :  { %v6657_v10 = vpack.c.bf16 %v6642_v31, %v6641_v13  ;;  %v6661_v1 = vpack.c.bf16 %v6650_v63, %v6649_v62  ;;  %v6645_v6 = vadd.f32 %v6640_v44, %v6625_v23  ;;  %v6646_v42 = vadd.f32 %v6640_v44, %v6626_v56 }
 0x689   :  { %v6658_v57 = vpack.c.bf16 %v6644_v20, %v6643_v30  ;;  %v6662_v32 = vpack.c.bf16 %v6652_v22, %v6651_v12  ;;  %v6653_v53 = vadd.f32 %v6640_v44, %v6633_v43  ;;  %v6654_v61 = vadd.f32 %v6640_v44, %v6634_v38 }
 0x68a   :  { %8560 = vmatprep.mubr.bf16.mxu0 %v6657_v10  ;;  %8568 = vmatprep.mubr.bf16.mxu1 %v6661_v1  ;;  %v6659_v15 = vpack.c.bf16 %v6646_v42, %v6645_v6  ;;  %v6647_v0 = vadd.f32 %v6640_v44, %v6627_v11  ;;  %v6648_v28 = vadd.f32 %v6640_v44, %v6628_v39 }
 0x68b   :  { %8561 = vmatmul.mubr.bf16.vlgmr.msra.gmra.mxu0 %v6658_v57  ;;  %8569 = vmatmul.mubr.bf16.vlgmr.msra.gmra.mxu1 %v6662_v32  ;;  %v6663_v29 = vpack.c.bf16 %v6654_v61, %v6653_v53  ;;  %v6655_v2 = vadd.f32 %v6640_v44, %v6635_v25  ;;  %v6656_v58 = vadd.f32 %v6640_v44, %v6636_v33 }
 0x68c   :  { %8564 = vmatprep.mubr.bf16.mxu0 %v6659_v15  ;;  %v6660_v50 = vpack.c.bf16 %v6648_v28, %v6647_v0 }
 0x68d   :  { %8572 = vmatprep.mubr.bf16.mxu1 %v6663_v29  ;;  %v6664_v19 = vpack.c.bf16 %v6656_v58, %v6655_v2 }
 0x693   :  { %8565 = vmatmul.mubr.bf16.gmra.mxu0 %v6660_v50  ;;  %8573 = vmatmul.mubr.bf16.gmra.mxu1 %v6664_v19 }
 0x74b   :  { %v8562_v27 = vpop.f32.mrf.mxu0  ;;  %v8570_v4 = vpop.f32.mrf.mxu1 }
 0x74c   :  { %v6779_v9 = vadd.f32 %v8562_v27, %v7443_v36  ;;  %v6811_v26 = vadd.f32 %v8570_v4, %v7443_v36 }
 0x74d   :  { %v6770_v35 = vpop.f32.mrf.mxu0  ;;  %v6802_v24 = vpop.f32.mrf.mxu1 }
 0x74e   :  { %6835 = vst [vmem:[%s14370_s9 + $0x10] sm:$0xff] %v6779_v9  ;;  %6843 = vst [vmem:[%s14370_s9 + $0x50] sm:$0xff] %v6811_v26  ;;  %v6771_v41 = vadd.f32 %v7443_v36, %v6770_v35  ;;  %v6803_v40 = vadd.f32 %v7443_v36, %v6802_v24 }
 0x74f   :  { %v8563_v54 = vpop.f32.mrf.mxu0  ;;  %v8571_v59 = vpop.f32.mrf.mxu1 }
 0x750   :  { %6833 = vst [vmem:[%s14370_s9] sm:$0xff] %v6771_v41  ;;  %6841 = vst [vmem:[%s14370_s9 + $0x40] sm:$0xff] %v6803_v40  ;;  %v6782_v5 = vadd.f32 %v8563_v54, %v7443_v36  ;;  %v6814_v3 = vadd.f32 %v8571_v59, %v7443_v36 }
 0x751   :  { %v6773_v46 = vpop.f32.mrf.mxu0  ;;  %v6805_v21 = vpop.f32.mrf.mxu1 }
 0x752   :  { %6836 = vst [vmem:[%s14370_s9 + $0x18] sm:$0xff] %v6782_v5  ;;  %6844 = vst [vmem:[%s14370_s9 + $0x58] sm:$0xff] %v6814_v3  ;;  %v6774_v60 = vadd.f32 %v7443_v36, %v6773_v46  ;;  %v6806_v17 = vadd.f32 %v7443_v36, %v6805_v21 }
 0x753   :  { %v8566_v47 = vpop.f32.mrf.mxu0  ;;  %v8574_v48 = vpop.f32.mrf.mxu1 }
 0x754   :  { %6834 = vst [vmem:[%s14370_s9 + $0x8] sm:$0xff] %v6774_v60  ;;  %6842 = vst [vmem:[%s14370_s9 + $0x48] sm:$0xff] %v6806_v17  ;;  %v6795_v18 = vadd.f32 %v8566_v47, %v7443_v36  ;;  %v6827_v45 = vadd.f32 %v8574_v48, %v7443_v36 }
 0x755   :  { %v6786_v38 = vpop.f32.mrf.mxu0  ;;  %v6818_v14 = vpop.f32.mrf.mxu1 }
 0x756   :  { %6839 = vst [vmem:[%s14370_s9 + $0x30] sm:$0xff] %v6795_v18  ;;  %6847 = vst [vmem:[%s14370_s9 + $0x70] sm:$0xff] %v6827_v45  ;;  %v6787_v49 = vadd.f32 %v7443_v36, %v6786_v38  ;;  %v6819_v8 = vadd.f32 %v7443_v36, %v6818_v14 }
 0x757   :  { %v8567_v7 = vpop.f32.mrf.mxu0  ;;  %v8575_v51 = vpop.f32.mrf.mxu1 }
 0x758   :  { %6837 = vst [vmem:[%s14370_s9 + $0x20] sm:$0xff] %v6787_v49  ;;  %6845 = vst [vmem:[%s14370_s9 + $0x60] sm:$0xff] %v6819_v8  ;;  %v6798_v55 = vadd.f32 %v8567_v7, %v7443_v36  ;;  %v6830_v37 = vadd.f32 %v8575_v51, %v7443_v36 }
 0x759   :  { %v6789_v52 = vpop.f32.mrf.mxu0  ;;  %v6821_v43 = vpop.f32.mrf.mxu1 }
 0x75a   :  { %6840 = vst [vmem:[%s14370_s9 + $0x38] sm:$0xff] %v6798_v55  ;;  %6848 = vst [vmem:[%s14370_s9 + $0x78] sm:$0xff] %v6830_v37  ;;  %v6790_v34 = vadd.f32 %v7443_v36, %v6789_v52  ;;  %v6822_v44 = vadd.f32 %v7443_v36, %v6821_v43 }
 0x75c   :  { %6838 = vst [vmem:[%s14370_s9 + $0x28] sm:$0xff] %v6790_v34  ;;  %6846 = vst [vmem:[%s14370_s9 + $0x68] sm:$0xff] %v6822_v44 }

</bundles_post_ra>
